<compile_context>
chip_gen: v6e
topology: v6e:2x2x1
jax: 0.10.0
libtpu: 0.0.40
codegen_flags: <defaults>
</compile_context>

<pallas_src>
import functools

import jax
import jax.numpy as jnp
from jax import lax
from jax.experimental import pallas as pl
from jax.experimental.pallas import tpu as pltpu

# ---------------- configuration (small, consistent with the module) ----------
B = 2          # batch
CP = 16        # input_size (features per timestep)
T = 8          # sequence length
HIDDEN = 8     # hidden_size  -> LSTM output width 2*HIDDEN = 16
OUT_CH = 4     # out_channels of the inner ConvRes
CIN_CH = 4     # cin_channels
F0 = 2 * HIDDEN * OUT_CH   # 64  (input to lineal1)
F1 = 9 * CIN_CH            # 36
F2 = 3 * CIN_CH            # 12
F3 = CIN_CH                # 4

_VMEM = functools.partial(pl.BlockSpec, memory_space=pltpu.MemorySpace.VMEM)


def _sig(v):
    # sigmoid via tanh: one EUP op instead of exp + divide on the serial path
    return 0.5 * (jnp.tanh(0.5 * v) + 1.0)


def _bn_train(v, gamma, beta):
    # BatchNorm2d, training-mode batch statistics over (B, spatial) per channel
    mu = jnp.mean(v)
    var = jnp.mean(jnp.square(v - mu))
    return (v - mu) * lax.rsqrt(var + 1e-5) * gamma + beta


# ------------------------------ fused kernel ---------------------------------
def body_kernel(
    x_ref,                      # (T*B, CP)  rows ordered (t, b), raw (pre-ReLU)
    wih_ref,                    # (CP, 8H)   [fwd i,f,g,o | rev i,f,g,o]
    whh_ref,                    # (2H, 8H)   block-diagonal [whh_f 0; 0 whh_r]
    bias_ref,                   # (1, 8H)    b_ih + b_hh, both directions
    l_dw_ref,                   # (1, 2)     left  k=1 depthwise [w, b]
    l_ch_ref,                   # (4, C)     left  rows: pw_w, pw_b, bn_gamma, bn_beta
    r1_dw_ref,                  # (1, 10)    right1 k=3 depthwise [9 taps, b]
    r1_ch_ref,                  # (4, C)     right1 rows: pw_w, pw_b, bn_gamma, bn_beta
    r2_dw_ref,                  # (C, 10)    right2 k=3 depthwise per in-channel [9 taps, b]
    r2_pw_ref,                  # (C, C)     right2 pointwise [out_ch, in_ch]
    r2_ch_ref,                  # (3, C)     right2 rows: pw_b, bn_gamma, bn_beta
    w1_ref, b1_ref,             # (F0, F1), (1, F1)
    w2_ref, b2_ref,             # (F1, F2), (1, F2)
    w3_ref, b3_ref,             # (F2, F3), (1, F3)
    o_ref,                      # (B, T, F3)
    gxc_ref,                    # (T, B, 8H)  pre-paired input-projected gates
    hf_ref,                     # (T, B, H)   forward hidden states
    hr_ref,                     # (T, B, H)   reverse hidden states (natural time order)
    upad_ref,                   # (B, T+2, 2H+2)    zero-padded relu(LSTM) image
    r1pad_ref,                  # (C, B, T+2, 2H+2) zero-padded relu(right1)
    r2pad_ref,                  # (C, B, T+2, 2H+2) -inf-padded right2 (for max-pool)
    feat_ref,                   # (B*T, 2H*C)  head input, rows = (b, t)
):
    Tn, Bn, H = hf_ref.shape
    G = 4 * H
    Y = 2 * H
    Cout = r1pad_ref.shape[0]

    # ---------------- scratch init ------------------------------------------
    upad_ref[...] = jnp.zeros_like(upad_ref)
    r1pad_ref[...] = jnp.zeros_like(r1pad_ref)
    r2pad_ref[...] = jnp.full(r2pad_ref.shape, -1e30, dtype=jnp.float32)

    # ---------------- Bi-LSTM ------------------------------------------------
    # hoisted input projection: one matmul for all timesteps x both directions
    xr = jnp.maximum(x_ref[...], 0.0)                       # ReLU before the LSTM
    gx = jnp.dot(xr, wih_ref[...], preferred_element_type=jnp.float32) + bias_ref[...]
    # pre-pair the directions: gxc[s] = [fwd gates at t=s | rev gates at t=T-1-s]
    for t in range(Tn):
        gxc_ref[t, :, 0:G] = gx[t * Bn:(t + 1) * Bn, 0:G]
        gxc_ref[t, :, G:2 * G] = gx[(Tn - 1 - t) * Bn:(Tn - t) * Bn, G:2 * G]

    whh = whh_ref[...]

    def step(s, carry):
        h_cat, c_f, c_r = carry                              # (B,2H), (B,H), (B,H)
        gates = gxc_ref[s] + jnp.dot(h_cat, whh, preferred_element_type=jnp.float32)
        gf = gates[:, 0:G]
        gr = gates[:, G:2 * G]
        i_f = _sig(gf[:, 0:H]); f_f = _sig(gf[:, H:2 * H])
        g_f = jnp.tanh(gf[:, 2 * H:3 * H]); o_f = _sig(gf[:, 3 * H:4 * H])
        i_r = _sig(gr[:, 0:H]); f_r = _sig(gr[:, H:2 * H])
        g_r = jnp.tanh(gr[:, 2 * H:3 * H]); o_r = _sig(gr[:, 3 * H:4 * H])
        c_f = f_f * c_f + i_f * g_f
        c_r = f_r * c_r + i_r * g_r
        h_f = o_f * jnp.tanh(c_f)
        h_r = o_r * jnp.tanh(c_r)
        hf_ref[s] = h_f
        hr_ref[Tn - 1 - s] = h_r
        return jnp.concatenate([h_f, h_r], axis=-1), c_f, c_r

    init = (jnp.zeros((Bn, Y), jnp.float32),
            jnp.zeros((Bn, H), jnp.float32),
            jnp.zeros((Bn, H), jnp.float32))
    lax.fori_loop(0, Tn, step, init, unroll=True)

    # ------------- relu(LSTM) image, zero-padded, (time, freq) layout --------
    hf = hf_ref[...]
    hr = hr_ref[...]
    for b in range(Bn):
        upad_ref[b, 1:1 + Tn, 1:1 + H] = jnp.maximum(hf[:, b, :], 0.0)
        upad_ref[b, 1:1 + Tn, 1 + H:1 + Y] = jnp.maximum(hr[:, b, :], 0.0)
    relu_u = upad_ref[:, 1:1 + Tn, 1:1 + Y]                  # (B, T, 2H)

    # ------------- left ConvStep: k=1 SepConv == per-channel affine + BN -----
    l_dw = l_dw_ref[...]
    l_ch = l_ch_ref[...]
    lefts = []
    for oc in range(Cout):
        scale = l_dw[0, 0] * l_ch[0, oc]
        shift = l_dw[0, 1] * l_ch[0, oc] + l_ch[1, oc]
        lefts.append(_bn_train(relu_u * scale + shift, l_ch[2, oc], l_ch[3, oc]))

    # ------------- right ConvStep 1: depthwise 3x3 (Cin=1) + pointwise + BN --
    r1_dw = r1_dw_ref[...]
    r1_ch = r1_ch_ref[...]
    dw1 = jnp.zeros_like(relu_u)
    for dt in range(3):
        for df in range(3):
            dw1 = dw1 + upad_ref[:, dt:dt + Tn, df:df + Y] * r1_dw[0, df * 3 + dt]
    dw1 = dw1 + r1_dw[0, 9]
    for oc in range(Cout):
        pre = dw1 * r1_ch[0, oc] + r1_ch[1, oc]
        # store relu(BN(...)) = prologue ReLU of right2, zero border == relu(0)
        r1pad_ref[oc, :, 1:1 + Tn, 1:1 + Y] = jnp.maximum(
            _bn_train(pre, r1_ch[2, oc], r1_ch[3, oc]), 0.0)

    # ------------- right ConvStep 2: depthwise 3x3 (Cin=C) + pointwise + BN --
    r2_dw = r2_dw_ref[...]
    r2_pw = r2_pw_ref[...]
    r2_ch = r2_ch_ref[...]
    dw2 = []
    for c in range(Cout):
        acc = jnp.zeros_like(relu_u)
        for dt in range(3):
            for df in range(3):
                acc = acc + r1pad_ref[c, :, dt:dt + Tn, df:df + Y] * r2_dw[c, df * 3 + dt]
        dw2.append(acc + r2_dw[c, 9])
    for oc in range(Cout):
        pre = dw2[0] * r2_pw[oc, 0]
        for c in range(1, Cout):
            pre = pre + dw2[c] * r2_pw[oc, c]
        pre = pre + r2_ch[0, oc]
        r2pad_ref[oc, :, 1:1 + Tn, 1:1 + Y] = _bn_train(pre, r2_ch[1, oc], r2_ch[2, oc])

    # ------------- 3x3 max-pool (stride 1, -inf pad) + residual + pack -------
    for oc in range(Cout):
        rp = r2pad_ref[oc]                                   # (B, T+2, 2H+2)
        m = rp[:, 1:1 + Tn, 1:1 + Y]                         # center tap (always valid)
        for dt in range(3):
            for df in range(3):
                if dt == 1 and df == 1:
                    continue
                m = jnp.maximum(m, rp[:, dt:dt + Tn, df:df + Y])
        res_oc = lefts[oc] + m                               # (B, T, 2H)
        for b in range(Bn):
            # feature index = oc*2H + freq, matching torch's h.view(B, -1, T)
            feat_ref[b * Tn:(b + 1) * Tn, oc * Y:(oc + 1) * Y] = res_oc[b]

    # ------------- Linear head: 3 x (one matmul over all (b, t) columns) -----
    hm = feat_ref[...]                                       # (B*T, F0)
    y1 = jnp.maximum(jnp.dot(hm, w1_ref[...], preferred_element_type=jnp.float32)
                     + b1_ref[...], 0.0)
    y2 = jnp.maximum(jnp.dot(y1, w2_ref[...], preferred_element_type=jnp.float32)
                     + b2_ref[...], 0.0)
    y3 = jnp.maximum(jnp.dot(y2, w3_ref[...], preferred_element_type=jnp.float32)
                     + b3_ref[...], 0.0)
    for b in range(Bn):
        o_ref[b] = y3[b * Tn:(b + 1) * Tn, :]


# ------------------------------ full forward ---------------------------------
PARAM_ORDER = ('wih', 'whh', 'bias',
               'l_dw', 'l_ch',
               'r1_dw', 'r1_ch',
               'r2_dw', 'r2_pw', 'r2_ch',
               'w1', 'b1', 'w2', 'b2', 'w3', 'b3')


@jax.jit
def body_net_forward(x, p):
    # x: (B, C_p, T) float32
    Bn, _, Tn = x.shape
    H = HIDDEN
    Y = 2 * H
    # rows ordered (t, b) so the hoisted LSTM input projection is one matmul
    x_flat = jnp.transpose(x, (2, 0, 1)).reshape(Tn * Bn, CP)
    args = [x_flat] + [p[k] for k in PARAM_ORDER]

    out_btf = pl.pallas_call(
        body_kernel,
        out_shape=jax.ShapeDtypeStruct((Bn, Tn, F3), jnp.float32),
        in_specs=[_VMEM()] * len(args),
        out_specs=_VMEM(),
        scratch_shapes=[
            pltpu.VMEM((Tn, Bn, 8 * H), jnp.float32),              # gxc
            pltpu.VMEM((Tn, Bn, H), jnp.float32),                  # hf
            pltpu.VMEM((Tn, Bn, H), jnp.float32),                  # hr
            pltpu.VMEM((Bn, Tn + 2, Y + 2), jnp.float32),          # upad
            pltpu.VMEM((OUT_CH, Bn, Tn + 2, Y + 2), jnp.float32),  # r1pad
            pltpu.VMEM((OUT_CH, Bn, Tn + 2, Y + 2), jnp.float32),  # r2pad
            pltpu.VMEM((Bn * Tn, F0), jnp.float32),                # feat
        ],
    )(*args)
    return jnp.transpose(out_btf, (0, 2, 1))                       # (B, F3, T)


# --------------------------- deterministic params ----------------------------
def init_params(key):
    ks = jax.random.split(key, 19)

    def rnd(i, shape, scale=0.1):
        return jax.random.normal(ks[i], shape, dtype=jnp.float32) * scale

    H = HIDDEN
    G = 4 * H
    # Bi-LSTM: weights pre-transposed for x @ W, gate order i,f,g,o per direction;
    # bias = b_ih + b_hh; columns packed [fwd | rev]; Whh packed block-diagonally.
    wih_f, whh_f, b_f = rnd(0, (CP, G)), rnd(1, (H, G)), rnd(2, (1, G))
    wih_r, whh_r, b_r = rnd(3, (CP, G)), rnd(4, (H, G)), rnd(5, (1, G))
    wih = jnp.concatenate([wih_f, wih_r], axis=1)                 # (CP, 8H)
    whh = (jnp.zeros((2 * H, 2 * G), jnp.float32)
           .at[:H, :G].set(whh_f).at[H:, G:].set(whh_r))          # (2H, 8H)
    bias = jnp.concatenate([b_f, b_r], axis=1)                    # (1, 8H)

    def ch_params(i):   # rows: pointwise w, pointwise b, BN gamma, BN beta
        return jnp.concatenate([rnd(i, (2, OUT_CH)),
                                jnp.ones((1, OUT_CH), jnp.float32),
                                jnp.zeros((1, OUT_CH), jnp.float32)], axis=0)

    return {
        'wih': wih, 'whh': whh, 'bias': bias,
        # left ConvStep (SepConv k=1, 1 -> OUT_CH)
        'l_dw': rnd(6, (1, 2)),                    # [depthwise w, depthwise b]
        'l_ch': ch_params(7),
        # right ConvStep 1 (SepConv k=3, 1 -> OUT_CH)
        'r1_dw': rnd(8, (1, 10)),                  # [9 taps (freq-major), dw bias]
        'r1_ch': ch_params(9),
        # right ConvStep 2 (SepConv k=3, OUT_CH -> OUT_CH)
        'r2_dw': rnd(10, (OUT_CH, 10)),            # per in-channel [9 taps, dw bias]
        'r2_pw': rnd(11, (OUT_CH, OUT_CH)),        # pointwise [out, in]
        'r2_ch': jnp.concatenate([rnd(12, (1, OUT_CH)),            # pointwise bias
                                  jnp.ones((1, OUT_CH), jnp.float32),
                                  jnp.zeros((1, OUT_CH), jnp.float32)], axis=0),
        # Linear head, stored (in, out) for row-major columns @ W
        'w1': rnd(13, (F0, F1)), 'b1': rnd(14, (1, F1)),
        'w2': rnd(15, (F1, F2)), 'b2': rnd(16, (1, F2)),
        'w3': rnd(17, (F2, F3)), 'b3': rnd(18, (1, F3)),
    }


if __name__ == "__main__":
    key = jax.random.PRNGKey(0)
    kx, kp = jax.random.split(key)
    x = jax.random.normal(kx, (B, CP, T), dtype=jnp.float32)   # 3-D input path
    params = init_params(kp)

    out = body_net_forward(x, params)
    out = jax.block_until_ready(out)

    assert out.shape == (B, CIN_CH, T), out.shape
    assert bool(jnp.all(jnp.isfinite(out)))
    # final ReLU: output must be non-negative
    assert bool(jnp.all(out >= 0.0))
    print("KERNEL_OK")
</pallas_src>

<mosaic_0001>
module attributes {stable_mosaic.version = 11 : i64} {
  func.func @body_kernel(%arg0: memref<16x16xf32, #tpu.memory_space<vmem>>, %arg1: memref<16x64xf32, #tpu.memory_space<vmem>>, %arg2: memref<16x64xf32, #tpu.memory_space<vmem>>, %arg3: memref<1x64xf32, #tpu.memory_space<vmem>>, %arg4: memref<1x2xf32, #tpu.memory_space<vmem>>, %arg5: memref<4x4xf32, #tpu.memory_space<vmem>>, %arg6: memref<1x10xf32, #tpu.memory_space<vmem>>, %arg7: memref<4x4xf32, #tpu.memory_space<vmem>>, %arg8: memref<4x10xf32, #tpu.memory_space<vmem>>, %arg9: memref<4x4xf32, #tpu.memory_space<vmem>>, %arg10: memref<3x4xf32, #tpu.memory_space<vmem>>, %arg11: memref<64x36xf32, #tpu.memory_space<vmem>>, %arg12: memref<1x36xf32, #tpu.memory_space<vmem>>, %arg13: memref<36x12xf32, #tpu.memory_space<vmem>>, %arg14: memref<1x12xf32, #tpu.memory_space<vmem>>, %arg15: memref<12x4xf32, #tpu.memory_space<vmem>>, %arg16: memref<1x4xf32, #tpu.memory_space<vmem>>, %arg17: memref<2x8x4xf32, #tpu.memory_space<vmem>>, %arg18: memref<8x2x64xf32, #tpu.memory_space<vmem>>, %arg19: memref<8x2x8xf32, #tpu.memory_space<vmem>>, %arg20: memref<8x2x8xf32, #tpu.memory_space<vmem>>, %arg21: memref<2x10x18xf32, #tpu.memory_space<vmem>>, %arg22: memref<4x2x10x18xf32, #tpu.memory_space<vmem>>, %arg23: memref<4x2x10x18xf32, #tpu.memory_space<vmem>>, %arg24: memref<16x64xf32, #tpu.memory_space<vmem>>) attributes {dimension_semantics = [], scalar_prefetch = 0 : i64, scratch_operands = 7 : i64, tpu.core_type = #tpu.core_type<tc>} {
    %cst = arith.constant 0.000000e+00 : f32
    %0 = vector.broadcast %cst : f32 to vector<2x10x18xf32>
    %c0 = arith.constant 0 : index
    %c0_0 = arith.constant 0 : index
    %c0_1 = arith.constant 0 : index
    %1 = vector.load %arg21[%c0, %c0_0, %c0_1] : memref<2x10x18xf32, #tpu.memory_space<vmem>>, vector<2x10x18xf32>
    tpu.vector_store %arg21[%c0, %c0_0, %c0_1], %0 {strides = array<i32>} : memref<2x10x18xf32, #tpu.memory_space<vmem>>, vector<2x10x18xf32>,
    %cst_2 = arith.constant 0.000000e+00 : f32
    %2 = vector.broadcast %cst_2 : f32 to vector<4x2x10x18xf32>
    %c0_3 = arith.constant 0 : index
    %c0_4 = arith.constant 0 : index
    %c0_5 = arith.constant 0 : index
    %c0_6 = arith.constant 0 : index
    %3 = vector.load %arg22[%c0_3, %c0_4, %c0_5, %c0_6] : memref<4x2x10x18xf32, #tpu.memory_space<vmem>>, vector<4x2x10x18xf32>
    tpu.vector_store %arg22[%c0_3, %c0_4, %c0_5, %c0_6], %2 {strides = array<i32>} : memref<4x2x10x18xf32, #tpu.memory_space<vmem>>, vector<4x2x10x18xf32>,
    %cst_7 = arith.constant -1.000000e+30 : f32
    %4 = vector.broadcast %cst_7 : f32 to vector<4x2x10x18xf32>
    %c0_8 = arith.constant 0 : index
    %c0_9 = arith.constant 0 : index
    %c0_10 = arith.constant 0 : index
    %c0_11 = arith.constant 0 : index
    %5 = vector.load %arg23[%c0_8, %c0_9, %c0_10, %c0_11] : memref<4x2x10x18xf32, #tpu.memory_space<vmem>>, vector<4x2x10x18xf32>
    tpu.vector_store %arg23[%c0_8, %c0_9, %c0_10, %c0_11], %4 {strides = array<i32>} : memref<4x2x10x18xf32, #tpu.memory_space<vmem>>, vector<4x2x10x18xf32>,
    %c0_12 = arith.constant 0 : index
    %c0_13 = arith.constant 0 : index
    %6 = vector.load %arg0[%c0_12, %c0_13] : memref<16x16xf32, #tpu.memory_space<vmem>>, vector<16x16xf32>
    %cst_14 = arith.constant 0.000000e+00 : f32
    %7 = vector.broadcast %cst_14 : f32 to vector<16x16xf32>
    %8 = arith.maximumf %6, %7 : vector<16x16xf32>
    %c0_15 = arith.constant 0 : index
    %c0_16 = arith.constant 0 : index
    %9 = vector.load %arg1[%c0_15, %c0_16] : memref<16x64xf32, #tpu.memory_space<vmem>>, vector<16x64xf32>
    %cst_17 = arith.constant dense<0.000000e+00> : vector<16x64xf32>
    %10 = tpu.matmul %8, %9, %cst_17 {dimension_numbers = #tpu.dot_dimension_numbers<[1], [0], [0], [1], [0, 0, 1, 1], [], []>} : vector<16x16xf32>, vector<16x64xf32>, vector<16x64xf32> -> vector<16x64xf32>
    %c0_18 = arith.constant 0 : index
    %c0_19 = arith.constant 0 : index
    %11 = vector.load %arg3[%c0_18, %c0_19] : memref<1x64xf32, #tpu.memory_space<vmem>>, vector<1x64xf32>
    %12 = vector.broadcast %11 : vector<1x64xf32> to vector<16x64xf32>
    %13 = arith.addf %10, %12 : vector<16x64xf32>
    %14 = vector.extract_strided_slice %13 {offsets = [0, 0], sizes = [2, 32], strides = [1, 1]} : vector<16x64xf32> to vector<2x32xf32>
    %c0_20 = arith.constant 0 : index
    %c0_21 = arith.constant 0 : index
    %c0_22 = arith.constant 0 : index
    %15 = vector.load %arg18[%c0_20, %c0_21, %c0_22] : memref<8x2x64xf32, #tpu.memory_space<vmem>>, vector<1x2x32xf32>
    %16 = vector.shape_cast %15 : vector<1x2x32xf32> to vector<2x32xf32>
    %17 = vector.shape_cast %14 : vector<2x32xf32> to vector<1x2x32xf32>
    tpu.vector_store %arg18[%c0_20, %c0_21, %c0_22], %17 {strides = array<i32>} : memref<8x2x64xf32, #tpu.memory_space<vmem>>, vector<1x2x32xf32>,
    %18 = vector.extract_strided_slice %13 {offsets = [14, 32], sizes = [2, 32], strides = [1, 1]} : vector<16x64xf32> to vector<2x32xf32>
    %c0_23 = arith.constant 0 : index
    %c0_24 = arith.constant 0 : index
    %c32 = arith.constant 32 : index
    %19 = vector.load %arg18[%c0_23, %c0_24, %c32] : memref<8x2x64xf32, #tpu.memory_space<vmem>>, vector<1x2x32xf32>
    %20 = vector.shape_cast %19 : vector<1x2x32xf32> to vector<2x32xf32>
    %21 = vector.shape_cast %18 : vector<2x32xf32> to vector<1x2x32xf32>
    tpu.vector_store %arg18[%c0_23, %c0_24, %c32], %21 {strides = array<i32>} : memref<8x2x64xf32, #tpu.memory_space<vmem>>, vector<1x2x32xf32>,
    %22 = vector.extract_strided_slice %13 {offsets = [2, 0], sizes = [2, 32], strides = [1, 1]} : vector<16x64xf32> to vector<2x32xf32>
    %c1 = arith.constant 1 : index
    %c0_25 = arith.constant 0 : index
    %c0_26 = arith.constant 0 : index
    %23 = vector.load %arg18[%c1, %c0_25, %c0_26] : memref<8x2x64xf32, #tpu.memory_space<vmem>>, vector<1x2x32xf32>
    %24 = vector.shape_cast %23 : vector<1x2x32xf32> to vector<2x32xf32>
    %25 = vector.shape_cast %22 : vector<2x32xf32> to vector<1x2x32xf32>
    tpu.vector_store %arg18[%c1, %c0_25, %c0_26], %25 {strides = array<i32>} : memref<8x2x64xf32, #tpu.memory_space<vmem>>, vector<1x2x32xf32>,
    %26 = vector.extract_strided_slice %13 {offsets = [12, 32], sizes = [2, 32], strides = [1, 1]} : vector<16x64xf32> to vector<2x32xf32>
    %c1_27 = arith.constant 1 : index
    %c0_28 = arith.constant 0 : index
    %c32_29 = arith.constant 32 : index
    %27 = vector.load %arg18[%c1_27, %c0_28, %c32_29] : memref<8x2x64xf32, #tpu.memory_space<vmem>>, vector<1x2x32xf32>
    %28 = vector.shape_cast %27 : vector<1x2x32xf32> to vector<2x32xf32>
    %29 = vector.shape_cast %26 : vector<2x32xf32> to vector<1x2x32xf32>
    tpu.vector_store %arg18[%c1_27, %c0_28, %c32_29], %29 {strides = array<i32>} : memref<8x2x64xf32, #tpu.memory_space<vmem>>, vector<1x2x32xf32>,
    %30 = vector.extract_strided_slice %13 {offsets = [4, 0], sizes = [2, 32], strides = [1, 1]} : vector<16x64xf32> to vector<2x32xf32>
    %c2 = arith.constant 2 : index
    %c0_30 = arith.constant 0 : index
    %c0_31 = arith.constant 0 : index
    %31 = vector.load %arg18[%c2, %c0_30, %c0_31] : memref<8x2x64xf32, #tpu.memory_space<vmem>>, vector<1x2x32xf32>
    %32 = vector.shape_cast %31 : vector<1x2x32xf32> to vector<2x32xf32>
    %33 = vector.shape_cast %30 : vector<2x32xf32> to vector<1x2x32xf32>
    tpu.vector_store %arg18[%c2, %c0_30, %c0_31], %33 {strides = array<i32>} : memref<8x2x64xf32, #tpu.memory_space<vmem>>, vector<1x2x32xf32>,
    %34 = vector.extract_strided_slice %13 {offsets = [10, 32], sizes = [2, 32], strides = [1, 1]} : vector<16x64xf32> to vector<2x32xf32>
    %c2_32 = arith.constant 2 : index
    %c0_33 = arith.constant 0 : index
    %c32_34 = arith.constant 32 : index
    %35 = vector.load %arg18[%c2_32, %c0_33, %c32_34] : memref<8x2x64xf32, #tpu.memory_space<vmem>>, vector<1x2x32xf32>
    %36 = vector.shape_cast %35 : vector<1x2x32xf32> to vector<2x32xf32>
    %37 = vector.shape_cast %34 : vector<2x32xf32> to vector<1x2x32xf32>
    tpu.vector_store %arg18[%c2_32, %c0_33, %c32_34], %37 {strides = array<i32>} : memref<8x2x64xf32, #tpu.memory_space<vmem>>, vector<1x2x32xf32>,
    %38 = vector.extract_strided_slice %13 {offsets = [6, 0], sizes = [2, 32], strides = [1, 1]} : vector<16x64xf32> to vector<2x32xf32>
    %c3 = arith.constant 3 : index
    %c0_35 = arith.constant 0 : index
    %c0_36 = arith.constant 0 : index
    %39 = vector.load %arg18[%c3, %c0_35, %c0_36] : memref<8x2x64xf32, #tpu.memory_space<vmem>>, vector<1x2x32xf32>
    %40 = vector.shape_cast %39 : vector<1x2x32xf32> to vector<2x32xf32>
    %41 = vector.shape_cast %38 : vector<2x32xf32> to vector<1x2x32xf32>
    tpu.vector_store %arg18[%c3, %c0_35, %c0_36], %41 {strides = array<i32>} : memref<8x2x64xf32, #tpu.memory_space<vmem>>, vector<1x2x32xf32>,
    %42 = vector.extract_strided_slice %13 {offsets = [8, 32], sizes = [2, 32], strides = [1, 1]} : vector<16x64xf32> to vector<2x32xf32>
    %c3_37 = arith.constant 3 : index
    %c0_38 = arith.constant 0 : index
    %c32_39 = arith.constant 32 : index
    %43 = vector.load %arg18[%c3_37, %c0_38, %c32_39] : memref<8x2x64xf32, #tpu.memory_space<vmem>>, vector<1x2x32xf32>
    %44 = vector.shape_cast %43 : vector<1x2x32xf32> to vector<2x32xf32>
    %45 = vector.shape_cast %42 : vector<2x32xf32> to vector<1x2x32xf32>
    tpu.vector_store %arg18[%c3_37, %c0_38, %c32_39], %45 {strides = array<i32>} : memref<8x2x64xf32, #tpu.memory_space<vmem>>, vector<1x2x32xf32>,
    %46 = vector.extract_strided_slice %13 {offsets = [8, 0], sizes = [2, 32], strides = [1, 1]} : vector<16x64xf32> to vector<2x32xf32>
    %c4 = arith.constant 4 : index
    %c0_40 = arith.constant 0 : index
    %c0_41 = arith.constant 0 : index
    %47 = vector.load %arg18[%c4, %c0_40, %c0_41] : memref<8x2x64xf32, #tpu.memory_space<vmem>>, vector<1x2x32xf32>
    %48 = vector.shape_cast %47 : vector<1x2x32xf32> to vector<2x32xf32>
    %49 = vector.shape_cast %46 : vector<2x32xf32> to vector<1x2x32xf32>
    tpu.vector_store %arg18[%c4, %c0_40, %c0_41], %49 {strides = array<i32>} : memref<8x2x64xf32, #tpu.memory_space<vmem>>, vector<1x2x32xf32>,
    %50 = vector.extract_strided_slice %13 {offsets = [6, 32], sizes = [2, 32], strides = [1, 1]} : vector<16x64xf32> to vector<2x32xf32>
    %c4_42 = arith.constant 4 : index
    %c0_43 = arith.constant 0 : index
    %c32_44 = arith.constant 32 : index
    %51 = vector.load %arg18[%c4_42, %c0_43, %c32_44] : memref<8x2x64xf32, #tpu.memory_space<vmem>>, vector<1x2x32xf32>
    %52 = vector.shape_cast %51 : vector<1x2x32xf32> to vector<2x32xf32>
    %53 = vector.shape_cast %50 : vector<2x32xf32> to vector<1x2x32xf32>
    tpu.vector_store %arg18[%c4_42, %c0_43, %c32_44], %53 {strides = array<i32>} : memref<8x2x64xf32, #tpu.memory_space<vmem>>, vector<1x2x32xf32>,
    %54 = vector.extract_strided_slice %13 {offsets = [10, 0], sizes = [2, 32], strides = [1, 1]} : vector<16x64xf32> to vector<2x32xf32>
    %c5 = arith.constant 5 : index
    %c0_45 = arith.constant 0 : index
    %c0_46 = arith.constant 0 : index
    %55 = vector.load %arg18[%c5, %c0_45, %c0_46] : memref<8x2x64xf32, #tpu.memory_space<vmem>>, vector<1x2x32xf32>
    %56 = vector.shape_cast %55 : vector<1x2x32xf32> to vector<2x32xf32>
    %57 = vector.shape_cast %54 : vector<2x32xf32> to vector<1x2x32xf32>
    tpu.vector_store %arg18[%c5, %c0_45, %c0_46], %57 {strides = array<i32>} : memref<8x2x64xf32, #tpu.memory_space<vmem>>, vector<1x2x32xf32>,
    %58 = vector.extract_strided_slice %13 {offsets = [4, 32], sizes = [2, 32], strides = [1, 1]} : vector<16x64xf32> to vector<2x32xf32>
    %c5_47 = arith.constant 5 : index
    %c0_48 = arith.constant 0 : index
    %c32_49 = arith.constant 32 : index
    %59 = vector.load %arg18[%c5_47, %c0_48, %c32_49] : memref<8x2x64xf32, #tpu.memory_space<vmem>>, vector<1x2x32xf32>
    %60 = vector.shape_cast %59 : vector<1x2x32xf32> to vector<2x32xf32>
    %61 = vector.shape_cast %58 : vector<2x32xf32> to vector<1x2x32xf32>
    tpu.vector_store %arg18[%c5_47, %c0_48, %c32_49], %61 {strides = array<i32>} : memref<8x2x64xf32, #tpu.memory_space<vmem>>, vector<1x2x32xf32>,
    %62 = vector.extract_strided_slice %13 {offsets = [12, 0], sizes = [2, 32], strides = [1, 1]} : vector<16x64xf32> to vector<2x32xf32>
    %c6 = arith.constant 6 : index
    %c0_50 = arith.constant 0 : index
    %c0_51 = arith.constant 0 : index
    %63 = vector.load %arg18[%c6, %c0_50, %c0_51] : memref<8x2x64xf32, #tpu.memory_space<vmem>>, vector<1x2x32xf32>
    %64 = vector.shape_cast %63 : vector<1x2x32xf32> to vector<2x32xf32>
    %65 = vector.shape_cast %62 : vector<2x32xf32> to vector<1x2x32xf32>
    tpu.vector_store %arg18[%c6, %c0_50, %c0_51], %65 {strides = array<i32>} : memref<8x2x64xf32, #tpu.memory_space<vmem>>, vector<1x2x32xf32>,
    %66 = vector.extract_strided_slice %13 {offsets = [2, 32], sizes = [2, 32], strides = [1, 1]} : vector<16x64xf32> to vector<2x32xf32>
    %c6_52 = arith.constant 6 : index
    %c0_53 = arith.constant 0 : index
    %c32_54 = arith.constant 32 : index
    %67 = vector.load %arg18[%c6_52, %c0_53, %c32_54] : memref<8x2x64xf32, #tpu.memory_space<vmem>>, vector<1x2x32xf32>
    %68 = vector.shape_cast %67 : vector<1x2x32xf32> to vector<2x32xf32>
    %69 = vector.shape_cast %66 : vector<2x32xf32> to vector<1x2x32xf32>
    tpu.vector_store %arg18[%c6_52, %c0_53, %c32_54], %69 {strides = array<i32>} : memref<8x2x64xf32, #tpu.memory_space<vmem>>, vector<1x2x32xf32>,
    %70 = vector.extract_strided_slice %13 {offsets = [14, 0], sizes = [2, 32], strides = [1, 1]} : vector<16x64xf32> to vector<2x32xf32>
    %c7 = arith.constant 7 : index
    %c0_55 = arith.constant 0 : index
    %c0_56 = arith.constant 0 : index
    %71 = vector.load %arg18[%c7, %c0_55, %c0_56] : memref<8x2x64xf32, #tpu.memory_space<vmem>>, vector<1x2x32xf32>
    %72 = vector.shape_cast %71 : vector<1x2x32xf32> to vector<2x32xf32>
    %73 = vector.shape_cast %70 : vector<2x32xf32> to vector<1x2x32xf32>
    tpu.vector_store %arg18[%c7, %c0_55, %c0_56], %73 {strides = array<i32>} : memref<8x2x64xf32, #tpu.memory_space<vmem>>, vector<1x2x32xf32>,
    %74 = vector.extract_strided_slice %13 {offsets = [0, 32], sizes = [2, 32], strides = [1, 1]} : vector<16x64xf32> to vector<2x32xf32>
    %c7_57 = arith.constant 7 : index
    %c0_58 = arith.constant 0 : index
    %c32_59 = arith.constant 32 : index
    %75 = vector.load %arg18[%c7_57, %c0_58, %c32_59] : memref<8x2x64xf32, #tpu.memory_space<vmem>>, vector<1x2x32xf32>
    %76 = vector.shape_cast %75 : vector<1x2x32xf32> to vector<2x32xf32>
    %77 = vector.shape_cast %74 : vector<2x32xf32> to vector<1x2x32xf32>
    tpu.vector_store %arg18[%c7_57, %c0_58, %c32_59], %77 {strides = array<i32>} : memref<8x2x64xf32, #tpu.memory_space<vmem>>, vector<1x2x32xf32>,
    %c0_60 = arith.constant 0 : index
    %c0_61 = arith.constant 0 : index
    %78 = vector.load %arg2[%c0_60, %c0_61] : memref<16x64xf32, #tpu.memory_space<vmem>>, vector<16x64xf32>
    %cst_62 = arith.constant 0.000000e+00 : f32
    %79 = vector.broadcast %cst_62 : f32 to vector<2x16xf32>
    %cst_63 = arith.constant 0.000000e+00 : f32
    %80 = vector.broadcast %cst_63 : f32 to vector<2x8xf32>
    %cst_64 = arith.constant 0.000000e+00 : f32
    %81 = vector.broadcast %cst_64 : f32 to vector<2x8xf32>
    %c0_i32 = arith.constant 0 : i32
    %82 = arith.index_cast %c0_i32 : i32 to index
    %c0_65 = arith.constant 0 : index
    %c0_66 = arith.constant 0 : index
    %83 = vector.load %arg18[%82, %c0_65, %c0_66] : memref<8x2x64xf32, #tpu.memory_space<vmem>>, vector<1x2x64xf32>
    %84 = vector.shape_cast %83 : vector<1x2x64xf32> to vector<2x64xf32>
    %cst_67 = arith.constant dense<0.000000e+00> : vector<2x64xf32>
    %85 = tpu.matmul %79, %78, %cst_67 {dimension_numbers = #tpu.dot_dimension_numbers<[1], [0], [0], [1], [0, 0, 1, 1], [], []>} : vector<2x16xf32>, vector<16x64xf32>, vector<2x64xf32> -> vector<2x64xf32>
    %86 = arith.addf %84, %85 : vector<2x64xf32>
    %87 = vector.extract_strided_slice %86 {offsets = [0, 0], sizes = [2, 32], strides = [1, 1]} : vector<2x64xf32> to vector<2x32xf32>
    %88 = vector.extract_strided_slice %86 {offsets = [0, 32], sizes = [2, 32], strides = [1, 1]} : vector<2x64xf32> to vector<2x32xf32>
    %89 = vector.extract_strided_slice %87 {offsets = [0, 0], sizes = [2, 8], strides = [1, 1]} : vector<2x32xf32> to vector<2x8xf32>
    %cst_68 = arith.constant 5.000000e-01 : f32
    %90 = vector.broadcast %cst_68 : f32 to vector<2x8xf32>
    %91 = arith.mulf %90, %89 : vector<2x8xf32>
    %92 = math.tanh %91 : vector<2x8xf32>
    %cst_69 = arith.constant 1.000000e+00 : f32
    %93 = vector.broadcast %cst_69 : f32 to vector<2x8xf32>
    %94 = arith.addf %92, %93 : vector<2x8xf32>
    %cst_70 = arith.constant 5.000000e-01 : f32
    %95 = vector.broadcast %cst_70 : f32 to vector<2x8xf32>
    %96 = arith.mulf %95, %94 : vector<2x8xf32>
    %97 = vector.extract_strided_slice %87 {offsets = [0, 8], sizes = [2, 8], strides = [1, 1]} : vector<2x32xf32> to vector<2x8xf32>
    %cst_71 = arith.constant 5.000000e-01 : f32
    %98 = vector.broadcast %cst_71 : f32 to vector<2x8xf32>
    %99 = arith.mulf %98, %97 : vector<2x8xf32>
    %100 = math.tanh %99 : vector<2x8xf32>
    %cst_72 = arith.constant 1.000000e+00 : f32
    %101 = vector.broadcast %cst_72 : f32 to vector<2x8xf32>
    %102 = arith.addf %100, %101 : vector<2x8xf32>
    %cst_73 = arith.constant 5.000000e-01 : f32
    %103 = vector.broadcast %cst_73 : f32 to vector<2x8xf32>
    %104 = arith.mulf %103, %102 : vector<2x8xf32>
    %105 = vector.extract_strided_slice %87 {offsets = [0, 16], sizes = [2, 8], strides = [1, 1]} : vector<2x32xf32> to vector<2x8xf32>
    %106 = math.tanh %105 : vector<2x8xf32>
    %107 = vector.extract_strided_slice %87 {offsets = [0, 24], sizes = [2, 8], strides = [1, 1]} : vector<2x32xf32> to vector<2x8xf32>
    %cst_74 = arith.constant 5.000000e-01 : f32
    %108 = vector.broadcast %cst_74 : f32 to vector<2x8xf32>
    %109 = arith.mulf %108, %107 : vector<2x8xf32>
    %110 = math.tanh %109 : vector<2x8xf32>
    %cst_75 = arith.constant 1.000000e+00 : f32
    %111 = vector.broadcast %cst_75 : f32 to vector<2x8xf32>
    %112 = arith.addf %110, %111 : vector<2x8xf32>
    %cst_76 = arith.constant 5.000000e-01 : f32
    %113 = vector.broadcast %cst_76 : f32 to vector<2x8xf32>
    %114 = arith.mulf %113, %112 : vector<2x8xf32>
    %115 = vector.extract_strided_slice %88 {offsets = [0, 0], sizes = [2, 8], strides = [1, 1]} : vector<2x32xf32> to vector<2x8xf32>
    %cst_77 = arith.constant 5.000000e-01 : f32
    %116 = vector.broadcast %cst_77 : f32 to vector<2x8xf32>
    %117 = arith.mulf %116, %115 : vector<2x8xf32>
    %118 = math.tanh %117 : vector<2x8xf32>
    %cst_78 = arith.constant 1.000000e+00 : f32
    %119 = vector.broadcast %cst_78 : f32 to vector<2x8xf32>
    %120 = arith.addf %118, %119 : vector<2x8xf32>
    %cst_79 = arith.constant 5.000000e-01 : f32
    %121 = vector.broadcast %cst_79 : f32 to vector<2x8xf32>
    %122 = arith.mulf %121, %120 : vector<2x8xf32>
    %123 = vector.extract_strided_slice %88 {offsets = [0, 8], sizes = [2, 8], strides = [1, 1]} : vector<2x32xf32> to vector<2x8xf32>
    %cst_80 = arith.constant 5.000000e-01 : f32
    %124 = vector.broadcast %cst_80 : f32 to vector<2x8xf32>
    %125 = arith.mulf %124, %123 : vector<2x8xf32>
    %126 = math.tanh %125 : vector<2x8xf32>
    %cst_81 = arith.constant 1.000000e+00 : f32
    %127 = vector.broadcast %cst_81 : f32 to vector<2x8xf32>
    %128 = arith.addf %126, %127 : vector<2x8xf32>
    %cst_82 = arith.constant 5.000000e-01 : f32
    %129 = vector.broadcast %cst_82 : f32 to vector<2x8xf32>
    %130 = arith.mulf %129, %128 : vector<2x8xf32>
    %131 = vector.extract_strided_slice %88 {offsets = [0, 16], sizes = [2, 8], strides = [1, 1]} : vector<2x32xf32> to vector<2x8xf32>
    %132 = math.tanh %131 : vector<2x8xf32>
    %133 = vector.extract_strided_slice %88 {offsets = [0, 24], sizes = [2, 8], strides = [1, 1]} : vector<2x32xf32> to vector<2x8xf32>
    %cst_83 = arith.constant 5.000000e-01 : f32
    %134 = vector.broadcast %cst_83 : f32 to vector<2x8xf32>
    %135 = arith.mulf %134, %133 : vector<2x8xf32>
    %136 = math.tanh %135 : vector<2x8xf32>
    %cst_84 = arith.constant 1.000000e+00 : f32
    %137 = vector.broadcast %cst_84 : f32 to vector<2x8xf32>
    %138 = arith.addf %136, %137 : vector<2x8xf32>
    %cst_85 = arith.constant 5.000000e-01 : f32
    %139 = vector.broadcast %cst_85 : f32 to vector<2x8xf32>
    %140 = arith.mulf %139, %138 : vector<2x8xf32>
    %141 = arith.mulf %104, %80 : vector<2x8xf32>
    %142 = arith.mulf %96, %106 : vector<2x8xf32>
    %143 = arith.addf %141, %142 : vector<2x8xf32>
    %144 = arith.mulf %130, %81 : vector<2x8xf32>
    %145 = arith.mulf %122, %132 : vector<2x8xf32>
    %146 = arith.addf %144, %145 : vector<2x8xf32>
    %147 = math.tanh %143 : vector<2x8xf32>
    %148 = arith.mulf %114, %147 : vector<2x8xf32>
    %149 = math.tanh %146 : vector<2x8xf32>
    %150 = arith.mulf %140, %149 : vector<2x8xf32>
    %151 = arith.index_cast %c0_i32 : i32 to index
    %c0_86 = arith.constant 0 : index
    %c0_87 = arith.constant 0 : index
    %152 = vector.load %arg19[%151, %c0_86, %c0_87] : memref<8x2x8xf32, #tpu.memory_space<vmem>>, vector<1x2x8xf32>
    %153 = vector.shape_cast %152 : vector<1x2x8xf32> to vector<2x8xf32>
    %154 = vector.shape_cast %148 : vector<2x8xf32> to vector<1x2x8xf32>
    tpu.vector_store %arg19[%151, %c0_86, %c0_87], %154 {strides = array<i32>} : memref<8x2x8xf32, #tpu.memory_space<vmem>>, vector<1x2x8xf32>,
    %c7_i32 = arith.constant 7 : i32
    %155 = arith.subi %c7_i32, %c0_i32 : i32
    %156 = arith.index_cast %155 : i32 to index
    %c0_88 = arith.constant 0 : index
    %c0_89 = arith.constant 0 : index
    %157 = vector.load %arg20[%156, %c0_88, %c0_89] : memref<8x2x8xf32, #tpu.memory_space<vmem>>, vector<1x2x8xf32>
    %158 = vector.shape_cast %157 : vector<1x2x8xf32> to vector<2x8xf32>
    %159 = vector.shape_cast %150 : vector<2x8xf32> to vector<1x2x8xf32>
    tpu.vector_store %arg20[%156, %c0_88, %c0_89], %159 {strides = array<i32>} : memref<8x2x8xf32, #tpu.memory_space<vmem>>, vector<1x2x8xf32>,
    %160 = tpu.concatenate %148, %150 in 1 : vector<2x8xf32>, vector<2x8xf32> -> vector<2x16xf32>
    %c1_i32 = arith.constant 1 : i32
    %161 = arith.index_cast %c1_i32 : i32 to index
    %c0_90 = arith.constant 0 : index
    %c0_91 = arith.constant 0 : index
    %162 = vector.load %arg18[%161, %c0_90, %c0_91] : memref<8x2x64xf32, #tpu.memory_space<vmem>>, vector<1x2x64xf32>
    %163 = vector.shape_cast %162 : vector<1x2x64xf32> to vector<2x64xf32>
    %cst_92 = arith.constant dense<0.000000e+00> : vector<2x64xf32>
    %164 = tpu.matmul %160, %78, %cst_92 {dimension_numbers = #tpu.dot_dimension_numbers<[1], [0], [0], [1], [0, 0, 1, 1], [], []>} : vector<2x16xf32>, vector<16x64xf32>, vector<2x64xf32> -> vector<2x64xf32>
    %165 = arith.addf %163, %164 : vector<2x64xf32>
    %166 = vector.extract_strided_slice %165 {offsets = [0, 0], sizes = [2, 32], strides = [1, 1]} : vector<2x64xf32> to vector<2x32xf32>
    %167 = vector.extract_strided_slice %165 {offsets = [0, 32], sizes = [2, 32], strides = [1, 1]} : vector<2x64xf32> to vector<2x32xf32>
    %168 = vector.extract_strided_slice %166 {offsets = [0, 0], sizes = [2, 8], strides = [1, 1]} : vector<2x32xf32> to vector<2x8xf32>
    %cst_93 = arith.constant 5.000000e-01 : f32
    %169 = vector.broadcast %cst_93 : f32 to vector<2x8xf32>
    %170 = arith.mulf %169, %168 : vector<2x8xf32>
    %171 = math.tanh %170 : vector<2x8xf32>
    %cst_94 = arith.constant 1.000000e+00 : f32
    %172 = vector.broadcast %cst_94 : f32 to vector<2x8xf32>
    %173 = arith.addf %171, %172 : vector<2x8xf32>
    %cst_95 = arith.constant 5.000000e-01 : f32
    %174 = vector.broadcast %cst_95 : f32 to vector<2x8xf32>
    %175 = arith.mulf %174, %173 : vector<2x8xf32>
    %176 = vector.extract_strided_slice %166 {offsets = [0, 8], sizes = [2, 8], strides = [1, 1]} : vector<2x32xf32> to vector<2x8xf32>
    %cst_96 = arith.constant 5.000000e-01 : f32
    %177 = vector.broadcast %cst_96 : f32 to vector<2x8xf32>
    %178 = arith.mulf %177, %176 : vector<2x8xf32>
    %179 = math.tanh %178 : vector<2x8xf32>
    %cst_97 = arith.constant 1.000000e+00 : f32
    %180 = vector.broadcast %cst_97 : f32 to vector<2x8xf32>
    %181 = arith.addf %179, %180 : vector<2x8xf32>
    %cst_98 = arith.constant 5.000000e-01 : f32
    %182 = vector.broadcast %cst_98 : f32 to vector<2x8xf32>
    %183 = arith.mulf %182, %181 : vector<2x8xf32>
    %184 = vector.extract_strided_slice %166 {offsets = [0, 16], sizes = [2, 8], strides = [1, 1]} : vector<2x32xf32> to vector<2x8xf32>
    %185 = math.tanh %184 : vector<2x8xf32>
    %186 = vector.extract_strided_slice %166 {offsets = [0, 24], sizes = [2, 8], strides = [1, 1]} : vector<2x32xf32> to vector<2x8xf32>
    %cst_99 = arith.constant 5.000000e-01 : f32
    %187 = vector.broadcast %cst_99 : f32 to vector<2x8xf32>
    %188 = arith.mulf %187, %186 : vector<2x8xf32>
    %189 = math.tanh %188 : vector<2x8xf32>
    %cst_100 = arith.constant 1.000000e+00 : f32
    %190 = vector.broadcast %cst_100 : f32 to vector<2x8xf32>
    %191 = arith.addf %189, %190 : vector<2x8xf32>
    %cst_101 = arith.constant 5.000000e-01 : f32
    %192 = vector.broadcast %cst_101 : f32 to vector<2x8xf32>
    %193 = arith.mulf %192, %191 : vector<2x8xf32>
    %194 = vector.extract_strided_slice %167 {offsets = [0, 0], sizes = [2, 8], strides = [1, 1]} : vector<2x32xf32> to vector<2x8xf32>
    %cst_102 = arith.constant 5.000000e-01 : f32
    %195 = vector.broadcast %cst_102 : f32 to vector<2x8xf32>
    %196 = arith.mulf %195, %194 : vector<2x8xf32>
    %197 = math.tanh %196 : vector<2x8xf32>
    %cst_103 = arith.constant 1.000000e+00 : f32
    %198 = vector.broadcast %cst_103 : f32 to vector<2x8xf32>
    %199 = arith.addf %197, %198 : vector<2x8xf32>
    %cst_104 = arith.constant 5.000000e-01 : f32
    %200 = vector.broadcast %cst_104 : f32 to vector<2x8xf32>
    %201 = arith.mulf %200, %199 : vector<2x8xf32>
    %202 = vector.extract_strided_slice %167 {offsets = [0, 8], sizes = [2, 8], strides = [1, 1]} : vector<2x32xf32> to vector<2x8xf32>
    %cst_105 = arith.constant 5.000000e-01 : f32
    %203 = vector.broadcast %cst_105 : f32 to vector<2x8xf32>
    %204 = arith.mulf %203, %202 : vector<2x8xf32>
    %205 = math.tanh %204 : vector<2x8xf32>
    %cst_106 = arith.constant 1.000000e+00 : f32
    %206 = vector.broadcast %cst_106 : f32 to vector<2x8xf32>
    %207 = arith.addf %205, %206 : vector<2x8xf32>
    %cst_107 = arith.constant 5.000000e-01 : f32
    %208 = vector.broadcast %cst_107 : f32 to vector<2x8xf32>
    %209 = arith.mulf %208, %207 : vector<2x8xf32>
    %210 = vector.extract_strided_slice %167 {offsets = [0, 16], sizes = [2, 8], strides = [1, 1]} : vector<2x32xf32> to vector<2x8xf32>
    %211 = math.tanh %210 : vector<2x8xf32>
    %212 = vector.extract_strided_slice %167 {offsets = [0, 24], sizes = [2, 8], strides = [1, 1]} : vector<2x32xf32> to vector<2x8xf32>
    %cst_108 = arith.constant 5.000000e-01 : f32
    %213 = vector.broadcast %cst_108 : f32 to vector<2x8xf32>
    %214 = arith.mulf %213, %212 : vector<2x8xf32>
    %215 = math.tanh %214 : vector<2x8xf32>
    %cst_109 = arith.constant 1.000000e+00 : f32
    %216 = vector.broadcast %cst_109 : f32 to vector<2x8xf32>
    %217 = arith.addf %215, %216 : vector<2x8xf32>
    %cst_110 = arith.constant 5.000000e-01 : f32
    %218 = vector.broadcast %cst_110 : f32 to vector<2x8xf32>
    %219 = arith.mulf %218, %217 : vector<2x8xf32>
    %220 = arith.mulf %183, %143 : vector<2x8xf32>
    %221 = arith.mulf %175, %185 : vector<2x8xf32>
    %222 = arith.addf %220, %221 : vector<2x8xf32>
    %223 = arith.mulf %209, %146 : vector<2x8xf32>
    %224 = arith.mulf %201, %211 : vector<2x8xf32>
    %225 = arith.addf %223, %224 : vector<2x8xf32>
    %226 = math.tanh %222 : vector<2x8xf32>
    %227 = arith.mulf %193, %226 : vector<2x8xf32>
    %228 = math.tanh %225 : vector<2x8xf32>
    %229 = arith.mulf %219, %228 : vector<2x8xf32>
    %230 = arith.index_cast %c1_i32 : i32 to index
    %c0_111 = arith.constant 0 : index
    %c0_112 = arith.constant 0 : index
    %231 = vector.load %arg19[%230, %c0_111, %c0_112] : memref<8x2x8xf32, #tpu.memory_space<vmem>>, vector<1x2x8xf32>
    %232 = vector.shape_cast %231 : vector<1x2x8xf32> to vector<2x8xf32>
    %233 = vector.shape_cast %227 : vector<2x8xf32> to vector<1x2x8xf32>
    tpu.vector_store %arg19[%230, %c0_111, %c0_112], %233 {strides = array<i32>} : memref<8x2x8xf32, #tpu.memory_space<vmem>>, vector<1x2x8xf32>,
    %c7_i32_113 = arith.constant 7 : i32
    %234 = arith.subi %c7_i32_113, %c1_i32 : i32
    %235 = arith.index_cast %234 : i32 to index
    %c0_114 = arith.constant 0 : index
    %c0_115 = arith.constant 0 : index
    %236 = vector.load %arg20[%235, %c0_114, %c0_115] : memref<8x2x8xf32, #tpu.memory_space<vmem>>, vector<1x2x8xf32>
    %237 = vector.shape_cast %236 : vector<1x2x8xf32> to vector<2x8xf32>
    %238 = vector.shape_cast %229 : vector<2x8xf32> to vector<1x2x8xf32>
    tpu.vector_store %arg20[%235, %c0_114, %c0_115], %238 {strides = array<i32>} : memref<8x2x8xf32, #tpu.memory_space<vmem>>, vector<1x2x8xf32>,
    %239 = tpu.concatenate %227, %229 in 1 : vector<2x8xf32>, vector<2x8xf32> -> vector<2x16xf32>
    %c2_i32 = arith.constant 2 : i32
    %240 = arith.index_cast %c2_i32 : i32 to index
    %c0_116 = arith.constant 0 : index
    %c0_117 = arith.constant 0 : index
    %241 = vector.load %arg18[%240, %c0_116, %c0_117] : memref<8x2x64xf32, #tpu.memory_space<vmem>>, vector<1x2x64xf32>
    %242 = vector.shape_cast %241 : vector<1x2x64xf32> to vector<2x64xf32>
    %cst_118 = arith.constant dense<0.000000e+00> : vector<2x64xf32>
    %243 = tpu.matmul %239, %78, %cst_118 {dimension_numbers = #tpu.dot_dimension_numbers<[1], [0], [0], [1], [0, 0, 1, 1], [], []>} : vector<2x16xf32>, vector<16x64xf32>, vector<2x64xf32> -> vector<2x64xf32>
    %244 = arith.addf %242, %243 : vector<2x64xf32>
    %245 = vector.extract_strided_slice %244 {offsets = [0, 0], sizes = [2, 32], strides = [1, 1]} : vector<2x64xf32> to vector<2x32xf32>
    %246 = vector.extract_strided_slice %244 {offsets = [0, 32], sizes = [2, 32], strides = [1, 1]} : vector<2x64xf32> to vector<2x32xf32>
    %247 = vector.extract_strided_slice %245 {offsets = [0, 0], sizes = [2, 8], strides = [1, 1]} : vector<2x32xf32> to vector<2x8xf32>
    %cst_119 = arith.constant 5.000000e-01 : f32
    %248 = vector.broadcast %cst_119 : f32 to vector<2x8xf32>
    %249 = arith.mulf %248, %247 : vector<2x8xf32>
    %250 = math.tanh %249 : vector<2x8xf32>
    %cst_120 = arith.constant 1.000000e+00 : f32
    %251 = vector.broadcast %cst_120 : f32 to vector<2x8xf32>
    %252 = arith.addf %250, %251 : vector<2x8xf32>
    %cst_121 = arith.constant 5.000000e-01 : f32
    %253 = vector.broadcast %cst_121 : f32 to vector<2x8xf32>
    %254 = arith.mulf %253, %252 : vector<2x8xf32>
    %255 = vector.extract_strided_slice %245 {offsets = [0, 8], sizes = [2, 8], strides = [1, 1]} : vector<2x32xf32> to vector<2x8xf32>
    %cst_122 = arith.constant 5.000000e-01 : f32
    %256 = vector.broadcast %cst_122 : f32 to vector<2x8xf32>
    %257 = arith.mulf %256, %255 : vector<2x8xf32>
    %258 = math.tanh %257 : vector<2x8xf32>
    %cst_123 = arith.constant 1.000000e+00 : f32
    %259 = vector.broadcast %cst_123 : f32 to vector<2x8xf32>
    %260 = arith.addf %258, %259 : vector<2x8xf32>
    %cst_124 = arith.constant 5.000000e-01 : f32
    %261 = vector.broadcast %cst_124 : f32 to vector<2x8xf32>
    %262 = arith.mulf %261, %260 : vector<2x8xf32>
    %263 = vector.extract_strided_slice %245 {offsets = [0, 16], sizes = [2, 8], strides = [1, 1]} : vector<2x32xf32> to vector<2x8xf32>
    %264 = math.tanh %263 : vector<2x8xf32>
    %265 = vector.extract_strided_slice %245 {offsets = [0, 24], sizes = [2, 8], strides = [1, 1]} : vector<2x32xf32> to vector<2x8xf32>
    %cst_125 = arith.constant 5.000000e-01 : f32
    %266 = vector.broadcast %cst_125 : f32 to vector<2x8xf32>
    %267 = arith.mulf %266, %265 : vector<2x8xf32>
    %268 = math.tanh %267 : vector<2x8xf32>
    %cst_126 = arith.constant 1.000000e+00 : f32
    %269 = vector.broadcast %cst_126 : f32 to vector<2x8xf32>
    %270 = arith.addf %268, %269 : vector<2x8xf32>
    %cst_127 = arith.constant 5.000000e-01 : f32
    %271 = vector.broadcast %cst_127 : f32 to vector<2x8xf32>
    %272 = arith.mulf %271, %270 : vector<2x8xf32>
    %273 = vector.extract_strided_slice %246 {offsets = [0, 0], sizes = [2, 8], strides = [1, 1]} : vector<2x32xf32> to vector<2x8xf32>
    %cst_128 = arith.constant 5.000000e-01 : f32
    %274 = vector.broadcast %cst_128 : f32 to vector<2x8xf32>
    %275 = arith.mulf %274, %273 : vector<2x8xf32>
    %276 = math.tanh %275 : vector<2x8xf32>
    %cst_129 = arith.constant 1.000000e+00 : f32
    %277 = vector.broadcast %cst_129 : f32 to vector<2x8xf32>
    %278 = arith.addf %276, %277 : vector<2x8xf32>
    %cst_130 = arith.constant 5.000000e-01 : f32
    %279 = vector.broadcast %cst_130 : f32 to vector<2x8xf32>
    %280 = arith.mulf %279, %278 : vector<2x8xf32>
    %281 = vector.extract_strided_slice %246 {offsets = [0, 8], sizes = [2, 8], strides = [1, 1]} : vector<2x32xf32> to vector<2x8xf32>
    %cst_131 = arith.constant 5.000000e-01 : f32
    %282 = vector.broadcast %cst_131 : f32 to vector<2x8xf32>
    %283 = arith.mulf %282, %281 : vector<2x8xf32>
    %284 = math.tanh %283 : vector<2x8xf32>
    %cst_132 = arith.constant 1.000000e+00 : f32
    %285 = vector.broadcast %cst_132 : f32 to vector<2x8xf32>
    %286 = arith.addf %284, %285 : vector<2x8xf32>
    %cst_133 = arith.constant 5.000000e-01 : f32
    %287 = vector.broadcast %cst_133 : f32 to vector<2x8xf32>
    %288 = arith.mulf %287, %286 : vector<2x8xf32>
    %289 = vector.extract_strided_slice %246 {offsets = [0, 16], sizes = [2, 8], strides = [1, 1]} : vector<2x32xf32> to vector<2x8xf32>
    %290 = math.tanh %289 : vector<2x8xf32>
    %291 = vector.extract_strided_slice %246 {offsets = [0, 24], sizes = [2, 8], strides = [1, 1]} : vector<2x32xf32> to vector<2x8xf32>
    %cst_134 = arith.constant 5.000000e-01 : f32
    %292 = vector.broadcast %cst_134 : f32 to vector<2x8xf32>
    %293 = arith.mulf %292, %291 : vector<2x8xf32>
    %294 = math.tanh %293 : vector<2x8xf32>
    %cst_135 = arith.constant 1.000000e+00 : f32
    %295 = vector.broadcast %cst_135 : f32 to vector<2x8xf32>
    %296 = arith.addf %294, %295 : vector<2x8xf32>
    %cst_136 = arith.constant 5.000000e-01 : f32
    %297 = vector.broadcast %cst_136 : f32 to vector<2x8xf32>
    %298 = arith.mulf %297, %296 : vector<2x8xf32>
    %299 = arith.mulf %262, %222 : vector<2x8xf32>
    %300 = arith.mulf %254, %264 : vector<2x8xf32>
    %301 = arith.addf %299, %300 : vector<2x8xf32>
    %302 = arith.mulf %288, %225 : vector<2x8xf32>
    %303 = arith.mulf %280, %290 : vector<2x8xf32>
    %304 = arith.addf %302, %303 : vector<2x8xf32>
    %305 = math.tanh %301 : vector<2x8xf32>
    %306 = arith.mulf %272, %305 : vector<2x8xf32>
    %307 = math.tanh %304 : vector<2x8xf32>
    %308 = arith.mulf %298, %307 : vector<2x8xf32>
    %309 = arith.index_cast %c2_i32 : i32 to index
    %c0_137 = arith.constant 0 : index
    %c0_138 = arith.constant 0 : index
    %310 = vector.load %arg19[%309, %c0_137, %c0_138] : memref<8x2x8xf32, #tpu.memory_space<vmem>>, vector<1x2x8xf32>
    %311 = vector.shape_cast %310 : vector<1x2x8xf32> to vector<2x8xf32>
    %312 = vector.shape_cast %306 : vector<2x8xf32> to vector<1x2x8xf32>
    tpu.vector_store %arg19[%309, %c0_137, %c0_138], %312 {strides = array<i32>} : memref<8x2x8xf32, #tpu.memory_space<vmem>>, vector<1x2x8xf32>,
    %c7_i32_139 = arith.constant 7 : i32
    %313 = arith.subi %c7_i32_139, %c2_i32 : i32
    %314 = arith.index_cast %313 : i32 to index
    %c0_140 = arith.constant 0 : index
    %c0_141 = arith.constant 0 : index
    %315 = vector.load %arg20[%314, %c0_140, %c0_141] : memref<8x2x8xf32, #tpu.memory_space<vmem>>, vector<1x2x8xf32>
    %316 = vector.shape_cast %315 : vector<1x2x8xf32> to vector<2x8xf32>
    %317 = vector.shape_cast %308 : vector<2x8xf32> to vector<1x2x8xf32>
    tpu.vector_store %arg20[%314, %c0_140, %c0_141], %317 {strides = array<i32>} : memref<8x2x8xf32, #tpu.memory_space<vmem>>, vector<1x2x8xf32>,
    %318 = tpu.concatenate %306, %308 in 1 : vector<2x8xf32>, vector<2x8xf32> -> vector<2x16xf32>
    %c3_i32 = arith.constant 3 : i32
    %319 = arith.index_cast %c3_i32 : i32 to index
    %c0_142 = arith.constant 0 : index
    %c0_143 = arith.constant 0 : index
    %320 = vector.load %arg18[%319, %c0_142, %c0_143] : memref<8x2x64xf32, #tpu.memory_space<vmem>>, vector<1x2x64xf32>
    %321 = vector.shape_cast %320 : vector<1x2x64xf32> to vector<2x64xf32>
    %cst_144 = arith.constant dense<0.000000e+00> : vector<2x64xf32>
    %322 = tpu.matmul %318, %78, %cst_144 {dimension_numbers = #tpu.dot_dimension_numbers<[1], [0], [0], [1], [0, 0, 1, 1], [], []>} : vector<2x16xf32>, vector<16x64xf32>, vector<2x64xf32> -> vector<2x64xf32>
    %323 = arith.addf %321, %322 : vector<2x64xf32>
    %324 = vector.extract_strided_slice %323 {offsets = [0, 0], sizes = [2, 32], strides = [1, 1]} : vector<2x64xf32> to vector<2x32xf32>
    %325 = vector.extract_strided_slice %323 {offsets = [0, 32], sizes = [2, 32], strides = [1, 1]} : vector<2x64xf32> to vector<2x32xf32>
    %326 = vector.extract_strided_slice %324 {offsets = [0, 0], sizes = [2, 8], strides = [1, 1]} : vector<2x32xf32> to vector<2x8xf32>
    %cst_145 = arith.constant 5.000000e-01 : f32
    %327 = vector.broadcast %cst_145 : f32 to vector<2x8xf32>
    %328 = arith.mulf %327, %326 : vector<2x8xf32>
    %329 = math.tanh %328 : vector<2x8xf32>
    %cst_146 = arith.constant 1.000000e+00 : f32
    %330 = vector.broadcast %cst_146 : f32 to vector<2x8xf32>
    %331 = arith.addf %329, %330 : vector<2x8xf32>
    %cst_147 = arith.constant 5.000000e-01 : f32
    %332 = vector.broadcast %cst_147 : f32 to vector<2x8xf32>
    %333 = arith.mulf %332, %331 : vector<2x8xf32>
    %334 = vector.extract_strided_slice %324 {offsets = [0, 8], sizes = [2, 8], strides = [1, 1]} : vector<2x32xf32> to vector<2x8xf32>
    %cst_148 = arith.constant 5.000000e-01 : f32
    %335 = vector.broadcast %cst_148 : f32 to vector<2x8xf32>
    %336 = arith.mulf %335, %334 : vector<2x8xf32>
    %337 = math.tanh %336 : vector<2x8xf32>
    %cst_149 = arith.constant 1.000000e+00 : f32
    %338 = vector.broadcast %cst_149 : f32 to vector<2x8xf32>
    %339 = arith.addf %337, %338 : vector<2x8xf32>
    %cst_150 = arith.constant 5.000000e-01 : f32
    %340 = vector.broadcast %cst_150 : f32 to vector<2x8xf32>
    %341 = arith.mulf %340, %339 : vector<2x8xf32>
    %342 = vector.extract_strided_slice %324 {offsets = [0, 16], sizes = [2, 8], strides = [1, 1]} : vector<2x32xf32> to vector<2x8xf32>
    %343 = math.tanh %342 : vector<2x8xf32>
    %344 = vector.extract_strided_slice %324 {offsets = [0, 24], sizes = [2, 8], strides = [1, 1]} : vector<2x32xf32> to vector<2x8xf32>
    %cst_151 = arith.constant 5.000000e-01 : f32
    %345 = vector.broadcast %cst_151 : f32 to vector<2x8xf32>
    %346 = arith.mulf %345, %344 : vector<2x8xf32>
    %347 = math.tanh %346 : vector<2x8xf32>
    %cst_152 = arith.constant 1.000000e+00 : f32
    %348 = vector.broadcast %cst_152 : f32 to vector<2x8xf32>
    %349 = arith.addf %347, %348 : vector<2x8xf32>
    %cst_153 = arith.constant 5.000000e-01 : f32
    %350 = vector.broadcast %cst_153 : f32 to vector<2x8xf32>
    %351 = arith.mulf %350, %349 : vector<2x8xf32>
    %352 = vector.extract_strided_slice %325 {offsets = [0, 0], sizes = [2, 8], strides = [1, 1]} : vector<2x32xf32> to vector<2x8xf32>
    %cst_154 = arith.constant 5.000000e-01 : f32
    %353 = vector.broadcast %cst_154 : f32 to vector<2x8xf32>
    %354 = arith.mulf %353, %352 : vector<2x8xf32>
    %355 = math.tanh %354 : vector<2x8xf32>
    %cst_155 = arith.constant 1.000000e+00 : f32
    %356 = vector.broadcast %cst_155 : f32 to vector<2x8xf32>
    %357 = arith.addf %355, %356 : vector<2x8xf32>
    %cst_156 = arith.constant 5.000000e-01 : f32
    %358 = vector.broadcast %cst_156 : f32 to vector<2x8xf32>
    %359 = arith.mulf %358, %357 : vector<2x8xf32>
    %360 = vector.extract_strided_slice %325 {offsets = [0, 8], sizes = [2, 8], strides = [1, 1]} : vector<2x32xf32> to vector<2x8xf32>
    %cst_157 = arith.constant 5.000000e-01 : f32
    %361 = vector.broadcast %cst_157 : f32 to vector<2x8xf32>
    %362 = arith.mulf %361, %360 : vector<2x8xf32>
    %363 = math.tanh %362 : vector<2x8xf32>
    %cst_158 = arith.constant 1.000000e+00 : f32
    %364 = vector.broadcast %cst_158 : f32 to vector<2x8xf32>
    %365 = arith.addf %363, %364 : vector<2x8xf32>
    %cst_159 = arith.constant 5.000000e-01 : f32
    %366 = vector.broadcast %cst_159 : f32 to vector<2x8xf32>
    %367 = arith.mulf %366, %365 : vector<2x8xf32>
    %368 = vector.extract_strided_slice %325 {offsets = [0, 16], sizes = [2, 8], strides = [1, 1]} : vector<2x32xf32> to vector<2x8xf32>
    %369 = math.tanh %368 : vector<2x8xf32>
    %370 = vector.extract_strided_slice %325 {offsets = [0, 24], sizes = [2, 8], strides = [1, 1]} : vector<2x32xf32> to vector<2x8xf32>
    %cst_160 = arith.constant 5.000000e-01 : f32
    %371 = vector.broadcast %cst_160 : f32 to vector<2x8xf32>
    %372 = arith.mulf %371, %370 : vector<2x8xf32>
    %373 = math.tanh %372 : vector<2x8xf32>
    %cst_161 = arith.constant 1.000000e+00 : f32
    %374 = vector.broadcast %cst_161 : f32 to vector<2x8xf32>
    %375 = arith.addf %373, %374 : vector<2x8xf32>
    %cst_162 = arith.constant 5.000000e-01 : f32
    %376 = vector.broadcast %cst_162 : f32 to vector<2x8xf32>
    %377 = arith.mulf %376, %375 : vector<2x8xf32>
    %378 = arith.mulf %341, %301 : vector<2x8xf32>
    %379 = arith.mulf %333, %343 : vector<2x8xf32>
    %380 = arith.addf %378, %379 : vector<2x8xf32>
    %381 = arith.mulf %367, %304 : vector<2x8xf32>
    %382 = arith.mulf %359, %369 : vector<2x8xf32>
    %383 = arith.addf %381, %382 : vector<2x8xf32>
    %384 = math.tanh %380 : vector<2x8xf32>
    %385 = arith.mulf %351, %384 : vector<2x8xf32>
    %386 = math.tanh %383 : vector<2x8xf32>
    %387 = arith.mulf %377, %386 : vector<2x8xf32>
    %388 = arith.index_cast %c3_i32 : i32 to index
    %c0_163 = arith.constant 0 : index
    %c0_164 = arith.constant 0 : index
    %389 = vector.load %arg19[%388, %c0_163, %c0_164] : memref<8x2x8xf32, #tpu.memory_space<vmem>>, vector<1x2x8xf32>
    %390 = vector.shape_cast %389 : vector<1x2x8xf32> to vector<2x8xf32>
    %391 = vector.shape_cast %385 : vector<2x8xf32> to vector<1x2x8xf32>
    tpu.vector_store %arg19[%388, %c0_163, %c0_164], %391 {strides = array<i32>} : memref<8x2x8xf32, #tpu.memory_space<vmem>>, vector<1x2x8xf32>,
    %c7_i32_165 = arith.constant 7 : i32
    %392 = arith.subi %c7_i32_165, %c3_i32 : i32
    %393 = arith.index_cast %392 : i32 to index
    %c0_166 = arith.constant 0 : index
    %c0_167 = arith.constant 0 : index
    %394 = vector.load %arg20[%393, %c0_166, %c0_167] : memref<8x2x8xf32, #tpu.memory_space<vmem>>, vector<1x2x8xf32>
    %395 = vector.shape_cast %394 : vector<1x2x8xf32> to vector<2x8xf32>
    %396 = vector.shape_cast %387 : vector<2x8xf32> to vector<1x2x8xf32>
    tpu.vector_store %arg20[%393, %c0_166, %c0_167], %396 {strides = array<i32>} : memref<8x2x8xf32, #tpu.memory_space<vmem>>, vector<1x2x8xf32>,
    %397 = tpu.concatenate %385, %387 in 1 : vector<2x8xf32>, vector<2x8xf32> -> vector<2x16xf32>
    %c4_i32 = arith.constant 4 : i32
    %398 = arith.index_cast %c4_i32 : i32 to index
    %c0_168 = arith.constant 0 : index
    %c0_169 = arith.constant 0 : index
    %399 = vector.load %arg18[%398, %c0_168, %c0_169] : memref<8x2x64xf32, #tpu.memory_space<vmem>>, vector<1x2x64xf32>
    %400 = vector.shape_cast %399 : vector<1x2x64xf32> to vector<2x64xf32>
    %cst_170 = arith.constant dense<0.000000e+00> : vector<2x64xf32>
    %401 = tpu.matmul %397, %78, %cst_170 {dimension_numbers = #tpu.dot_dimension_numbers<[1], [0], [0], [1], [0, 0, 1, 1], [], []>} : vector<2x16xf32>, vector<16x64xf32>, vector<2x64xf32> -> vector<2x64xf32>
    %402 = arith.addf %400, %401 : vector<2x64xf32>
    %403 = vector.extract_strided_slice %402 {offsets = [0, 0], sizes = [2, 32], strides = [1, 1]} : vector<2x64xf32> to vector<2x32xf32>
    %404 = vector.extract_strided_slice %402 {offsets = [0, 32], sizes = [2, 32], strides = [1, 1]} : vector<2x64xf32> to vector<2x32xf32>
    %405 = vector.extract_strided_slice %403 {offsets = [0, 0], sizes = [2, 8], strides = [1, 1]} : vector<2x32xf32> to vector<2x8xf32>
    %cst_171 = arith.constant 5.000000e-01 : f32
    %406 = vector.broadcast %cst_171 : f32 to vector<2x8xf32>
    %407 = arith.mulf %406, %405 : vector<2x8xf32>
    %408 = math.tanh %407 : vector<2x8xf32>
    %cst_172 = arith.constant 1.000000e+00 : f32
    %409 = vector.broadcast %cst_172 : f32 to vector<2x8xf32>
    %410 = arith.addf %408, %409 : vector<2x8xf32>
    %cst_173 = arith.constant 5.000000e-01 : f32
    %411 = vector.broadcast %cst_173 : f32 to vector<2x8xf32>
    %412 = arith.mulf %411, %410 : vector<2x8xf32>
    %413 = vector.extract_strided_slice %403 {offsets = [0, 8], sizes = [2, 8], strides = [1, 1]} : vector<2x32xf32> to vector<2x8xf32>
    %cst_174 = arith.constant 5.000000e-01 : f32
    %414 = vector.broadcast %cst_174 : f32 to vector<2x8xf32>
    %415 = arith.mulf %414, %413 : vector<2x8xf32>
    %416 = math.tanh %415 : vector<2x8xf32>
    %cst_175 = arith.constant 1.000000e+00 : f32
    %417 = vector.broadcast %cst_175 : f32 to vector<2x8xf32>
    %418 = arith.addf %416, %417 : vector<2x8xf32>
    %cst_176 = arith.constant 5.000000e-01 : f32
    %419 = vector.broadcast %cst_176 : f32 to vector<2x8xf32>
    %420 = arith.mulf %419, %418 : vector<2x8xf32>
    %421 = vector.extract_strided_slice %403 {offsets = [0, 16], sizes = [2, 8], strides = [1, 1]} : vector<2x32xf32> to vector<2x8xf32>
    %422 = math.tanh %421 : vector<2x8xf32>
    %423 = vector.extract_strided_slice %403 {offsets = [0, 24], sizes = [2, 8], strides = [1, 1]} : vector<2x32xf32> to vector<2x8xf32>
    %cst_177 = arith.constant 5.000000e-01 : f32
    %424 = vector.broadcast %cst_177 : f32 to vector<2x8xf32>
    %425 = arith.mulf %424, %423 : vector<2x8xf32>
    %426 = math.tanh %425 : vector<2x8xf32>
    %cst_178 = arith.constant 1.000000e+00 : f32
    %427 = vector.broadcast %cst_178 : f32 to vector<2x8xf32>
    %428 = arith.addf %426, %427 : vector<2x8xf32>
    %cst_179 = arith.constant 5.000000e-01 : f32
    %429 = vector.broadcast %cst_179 : f32 to vector<2x8xf32>
    %430 = arith.mulf %429, %428 : vector<2x8xf32>
    %431 = vector.extract_strided_slice %404 {offsets = [0, 0], sizes = [2, 8], strides = [1, 1]} : vector<2x32xf32> to vector<2x8xf32>
    %cst_180 = arith.constant 5.000000e-01 : f32
    %432 = vector.broadcast %cst_180 : f32 to vector<2x8xf32>
    %433 = arith.mulf %432, %431 : vector<2x8xf32>
    %434 = math.tanh %433 : vector<2x8xf32>
    %cst_181 = arith.constant 1.000000e+00 : f32
    %435 = vector.broadcast %cst_181 : f32 to vector<2x8xf32>
    %436 = arith.addf %434, %435 : vector<2x8xf32>
    %cst_182 = arith.constant 5.000000e-01 : f32
    %437 = vector.broadcast %cst_182 : f32 to vector<2x8xf32>
    %438 = arith.mulf %437, %436 : vector<2x8xf32>
    %439 = vector.extract_strided_slice %404 {offsets = [0, 8], sizes = [2, 8], strides = [1, 1]} : vector<2x32xf32> to vector<2x8xf32>
    %cst_183 = arith.constant 5.000000e-01 : f32
    %440 = vector.broadcast %cst_183 : f32 to vector<2x8xf32>
    %441 = arith.mulf %440, %439 : vector<2x8xf32>
    %442 = math.tanh %441 : vector<2x8xf32>
    %cst_184 = arith.constant 1.000000e+00 : f32
    %443 = vector.broadcast %cst_184 : f32 to vector<2x8xf32>
    %444 = arith.addf %442, %443 : vector<2x8xf32>
    %cst_185 = arith.constant 5.000000e-01 : f32
    %445 = vector.broadcast %cst_185 : f32 to vector<2x8xf32>
    %446 = arith.mulf %445, %444 : vector<2x8xf32>
    %447 = vector.extract_strided_slice %404 {offsets = [0, 16], sizes = [2, 8], strides = [1, 1]} : vector<2x32xf32> to vector<2x8xf32>
    %448 = math.tanh %447 : vector<2x8xf32>
    %449 = vector.extract_strided_slice %404 {offsets = [0, 24], sizes = [2, 8], strides = [1, 1]} : vector<2x32xf32> to vector<2x8xf32>
    %cst_186 = arith.constant 5.000000e-01 : f32
    %450 = vector.broadcast %cst_186 : f32 to vector<2x8xf32>
    %451 = arith.mulf %450, %449 : vector<2x8xf32>
    %452 = math.tanh %451 : vector<2x8xf32>
    %cst_187 = arith.constant 1.000000e+00 : f32
    %453 = vector.broadcast %cst_187 : f32 to vector<2x8xf32>
    %454 = arith.addf %452, %453 : vector<2x8xf32>
    %cst_188 = arith.constant 5.000000e-01 : f32
    %455 = vector.broadcast %cst_188 : f32 to vector<2x8xf32>
    %456 = arith.mulf %455, %454 : vector<2x8xf32>
    %457 = arith.mulf %420, %380 : vector<2x8xf32>
    %458 = arith.mulf %412, %422 : vector<2x8xf32>
    %459 = arith.addf %457, %458 : vector<2x8xf32>
    %460 = arith.mulf %446, %383 : vector<2x8xf32>
    %461 = arith.mulf %438, %448 : vector<2x8xf32>
    %462 = arith.addf %460, %461 : vector<2x8xf32>
    %463 = math.tanh %459 : vector<2x8xf32>
    %464 = arith.mulf %430, %463 : vector<2x8xf32>
    %465 = math.tanh %462 : vector<2x8xf32>
    %466 = arith.mulf %456, %465 : vector<2x8xf32>
    %467 = arith.index_cast %c4_i32 : i32 to index
    %c0_189 = arith.constant 0 : index
    %c0_190 = arith.constant 0 : index
    %468 = vector.load %arg19[%467, %c0_189, %c0_190] : memref<8x2x8xf32, #tpu.memory_space<vmem>>, vector<1x2x8xf32>
    %469 = vector.shape_cast %468 : vector<1x2x8xf32> to vector<2x8xf32>
    %470 = vector.shape_cast %464 : vector<2x8xf32> to vector<1x2x8xf32>
    tpu.vector_store %arg19[%467, %c0_189, %c0_190], %470 {strides = array<i32>} : memref<8x2x8xf32, #tpu.memory_space<vmem>>, vector<1x2x8xf32>,
    %c7_i32_191 = arith.constant 7 : i32
    %471 = arith.subi %c7_i32_191, %c4_i32 : i32
    %472 = arith.index_cast %471 : i32 to index
    %c0_192 = arith.constant 0 : index
    %c0_193 = arith.constant 0 : index
    %473 = vector.load %arg20[%472, %c0_192, %c0_193] : memref<8x2x8xf32, #tpu.memory_space<vmem>>, vector<1x2x8xf32>
    %474 = vector.shape_cast %473 : vector<1x2x8xf32> to vector<2x8xf32>
    %475 = vector.shape_cast %466 : vector<2x8xf32> to vector<1x2x8xf32>
    tpu.vector_store %arg20[%472, %c0_192, %c0_193], %475 {strides = array<i32>} : memref<8x2x8xf32, #tpu.memory_space<vmem>>, vector<1x2x8xf32>,
    %476 = tpu.concatenate %464, %466 in 1 : vector<2x8xf32>, vector<2x8xf32> -> vector<2x16xf32>
    %c5_i32 = arith.constant 5 : i32
    %477 = arith.index_cast %c5_i32 : i32 to index
    %c0_194 = arith.constant 0 : index
    %c0_195 = arith.constant 0 : index
    %478 = vector.load %arg18[%477, %c0_194, %c0_195] : memref<8x2x64xf32, #tpu.memory_space<vmem>>, vector<1x2x64xf32>
    %479 = vector.shape_cast %478 : vector<1x2x64xf32> to vector<2x64xf32>
    %cst_196 = arith.constant dense<0.000000e+00> : vector<2x64xf32>
    %480 = tpu.matmul %476, %78, %cst_196 {dimension_numbers = #tpu.dot_dimension_numbers<[1], [0], [0], [1], [0, 0, 1, 1], [], []>} : vector<2x16xf32>, vector<16x64xf32>, vector<2x64xf32> -> vector<2x64xf32>
    %481 = arith.addf %479, %480 : vector<2x64xf32>
    %482 = vector.extract_strided_slice %481 {offsets = [0, 0], sizes = [2, 32], strides = [1, 1]} : vector<2x64xf32> to vector<2x32xf32>
    %483 = vector.extract_strided_slice %481 {offsets = [0, 32], sizes = [2, 32], strides = [1, 1]} : vector<2x64xf32> to vector<2x32xf32>
    %484 = vector.extract_strided_slice %482 {offsets = [0, 0], sizes = [2, 8], strides = [1, 1]} : vector<2x32xf32> to vector<2x8xf32>
    %cst_197 = arith.constant 5.000000e-01 : f32
    %485 = vector.broadcast %cst_197 : f32 to vector<2x8xf32>
    %486 = arith.mulf %485, %484 : vector<2x8xf32>
    %487 = math.tanh %486 : vector<2x8xf32>
    %cst_198 = arith.constant 1.000000e+00 : f32
    %488 = vector.broadcast %cst_198 : f32 to vector<2x8xf32>
    %489 = arith.addf %487, %488 : vector<2x8xf32>
    %cst_199 = arith.constant 5.000000e-01 : f32
    %490 = vector.broadcast %cst_199 : f32 to vector<2x8xf32>
    %491 = arith.mulf %490, %489 : vector<2x8xf32>
    %492 = vector.extract_strided_slice %482 {offsets = [0, 8], sizes = [2, 8], strides = [1, 1]} : vector<2x32xf32> to vector<2x8xf32>
    %cst_200 = arith.constant 5.000000e-01 : f32
    %493 = vector.broadcast %cst_200 : f32 to vector<2x8xf32>
    %494 = arith.mulf %493, %492 : vector<2x8xf32>
    %495 = math.tanh %494 : vector<2x8xf32>
    %cst_201 = arith.constant 1.000000e+00 : f32
    %496 = vector.broadcast %cst_201 : f32 to vector<2x8xf32>
    %497 = arith.addf %495, %496 : vector<2x8xf32>
    %cst_202 = arith.constant 5.000000e-01 : f32
    %498 = vector.broadcast %cst_202 : f32 to vector<2x8xf32>
    %499 = arith.mulf %498, %497 : vector<2x8xf32>
    %500 = vector.extract_strided_slice %482 {offsets = [0, 16], sizes = [2, 8], strides = [1, 1]} : vector<2x32xf32> to vector<2x8xf32>
    %501 = math.tanh %500 : vector<2x8xf32>
    %502 = vector.extract_strided_slice %482 {offsets = [0, 24], sizes = [2, 8], strides = [1, 1]} : vector<2x32xf32> to vector<2x8xf32>
    %cst_203 = arith.constant 5.000000e-01 : f32
    %503 = vector.broadcast %cst_203 : f32 to vector<2x8xf32>
    %504 = arith.mulf %503, %502 : vector<2x8xf32>
    %505 = math.tanh %504 : vector<2x8xf32>
    %cst_204 = arith.constant 1.000000e+00 : f32
    %506 = vector.broadcast %cst_204 : f32 to vector<2x8xf32>
    %507 = arith.addf %505, %506 : vector<2x8xf32>
    %cst_205 = arith.constant 5.000000e-01 : f32
    %508 = vector.broadcast %cst_205 : f32 to vector<2x8xf32>
    %509 = arith.mulf %508, %507 : vector<2x8xf32>
    %510 = vector.extract_strided_slice %483 {offsets = [0, 0], sizes = [2, 8], strides = [1, 1]} : vector<2x32xf32> to vector<2x8xf32>
    %cst_206 = arith.constant 5.000000e-01 : f32
    %511 = vector.broadcast %cst_206 : f32 to vector<2x8xf32>
    %512 = arith.mulf %511, %510 : vector<2x8xf32>
    %513 = math.tanh %512 : vector<2x8xf32>
    %cst_207 = arith.constant 1.000000e+00 : f32
    %514 = vector.broadcast %cst_207 : f32 to vector<2x8xf32>
    %515 = arith.addf %513, %514 : vector<2x8xf32>
    %cst_208 = arith.constant 5.000000e-01 : f32
    %516 = vector.broadcast %cst_208 : f32 to vector<2x8xf32>
    %517 = arith.mulf %516, %515 : vector<2x8xf32>
    %518 = vector.extract_strided_slice %483 {offsets = [0, 8], sizes = [2, 8], strides = [1, 1]} : vector<2x32xf32> to vector<2x8xf32>
    %cst_209 = arith.constant 5.000000e-01 : f32
    %519 = vector.broadcast %cst_209 : f32 to vector<2x8xf32>
    %520 = arith.mulf %519, %518 : vector<2x8xf32>
    %521 = math.tanh %520 : vector<2x8xf32>
    %cst_210 = arith.constant 1.000000e+00 : f32
    %522 = vector.broadcast %cst_210 : f32 to vector<2x8xf32>
    %523 = arith.addf %521, %522 : vector<2x8xf32>
    %cst_211 = arith.constant 5.000000e-01 : f32
    %524 = vector.broadcast %cst_211 : f32 to vector<2x8xf32>
    %525 = arith.mulf %524, %523 : vector<2x8xf32>
    %526 = vector.extract_strided_slice %483 {offsets = [0, 16], sizes = [2, 8], strides = [1, 1]} : vector<2x32xf32> to vector<2x8xf32>
    %527 = math.tanh %526 : vector<2x8xf32>
    %528 = vector.extract_strided_slice %483 {offsets = [0, 24], sizes = [2, 8], strides = [1, 1]} : vector<2x32xf32> to vector<2x8xf32>
    %cst_212 = arith.constant 5.000000e-01 : f32
    %529 = vector.broadcast %cst_212 : f32 to vector<2x8xf32>
    %530 = arith.mulf %529, %528 : vector<2x8xf32>
    %531 = math.tanh %530 : vector<2x8xf32>
    %cst_213 = arith.constant 1.000000e+00 : f32
    %532 = vector.broadcast %cst_213 : f32 to vector<2x8xf32>
    %533 = arith.addf %531, %532 : vector<2x8xf32>
    %cst_214 = arith.constant 5.000000e-01 : f32
    %534 = vector.broadcast %cst_214 : f32 to vector<2x8xf32>
    %535 = arith.mulf %534, %533 : vector<2x8xf32>
    %536 = arith.mulf %499, %459 : vector<2x8xf32>
    %537 = arith.mulf %491, %501 : vector<2x8xf32>
    %538 = arith.addf %536, %537 : vector<2x8xf32>
    %539 = arith.mulf %525, %462 : vector<2x8xf32>
    %540 = arith.mulf %517, %527 : vector<2x8xf32>
    %541 = arith.addf %539, %540 : vector<2x8xf32>
    %542 = math.tanh %538 : vector<2x8xf32>
    %543 = arith.mulf %509, %542 : vector<2x8xf32>
    %544 = math.tanh %541 : vector<2x8xf32>
    %545 = arith.mulf %535, %544 : vector<2x8xf32>
    %546 = arith.index_cast %c5_i32 : i32 to index
    %c0_215 = arith.constant 0 : index
    %c0_216 = arith.constant 0 : index
    %547 = vector.load %arg19[%546, %c0_215, %c0_216] : memref<8x2x8xf32, #tpu.memory_space<vmem>>, vector<1x2x8xf32>
    %548 = vector.shape_cast %547 : vector<1x2x8xf32> to vector<2x8xf32>
    %549 = vector.shape_cast %543 : vector<2x8xf32> to vector<1x2x8xf32>
    tpu.vector_store %arg19[%546, %c0_215, %c0_216], %549 {strides = array<i32>} : memref<8x2x8xf32, #tpu.memory_space<vmem>>, vector<1x2x8xf32>,
    %c7_i32_217 = arith.constant 7 : i32
    %550 = arith.subi %c7_i32_217, %c5_i32 : i32
    %551 = arith.index_cast %550 : i32 to index
    %c0_218 = arith.constant 0 : index
    %c0_219 = arith.constant 0 : index
    %552 = vector.load %arg20[%551, %c0_218, %c0_219] : memref<8x2x8xf32, #tpu.memory_space<vmem>>, vector<1x2x8xf32>
    %553 = vector.shape_cast %552 : vector<1x2x8xf32> to vector<2x8xf32>
    %554 = vector.shape_cast %545 : vector<2x8xf32> to vector<1x2x8xf32>
    tpu.vector_store %arg20[%551, %c0_218, %c0_219], %554 {strides = array<i32>} : memref<8x2x8xf32, #tpu.memory_space<vmem>>, vector<1x2x8xf32>,
    %555 = tpu.concatenate %543, %545 in 1 : vector<2x8xf32>, vector<2x8xf32> -> vector<2x16xf32>
    %c6_i32 = arith.constant 6 : i32
    %556 = arith.index_cast %c6_i32 : i32 to index
    %c0_220 = arith.constant 0 : index
    %c0_221 = arith.constant 0 : index
    %557 = vector.load %arg18[%556, %c0_220, %c0_221] : memref<8x2x64xf32, #tpu.memory_space<vmem>>, vector<1x2x64xf32>
    %558 = vector.shape_cast %557 : vector<1x2x64xf32> to vector<2x64xf32>
    %cst_222 = arith.constant dense<0.000000e+00> : vector<2x64xf32>
    %559 = tpu.matmul %555, %78, %cst_222 {dimension_numbers = #tpu.dot_dimension_numbers<[1], [0], [0], [1], [0, 0, 1, 1], [], []>} : vector<2x16xf32>, vector<16x64xf32>, vector<2x64xf32> -> vector<2x64xf32>
    %560 = arith.addf %558, %559 : vector<2x64xf32>
    %561 = vector.extract_strided_slice %560 {offsets = [0, 0], sizes = [2, 32], strides = [1, 1]} : vector<2x64xf32> to vector<2x32xf32>
    %562 = vector.extract_strided_slice %560 {offsets = [0, 32], sizes = [2, 32], strides = [1, 1]} : vector<2x64xf32> to vector<2x32xf32>
    %563 = vector.extract_strided_slice %561 {offsets = [0, 0], sizes = [2, 8], strides = [1, 1]} : vector<2x32xf32> to vector<2x8xf32>
    %cst_223 = arith.constant 5.000000e-01 : f32
    %564 = vector.broadcast %cst_223 : f32 to vector<2x8xf32>
    %565 = arith.mulf %564, %563 : vector<2x8xf32>
    %566 = math.tanh %565 : vector<2x8xf32>
    %cst_224 = arith.constant 1.000000e+00 : f32
    %567 = vector.broadcast %cst_224 : f32 to vector<2x8xf32>
    %568 = arith.addf %566, %567 : vector<2x8xf32>
    %cst_225 = arith.constant 5.000000e-01 : f32
    %569 = vector.broadcast %cst_225 : f32 to vector<2x8xf32>
    %570 = arith.mulf %569, %568 : vector<2x8xf32>
    %571 = vector.extract_strided_slice %561 {offsets = [0, 8], sizes = [2, 8], strides = [1, 1]} : vector<2x32xf32> to vector<2x8xf32>
    %cst_226 = arith.constant 5.000000e-01 : f32
    %572 = vector.broadcast %cst_226 : f32 to vector<2x8xf32>
    %573 = arith.mulf %572, %571 : vector<2x8xf32>
    %574 = math.tanh %573 : vector<2x8xf32>
    %cst_227 = arith.constant 1.000000e+00 : f32
    %575 = vector.broadcast %cst_227 : f32 to vector<2x8xf32>
    %576 = arith.addf %574, %575 : vector<2x8xf32>
    %cst_228 = arith.constant 5.000000e-01 : f32
    %577 = vector.broadcast %cst_228 : f32 to vector<2x8xf32>
    %578 = arith.mulf %577, %576 : vector<2x8xf32>
    %579 = vector.extract_strided_slice %561 {offsets = [0, 16], sizes = [2, 8], strides = [1, 1]} : vector<2x32xf32> to vector<2x8xf32>
    %580 = math.tanh %579 : vector<2x8xf32>
    %581 = vector.extract_strided_slice %561 {offsets = [0, 24], sizes = [2, 8], strides = [1, 1]} : vector<2x32xf32> to vector<2x8xf32>
    %cst_229 = arith.constant 5.000000e-01 : f32
    %582 = vector.broadcast %cst_229 : f32 to vector<2x8xf32>
    %583 = arith.mulf %582, %581 : vector<2x8xf32>
    %584 = math.tanh %583 : vector<2x8xf32>
    %cst_230 = arith.constant 1.000000e+00 : f32
    %585 = vector.broadcast %cst_230 : f32 to vector<2x8xf32>
    %586 = arith.addf %584, %585 : vector<2x8xf32>
    %cst_231 = arith.constant 5.000000e-01 : f32
    %587 = vector.broadcast %cst_231 : f32 to vector<2x8xf32>
    %588 = arith.mulf %587, %586 : vector<2x8xf32>
    %589 = vector.extract_strided_slice %562 {offsets = [0, 0], sizes = [2, 8], strides = [1, 1]} : vector<2x32xf32> to vector<2x8xf32>
    %cst_232 = arith.constant 5.000000e-01 : f32
    %590 = vector.broadcast %cst_232 : f32 to vector<2x8xf32>
    %591 = arith.mulf %590, %589 : vector<2x8xf32>
    %592 = math.tanh %591 : vector<2x8xf32>
    %cst_233 = arith.constant 1.000000e+00 : f32
    %593 = vector.broadcast %cst_233 : f32 to vector<2x8xf32>
    %594 = arith.addf %592, %593 : vector<2x8xf32>
    %cst_234 = arith.constant 5.000000e-01 : f32
    %595 = vector.broadcast %cst_234 : f32 to vector<2x8xf32>
    %596 = arith.mulf %595, %594 : vector<2x8xf32>
    %597 = vector.extract_strided_slice %562 {offsets = [0, 8], sizes = [2, 8], strides = [1, 1]} : vector<2x32xf32> to vector<2x8xf32>
    %cst_235 = arith.constant 5.000000e-01 : f32
    %598 = vector.broadcast %cst_235 : f32 to vector<2x8xf32>
    %599 = arith.mulf %598, %597 : vector<2x8xf32>
    %600 = math.tanh %599 : vector<2x8xf32>
    %cst_236 = arith.constant 1.000000e+00 : f32
    %601 = vector.broadcast %cst_236 : f32 to vector<2x8xf32>
    %602 = arith.addf %600, %601 : vector<2x8xf32>
    %cst_237 = arith.constant 5.000000e-01 : f32
    %603 = vector.broadcast %cst_237 : f32 to vector<2x8xf32>
    %604 = arith.mulf %603, %602 : vector<2x8xf32>
    %605 = vector.extract_strided_slice %562 {offsets = [0, 16], sizes = [2, 8], strides = [1, 1]} : vector<2x32xf32> to vector<2x8xf32>
    %606 = math.tanh %605 : vector<2x8xf32>
    %607 = vector.extract_strided_slice %562 {offsets = [0, 24], sizes = [2, 8], strides = [1, 1]} : vector<2x32xf32> to vector<2x8xf32>
    %cst_238 = arith.constant 5.000000e-01 : f32
    %608 = vector.broadcast %cst_238 : f32 to vector<2x8xf32>
    %609 = arith.mulf %608, %607 : vector<2x8xf32>
    %610 = math.tanh %609 : vector<2x8xf32>
    %cst_239 = arith.constant 1.000000e+00 : f32
    %611 = vector.broadcast %cst_239 : f32 to vector<2x8xf32>
    %612 = arith.addf %610, %611 : vector<2x8xf32>
    %cst_240 = arith.constant 5.000000e-01 : f32
    %613 = vector.broadcast %cst_240 : f32 to vector<2x8xf32>
    %614 = arith.mulf %613, %612 : vector<2x8xf32>
    %615 = arith.mulf %578, %538 : vector<2x8xf32>
    %616 = arith.mulf %570, %580 : vector<2x8xf32>
    %617 = arith.addf %615, %616 : vector<2x8xf32>
    %618 = arith.mulf %604, %541 : vector<2x8xf32>
    %619 = arith.mulf %596, %606 : vector<2x8xf32>
    %620 = arith.addf %618, %619 : vector<2x8xf32>
    %621 = math.tanh %617 : vector<2x8xf32>
    %622 = arith.mulf %588, %621 : vector<2x8xf32>
    %623 = math.tanh %620 : vector<2x8xf32>
    %624 = arith.mulf %614, %623 : vector<2x8xf32>
    %625 = arith.index_cast %c6_i32 : i32 to index
    %c0_241 = arith.constant 0 : index
    %c0_242 = arith.constant 0 : index
    %626 = vector.load %arg19[%625, %c0_241, %c0_242] : memref<8x2x8xf32, #tpu.memory_space<vmem>>, vector<1x2x8xf32>
    %627 = vector.shape_cast %626 : vector<1x2x8xf32> to vector<2x8xf32>
    %628 = vector.shape_cast %622 : vector<2x8xf32> to vector<1x2x8xf32>
    tpu.vector_store %arg19[%625, %c0_241, %c0_242], %628 {strides = array<i32>} : memref<8x2x8xf32, #tpu.memory_space<vmem>>, vector<1x2x8xf32>,
    %c7_i32_243 = arith.constant 7 : i32
    %629 = arith.subi %c7_i32_243, %c6_i32 : i32
    %630 = arith.index_cast %629 : i32 to index
    %c0_244 = arith.constant 0 : index
    %c0_245 = arith.constant 0 : index
    %631 = vector.load %arg20[%630, %c0_244, %c0_245] : memref<8x2x8xf32, #tpu.memory_space<vmem>>, vector<1x2x8xf32>
    %632 = vector.shape_cast %631 : vector<1x2x8xf32> to vector<2x8xf32>
    %633 = vector.shape_cast %624 : vector<2x8xf32> to vector<1x2x8xf32>
    tpu.vector_store %arg20[%630, %c0_244, %c0_245], %633 {strides = array<i32>} : memref<8x2x8xf32, #tpu.memory_space<vmem>>, vector<1x2x8xf32>,
    %634 = tpu.concatenate %622, %624 in 1 : vector<2x8xf32>, vector<2x8xf32> -> vector<2x16xf32>
    %c7_i32_246 = arith.constant 7 : i32
    %635 = arith.index_cast %c7_i32_246 : i32 to index
    %c0_247 = arith.constant 0 : index
    %c0_248 = arith.constant 0 : index
    %636 = vector.load %arg18[%635, %c0_247, %c0_248] : memref<8x2x64xf32, #tpu.memory_space<vmem>>, vector<1x2x64xf32>
    %637 = vector.shape_cast %636 : vector<1x2x64xf32> to vector<2x64xf32>
    %cst_249 = arith.constant dense<0.000000e+00> : vector<2x64xf32>
    %638 = tpu.matmul %634, %78, %cst_249 {dimension_numbers = #tpu.dot_dimension_numbers<[1], [0], [0], [1], [0, 0, 1, 1], [], []>} : vector<2x16xf32>, vector<16x64xf32>, vector<2x64xf32> -> vector<2x64xf32>
    %639 = arith.addf %637, %638 : vector<2x64xf32>
    %640 = vector.extract_strided_slice %639 {offsets = [0, 0], sizes = [2, 32], strides = [1, 1]} : vector<2x64xf32> to vector<2x32xf32>
    %641 = vector.extract_strided_slice %639 {offsets = [0, 32], sizes = [2, 32], strides = [1, 1]} : vector<2x64xf32> to vector<2x32xf32>
    %642 = vector.extract_strided_slice %640 {offsets = [0, 0], sizes = [2, 8], strides = [1, 1]} : vector<2x32xf32> to vector<2x8xf32>
    %cst_250 = arith.constant 5.000000e-01 : f32
    %643 = vector.broadcast %cst_250 : f32 to vector<2x8xf32>
    %644 = arith.mulf %643, %642 : vector<2x8xf32>
    %645 = math.tanh %644 : vector<2x8xf32>
    %cst_251 = arith.constant 1.000000e+00 : f32
    %646 = vector.broadcast %cst_251 : f32 to vector<2x8xf32>
    %647 = arith.addf %645, %646 : vector<2x8xf32>
    %cst_252 = arith.constant 5.000000e-01 : f32
    %648 = vector.broadcast %cst_252 : f32 to vector<2x8xf32>
    %649 = arith.mulf %648, %647 : vector<2x8xf32>
    %650 = vector.extract_strided_slice %640 {offsets = [0, 8], sizes = [2, 8], strides = [1, 1]} : vector<2x32xf32> to vector<2x8xf32>
    %cst_253 = arith.constant 5.000000e-01 : f32
    %651 = vector.broadcast %cst_253 : f32 to vector<2x8xf32>
    %652 = arith.mulf %651, %650 : vector<2x8xf32>
    %653 = math.tanh %652 : vector<2x8xf32>
    %cst_254 = arith.constant 1.000000e+00 : f32
    %654 = vector.broadcast %cst_254 : f32 to vector<2x8xf32>
    %655 = arith.addf %653, %654 : vector<2x8xf32>
    %cst_255 = arith.constant 5.000000e-01 : f32
    %656 = vector.broadcast %cst_255 : f32 to vector<2x8xf32>
    %657 = arith.mulf %656, %655 : vector<2x8xf32>
    %658 = vector.extract_strided_slice %640 {offsets = [0, 16], sizes = [2, 8], strides = [1, 1]} : vector<2x32xf32> to vector<2x8xf32>
    %659 = math.tanh %658 : vector<2x8xf32>
    %660 = vector.extract_strided_slice %640 {offsets = [0, 24], sizes = [2, 8], strides = [1, 1]} : vector<2x32xf32> to vector<2x8xf32>
    %cst_256 = arith.constant 5.000000e-01 : f32
    %661 = vector.broadcast %cst_256 : f32 to vector<2x8xf32>
    %662 = arith.mulf %661, %660 : vector<2x8xf32>
    %663 = math.tanh %662 : vector<2x8xf32>
    %cst_257 = arith.constant 1.000000e+00 : f32
    %664 = vector.broadcast %cst_257 : f32 to vector<2x8xf32>
    %665 = arith.addf %663, %664 : vector<2x8xf32>
    %cst_258 = arith.constant 5.000000e-01 : f32
    %666 = vector.broadcast %cst_258 : f32 to vector<2x8xf32>
    %667 = arith.mulf %666, %665 : vector<2x8xf32>
    %668 = vector.extract_strided_slice %641 {offsets = [0, 0], sizes = [2, 8], strides = [1, 1]} : vector<2x32xf32> to vector<2x8xf32>
    %cst_259 = arith.constant 5.000000e-01 : f32
    %669 = vector.broadcast %cst_259 : f32 to vector<2x8xf32>
    %670 = arith.mulf %669, %668 : vector<2x8xf32>
    %671 = math.tanh %670 : vector<2x8xf32>
    %cst_260 = arith.constant 1.000000e+00 : f32
    %672 = vector.broadcast %cst_260 : f32 to vector<2x8xf32>
    %673 = arith.addf %671, %672 : vector<2x8xf32>
    %cst_261 = arith.constant 5.000000e-01 : f32
    %674 = vector.broadcast %cst_261 : f32 to vector<2x8xf32>
    %675 = arith.mulf %674, %673 : vector<2x8xf32>
    %676 = vector.extract_strided_slice %641 {offsets = [0, 8], sizes = [2, 8], strides = [1, 1]} : vector<2x32xf32> to vector<2x8xf32>
    %cst_262 = arith.constant 5.000000e-01 : f32
    %677 = vector.broadcast %cst_262 : f32 to vector<2x8xf32>
    %678 = arith.mulf %677, %676 : vector<2x8xf32>
    %679 = math.tanh %678 : vector<2x8xf32>
    %cst_263 = arith.constant 1.000000e+00 : f32
    %680 = vector.broadcast %cst_263 : f32 to vector<2x8xf32>
    %681 = arith.addf %679, %680 : vector<2x8xf32>
    %cst_264 = arith.constant 5.000000e-01 : f32
    %682 = vector.broadcast %cst_264 : f32 to vector<2x8xf32>
    %683 = arith.mulf %682, %681 : vector<2x8xf32>
    %684 = vector.extract_strided_slice %641 {offsets = [0, 16], sizes = [2, 8], strides = [1, 1]} : vector<2x32xf32> to vector<2x8xf32>
    %685 = math.tanh %684 : vector<2x8xf32>
    %686 = vector.extract_strided_slice %641 {offsets = [0, 24], sizes = [2, 8], strides = [1, 1]} : vector<2x32xf32> to vector<2x8xf32>
    %cst_265 = arith.constant 5.000000e-01 : f32
    %687 = vector.broadcast %cst_265 : f32 to vector<2x8xf32>
    %688 = arith.mulf %687, %686 : vector<2x8xf32>
    %689 = math.tanh %688 : vector<2x8xf32>
    %cst_266 = arith.constant 1.000000e+00 : f32
    %690 = vector.broadcast %cst_266 : f32 to vector<2x8xf32>
    %691 = arith.addf %689, %690 : vector<2x8xf32>
    %cst_267 = arith.constant 5.000000e-01 : f32
    %692 = vector.broadcast %cst_267 : f32 to vector<2x8xf32>
    %693 = arith.mulf %692, %691 : vector<2x8xf32>
    %694 = arith.mulf %657, %617 : vector<2x8xf32>
    %695 = arith.mulf %649, %659 : vector<2x8xf32>
    %696 = arith.addf %694, %695 : vector<2x8xf32>
    %697 = arith.mulf %683, %620 : vector<2x8xf32>
    %698 = arith.mulf %675, %685 : vector<2x8xf32>
    %699 = arith.addf %697, %698 : vector<2x8xf32>
    %700 = math.tanh %696 : vector<2x8xf32>
    %701 = arith.mulf %667, %700 : vector<2x8xf32>
    %702 = math.tanh %699 : vector<2x8xf32>
    %703 = arith.mulf %693, %702 : vector<2x8xf32>
    %704 = arith.index_cast %c7_i32_246 : i32 to index
    %c0_268 = arith.constant 0 : index
    %c0_269 = arith.constant 0 : index
    %705 = vector.load %arg19[%704, %c0_268, %c0_269] : memref<8x2x8xf32, #tpu.memory_space<vmem>>, vector<1x2x8xf32>
    %706 = vector.shape_cast %705 : vector<1x2x8xf32> to vector<2x8xf32>
    %707 = vector.shape_cast %701 : vector<2x8xf32> to vector<1x2x8xf32>
    tpu.vector_store %arg19[%704, %c0_268, %c0_269], %707 {strides = array<i32>} : memref<8x2x8xf32, #tpu.memory_space<vmem>>, vector<1x2x8xf32>,
    %c7_i32_270 = arith.constant 7 : i32
    %708 = arith.subi %c7_i32_270, %c7_i32_246 : i32
    %709 = arith.index_cast %708 : i32 to index
    %c0_271 = arith.constant 0 : index
    %c0_272 = arith.constant 0 : index
    %710 = vector.load %arg20[%709, %c0_271, %c0_272] : memref<8x2x8xf32, #tpu.memory_space<vmem>>, vector<1x2x8xf32>
    %711 = vector.shape_cast %710 : vector<1x2x8xf32> to vector<2x8xf32>
    %712 = vector.shape_cast %703 : vector<2x8xf32> to vector<1x2x8xf32>
    tpu.vector_store %arg20[%709, %c0_271, %c0_272], %712 {strides = array<i32>} : memref<8x2x8xf32, #tpu.memory_space<vmem>>, vector<1x2x8xf32>,
    %713 = tpu.concatenate %701, %703 in 1 : vector<2x8xf32>, vector<2x8xf32> -> vector<2x16xf32>
    %c8_i32 = arith.constant 8 : i32
    %c0_273 = arith.constant 0 : index
    %c0_274 = arith.constant 0 : index
    %c0_275 = arith.constant 0 : index
    %714 = vector.load %arg19[%c0_273, %c0_274, %c0_275] : memref<8x2x8xf32, #tpu.memory_space<vmem>>, vector<8x2x8xf32>
    %c0_276 = arith.constant 0 : index
    %c0_277 = arith.constant 0 : index
    %c0_278 = arith.constant 0 : index
    %715 = vector.load %arg20[%c0_276, %c0_277, %c0_278] : memref<8x2x8xf32, #tpu.memory_space<vmem>>, vector<8x2x8xf32>
    %716 = vector.extract_strided_slice %714 {offsets = [0, 0, 0], sizes = [8, 1, 8], strides = [1, 1, 1]} : vector<8x2x8xf32> to vector<8x1x8xf32>
    %717 = vector.shape_cast %716 : vector<8x1x8xf32> to vector<8x8xf32>
    %cst_279 = arith.constant 0.000000e+00 : f32
    %718 = vector.broadcast %cst_279 : f32 to vector<8x8xf32>
    %719 = arith.maximumf %717, %718 : vector<8x8xf32>
    %c0_280 = arith.constant 0 : index
    %c1_281 = arith.constant 1 : index
    %c1_282 = arith.constant 1 : index
    %720 = vector.load %arg21[%c0_280, %c1_281, %c1_282] : memref<2x10x18xf32, #tpu.memory_space<vmem>>, vector<1x8x8xf32>
    %721 = vector.shape_cast %720 : vector<1x8x8xf32> to vector<8x8xf32>
    %722 = vector.shape_cast %719 : vector<8x8xf32> to vector<1x8x8xf32>
    tpu.vector_store %arg21[%c0_280, %c1_281, %c1_282], %722 {strides = array<i32>} : memref<2x10x18xf32, #tpu.memory_space<vmem>>, vector<1x8x8xf32>,
    %723 = vector.extract_strided_slice %715 {offsets = [0, 0, 0], sizes = [8, 1, 8], strides = [1, 1, 1]} : vector<8x2x8xf32> to vector<8x1x8xf32>
    %724 = vector.shape_cast %723 : vector<8x1x8xf32> to vector<8x8xf32>
    %cst_283 = arith.constant 0.000000e+00 : f32
    %725 = vector.broadcast %cst_283 : f32 to vector<8x8xf32>
    %726 = arith.maximumf %724, %725 : vector<8x8xf32>
    %c0_284 = arith.constant 0 : index
    %c1_285 = arith.constant 1 : index
    %c9 = arith.constant 9 : index
    %727 = vector.load %arg21[%c0_284, %c1_285, %c9] : memref<2x10x18xf32, #tpu.memory_space<vmem>>, vector<1x8x8xf32>
    %728 = vector.shape_cast %727 : vector<1x8x8xf32> to vector<8x8xf32>
    %729 = vector.shape_cast %726 : vector<8x8xf32> to vector<1x8x8xf32>
    tpu.vector_store %arg21[%c0_284, %c1_285, %c9], %729 {strides = array<i32>} : memref<2x10x18xf32, #tpu.memory_space<vmem>>, vector<1x8x8xf32>,
    %730 = vector.extract_strided_slice %714 {offsets = [0, 1, 0], sizes = [8, 1, 8], strides = [1, 1, 1]} : vector<8x2x8xf32> to vector<8x1x8xf32>
    %731 = vector.shape_cast %730 : vector<8x1x8xf32> to vector<8x8xf32>
    %cst_286 = arith.constant 0.000000e+00 : f32
    %732 = vector.broadcast %cst_286 : f32 to vector<8x8xf32>
    %733 = arith.maximumf %731, %732 : vector<8x8xf32>
    %c1_287 = arith.constant 1 : index
    %c1_288 = arith.constant 1 : index
    %c1_289 = arith.constant 1 : index
    %734 = vector.load %arg21[%c1_287, %c1_288, %c1_289] : memref<2x10x18xf32, #tpu.memory_space<vmem>>, vector<1x8x8xf32>
    %735 = vector.shape_cast %734 : vector<1x8x8xf32> to vector<8x8xf32>
    %736 = vector.shape_cast %733 : vector<8x8xf32> to vector<1x8x8xf32>
    tpu.vector_store %arg21[%c1_287, %c1_288, %c1_289], %736 {strides = array<i32>} : memref<2x10x18xf32, #tpu.memory_space<vmem>>, vector<1x8x8xf32>,
    %737 = vector.extract_strided_slice %715 {offsets = [0, 1, 0], sizes = [8, 1, 8], strides = [1, 1, 1]} : vector<8x2x8xf32> to vector<8x1x8xf32>
    %738 = vector.shape_cast %737 : vector<8x1x8xf32> to vector<8x8xf32>
    %cst_290 = arith.constant 0.000000e+00 : f32
    %739 = vector.broadcast %cst_290 : f32 to vector<8x8xf32>
    %740 = arith.maximumf %738, %739 : vector<8x8xf32>
    %c1_291 = arith.constant 1 : index
    %c1_292 = arith.constant 1 : index
    %c9_293 = arith.constant 9 : index
    %741 = vector.load %arg21[%c1_291, %c1_292, %c9_293] : memref<2x10x18xf32, #tpu.memory_space<vmem>>, vector<1x8x8xf32>
    %742 = vector.shape_cast %741 : vector<1x8x8xf32> to vector<8x8xf32>
    %743 = vector.shape_cast %740 : vector<8x8xf32> to vector<1x8x8xf32>
    tpu.vector_store %arg21[%c1_291, %c1_292, %c9_293], %743 {strides = array<i32>} : memref<2x10x18xf32, #tpu.memory_space<vmem>>, vector<1x8x8xf32>,
    %c0_294 = arith.constant 0 : index
    %c1_295 = arith.constant 1 : index
    %c1_296 = arith.constant 1 : index
    %744 = vector.load %arg21[%c0_294, %c1_295, %c1_296] : memref<2x10x18xf32, #tpu.memory_space<vmem>>, vector<2x8x16xf32>
    %c0_297 = arith.constant 0 : index
    %c0_298 = arith.constant 0 : index
    %745 = vector.load %arg4[%c0_297, %c0_298] : memref<1x2xf32, #tpu.memory_space<vmem>>, vector<1x2xf32>
    %c0_299 = arith.constant 0 : index
    %c0_300 = arith.constant 0 : index
    %746 = vector.load %arg5[%c0_299, %c0_300] : memref<4x4xf32, #tpu.memory_space<vmem>>, vector<4x4xf32>
    %747 = vector.extract_strided_slice %745 {offsets = [0, 0], sizes = [1, 1], strides = [1, 1]} : vector<1x2xf32> to vector<1x1xf32>
    %748 = vector.extract %747[0, 0] : f32 from vector<1x1xf32>
    %749 = vector.extract_strided_slice %746 {offsets = [0, 0], sizes = [1, 1], strides = [1, 1]} : vector<4x4xf32> to vector<1x1xf32>
    %750 = vector.extract %749[0, 0] : f32 from vector<1x1xf32>
    %751 = arith.mulf %748, %750 : f32
    %752 = vector.extract_strided_slice %745 {offsets = [0, 1], sizes = [1, 1], strides = [1, 1]} : vector<1x2xf32> to vector<1x1xf32>
    %753 = vector.extract %752[0, 0] : f32 from vector<1x1xf32>
    %754 = vector.extract_strided_slice %746 {offsets = [0, 0], sizes = [1, 1], strides = [1, 1]} : vector<4x4xf32> to vector<1x1xf32>
    %755 = vector.extract %754[0, 0] : f32 from vector<1x1xf32>
    %756 = arith.mulf %753, %755 : f32
    %757 = vector.extract_strided_slice %746 {offsets = [1, 0], sizes = [1, 1], strides = [1, 1]} : vector<4x4xf32> to vector<1x1xf32>
    %758 = vector.extract %757[0, 0] : f32 from vector<1x1xf32>
    %759 = arith.addf %756, %758 : f32
    %760 = vector.broadcast %751 : f32 to vector<2x8x16xf32>
    %761 = arith.mulf %744, %760 : vector<2x8x16xf32>
    %762 = vector.broadcast %759 : f32 to vector<2x8x16xf32>
    %763 = arith.addf %761, %762 : vector<2x8x16xf32>
    %764 = vector.extract_strided_slice %746 {offsets = [2, 0], sizes = [1, 1], strides = [1, 1]} : vector<4x4xf32> to vector<1x1xf32>
    %765 = vector.extract %764[0, 0] : f32 from vector<1x1xf32>
    %766 = vector.extract_strided_slice %746 {offsets = [3, 0], sizes = [1, 1], strides = [1, 1]} : vector<4x4xf32> to vector<1x1xf32>
    %767 = vector.extract %766[0, 0] : f32 from vector<1x1xf32>
    %768 = vector.shape_cast %763 : vector<2x8x16xf32> to vector<1x2x8x16xf32>
    %cst_301 = arith.constant dense<0.000000e+00> : vector<1xf32>
    %769 = vector.multi_reduction <add>, %768, %cst_301 [1, 2, 3] : vector<1x2x8x16xf32> to vector<1xf32>
    %770 = vector.shape_cast %769 : vector<1xf32> to vector<1x1x1x1xf32>
    %771 = vector.extract %770[0, 0, 0, 0] : f32 from vector<1x1x1x1xf32>
    %cst_302 = arith.constant 2.560000e+02 : f32
    %772 = arith.divf %771, %cst_302 : f32
    %773 = vector.broadcast %772 : f32 to vector<2x8x16xf32>
    %774 = arith.subf %763, %773 : vector<2x8x16xf32>
    %775 = arith.mulf %774, %774 : vector<2x8x16xf32>
    %776 = vector.shape_cast %775 : vector<2x8x16xf32> to vector<1x2x8x16xf32>
    %cst_303 = arith.constant dense<0.000000e+00> : vector<1xf32>
    %777 = vector.multi_reduction <add>, %776, %cst_303 [1, 2, 3] : vector<1x2x8x16xf32> to vector<1xf32>
    %778 = vector.shape_cast %777 : vector<1xf32> to vector<1x1x1x1xf32>
    %779 = vector.extract %778[0, 0, 0, 0] : f32 from vector<1x1x1x1xf32>
    %cst_304 = arith.constant 2.560000e+02 : f32
    %780 = arith.divf %779, %cst_304 : f32
    %781 = vector.broadcast %772 : f32 to vector<2x8x16xf32>
    %782 = arith.subf %763, %781 : vector<2x8x16xf32>
    %cst_305 = arith.constant 9.99999974E-6 : f32
    %783 = arith.addf %780, %cst_305 : f32
    %784 = math.rsqrt %783 : f32
    %785 = vector.broadcast %784 : f32 to vector<2x8x16xf32>
    %786 = arith.mulf %782, %785 : vector<2x8x16xf32>
    %787 = vector.broadcast %765 : f32 to vector<2x8x16xf32>
    %788 = arith.mulf %786, %787 : vector<2x8x16xf32>
    %789 = vector.broadcast %767 : f32 to vector<2x8x16xf32>
    %790 = arith.addf %788, %789 : vector<2x8x16xf32>
    %791 = vector.extract_strided_slice %745 {offsets = [0, 0], sizes = [1, 1], strides = [1, 1]} : vector<1x2xf32> to vector<1x1xf32>
    %792 = vector.extract %791[0, 0] : f32 from vector<1x1xf32>
    %793 = vector.extract_strided_slice %746 {offsets = [0, 1], sizes = [1, 1], strides = [1, 1]} : vector<4x4xf32> to vector<1x1xf32>
    %794 = vector.extract %793[0, 0] : f32 from vector<1x1xf32>
    %795 = arith.mulf %792, %794 : f32
    %796 = vector.extract_strided_slice %745 {offsets = [0, 1], sizes = [1, 1], strides = [1, 1]} : vector<1x2xf32> to vector<1x1xf32>
    %797 = vector.extract %796[0, 0] : f32 from vector<1x1xf32>
    %798 = vector.extract_strided_slice %746 {offsets = [0, 1], sizes = [1, 1], strides = [1, 1]} : vector<4x4xf32> to vector<1x1xf32>
    %799 = vector.extract %798[0, 0] : f32 from vector<1x1xf32>
    %800 = arith.mulf %797, %799 : f32
    %801 = vector.extract_strided_slice %746 {offsets = [1, 1], sizes = [1, 1], strides = [1, 1]} : vector<4x4xf32> to vector<1x1xf32>
    %802 = vector.extract %801[0, 0] : f32 from vector<1x1xf32>
    %803 = arith.addf %800, %802 : f32
    %804 = vector.broadcast %795 : f32 to vector<2x8x16xf32>
    %805 = arith.mulf %744, %804 : vector<2x8x16xf32>
    %806 = vector.broadcast %803 : f32 to vector<2x8x16xf32>
    %807 = arith.addf %805, %806 : vector<2x8x16xf32>
    %808 = vector.extract_strided_slice %746 {offsets = [2, 1], sizes = [1, 1], strides = [1, 1]} : vector<4x4xf32> to vector<1x1xf32>
    %809 = vector.extract %808[0, 0] : f32 from vector<1x1xf32>
    %810 = vector.extract_strided_slice %746 {offsets = [3, 1], sizes = [1, 1], strides = [1, 1]} : vector<4x4xf32> to vector<1x1xf32>
    %811 = vector.extract %810[0, 0] : f32 from vector<1x1xf32>
    %812 = vector.shape_cast %807 : vector<2x8x16xf32> to vector<1x2x8x16xf32>
    %cst_306 = arith.constant dense<0.000000e+00> : vector<1xf32>
    %813 = vector.multi_reduction <add>, %812, %cst_306 [1, 2, 3] : vector<1x2x8x16xf32> to vector<1xf32>
    %814 = vector.shape_cast %813 : vector<1xf32> to vector<1x1x1x1xf32>
    %815 = vector.extract %814[0, 0, 0, 0] : f32 from vector<1x1x1x1xf32>
    %cst_307 = arith.constant 2.560000e+02 : f32
    %816 = arith.divf %815, %cst_307 : f32
    %817 = vector.broadcast %816 : f32 to vector<2x8x16xf32>
    %818 = arith.subf %807, %817 : vector<2x8x16xf32>
    %819 = arith.mulf %818, %818 : vector<2x8x16xf32>
    %820 = vector.shape_cast %819 : vector<2x8x16xf32> to vector<1x2x8x16xf32>
    %cst_308 = arith.constant dense<0.000000e+00> : vector<1xf32>
    %821 = vector.multi_reduction <add>, %820, %cst_308 [1, 2, 3] : vector<1x2x8x16xf32> to vector<1xf32>
    %822 = vector.shape_cast %821 : vector<1xf32> to vector<1x1x1x1xf32>
    %823 = vector.extract %822[0, 0, 0, 0] : f32 from vector<1x1x1x1xf32>
    %cst_309 = arith.constant 2.560000e+02 : f32
    %824 = arith.divf %823, %cst_309 : f32
    %825 = vector.broadcast %816 : f32 to vector<2x8x16xf32>
    %826 = arith.subf %807, %825 : vector<2x8x16xf32>
    %cst_310 = arith.constant 9.99999974E-6 : f32
    %827 = arith.addf %824, %cst_310 : f32
    %828 = math.rsqrt %827 : f32
    %829 = vector.broadcast %828 : f32 to vector<2x8x16xf32>
    %830 = arith.mulf %826, %829 : vector<2x8x16xf32>
    %831 = vector.broadcast %809 : f32 to vector<2x8x16xf32>
    %832 = arith.mulf %830, %831 : vector<2x8x16xf32>
    %833 = vector.broadcast %811 : f32 to vector<2x8x16xf32>
    %834 = arith.addf %832, %833 : vector<2x8x16xf32>
    %835 = vector.extract_strided_slice %745 {offsets = [0, 0], sizes = [1, 1], strides = [1, 1]} : vector<1x2xf32> to vector<1x1xf32>
    %836 = vector.extract %835[0, 0] : f32 from vector<1x1xf32>
    %837 = vector.extract_strided_slice %746 {offsets = [0, 2], sizes = [1, 1], strides = [1, 1]} : vector<4x4xf32> to vector<1x1xf32>
    %838 = vector.extract %837[0, 0] : f32 from vector<1x1xf32>
    %839 = arith.mulf %836, %838 : f32
    %840 = vector.extract_strided_slice %745 {offsets = [0, 1], sizes = [1, 1], strides = [1, 1]} : vector<1x2xf32> to vector<1x1xf32>
    %841 = vector.extract %840[0, 0] : f32 from vector<1x1xf32>
    %842 = vector.extract_strided_slice %746 {offsets = [0, 2], sizes = [1, 1], strides = [1, 1]} : vector<4x4xf32> to vector<1x1xf32>
    %843 = vector.extract %842[0, 0] : f32 from vector<1x1xf32>
    %844 = arith.mulf %841, %843 : f32
    %845 = vector.extract_strided_slice %746 {offsets = [1, 2], sizes = [1, 1], strides = [1, 1]} : vector<4x4xf32> to vector<1x1xf32>
    %846 = vector.extract %845[0, 0] : f32 from vector<1x1xf32>
    %847 = arith.addf %844, %846 : f32
    %848 = vector.broadcast %839 : f32 to vector<2x8x16xf32>
    %849 = arith.mulf %744, %848 : vector<2x8x16xf32>
    %850 = vector.broadcast %847 : f32 to vector<2x8x16xf32>
    %851 = arith.addf %849, %850 : vector<2x8x16xf32>
    %852 = vector.extract_strided_slice %746 {offsets = [2, 2], sizes = [1, 1], strides = [1, 1]} : vector<4x4xf32> to vector<1x1xf32>
    %853 = vector.extract %852[0, 0] : f32 from vector<1x1xf32>
    %854 = vector.extract_strided_slice %746 {offsets = [3, 2], sizes = [1, 1], strides = [1, 1]} : vector<4x4xf32> to vector<1x1xf32>
    %855 = vector.extract %854[0, 0] : f32 from vector<1x1xf32>
    %856 = vector.shape_cast %851 : vector<2x8x16xf32> to vector<1x2x8x16xf32>
    %cst_311 = arith.constant dense<0.000000e+00> : vector<1xf32>
    %857 = vector.multi_reduction <add>, %856, %cst_311 [1, 2, 3] : vector<1x2x8x16xf32> to vector<1xf32>
    %858 = vector.shape_cast %857 : vector<1xf32> to vector<1x1x1x1xf32>
    %859 = vector.extract %858[0, 0, 0, 0] : f32 from vector<1x1x1x1xf32>
    %cst_312 = arith.constant 2.560000e+02 : f32
    %860 = arith.divf %859, %cst_312 : f32
    %861 = vector.broadcast %860 : f32 to vector<2x8x16xf32>
    %862 = arith.subf %851, %861 : vector<2x8x16xf32>
    %863 = arith.mulf %862, %862 : vector<2x8x16xf32>
    %864 = vector.shape_cast %863 : vector<2x8x16xf32> to vector<1x2x8x16xf32>
    %cst_313 = arith.constant dense<0.000000e+00> : vector<1xf32>
    %865 = vector.multi_reduction <add>, %864, %cst_313 [1, 2, 3] : vector<1x2x8x16xf32> to vector<1xf32>
    %866 = vector.shape_cast %865 : vector<1xf32> to vector<1x1x1x1xf32>
    %867 = vector.extract %866[0, 0, 0, 0] : f32 from vector<1x1x1x1xf32>
    %cst_314 = arith.constant 2.560000e+02 : f32
    %868 = arith.divf %867, %cst_314 : f32
    %869 = vector.broadcast %860 : f32 to vector<2x8x16xf32>
    %870 = arith.subf %851, %869 : vector<2x8x16xf32>
    %cst_315 = arith.constant 9.99999974E-6 : f32
    %871 = arith.addf %868, %cst_315 : f32
    %872 = math.rsqrt %871 : f32
    %873 = vector.broadcast %872 : f32 to vector<2x8x16xf32>
    %874 = arith.mulf %870, %873 : vector<2x8x16xf32>
    %875 = vector.broadcast %853 : f32 to vector<2x8x16xf32>
    %876 = arith.mulf %874, %875 : vector<2x8x16xf32>
    %877 = vector.broadcast %855 : f32 to vector<2x8x16xf32>
    %878 = arith.addf %876, %877 : vector<2x8x16xf32>
    %879 = vector.extract_strided_slice %745 {offsets = [0, 0], sizes = [1, 1], strides = [1, 1]} : vector<1x2xf32> to vector<1x1xf32>
    %880 = vector.extract %879[0, 0] : f32 from vector<1x1xf32>
    %881 = vector.extract_strided_slice %746 {offsets = [0, 3], sizes = [1, 1], strides = [1, 1]} : vector<4x4xf32> to vector<1x1xf32>
    %882 = vector.extract %881[0, 0] : f32 from vector<1x1xf32>
    %883 = arith.mulf %880, %882 : f32
    %884 = vector.extract_strided_slice %745 {offsets = [0, 1], sizes = [1, 1], strides = [1, 1]} : vector<1x2xf32> to vector<1x1xf32>
    %885 = vector.extract %884[0, 0] : f32 from vector<1x1xf32>
    %886 = vector.extract_strided_slice %746 {offsets = [0, 3], sizes = [1, 1], strides = [1, 1]} : vector<4x4xf32> to vector<1x1xf32>
    %887 = vector.extract %886[0, 0] : f32 from vector<1x1xf32>
    %888 = arith.mulf %885, %887 : f32
    %889 = vector.extract_strided_slice %746 {offsets = [1, 3], sizes = [1, 1], strides = [1, 1]} : vector<4x4xf32> to vector<1x1xf32>
    %890 = vector.extract %889[0, 0] : f32 from vector<1x1xf32>
    %891 = arith.addf %888, %890 : f32
    %892 = vector.broadcast %883 : f32 to vector<2x8x16xf32>
    %893 = arith.mulf %744, %892 : vector<2x8x16xf32>
    %894 = vector.broadcast %891 : f32 to vector<2x8x16xf32>
    %895 = arith.addf %893, %894 : vector<2x8x16xf32>
    %896 = vector.extract_strided_slice %746 {offsets = [2, 3], sizes = [1, 1], strides = [1, 1]} : vector<4x4xf32> to vector<1x1xf32>
    %897 = vector.extract %896[0, 0] : f32 from vector<1x1xf32>
    %898 = vector.extract_strided_slice %746 {offsets = [3, 3], sizes = [1, 1], strides = [1, 1]} : vector<4x4xf32> to vector<1x1xf32>
    %899 = vector.extract %898[0, 0] : f32 from vector<1x1xf32>
    %900 = vector.shape_cast %895 : vector<2x8x16xf32> to vector<1x2x8x16xf32>
    %cst_316 = arith.constant dense<0.000000e+00> : vector<1xf32>
    %901 = vector.multi_reduction <add>, %900, %cst_316 [1, 2, 3] : vector<1x2x8x16xf32> to vector<1xf32>
    %902 = vector.shape_cast %901 : vector<1xf32> to vector<1x1x1x1xf32>
    %903 = vector.extract %902[0, 0, 0, 0] : f32 from vector<1x1x1x1xf32>
    %cst_317 = arith.constant 2.560000e+02 : f32
    %904 = arith.divf %903, %cst_317 : f32
    %905 = vector.broadcast %904 : f32 to vector<2x8x16xf32>
    %906 = arith.subf %895, %905 : vector<2x8x16xf32>
    %907 = arith.mulf %906, %906 : vector<2x8x16xf32>
    %908 = vector.shape_cast %907 : vector<2x8x16xf32> to vector<1x2x8x16xf32>
    %cst_318 = arith.constant dense<0.000000e+00> : vector<1xf32>
    %909 = vector.multi_reduction <add>, %908, %cst_318 [1, 2, 3] : vector<1x2x8x16xf32> to vector<1xf32>
    %910 = vector.shape_cast %909 : vector<1xf32> to vector<1x1x1x1xf32>
    %911 = vector.extract %910[0, 0, 0, 0] : f32 from vector<1x1x1x1xf32>
    %cst_319 = arith.constant 2.560000e+02 : f32
    %912 = arith.divf %911, %cst_319 : f32
    %913 = vector.broadcast %904 : f32 to vector<2x8x16xf32>
    %914 = arith.subf %895, %913 : vector<2x8x16xf32>
    %cst_320 = arith.constant 9.99999974E-6 : f32
    %915 = arith.addf %912, %cst_320 : f32
    %916 = math.rsqrt %915 : f32
    %917 = vector.broadcast %916 : f32 to vector<2x8x16xf32>
    %918 = arith.mulf %914, %917 : vector<2x8x16xf32>
    %919 = vector.broadcast %897 : f32 to vector<2x8x16xf32>
    %920 = arith.mulf %918, %919 : vector<2x8x16xf32>
    %921 = vector.broadcast %899 : f32 to vector<2x8x16xf32>
    %922 = arith.addf %920, %921 : vector<2x8x16xf32>
    %c0_321 = arith.constant 0 : index
    %c0_322 = arith.constant 0 : index
    %923 = vector.load %arg6[%c0_321, %c0_322] : memref<1x10xf32, #tpu.memory_space<vmem>>, vector<1x10xf32>
    %c0_323 = arith.constant 0 : index
    %c0_324 = arith.constant 0 : index
    %924 = vector.load %arg7[%c0_323, %c0_324] : memref<4x4xf32, #tpu.memory_space<vmem>>, vector<4x4xf32>
    %cst_325 = arith.constant 0.000000e+00 : f32
    %925 = vector.broadcast %cst_325 : f32 to vector<2x8x16xf32>
    %c0_326 = arith.constant 0 : index
    %c0_327 = arith.constant 0 : index
    %c0_328 = arith.constant 0 : index
    %926 = vector.load %arg21[%c0_326, %c0_327, %c0_328] : memref<2x10x18xf32, #tpu.memory_space<vmem>>, vector<2x8x16xf32>
    %927 = vector.extract_strided_slice %923 {offsets = [0, 0], sizes = [1, 1], strides = [1, 1]} : vector<1x10xf32> to vector<1x1xf32>
    %928 = vector.extract %927[0, 0] : f32 from vector<1x1xf32>
    %929 = vector.broadcast %928 : f32 to vector<2x8x16xf32>
    %930 = arith.mulf %926, %929 : vector<2x8x16xf32>
    %931 = arith.addf %925, %930 : vector<2x8x16xf32>
    %c0_329 = arith.constant 0 : index
    %c0_330 = arith.constant 0 : index
    %c1_331 = arith.constant 1 : index
    %932 = vector.load %arg21[%c0_329, %c0_330, %c1_331] : memref<2x10x18xf32, #tpu.memory_space<vmem>>, vector<2x8x16xf32>
    %933 = vector.extract_strided_slice %923 {offsets = [0, 3], sizes = [1, 1], strides = [1, 1]} : vector<1x10xf32> to vector<1x1xf32>
    %934 = vector.extract %933[0, 0] : f32 from vector<1x1xf32>
    %935 = vector.broadcast %934 : f32 to vector<2x8x16xf32>
    %936 = arith.mulf %932, %935 : vector<2x8x16xf32>
    %937 = arith.addf %931, %936 : vector<2x8x16xf32>
    %c0_332 = arith.constant 0 : index
    %c0_333 = arith.constant 0 : index
    %c2_334 = arith.constant 2 : index
    %938 = vector.load %arg21[%c0_332, %c0_333, %c2_334] : memref<2x10x18xf32, #tpu.memory_space<vmem>>, vector<2x8x16xf32>
    %939 = vector.extract_strided_slice %923 {offsets = [0, 6], sizes = [1, 1], strides = [1, 1]} : vector<1x10xf32> to vector<1x1xf32>
    %940 = vector.extract %939[0, 0] : f32 from vector<1x1xf32>
    %941 = vector.broadcast %940 : f32 to vector<2x8x16xf32>
    %942 = arith.mulf %938, %941 : vector<2x8x16xf32>
    %943 = arith.addf %937, %942 : vector<2x8x16xf32>
    %c0_335 = arith.constant 0 : index
    %c1_336 = arith.constant 1 : index
    %c0_337 = arith.constant 0 : index
    %944 = vector.load %arg21[%c0_335, %c1_336, %c0_337] : memref<2x10x18xf32, #tpu.memory_space<vmem>>, vector<2x8x16xf32>
    %945 = vector.extract_strided_slice %923 {offsets = [0, 1], sizes = [1, 1], strides = [1, 1]} : vector<1x10xf32> to vector<1x1xf32>
    %946 = vector.extract %945[0, 0] : f32 from vector<1x1xf32>
    %947 = vector.broadcast %946 : f32 to vector<2x8x16xf32>
    %948 = arith.mulf %944, %947 : vector<2x8x16xf32>
    %949 = arith.addf %943, %948 : vector<2x8x16xf32>
    %c0_338 = arith.constant 0 : index
    %c1_339 = arith.constant 1 : index
    %c1_340 = arith.constant 1 : index
    %950 = vector.load %arg21[%c0_338, %c1_339, %c1_340] : memref<2x10x18xf32, #tpu.memory_space<vmem>>, vector<2x8x16xf32>
    %951 = vector.extract_strided_slice %923 {offsets = [0, 4], sizes = [1, 1], strides = [1, 1]} : vector<1x10xf32> to vector<1x1xf32>
    %952 = vector.extract %951[0, 0] : f32 from vector<1x1xf32>
    %953 = vector.broadcast %952 : f32 to vector<2x8x16xf32>
    %954 = arith.mulf %950, %953 : vector<2x8x16xf32>
    %955 = arith.addf %949, %954 : vector<2x8x16xf32>
    %c0_341 = arith.constant 0 : index
    %c1_342 = arith.constant 1 : index
    %c2_343 = arith.constant 2 : index
    %956 = vector.load %arg21[%c0_341, %c1_342, %c2_343] : memref<2x10x18xf32, #tpu.memory_space<vmem>>, vector<2x8x16xf32>
    %957 = vector.extract_strided_slice %923 {offsets = [0, 7], sizes = [1, 1], strides = [1, 1]} : vector<1x10xf32> to vector<1x1xf32>
    %958 = vector.extract %957[0, 0] : f32 from vector<1x1xf32>
    %959 = vector.broadcast %958 : f32 to vector<2x8x16xf32>
    %960 = arith.mulf %956, %959 : vector<2x8x16xf32>
    %961 = arith.addf %955, %960 : vector<2x8x16xf32>
    %c0_344 = arith.constant 0 : index
    %c2_345 = arith.constant 2 : index
    %c0_346 = arith.constant 0 : index
    %962 = vector.load %arg21[%c0_344, %c2_345, %c0_346] : memref<2x10x18xf32, #tpu.memory_space<vmem>>, vector<2x8x16xf32>
    %963 = vector.extract_strided_slice %923 {offsets = [0, 2], sizes = [1, 1], strides = [1, 1]} : vector<1x10xf32> to vector<1x1xf32>
    %964 = vector.extract %963[0, 0] : f32 from vector<1x1xf32>
    %965 = vector.broadcast %964 : f32 to vector<2x8x16xf32>
    %966 = arith.mulf %962, %965 : vector<2x8x16xf32>
    %967 = arith.addf %961, %966 : vector<2x8x16xf32>
    %c0_347 = arith.constant 0 : index
    %c2_348 = arith.constant 2 : index
    %c1_349 = arith.constant 1 : index
    %968 = vector.load %arg21[%c0_347, %c2_348, %c1_349] : memref<2x10x18xf32, #tpu.memory_space<vmem>>, vector<2x8x16xf32>
    %969 = vector.extract_strided_slice %923 {offsets = [0, 5], sizes = [1, 1], strides = [1, 1]} : vector<1x10xf32> to vector<1x1xf32>
    %970 = vector.extract %969[0, 0] : f32 from vector<1x1xf32>
    %971 = vector.broadcast %970 : f32 to vector<2x8x16xf32>
    %972 = arith.mulf %968, %971 : vector<2x8x16xf32>
    %973 = arith.addf %967, %972 : vector<2x8x16xf32>
    %c0_350 = arith.constant 0 : index
    %c2_351 = arith.constant 2 : index
    %c2_352 = arith.constant 2 : index
    %974 = vector.load %arg21[%c0_350, %c2_351, %c2_352] : memref<2x10x18xf32, #tpu.memory_space<vmem>>, vector<2x8x16xf32>
    %975 = vector.extract_strided_slice %923 {offsets = [0, 8], sizes = [1, 1], strides = [1, 1]} : vector<1x10xf32> to vector<1x1xf32>
    %976 = vector.extract %975[0, 0] : f32 from vector<1x1xf32>
    %977 = vector.broadcast %976 : f32 to vector<2x8x16xf32>
    %978 = arith.mulf %974, %977 : vector<2x8x16xf32>
    %979 = arith.addf %973, %978 : vector<2x8x16xf32>
    %980 = vector.extract_strided_slice %923 {offsets = [0, 9], sizes = [1, 1], strides = [1, 1]} : vector<1x10xf32> to vector<1x1xf32>
    %981 = vector.extract %980[0, 0] : f32 from vector<1x1xf32>
    %982 = vector.broadcast %981 : f32 to vector<2x8x16xf32>
    %983 = arith.addf %979, %982 : vector<2x8x16xf32>
    %984 = vector.extract_strided_slice %924 {offsets = [0, 0], sizes = [1, 1], strides = [1, 1]} : vector<4x4xf32> to vector<1x1xf32>
    %985 = vector.extract %984[0, 0] : f32 from vector<1x1xf32>
    %986 = vector.broadcast %985 : f32 to vector<2x8x16xf32>
    %987 = arith.mulf %983, %986 : vector<2x8x16xf32>
    %988 = vector.extract_strided_slice %924 {offsets = [1, 0], sizes = [1, 1], strides = [1, 1]} : vector<4x4xf32> to vector<1x1xf32>
    %989 = vector.extract %988[0, 0] : f32 from vector<1x1xf32>
    %990 = vector.broadcast %989 : f32 to vector<2x8x16xf32>
    %991 = arith.addf %987, %990 : vector<2x8x16xf32>
    %992 = vector.extract_strided_slice %924 {offsets = [2, 0], sizes = [1, 1], strides = [1, 1]} : vector<4x4xf32> to vector<1x1xf32>
    %993 = vector.extract %992[0, 0] : f32 from vector<1x1xf32>
    %994 = vector.extract_strided_slice %924 {offsets = [3, 0], sizes = [1, 1], strides = [1, 1]} : vector<4x4xf32> to vector<1x1xf32>
    %995 = vector.extract %994[0, 0] : f32 from vector<1x1xf32>
    %996 = vector.shape_cast %991 : vector<2x8x16xf32> to vector<1x2x8x16xf32>
    %cst_353 = arith.constant dense<0.000000e+00> : vector<1xf32>
    %997 = vector.multi_reduction <add>, %996, %cst_353 [1, 2, 3] : vector<1x2x8x16xf32> to vector<1xf32>
    %998 = vector.shape_cast %997 : vector<1xf32> to vector<1x1x1x1xf32>
    %999 = vector.extract %998[0, 0, 0, 0] : f32 from vector<1x1x1x1xf32>
    %cst_354 = arith.constant 2.560000e+02 : f32
    %1000 = arith.divf %999, %cst_354 : f32
    %1001 = vector.broadcast %1000 : f32 to vector<2x8x16xf32>
    %1002 = arith.subf %991, %1001 : vector<2x8x16xf32>
    %1003 = arith.mulf %1002, %1002 : vector<2x8x16xf32>
    %1004 = vector.shape_cast %1003 : vector<2x8x16xf32> to vector<1x2x8x16xf32>
    %cst_355 = arith.constant dense<0.000000e+00> : vector<1xf32>
    %1005 = vector.multi_reduction <add>, %1004, %cst_355 [1, 2, 3] : vector<1x2x8x16xf32> to vector<1xf32>
    %1006 = vector.shape_cast %1005 : vector<1xf32> to vector<1x1x1x1xf32>
    %1007 = vector.extract %1006[0, 0, 0, 0] : f32 from vector<1x1x1x1xf32>
    %cst_356 = arith.constant 2.560000e+02 : f32
    %1008 = arith.divf %1007, %cst_356 : f32
    %1009 = vector.broadcast %1000 : f32 to vector<2x8x16xf32>
    %1010 = arith.subf %991, %1009 : vector<2x8x16xf32>
    %cst_357 = arith.constant 9.99999974E-6 : f32
    %1011 = arith.addf %1008, %cst_357 : f32
    %1012 = math.rsqrt %1011 : f32
    %1013 = vector.broadcast %1012 : f32 to vector<2x8x16xf32>
    %1014 = arith.mulf %1010, %1013 : vector<2x8x16xf32>
    %1015 = vector.broadcast %993 : f32 to vector<2x8x16xf32>
    %1016 = arith.mulf %1014, %1015 : vector<2x8x16xf32>
    %1017 = vector.broadcast %995 : f32 to vector<2x8x16xf32>
    %1018 = arith.addf %1016, %1017 : vector<2x8x16xf32>
    %cst_358 = arith.constant 0.000000e+00 : f32
    %1019 = vector.broadcast %cst_358 : f32 to vector<2x8x16xf32>
    %1020 = arith.maximumf %1018, %1019 : vector<2x8x16xf32>
    %c0_359 = arith.constant 0 : index
    %c0_360 = arith.constant 0 : index
    %c1_361 = arith.constant 1 : index
    %c1_362 = arith.constant 1 : index
    %1021 = vector.load %arg22[%c0_359, %c0_360, %c1_361, %c1_362] : memref<4x2x10x18xf32, #tpu.memory_space<vmem>>, vector<1x2x8x16xf32>
    %1022 = vector.shape_cast %1021 : vector<1x2x8x16xf32> to vector<2x8x16xf32>
    %1023 = vector.shape_cast %1020 : vector<2x8x16xf32> to vector<1x2x8x16xf32>
    tpu.vector_store %arg22[%c0_359, %c0_360, %c1_361, %c1_362], %1023 {strides = array<i32>} : memref<4x2x10x18xf32, #tpu.memory_space<vmem>>, vector<1x2x8x16xf32>,
    %1024 = vector.extract_strided_slice %924 {offsets = [0, 1], sizes = [1, 1], strides = [1, 1]} : vector<4x4xf32> to vector<1x1xf32>
    %1025 = vector.extract %1024[0, 0] : f32 from vector<1x1xf32>
    %1026 = vector.broadcast %1025 : f32 to vector<2x8x16xf32>
    %1027 = arith.mulf %983, %1026 : vector<2x8x16xf32>
    %1028 = vector.extract_strided_slice %924 {offsets = [1, 1], sizes = [1, 1], strides = [1, 1]} : vector<4x4xf32> to vector<1x1xf32>
    %1029 = vector.extract %1028[0, 0] : f32 from vector<1x1xf32>
    %1030 = vector.broadcast %1029 : f32 to vector<2x8x16xf32>
    %1031 = arith.addf %1027, %1030 : vector<2x8x16xf32>
    %1032 = vector.extract_strided_slice %924 {offsets = [2, 1], sizes = [1, 1], strides = [1, 1]} : vector<4x4xf32> to vector<1x1xf32>
    %1033 = vector.extract %1032[0, 0] : f32 from vector<1x1xf32>
    %1034 = vector.extract_strided_slice %924 {offsets = [3, 1], sizes = [1, 1], strides = [1, 1]} : vector<4x4xf32> to vector<1x1xf32>
    %1035 = vector.extract %1034[0, 0] : f32 from vector<1x1xf32>
    %1036 = vector.shape_cast %1031 : vector<2x8x16xf32> to vector<1x2x8x16xf32>
    %cst_363 = arith.constant dense<0.000000e+00> : vector<1xf32>
    %1037 = vector.multi_reduction <add>, %1036, %cst_363 [1, 2, 3] : vector<1x2x8x16xf32> to vector<1xf32>
    %1038 = vector.shape_cast %1037 : vector<1xf32> to vector<1x1x1x1xf32>
    %1039 = vector.extract %1038[0, 0, 0, 0] : f32 from vector<1x1x1x1xf32>
    %cst_364 = arith.constant 2.560000e+02 : f32
    %1040 = arith.divf %1039, %cst_364 : f32
    %1041 = vector.broadcast %1040 : f32 to vector<2x8x16xf32>
    %1042 = arith.subf %1031, %1041 : vector<2x8x16xf32>
    %1043 = arith.mulf %1042, %1042 : vector<2x8x16xf32>
    %1044 = vector.shape_cast %1043 : vector<2x8x16xf32> to vector<1x2x8x16xf32>
    %cst_365 = arith.constant dense<0.000000e+00> : vector<1xf32>
    %1045 = vector.multi_reduction <add>, %1044, %cst_365 [1, 2, 3] : vector<1x2x8x16xf32> to vector<1xf32>
    %1046 = vector.shape_cast %1045 : vector<1xf32> to vector<1x1x1x1xf32>
    %1047 = vector.extract %1046[0, 0, 0, 0] : f32 from vector<1x1x1x1xf32>
    %cst_366 = arith.constant 2.560000e+02 : f32
    %1048 = arith.divf %1047, %cst_366 : f32
    %1049 = vector.broadcast %1040 : f32 to vector<2x8x16xf32>
    %1050 = arith.subf %1031, %1049 : vector<2x8x16xf32>
    %cst_367 = arith.constant 9.99999974E-6 : f32
    %1051 = arith.addf %1048, %cst_367 : f32
    %1052 = math.rsqrt %1051 : f32
    %1053 = vector.broadcast %1052 : f32 to vector<2x8x16xf32>
    %1054 = arith.mulf %1050, %1053 : vector<2x8x16xf32>
    %1055 = vector.broadcast %1033 : f32 to vector<2x8x16xf32>
    %1056 = arith.mulf %1054, %1055 : vector<2x8x16xf32>
    %1057 = vector.broadcast %1035 : f32 to vector<2x8x16xf32>
    %1058 = arith.addf %1056, %1057 : vector<2x8x16xf32>
    %cst_368 = arith.constant 0.000000e+00 : f32
    %1059 = vector.broadcast %cst_368 : f32 to vector<2x8x16xf32>
    %1060 = arith.maximumf %1058, %1059 : vector<2x8x16xf32>
    %c1_369 = arith.constant 1 : index
    %c0_370 = arith.constant 0 : index
    %c1_371 = arith.constant 1 : index
    %c1_372 = arith.constant 1 : index
    %1061 = vector.load %arg22[%c1_369, %c0_370, %c1_371, %c1_372] : memref<4x2x10x18xf32, #tpu.memory_space<vmem>>, vector<1x2x8x16xf32>
    %1062 = vector.shape_cast %1061 : vector<1x2x8x16xf32> to vector<2x8x16xf32>
    %1063 = vector.shape_cast %1060 : vector<2x8x16xf32> to vector<1x2x8x16xf32>
    tpu.vector_store %arg22[%c1_369, %c0_370, %c1_371, %c1_372], %1063 {strides = array<i32>} : memref<4x2x10x18xf32, #tpu.memory_space<vmem>>, vector<1x2x8x16xf32>,
    %1064 = vector.extract_strided_slice %924 {offsets = [0, 2], sizes = [1, 1], strides = [1, 1]} : vector<4x4xf32> to vector<1x1xf32>
    %1065 = vector.extract %1064[0, 0] : f32 from vector<1x1xf32>
    %1066 = vector.broadcast %1065 : f32 to vector<2x8x16xf32>
    %1067 = arith.mulf %983, %1066 : vector<2x8x16xf32>
    %1068 = vector.extract_strided_slice %924 {offsets = [1, 2], sizes = [1, 1], strides = [1, 1]} : vector<4x4xf32> to vector<1x1xf32>
    %1069 = vector.extract %1068[0, 0] : f32 from vector<1x1xf32>
    %1070 = vector.broadcast %1069 : f32 to vector<2x8x16xf32>
    %1071 = arith.addf %1067, %1070 : vector<2x8x16xf32>
    %1072 = vector.extract_strided_slice %924 {offsets = [2, 2], sizes = [1, 1], strides = [1, 1]} : vector<4x4xf32> to vector<1x1xf32>
    %1073 = vector.extract %1072[0, 0] : f32 from vector<1x1xf32>
    %1074 = vector.extract_strided_slice %924 {offsets = [3, 2], sizes = [1, 1], strides = [1, 1]} : vector<4x4xf32> to vector<1x1xf32>
    %1075 = vector.extract %1074[0, 0] : f32 from vector<1x1xf32>
    %1076 = vector.shape_cast %1071 : vector<2x8x16xf32> to vector<1x2x8x16xf32>
    %cst_373 = arith.constant dense<0.000000e+00> : vector<1xf32>
    %1077 = vector.multi_reduction <add>, %1076, %cst_373 [1, 2, 3] : vector<1x2x8x16xf32> to vector<1xf32>
    %1078 = vector.shape_cast %1077 : vector<1xf32> to vector<1x1x1x1xf32>
    %1079 = vector.extract %1078[0, 0, 0, 0] : f32 from vector<1x1x1x1xf32>
    %cst_374 = arith.constant 2.560000e+02 : f32
    %1080 = arith.divf %1079, %cst_374 : f32
    %1081 = vector.broadcast %1080 : f32 to vector<2x8x16xf32>
    %1082 = arith.subf %1071, %1081 : vector<2x8x16xf32>
    %1083 = arith.mulf %1082, %1082 : vector<2x8x16xf32>
    %1084 = vector.shape_cast %1083 : vector<2x8x16xf32> to vector<1x2x8x16xf32>
    %cst_375 = arith.constant dense<0.000000e+00> : vector<1xf32>
    %1085 = vector.multi_reduction <add>, %1084, %cst_375 [1, 2, 3] : vector<1x2x8x16xf32> to vector<1xf32>
    %1086 = vector.shape_cast %1085 : vector<1xf32> to vector<1x1x1x1xf32>
    %1087 = vector.extract %1086[0, 0, 0, 0] : f32 from vector<1x1x1x1xf32>
    %cst_376 = arith.constant 2.560000e+02 : f32
    %1088 = arith.divf %1087, %cst_376 : f32
    %1089 = vector.broadcast %1080 : f32 to vector<2x8x16xf32>
    %1090 = arith.subf %1071, %1089 : vector<2x8x16xf32>
    %cst_377 = arith.constant 9.99999974E-6 : f32
    %1091 = arith.addf %1088, %cst_377 : f32
    %1092 = math.rsqrt %1091 : f32
    %1093 = vector.broadcast %1092 : f32 to vector<2x8x16xf32>
    %1094 = arith.mulf %1090, %1093 : vector<2x8x16xf32>
    %1095 = vector.broadcast %1073 : f32 to vector<2x8x16xf32>
    %1096 = arith.mulf %1094, %1095 : vector<2x8x16xf32>
    %1097 = vector.broadcast %1075 : f32 to vector<2x8x16xf32>
    %1098 = arith.addf %1096, %1097 : vector<2x8x16xf32>
    %cst_378 = arith.constant 0.000000e+00 : f32
    %1099 = vector.broadcast %cst_378 : f32 to vector<2x8x16xf32>
    %1100 = arith.maximumf %1098, %1099 : vector<2x8x16xf32>
    %c2_379 = arith.constant 2 : index
    %c0_380 = arith.constant 0 : index
    %c1_381 = arith.constant 1 : index
    %c1_382 = arith.constant 1 : index
    %1101 = vector.load %arg22[%c2_379, %c0_380, %c1_381, %c1_382] : memref<4x2x10x18xf32, #tpu.memory_space<vmem>>, vector<1x2x8x16xf32>
    %1102 = vector.shape_cast %1101 : vector<1x2x8x16xf32> to vector<2x8x16xf32>
    %1103 = vector.shape_cast %1100 : vector<2x8x16xf32> to vector<1x2x8x16xf32>
    tpu.vector_store %arg22[%c2_379, %c0_380, %c1_381, %c1_382], %1103 {strides = array<i32>} : memref<4x2x10x18xf32, #tpu.memory_space<vmem>>, vector<1x2x8x16xf32>,
    %1104 = vector.extract_strided_slice %924 {offsets = [0, 3], sizes = [1, 1], strides = [1, 1]} : vector<4x4xf32> to vector<1x1xf32>
    %1105 = vector.extract %1104[0, 0] : f32 from vector<1x1xf32>
    %1106 = vector.broadcast %1105 : f32 to vector<2x8x16xf32>
    %1107 = arith.mulf %983, %1106 : vector<2x8x16xf32>
    %1108 = vector.extract_strided_slice %924 {offsets = [1, 3], sizes = [1, 1], strides = [1, 1]} : vector<4x4xf32> to vector<1x1xf32>
    %1109 = vector.extract %1108[0, 0] : f32 from vector<1x1xf32>
    %1110 = vector.broadcast %1109 : f32 to vector<2x8x16xf32>
    %1111 = arith.addf %1107, %1110 : vector<2x8x16xf32>
    %1112 = vector.extract_strided_slice %924 {offsets = [2, 3], sizes = [1, 1], strides = [1, 1]} : vector<4x4xf32> to vector<1x1xf32>
    %1113 = vector.extract %1112[0, 0] : f32 from vector<1x1xf32>
    %1114 = vector.extract_strided_slice %924 {offsets = [3, 3], sizes = [1, 1], strides = [1, 1]} : vector<4x4xf32> to vector<1x1xf32>
    %1115 = vector.extract %1114[0, 0] : f32 from vector<1x1xf32>
    %1116 = vector.shape_cast %1111 : vector<2x8x16xf32> to vector<1x2x8x16xf32>
    %cst_383 = arith.constant dense<0.000000e+00> : vector<1xf32>
    %1117 = vector.multi_reduction <add>, %1116, %cst_383 [1, 2, 3] : vector<1x2x8x16xf32> to vector<1xf32>
    %1118 = vector.shape_cast %1117 : vector<1xf32> to vector<1x1x1x1xf32>
    %1119 = vector.extract %1118[0, 0, 0, 0] : f32 from vector<1x1x1x1xf32>
    %cst_384 = arith.constant 2.560000e+02 : f32
    %1120 = arith.divf %1119, %cst_384 : f32
    %1121 = vector.broadcast %1120 : f32 to vector<2x8x16xf32>
    %1122 = arith.subf %1111, %1121 : vector<2x8x16xf32>
    %1123 = arith.mulf %1122, %1122 : vector<2x8x16xf32>
    %1124 = vector.shape_cast %1123 : vector<2x8x16xf32> to vector<1x2x8x16xf32>
    %cst_385 = arith.constant dense<0.000000e+00> : vector<1xf32>
    %1125 = vector.multi_reduction <add>, %1124, %cst_385 [1, 2, 3] : vector<1x2x8x16xf32> to vector<1xf32>
    %1126 = vector.shape_cast %1125 : vector<1xf32> to vector<1x1x1x1xf32>
    %1127 = vector.extract %1126[0, 0, 0, 0] : f32 from vector<1x1x1x1xf32>
    %cst_386 = arith.constant 2.560000e+02 : f32
    %1128 = arith.divf %1127, %cst_386 : f32
    %1129 = vector.broadcast %1120 : f32 to vector<2x8x16xf32>
    %1130 = arith.subf %1111, %1129 : vector<2x8x16xf32>
    %cst_387 = arith.constant 9.99999974E-6 : f32
    %1131 = arith.addf %1128, %cst_387 : f32
    %1132 = math.rsqrt %1131 : f32
    %1133 = vector.broadcast %1132 : f32 to vector<2x8x16xf32>
    %1134 = arith.mulf %1130, %1133 : vector<2x8x16xf32>
    %1135 = vector.broadcast %1113 : f32 to vector<2x8x16xf32>
    %1136 = arith.mulf %1134, %1135 : vector<2x8x16xf32>
    %1137 = vector.broadcast %1115 : f32 to vector<2x8x16xf32>
    %1138 = arith.addf %1136, %1137 : vector<2x8x16xf32>
    %cst_388 = arith.constant 0.000000e+00 : f32
    %1139 = vector.broadcast %cst_388 : f32 to vector<2x8x16xf32>
    %1140 = arith.maximumf %1138, %1139 : vector<2x8x16xf32>
    %c3_389 = arith.constant 3 : index
    %c0_390 = arith.constant 0 : index
    %c1_391 = arith.constant 1 : index
    %c1_392 = arith.constant 1 : index
    %1141 = vector.load %arg22[%c3_389, %c0_390, %c1_391, %c1_392] : memref<4x2x10x18xf32, #tpu.memory_space<vmem>>, vector<1x2x8x16xf32>
    %1142 = vector.shape_cast %1141 : vector<1x2x8x16xf32> to vector<2x8x16xf32>
    %1143 = vector.shape_cast %1140 : vector<2x8x16xf32> to vector<1x2x8x16xf32>
    tpu.vector_store %arg22[%c3_389, %c0_390, %c1_391, %c1_392], %1143 {strides = array<i32>} : memref<4x2x10x18xf32, #tpu.memory_space<vmem>>, vector<1x2x8x16xf32>,
    %c0_393 = arith.constant 0 : index
    %c0_394 = arith.constant 0 : index
    %1144 = vector.load %arg8[%c0_393, %c0_394] : memref<4x10xf32, #tpu.memory_space<vmem>>, vector<4x10xf32>
    %c0_395 = arith.constant 0 : index
    %c0_396 = arith.constant 0 : index
    %1145 = vector.load %arg9[%c0_395, %c0_396] : memref<4x4xf32, #tpu.memory_space<vmem>>, vector<4x4xf32>
    %c0_397 = arith.constant 0 : index
    %c0_398 = arith.constant 0 : index
    %1146 = vector.load %arg10[%c0_397, %c0_398] : memref<3x4xf32, #tpu.memory_space<vmem>>, vector<3x4xf32>
    %cst_399 = arith.constant 0.000000e+00 : f32
    %1147 = vector.broadcast %cst_399 : f32 to vector<2x8x16xf32>
    %c0_400 = arith.constant 0 : index
    %c0_401 = arith.constant 0 : index
    %c0_402 = arith.constant 0 : index
    %c0_403 = arith.constant 0 : index
    %1148 = vector.load %arg22[%c0_400, %c0_401, %c0_402, %c0_403] : memref<4x2x10x18xf32, #tpu.memory_space<vmem>>, vector<1x2x8x16xf32>
    %1149 = vector.shape_cast %1148 : vector<1x2x8x16xf32> to vector<2x8x16xf32>
    %1150 = vector.extract_strided_slice %1144 {offsets = [0, 0], sizes = [1, 1], strides = [1, 1]} : vector<4x10xf32> to vector<1x1xf32>
    %1151 = vector.extract %1150[0, 0] : f32 from vector<1x1xf32>
    %1152 = vector.broadcast %1151 : f32 to vector<2x8x16xf32>
    %1153 = arith.mulf %1149, %1152 : vector<2x8x16xf32>
    %1154 = arith.addf %1147, %1153 : vector<2x8x16xf32>
    %c0_404 = arith.constant 0 : index
    %c0_405 = arith.constant 0 : index
    %c0_406 = arith.constant 0 : index
    %c1_407 = arith.constant 1 : index
    %1155 = vector.load %arg22[%c0_404, %c0_405, %c0_406, %c1_407] : memref<4x2x10x18xf32, #tpu.memory_space<vmem>>, vector<1x2x8x16xf32>
    %1156 = vector.shape_cast %1155 : vector<1x2x8x16xf32> to vector<2x8x16xf32>
    %1157 = vector.extract_strided_slice %1144 {offsets = [0, 3], sizes = [1, 1], strides = [1, 1]} : vector<4x10xf32> to vector<1x1xf32>
    %1158 = vector.extract %1157[0, 0] : f32 from vector<1x1xf32>
    %1159 = vector.broadcast %1158 : f32 to vector<2x8x16xf32>
    %1160 = arith.mulf %1156, %1159 : vector<2x8x16xf32>
    %1161 = arith.addf %1154, %1160 : vector<2x8x16xf32>
    %c0_408 = arith.constant 0 : index
    %c0_409 = arith.constant 0 : index
    %c0_410 = arith.constant 0 : index
    %c2_411 = arith.constant 2 : index
    %1162 = vector.load %arg22[%c0_408, %c0_409, %c0_410, %c2_411] : memref<4x2x10x18xf32, #tpu.memory_space<vmem>>, vector<1x2x8x16xf32>
    %1163 = vector.shape_cast %1162 : vector<1x2x8x16xf32> to vector<2x8x16xf32>
    %1164 = vector.extract_strided_slice %1144 {offsets = [0, 6], sizes = [1, 1], strides = [1, 1]} : vector<4x10xf32> to vector<1x1xf32>
    %1165 = vector.extract %1164[0, 0] : f32 from vector<1x1xf32>
    %1166 = vector.broadcast %1165 : f32 to vector<2x8x16xf32>
    %1167 = arith.mulf %1163, %1166 : vector<2x8x16xf32>
    %1168 = arith.addf %1161, %1167 : vector<2x8x16xf32>
    %c0_412 = arith.constant 0 : index
    %c0_413 = arith.constant 0 : index
    %c1_414 = arith.constant 1 : index
    %c0_415 = arith.constant 0 : index
    %1169 = vector.load %arg22[%c0_412, %c0_413, %c1_414, %c0_415] : memref<4x2x10x18xf32, #tpu.memory_space<vmem>>, vector<1x2x8x16xf32>
    %1170 = vector.shape_cast %1169 : vector<1x2x8x16xf32> to vector<2x8x16xf32>
    %1171 = vector.extract_strided_slice %1144 {offsets = [0, 1], sizes = [1, 1], strides = [1, 1]} : vector<4x10xf32> to vector<1x1xf32>
    %1172 = vector.extract %1171[0, 0] : f32 from vector<1x1xf32>
    %1173 = vector.broadcast %1172 : f32 to vector<2x8x16xf32>
    %1174 = arith.mulf %1170, %1173 : vector<2x8x16xf32>
    %1175 = arith.addf %1168, %1174 : vector<2x8x16xf32>
    %c0_416 = arith.constant 0 : index
    %c0_417 = arith.constant 0 : index
    %c1_418 = arith.constant 1 : index
    %c1_419 = arith.constant 1 : index
    %1176 = vector.load %arg22[%c0_416, %c0_417, %c1_418, %c1_419] : memref<4x2x10x18xf32, #tpu.memory_space<vmem>>, vector<1x2x8x16xf32>
    %1177 = vector.shape_cast %1176 : vector<1x2x8x16xf32> to vector<2x8x16xf32>
    %1178 = vector.extract_strided_slice %1144 {offsets = [0, 4], sizes = [1, 1], strides = [1, 1]} : vector<4x10xf32> to vector<1x1xf32>
    %1179 = vector.extract %1178[0, 0] : f32 from vector<1x1xf32>
    %1180 = vector.broadcast %1179 : f32 to vector<2x8x16xf32>
    %1181 = arith.mulf %1177, %1180 : vector<2x8x16xf32>
    %1182 = arith.addf %1175, %1181 : vector<2x8x16xf32>
    %c0_420 = arith.constant 0 : index
    %c0_421 = arith.constant 0 : index
    %c1_422 = arith.constant 1 : index
    %c2_423 = arith.constant 2 : index
    %1183 = vector.load %arg22[%c0_420, %c0_421, %c1_422, %c2_423] : memref<4x2x10x18xf32, #tpu.memory_space<vmem>>, vector<1x2x8x16xf32>
    %1184 = vector.shape_cast %1183 : vector<1x2x8x16xf32> to vector<2x8x16xf32>
    %1185 = vector.extract_strided_slice %1144 {offsets = [0, 7], sizes = [1, 1], strides = [1, 1]} : vector<4x10xf32> to vector<1x1xf32>
    %1186 = vector.extract %1185[0, 0] : f32 from vector<1x1xf32>
    %1187 = vector.broadcast %1186 : f32 to vector<2x8x16xf32>
    %1188 = arith.mulf %1184, %1187 : vector<2x8x16xf32>
    %1189 = arith.addf %1182, %1188 : vector<2x8x16xf32>
    %c0_424 = arith.constant 0 : index
    %c0_425 = arith.constant 0 : index
    %c2_426 = arith.constant 2 : index
    %c0_427 = arith.constant 0 : index
    %1190 = vector.load %arg22[%c0_424, %c0_425, %c2_426, %c0_427] : memref<4x2x10x18xf32, #tpu.memory_space<vmem>>, vector<1x2x8x16xf32>
    %1191 = vector.shape_cast %1190 : vector<1x2x8x16xf32> to vector<2x8x16xf32>
    %1192 = vector.extract_strided_slice %1144 {offsets = [0, 2], sizes = [1, 1], strides = [1, 1]} : vector<4x10xf32> to vector<1x1xf32>
    %1193 = vector.extract %1192[0, 0] : f32 from vector<1x1xf32>
    %1194 = vector.broadcast %1193 : f32 to vector<2x8x16xf32>
    %1195 = arith.mulf %1191, %1194 : vector<2x8x16xf32>
    %1196 = arith.addf %1189, %1195 : vector<2x8x16xf32>
    %c0_428 = arith.constant 0 : index
    %c0_429 = arith.constant 0 : index
    %c2_430 = arith.constant 2 : index
    %c1_431 = arith.constant 1 : index
    %1197 = vector.load %arg22[%c0_428, %c0_429, %c2_430, %c1_431] : memref<4x2x10x18xf32, #tpu.memory_space<vmem>>, vector<1x2x8x16xf32>
    %1198 = vector.shape_cast %1197 : vector<1x2x8x16xf32> to vector<2x8x16xf32>
    %1199 = vector.extract_strided_slice %1144 {offsets = [0, 5], sizes = [1, 1], strides = [1, 1]} : vector<4x10xf32> to vector<1x1xf32>
    %1200 = vector.extract %1199[0, 0] : f32 from vector<1x1xf32>
    %1201 = vector.broadcast %1200 : f32 to vector<2x8x16xf32>
    %1202 = arith.mulf %1198, %1201 : vector<2x8x16xf32>
    %1203 = arith.addf %1196, %1202 : vector<2x8x16xf32>
    %c0_432 = arith.constant 0 : index
    %c0_433 = arith.constant 0 : index
    %c2_434 = arith.constant 2 : index
    %c2_435 = arith.constant 2 : index
    %1204 = vector.load %arg22[%c0_432, %c0_433, %c2_434, %c2_435] : memref<4x2x10x18xf32, #tpu.memory_space<vmem>>, vector<1x2x8x16xf32>
    %1205 = vector.shape_cast %1204 : vector<1x2x8x16xf32> to vector<2x8x16xf32>
    %1206 = vector.extract_strided_slice %1144 {offsets = [0, 8], sizes = [1, 1], strides = [1, 1]} : vector<4x10xf32> to vector<1x1xf32>
    %1207 = vector.extract %1206[0, 0] : f32 from vector<1x1xf32>
    %1208 = vector.broadcast %1207 : f32 to vector<2x8x16xf32>
    %1209 = arith.mulf %1205, %1208 : vector<2x8x16xf32>
    %1210 = arith.addf %1203, %1209 : vector<2x8x16xf32>
    %1211 = vector.extract_strided_slice %1144 {offsets = [0, 9], sizes = [1, 1], strides = [1, 1]} : vector<4x10xf32> to vector<1x1xf32>
    %1212 = vector.extract %1211[0, 0] : f32 from vector<1x1xf32>
    %1213 = vector.broadcast %1212 : f32 to vector<2x8x16xf32>
    %1214 = arith.addf %1210, %1213 : vector<2x8x16xf32>
    %cst_436 = arith.constant 0.000000e+00 : f32
    %1215 = vector.broadcast %cst_436 : f32 to vector<2x8x16xf32>
    %c1_437 = arith.constant 1 : index
    %c0_438 = arith.constant 0 : index
    %c0_439 = arith.constant 0 : index
    %c0_440 = arith.constant 0 : index
    %1216 = vector.load %arg22[%c1_437, %c0_438, %c0_439, %c0_440] : memref<4x2x10x18xf32, #tpu.memory_space<vmem>>, vector<1x2x8x16xf32>
    %1217 = vector.shape_cast %1216 : vector<1x2x8x16xf32> to vector<2x8x16xf32>
    %1218 = vector.extract_strided_slice %1144 {offsets = [1, 0], sizes = [1, 1], strides = [1, 1]} : vector<4x10xf32> to vector<1x1xf32>
    %1219 = vector.extract %1218[0, 0] : f32 from vector<1x1xf32>
    %1220 = vector.broadcast %1219 : f32 to vector<2x8x16xf32>
    %1221 = arith.mulf %1217, %1220 : vector<2x8x16xf32>
    %1222 = arith.addf %1215, %1221 : vector<2x8x16xf32>
    %c1_441 = arith.constant 1 : index
    %c0_442 = arith.constant 0 : index
    %c0_443 = arith.constant 0 : index
    %c1_444 = arith.constant 1 : index
    %1223 = vector.load %arg22[%c1_441, %c0_442, %c0_443, %c1_444] : memref<4x2x10x18xf32, #tpu.memory_space<vmem>>, vector<1x2x8x16xf32>
    %1224 = vector.shape_cast %1223 : vector<1x2x8x16xf32> to vector<2x8x16xf32>
    %1225 = vector.extract_strided_slice %1144 {offsets = [1, 3], sizes = [1, 1], strides = [1, 1]} : vector<4x10xf32> to vector<1x1xf32>
    %1226 = vector.extract %1225[0, 0] : f32 from vector<1x1xf32>
    %1227 = vector.broadcast %1226 : f32 to vector<2x8x16xf32>
    %1228 = arith.mulf %1224, %1227 : vector<2x8x16xf32>
    %1229 = arith.addf %1222, %1228 : vector<2x8x16xf32>
    %c1_445 = arith.constant 1 : index
    %c0_446 = arith.constant 0 : index
    %c0_447 = arith.constant 0 : index
    %c2_448 = arith.constant 2 : index
    %1230 = vector.load %arg22[%c1_445, %c0_446, %c0_447, %c2_448] : memref<4x2x10x18xf32, #tpu.memory_space<vmem>>, vector<1x2x8x16xf32>
    %1231 = vector.shape_cast %1230 : vector<1x2x8x16xf32> to vector<2x8x16xf32>
    %1232 = vector.extract_strided_slice %1144 {offsets = [1, 6], sizes = [1, 1], strides = [1, 1]} : vector<4x10xf32> to vector<1x1xf32>
    %1233 = vector.extract %1232[0, 0] : f32 from vector<1x1xf32>
    %1234 = vector.broadcast %1233 : f32 to vector<2x8x16xf32>
    %1235 = arith.mulf %1231, %1234 : vector<2x8x16xf32>
    %1236 = arith.addf %1229, %1235 : vector<2x8x16xf32>
    %c1_449 = arith.constant 1 : index
    %c0_450 = arith.constant 0 : index
    %c1_451 = arith.constant 1 : index
    %c0_452 = arith.constant 0 : index
    %1237 = vector.load %arg22[%c1_449, %c0_450, %c1_451, %c0_452] : memref<4x2x10x18xf32, #tpu.memory_space<vmem>>, vector<1x2x8x16xf32>
    %1238 = vector.shape_cast %1237 : vector<1x2x8x16xf32> to vector<2x8x16xf32>
    %1239 = vector.extract_strided_slice %1144 {offsets = [1, 1], sizes = [1, 1], strides = [1, 1]} : vector<4x10xf32> to vector<1x1xf32>
    %1240 = vector.extract %1239[0, 0] : f32 from vector<1x1xf32>
    %1241 = vector.broadcast %1240 : f32 to vector<2x8x16xf32>
    %1242 = arith.mulf %1238, %1241 : vector<2x8x16xf32>
    %1243 = arith.addf %1236, %1242 : vector<2x8x16xf32>
    %c1_453 = arith.constant 1 : index
    %c0_454 = arith.constant 0 : index
    %c1_455 = arith.constant 1 : index
    %c1_456 = arith.constant 1 : index
    %1244 = vector.load %arg22[%c1_453, %c0_454, %c1_455, %c1_456] : memref<4x2x10x18xf32, #tpu.memory_space<vmem>>, vector<1x2x8x16xf32>
    %1245 = vector.shape_cast %1244 : vector<1x2x8x16xf32> to vector<2x8x16xf32>
    %1246 = vector.extract_strided_slice %1144 {offsets = [1, 4], sizes = [1, 1], strides = [1, 1]} : vector<4x10xf32> to vector<1x1xf32>
    %1247 = vector.extract %1246[0, 0] : f32 from vector<1x1xf32>
    %1248 = vector.broadcast %1247 : f32 to vector<2x8x16xf32>
    %1249 = arith.mulf %1245, %1248 : vector<2x8x16xf32>
    %1250 = arith.addf %1243, %1249 : vector<2x8x16xf32>
    %c1_457 = arith.constant 1 : index
    %c0_458 = arith.constant 0 : index
    %c1_459 = arith.constant 1 : index
    %c2_460 = arith.constant 2 : index
    %1251 = vector.load %arg22[%c1_457, %c0_458, %c1_459, %c2_460] : memref<4x2x10x18xf32, #tpu.memory_space<vmem>>, vector<1x2x8x16xf32>
    %1252 = vector.shape_cast %1251 : vector<1x2x8x16xf32> to vector<2x8x16xf32>
    %1253 = vector.extract_strided_slice %1144 {offsets = [1, 7], sizes = [1, 1], strides = [1, 1]} : vector<4x10xf32> to vector<1x1xf32>
    %1254 = vector.extract %1253[0, 0] : f32 from vector<1x1xf32>
    %1255 = vector.broadcast %1254 : f32 to vector<2x8x16xf32>
    %1256 = arith.mulf %1252, %1255 : vector<2x8x16xf32>
    %1257 = arith.addf %1250, %1256 : vector<2x8x16xf32>
    %c1_461 = arith.constant 1 : index
    %c0_462 = arith.constant 0 : index
    %c2_463 = arith.constant 2 : index
    %c0_464 = arith.constant 0 : index
    %1258 = vector.load %arg22[%c1_461, %c0_462, %c2_463, %c0_464] : memref<4x2x10x18xf32, #tpu.memory_space<vmem>>, vector<1x2x8x16xf32>
    %1259 = vector.shape_cast %1258 : vector<1x2x8x16xf32> to vector<2x8x16xf32>
    %1260 = vector.extract_strided_slice %1144 {offsets = [1, 2], sizes = [1, 1], strides = [1, 1]} : vector<4x10xf32> to vector<1x1xf32>
    %1261 = vector.extract %1260[0, 0] : f32 from vector<1x1xf32>
    %1262 = vector.broadcast %1261 : f32 to vector<2x8x16xf32>
    %1263 = arith.mulf %1259, %1262 : vector<2x8x16xf32>
    %1264 = arith.addf %1257, %1263 : vector<2x8x16xf32>
    %c1_465 = arith.constant 1 : index
    %c0_466 = arith.constant 0 : index
    %c2_467 = arith.constant 2 : index
    %c1_468 = arith.constant 1 : index
    %1265 = vector.load %arg22[%c1_465, %c0_466, %c2_467, %c1_468] : memref<4x2x10x18xf32, #tpu.memory_space<vmem>>, vector<1x2x8x16xf32>
    %1266 = vector.shape_cast %1265 : vector<1x2x8x16xf32> to vector<2x8x16xf32>
    %1267 = vector.extract_strided_slice %1144 {offsets = [1, 5], sizes = [1, 1], strides = [1, 1]} : vector<4x10xf32> to vector<1x1xf32>
    %1268 = vector.extract %1267[0, 0] : f32 from vector<1x1xf32>
    %1269 = vector.broadcast %1268 : f32 to vector<2x8x16xf32>
    %1270 = arith.mulf %1266, %1269 : vector<2x8x16xf32>
    %1271 = arith.addf %1264, %1270 : vector<2x8x16xf32>
    %c1_469 = arith.constant 1 : index
    %c0_470 = arith.constant 0 : index
    %c2_471 = arith.constant 2 : index
    %c2_472 = arith.constant 2 : index
    %1272 = vector.load %arg22[%c1_469, %c0_470, %c2_471, %c2_472] : memref<4x2x10x18xf32, #tpu.memory_space<vmem>>, vector<1x2x8x16xf32>
    %1273 = vector.shape_cast %1272 : vector<1x2x8x16xf32> to vector<2x8x16xf32>
    %1274 = vector.extract_strided_slice %1144 {offsets = [1, 8], sizes = [1, 1], strides = [1, 1]} : vector<4x10xf32> to vector<1x1xf32>
    %1275 = vector.extract %1274[0, 0] : f32 from vector<1x1xf32>
    %1276 = vector.broadcast %1275 : f32 to vector<2x8x16xf32>
    %1277 = arith.mulf %1273, %1276 : vector<2x8x16xf32>
    %1278 = arith.addf %1271, %1277 : vector<2x8x16xf32>
    %1279 = vector.extract_strided_slice %1144 {offsets = [1, 9], sizes = [1, 1], strides = [1, 1]} : vector<4x10xf32> to vector<1x1xf32>
    %1280 = vector.extract %1279[0, 0] : f32 from vector<1x1xf32>
    %1281 = vector.broadcast %1280 : f32 to vector<2x8x16xf32>
    %1282 = arith.addf %1278, %1281 : vector<2x8x16xf32>
    %cst_473 = arith.constant 0.000000e+00 : f32
    %1283 = vector.broadcast %cst_473 : f32 to vector<2x8x16xf32>
    %c2_474 = arith.constant 2 : index
    %c0_475 = arith.constant 0 : index
    %c0_476 = arith.constant 0 : index
    %c0_477 = arith.constant 0 : index
    %1284 = vector.load %arg22[%c2_474, %c0_475, %c0_476, %c0_477] : memref<4x2x10x18xf32, #tpu.memory_space<vmem>>, vector<1x2x8x16xf32>
    %1285 = vector.shape_cast %1284 : vector<1x2x8x16xf32> to vector<2x8x16xf32>
    %1286 = vector.extract_strided_slice %1144 {offsets = [2, 0], sizes = [1, 1], strides = [1, 1]} : vector<4x10xf32> to vector<1x1xf32>
    %1287 = vector.extract %1286[0, 0] : f32 from vector<1x1xf32>
    %1288 = vector.broadcast %1287 : f32 to vector<2x8x16xf32>
    %1289 = arith.mulf %1285, %1288 : vector<2x8x16xf32>
    %1290 = arith.addf %1283, %1289 : vector<2x8x16xf32>
    %c2_478 = arith.constant 2 : index
    %c0_479 = arith.constant 0 : index
    %c0_480 = arith.constant 0 : index
    %c1_481 = arith.constant 1 : index
    %1291 = vector.load %arg22[%c2_478, %c0_479, %c0_480, %c1_481] : memref<4x2x10x18xf32, #tpu.memory_space<vmem>>, vector<1x2x8x16xf32>
    %1292 = vector.shape_cast %1291 : vector<1x2x8x16xf32> to vector<2x8x16xf32>
    %1293 = vector.extract_strided_slice %1144 {offsets = [2, 3], sizes = [1, 1], strides = [1, 1]} : vector<4x10xf32> to vector<1x1xf32>
    %1294 = vector.extract %1293[0, 0] : f32 from vector<1x1xf32>
    %1295 = vector.broadcast %1294 : f32 to vector<2x8x16xf32>
    %1296 = arith.mulf %1292, %1295 : vector<2x8x16xf32>
    %1297 = arith.addf %1290, %1296 : vector<2x8x16xf32>
    %c2_482 = arith.constant 2 : index
    %c0_483 = arith.constant 0 : index
    %c0_484 = arith.constant 0 : index
    %c2_485 = arith.constant 2 : index
    %1298 = vector.load %arg22[%c2_482, %c0_483, %c0_484, %c2_485] : memref<4x2x10x18xf32, #tpu.memory_space<vmem>>, vector<1x2x8x16xf32>
    %1299 = vector.shape_cast %1298 : vector<1x2x8x16xf32> to vector<2x8x16xf32>
    %1300 = vector.extract_strided_slice %1144 {offsets = [2, 6], sizes = [1, 1], strides = [1, 1]} : vector<4x10xf32> to vector<1x1xf32>
    %1301 = vector.extract %1300[0, 0] : f32 from vector<1x1xf32>
    %1302 = vector.broadcast %1301 : f32 to vector<2x8x16xf32>
    %1303 = arith.mulf %1299, %1302 : vector<2x8x16xf32>
    %1304 = arith.addf %1297, %1303 : vector<2x8x16xf32>
    %c2_486 = arith.constant 2 : index
    %c0_487 = arith.constant 0 : index
    %c1_488 = arith.constant 1 : index
    %c0_489 = arith.constant 0 : index
    %1305 = vector.load %arg22[%c2_486, %c0_487, %c1_488, %c0_489] : memref<4x2x10x18xf32, #tpu.memory_space<vmem>>, vector<1x2x8x16xf32>
    %1306 = vector.shape_cast %1305 : vector<1x2x8x16xf32> to vector<2x8x16xf32>
    %1307 = vector.extract_strided_slice %1144 {offsets = [2, 1], sizes = [1, 1], strides = [1, 1]} : vector<4x10xf32> to vector<1x1xf32>
    %1308 = vector.extract %1307[0, 0] : f32 from vector<1x1xf32>
    %1309 = vector.broadcast %1308 : f32 to vector<2x8x16xf32>
    %1310 = arith.mulf %1306, %1309 : vector<2x8x16xf32>
    %1311 = arith.addf %1304, %1310 : vector<2x8x16xf32>
    %c2_490 = arith.constant 2 : index
    %c0_491 = arith.constant 0 : index
    %c1_492 = arith.constant 1 : index
    %c1_493 = arith.constant 1 : index
    %1312 = vector.load %arg22[%c2_490, %c0_491, %c1_492, %c1_493] : memref<4x2x10x18xf32, #tpu.memory_space<vmem>>, vector<1x2x8x16xf32>
    %1313 = vector.shape_cast %1312 : vector<1x2x8x16xf32> to vector<2x8x16xf32>
    %1314 = vector.extract_strided_slice %1144 {offsets = [2, 4], sizes = [1, 1], strides = [1, 1]} : vector<4x10xf32> to vector<1x1xf32>
    %1315 = vector.extract %1314[0, 0] : f32 from vector<1x1xf32>
    %1316 = vector.broadcast %1315 : f32 to vector<2x8x16xf32>
    %1317 = arith.mulf %1313, %1316 : vector<2x8x16xf32>
    %1318 = arith.addf %1311, %1317 : vector<2x8x16xf32>
    %c2_494 = arith.constant 2 : index
    %c0_495 = arith.constant 0 : index
    %c1_496 = arith.constant 1 : index
    %c2_497 = arith.constant 2 : index
    %1319 = vector.load %arg22[%c2_494, %c0_495, %c1_496, %c2_497] : memref<4x2x10x18xf32, #tpu.memory_space<vmem>>, vector<1x2x8x16xf32>
    %1320 = vector.shape_cast %1319 : vector<1x2x8x16xf32> to vector<2x8x16xf32>
    %1321 = vector.extract_strided_slice %1144 {offsets = [2, 7], sizes = [1, 1], strides = [1, 1]} : vector<4x10xf32> to vector<1x1xf32>
    %1322 = vector.extract %1321[0, 0] : f32 from vector<1x1xf32>
    %1323 = vector.broadcast %1322 : f32 to vector<2x8x16xf32>
    %1324 = arith.mulf %1320, %1323 : vector<2x8x16xf32>
    %1325 = arith.addf %1318, %1324 : vector<2x8x16xf32>
    %c2_498 = arith.constant 2 : index
    %c0_499 = arith.constant 0 : index
    %c2_500 = arith.constant 2 : index
    %c0_501 = arith.constant 0 : index
    %1326 = vector.load %arg22[%c2_498, %c0_499, %c2_500, %c0_501] : memref<4x2x10x18xf32, #tpu.memory_space<vmem>>, vector<1x2x8x16xf32>
    %1327 = vector.shape_cast %1326 : vector<1x2x8x16xf32> to vector<2x8x16xf32>
    %1328 = vector.extract_strided_slice %1144 {offsets = [2, 2], sizes = [1, 1], strides = [1, 1]} : vector<4x10xf32> to vector<1x1xf32>
    %1329 = vector.extract %1328[0, 0] : f32 from vector<1x1xf32>
    %1330 = vector.broadcast %1329 : f32 to vector<2x8x16xf32>
    %1331 = arith.mulf %1327, %1330 : vector<2x8x16xf32>
    %1332 = arith.addf %1325, %1331 : vector<2x8x16xf32>
    %c2_502 = arith.constant 2 : index
    %c0_503 = arith.constant 0 : index
    %c2_504 = arith.constant 2 : index
    %c1_505 = arith.constant 1 : index
    %1333 = vector.load %arg22[%c2_502, %c0_503, %c2_504, %c1_505] : memref<4x2x10x18xf32, #tpu.memory_space<vmem>>, vector<1x2x8x16xf32>
    %1334 = vector.shape_cast %1333 : vector<1x2x8x16xf32> to vector<2x8x16xf32>
    %1335 = vector.extract_strided_slice %1144 {offsets = [2, 5], sizes = [1, 1], strides = [1, 1]} : vector<4x10xf32> to vector<1x1xf32>
    %1336 = vector.extract %1335[0, 0] : f32 from vector<1x1xf32>
    %1337 = vector.broadcast %1336 : f32 to vector<2x8x16xf32>
    %1338 = arith.mulf %1334, %1337 : vector<2x8x16xf32>
    %1339 = arith.addf %1332, %1338 : vector<2x8x16xf32>
    %c2_506 = arith.constant 2 : index
    %c0_507 = arith.constant 0 : index
    %c2_508 = arith.constant 2 : index
    %c2_509 = arith.constant 2 : index
    %1340 = vector.load %arg22[%c2_506, %c0_507, %c2_508, %c2_509] : memref<4x2x10x18xf32, #tpu.memory_space<vmem>>, vector<1x2x8x16xf32>
    %1341 = vector.shape_cast %1340 : vector<1x2x8x16xf32> to vector<2x8x16xf32>
    %1342 = vector.extract_strided_slice %1144 {offsets = [2, 8], sizes = [1, 1], strides = [1, 1]} : vector<4x10xf32> to vector<1x1xf32>
    %1343 = vector.extract %1342[0, 0] : f32 from vector<1x1xf32>
    %1344 = vector.broadcast %1343 : f32 to vector<2x8x16xf32>
    %1345 = arith.mulf %1341, %1344 : vector<2x8x16xf32>
    %1346 = arith.addf %1339, %1345 : vector<2x8x16xf32>
    %1347 = vector.extract_strided_slice %1144 {offsets = [2, 9], sizes = [1, 1], strides = [1, 1]} : vector<4x10xf32> to vector<1x1xf32>
    %1348 = vector.extract %1347[0, 0] : f32 from vector<1x1xf32>
    %1349 = vector.broadcast %1348 : f32 to vector<2x8x16xf32>
    %1350 = arith.addf %1346, %1349 : vector<2x8x16xf32>
    %cst_510 = arith.constant 0.000000e+00 : f32
    %1351 = vector.broadcast %cst_510 : f32 to vector<2x8x16xf32>
    %c3_511 = arith.constant 3 : index
    %c0_512 = arith.constant 0 : index
    %c0_513 = arith.constant 0 : index
    %c0_514 = arith.constant 0 : index
    %1352 = vector.load %arg22[%c3_511, %c0_512, %c0_513, %c0_514] : memref<4x2x10x18xf32, #tpu.memory_space<vmem>>, vector<1x2x8x16xf32>
    %1353 = vector.shape_cast %1352 : vector<1x2x8x16xf32> to vector<2x8x16xf32>
    %1354 = vector.extract_strided_slice %1144 {offsets = [3, 0], sizes = [1, 1], strides = [1, 1]} : vector<4x10xf32> to vector<1x1xf32>
    %1355 = vector.extract %1354[0, 0] : f32 from vector<1x1xf32>
    %1356 = vector.broadcast %1355 : f32 to vector<2x8x16xf32>
    %1357 = arith.mulf %1353, %1356 : vector<2x8x16xf32>
    %1358 = arith.addf %1351, %1357 : vector<2x8x16xf32>
    %c3_515 = arith.constant 3 : index
    %c0_516 = arith.constant 0 : index
    %c0_517 = arith.constant 0 : index
    %c1_518 = arith.constant 1 : index
    %1359 = vector.load %arg22[%c3_515, %c0_516, %c0_517, %c1_518] : memref<4x2x10x18xf32, #tpu.memory_space<vmem>>, vector<1x2x8x16xf32>
    %1360 = vector.shape_cast %1359 : vector<1x2x8x16xf32> to vector<2x8x16xf32>
    %1361 = vector.extract_strided_slice %1144 {offsets = [3, 3], sizes = [1, 1], strides = [1, 1]} : vector<4x10xf32> to vector<1x1xf32>
    %1362 = vector.extract %1361[0, 0] : f32 from vector<1x1xf32>
    %1363 = vector.broadcast %1362 : f32 to vector<2x8x16xf32>
    %1364 = arith.mulf %1360, %1363 : vector<2x8x16xf32>
    %1365 = arith.addf %1358, %1364 : vector<2x8x16xf32>
    %c3_519 = arith.constant 3 : index
    %c0_520 = arith.constant 0 : index
    %c0_521 = arith.constant 0 : index
    %c2_522 = arith.constant 2 : index
    %1366 = vector.load %arg22[%c3_519, %c0_520, %c0_521, %c2_522] : memref<4x2x10x18xf32, #tpu.memory_space<vmem>>, vector<1x2x8x16xf32>
    %1367 = vector.shape_cast %1366 : vector<1x2x8x16xf32> to vector<2x8x16xf32>
    %1368 = vector.extract_strided_slice %1144 {offsets = [3, 6], sizes = [1, 1], strides = [1, 1]} : vector<4x10xf32> to vector<1x1xf32>
    %1369 = vector.extract %1368[0, 0] : f32 from vector<1x1xf32>
    %1370 = vector.broadcast %1369 : f32 to vector<2x8x16xf32>
    %1371 = arith.mulf %1367, %1370 : vector<2x8x16xf32>
    %1372 = arith.addf %1365, %1371 : vector<2x8x16xf32>
    %c3_523 = arith.constant 3 : index
    %c0_524 = arith.constant 0 : index
    %c1_525 = arith.constant 1 : index
    %c0_526 = arith.constant 0 : index
    %1373 = vector.load %arg22[%c3_523, %c0_524, %c1_525, %c0_526] : memref<4x2x10x18xf32, #tpu.memory_space<vmem>>, vector<1x2x8x16xf32>
    %1374 = vector.shape_cast %1373 : vector<1x2x8x16xf32> to vector<2x8x16xf32>
    %1375 = vector.extract_strided_slice %1144 {offsets = [3, 1], sizes = [1, 1], strides = [1, 1]} : vector<4x10xf32> to vector<1x1xf32>
    %1376 = vector.extract %1375[0, 0] : f32 from vector<1x1xf32>
    %1377 = vector.broadcast %1376 : f32 to vector<2x8x16xf32>
    %1378 = arith.mulf %1374, %1377 : vector<2x8x16xf32>
    %1379 = arith.addf %1372, %1378 : vector<2x8x16xf32>
    %c3_527 = arith.constant 3 : index
    %c0_528 = arith.constant 0 : index
    %c1_529 = arith.constant 1 : index
    %c1_530 = arith.constant 1 : index
    %1380 = vector.load %arg22[%c3_527, %c0_528, %c1_529, %c1_530] : memref<4x2x10x18xf32, #tpu.memory_space<vmem>>, vector<1x2x8x16xf32>
    %1381 = vector.shape_cast %1380 : vector<1x2x8x16xf32> to vector<2x8x16xf32>
    %1382 = vector.extract_strided_slice %1144 {offsets = [3, 4], sizes = [1, 1], strides = [1, 1]} : vector<4x10xf32> to vector<1x1xf32>
    %1383 = vector.extract %1382[0, 0] : f32 from vector<1x1xf32>
    %1384 = vector.broadcast %1383 : f32 to vector<2x8x16xf32>
    %1385 = arith.mulf %1381, %1384 : vector<2x8x16xf32>
    %1386 = arith.addf %1379, %1385 : vector<2x8x16xf32>
    %c3_531 = arith.constant 3 : index
    %c0_532 = arith.constant 0 : index
    %c1_533 = arith.constant 1 : index
    %c2_534 = arith.constant 2 : index
    %1387 = vector.load %arg22[%c3_531, %c0_532, %c1_533, %c2_534] : memref<4x2x10x18xf32, #tpu.memory_space<vmem>>, vector<1x2x8x16xf32>
    %1388 = vector.shape_cast %1387 : vector<1x2x8x16xf32> to vector<2x8x16xf32>
    %1389 = vector.extract_strided_slice %1144 {offsets = [3, 7], sizes = [1, 1], strides = [1, 1]} : vector<4x10xf32> to vector<1x1xf32>
    %1390 = vector.extract %1389[0, 0] : f32 from vector<1x1xf32>
    %1391 = vector.broadcast %1390 : f32 to vector<2x8x16xf32>
    %1392 = arith.mulf %1388, %1391 : vector<2x8x16xf32>
    %1393 = arith.addf %1386, %1392 : vector<2x8x16xf32>
    %c3_535 = arith.constant 3 : index
    %c0_536 = arith.constant 0 : index
    %c2_537 = arith.constant 2 : index
    %c0_538 = arith.constant 0 : index
    %1394 = vector.load %arg22[%c3_535, %c0_536, %c2_537, %c0_538] : memref<4x2x10x18xf32, #tpu.memory_space<vmem>>, vector<1x2x8x16xf32>
    %1395 = vector.shape_cast %1394 : vector<1x2x8x16xf32> to vector<2x8x16xf32>
    %1396 = vector.extract_strided_slice %1144 {offsets = [3, 2], sizes = [1, 1], strides = [1, 1]} : vector<4x10xf32> to vector<1x1xf32>
    %1397 = vector.extract %1396[0, 0] : f32 from vector<1x1xf32>
    %1398 = vector.broadcast %1397 : f32 to vector<2x8x16xf32>
    %1399 = arith.mulf %1395, %1398 : vector<2x8x16xf32>
    %1400 = arith.addf %1393, %1399 : vector<2x8x16xf32>
    %c3_539 = arith.constant 3 : index
    %c0_540 = arith.constant 0 : index
    %c2_541 = arith.constant 2 : index
    %c1_542 = arith.constant 1 : index
    %1401 = vector.load %arg22[%c3_539, %c0_540, %c2_541, %c1_542] : memref<4x2x10x18xf32, #tpu.memory_space<vmem>>, vector<1x2x8x16xf32>
    %1402 = vector.shape_cast %1401 : vector<1x2x8x16xf32> to vector<2x8x16xf32>
    %1403 = vector.extract_strided_slice %1144 {offsets = [3, 5], sizes = [1, 1], strides = [1, 1]} : vector<4x10xf32> to vector<1x1xf32>
    %1404 = vector.extract %1403[0, 0] : f32 from vector<1x1xf32>
    %1405 = vector.broadcast %1404 : f32 to vector<2x8x16xf32>
    %1406 = arith.mulf %1402, %1405 : vector<2x8x16xf32>
    %1407 = arith.addf %1400, %1406 : vector<2x8x16xf32>
    %c3_543 = arith.constant 3 : index
    %c0_544 = arith.constant 0 : index
    %c2_545 = arith.constant 2 : index
    %c2_546 = arith.constant 2 : index
    %1408 = vector.load %arg22[%c3_543, %c0_544, %c2_545, %c2_546] : memref<4x2x10x18xf32, #tpu.memory_space<vmem>>, vector<1x2x8x16xf32>
    %1409 = vector.shape_cast %1408 : vector<1x2x8x16xf32> to vector<2x8x16xf32>
    %1410 = vector.extract_strided_slice %1144 {offsets = [3, 8], sizes = [1, 1], strides = [1, 1]} : vector<4x10xf32> to vector<1x1xf32>
    %1411 = vector.extract %1410[0, 0] : f32 from vector<1x1xf32>
    %1412 = vector.broadcast %1411 : f32 to vector<2x8x16xf32>
    %1413 = arith.mulf %1409, %1412 : vector<2x8x16xf32>
    %1414 = arith.addf %1407, %1413 : vector<2x8x16xf32>
    %1415 = vector.extract_strided_slice %1144 {offsets = [3, 9], sizes = [1, 1], strides = [1, 1]} : vector<4x10xf32> to vector<1x1xf32>
    %1416 = vector.extract %1415[0, 0] : f32 from vector<1x1xf32>
    %1417 = vector.broadcast %1416 : f32 to vector<2x8x16xf32>
    %1418 = arith.addf %1414, %1417 : vector<2x8x16xf32>
    %1419 = vector.extract_strided_slice %1145 {offsets = [0, 0], sizes = [1, 1], strides = [1, 1]} : vector<4x4xf32> to vector<1x1xf32>
    %1420 = vector.extract %1419[0, 0] : f32 from vector<1x1xf32>
    %1421 = vector.broadcast %1420 : f32 to vector<2x8x16xf32>
    %1422 = arith.mulf %1214, %1421 : vector<2x8x16xf32>
    %1423 = vector.extract_strided_slice %1145 {offsets = [0, 1], sizes = [1, 1], strides = [1, 1]} : vector<4x4xf32> to vector<1x1xf32>
    %1424 = vector.extract %1423[0, 0] : f32 from vector<1x1xf32>
    %1425 = vector.broadcast %1424 : f32 to vector<2x8x16xf32>
    %1426 = arith.mulf %1282, %1425 : vector<2x8x16xf32>
    %1427 = arith.addf %1422, %1426 : vector<2x8x16xf32>
    %1428 = vector.extract_strided_slice %1145 {offsets = [0, 2], sizes = [1, 1], strides = [1, 1]} : vector<4x4xf32> to vector<1x1xf32>
    %1429 = vector.extract %1428[0, 0] : f32 from vector<1x1xf32>
    %1430 = vector.broadcast %1429 : f32 to vector<2x8x16xf32>
    %1431 = arith.mulf %1350, %1430 : vector<2x8x16xf32>
    %1432 = arith.addf %1427, %1431 : vector<2x8x16xf32>
    %1433 = vector.extract_strided_slice %1145 {offsets = [0, 3], sizes = [1, 1], strides = [1, 1]} : vector<4x4xf32> to vector<1x1xf32>
    %1434 = vector.extract %1433[0, 0] : f32 from vector<1x1xf32>
    %1435 = vector.broadcast %1434 : f32 to vector<2x8x16xf32>
    %1436 = arith.mulf %1418, %1435 : vector<2x8x16xf32>
    %1437 = arith.addf %1432, %1436 : vector<2x8x16xf32>
    %1438 = vector.extract_strided_slice %1146 {offsets = [0, 0], sizes = [1, 1], strides = [1, 1]} : vector<3x4xf32> to vector<1x1xf32>
    %1439 = vector.extract %1438[0, 0] : f32 from vector<1x1xf32>
    %1440 = vector.broadcast %1439 : f32 to vector<2x8x16xf32>
    %1441 = arith.addf %1437, %1440 : vector<2x8x16xf32>
    %1442 = vector.extract_strided_slice %1146 {offsets = [1, 0], sizes = [1, 1], strides = [1, 1]} : vector<3x4xf32> to vector<1x1xf32>
    %1443 = vector.extract %1442[0, 0] : f32 from vector<1x1xf32>
    %1444 = vector.extract_strided_slice %1146 {offsets = [2, 0], sizes = [1, 1], strides = [1, 1]} : vector<3x4xf32> to vector<1x1xf32>
    %1445 = vector.extract %1444[0, 0] : f32 from vector<1x1xf32>
    %1446 = vector.shape_cast %1441 : vector<2x8x16xf32> to vector<1x2x8x16xf32>
    %cst_547 = arith.constant dense<0.000000e+00> : vector<1xf32>
    %1447 = vector.multi_reduction <add>, %1446, %cst_547 [1, 2, 3] : vector<1x2x8x16xf32> to vector<1xf32>
    %1448 = vector.shape_cast %1447 : vector<1xf32> to vector<1x1x1x1xf32>
    %1449 = vector.extract %1448[0, 0, 0, 0] : f32 from vector<1x1x1x1xf32>
    %cst_548 = arith.constant 2.560000e+02 : f32
    %1450 = arith.divf %1449, %cst_548 : f32
    %1451 = vector.broadcast %1450 : f32 to vector<2x8x16xf32>
    %1452 = arith.subf %1441, %1451 : vector<2x8x16xf32>
    %1453 = arith.mulf %1452, %1452 : vector<2x8x16xf32>
    %1454 = vector.shape_cast %1453 : vector<2x8x16xf32> to vector<1x2x8x16xf32>
    %cst_549 = arith.constant dense<0.000000e+00> : vector<1xf32>
    %1455 = vector.multi_reduction <add>, %1454, %cst_549 [1, 2, 3] : vector<1x2x8x16xf32> to vector<1xf32>
    %1456 = vector.shape_cast %1455 : vector<1xf32> to vector<1x1x1x1xf32>
    %1457 = vector.extract %1456[0, 0, 0, 0] : f32 from vector<1x1x1x1xf32>
    %cst_550 = arith.constant 2.560000e+02 : f32
    %1458 = arith.divf %1457, %cst_550 : f32
    %1459 = vector.broadcast %1450 : f32 to vector<2x8x16xf32>
    %1460 = arith.subf %1441, %1459 : vector<2x8x16xf32>
    %cst_551 = arith.constant 9.99999974E-6 : f32
    %1461 = arith.addf %1458, %cst_551 : f32
    %1462 = math.rsqrt %1461 : f32
    %1463 = vector.broadcast %1462 : f32 to vector<2x8x16xf32>
    %1464 = arith.mulf %1460, %1463 : vector<2x8x16xf32>
    %1465 = vector.broadcast %1443 : f32 to vector<2x8x16xf32>
    %1466 = arith.mulf %1464, %1465 : vector<2x8x16xf32>
    %1467 = vector.broadcast %1445 : f32 to vector<2x8x16xf32>
    %1468 = arith.addf %1466, %1467 : vector<2x8x16xf32>
    %c0_552 = arith.constant 0 : index
    %c0_553 = arith.constant 0 : index
    %c1_554 = arith.constant 1 : index
    %c1_555 = arith.constant 1 : index
    %1469 = vector.load %arg23[%c0_552, %c0_553, %c1_554, %c1_555] : memref<4x2x10x18xf32, #tpu.memory_space<vmem>>, vector<1x2x8x16xf32>
    %1470 = vector.shape_cast %1469 : vector<1x2x8x16xf32> to vector<2x8x16xf32>
    %1471 = vector.shape_cast %1468 : vector<2x8x16xf32> to vector<1x2x8x16xf32>
    tpu.vector_store %arg23[%c0_552, %c0_553, %c1_554, %c1_555], %1471 {strides = array<i32>} : memref<4x2x10x18xf32, #tpu.memory_space<vmem>>, vector<1x2x8x16xf32>,
    %1472 = vector.extract_strided_slice %1145 {offsets = [1, 0], sizes = [1, 1], strides = [1, 1]} : vector<4x4xf32> to vector<1x1xf32>
    %1473 = vector.extract %1472[0, 0] : f32 from vector<1x1xf32>
    %1474 = vector.broadcast %1473 : f32 to vector<2x8x16xf32>
    %1475 = arith.mulf %1214, %1474 : vector<2x8x16xf32>
    %1476 = vector.extract_strided_slice %1145 {offsets = [1, 1], sizes = [1, 1], strides = [1, 1]} : vector<4x4xf32> to vector<1x1xf32>
    %1477 = vector.extract %1476[0, 0] : f32 from vector<1x1xf32>
    %1478 = vector.broadcast %1477 : f32 to vector<2x8x16xf32>
    %1479 = arith.mulf %1282, %1478 : vector<2x8x16xf32>
    %1480 = arith.addf %1475, %1479 : vector<2x8x16xf32>
    %1481 = vector.extract_strided_slice %1145 {offsets = [1, 2], sizes = [1, 1], strides = [1, 1]} : vector<4x4xf32> to vector<1x1xf32>
    %1482 = vector.extract %1481[0, 0] : f32 from vector<1x1xf32>
    %1483 = vector.broadcast %1482 : f32 to vector<2x8x16xf32>
    %1484 = arith.mulf %1350, %1483 : vector<2x8x16xf32>
    %1485 = arith.addf %1480, %1484 : vector<2x8x16xf32>
    %1486 = vector.extract_strided_slice %1145 {offsets = [1, 3], sizes = [1, 1], strides = [1, 1]} : vector<4x4xf32> to vector<1x1xf32>
    %1487 = vector.extract %1486[0, 0] : f32 from vector<1x1xf32>
    %1488 = vector.broadcast %1487 : f32 to vector<2x8x16xf32>
    %1489 = arith.mulf %1418, %1488 : vector<2x8x16xf32>
    %1490 = arith.addf %1485, %1489 : vector<2x8x16xf32>
    %1491 = vector.extract_strided_slice %1146 {offsets = [0, 1], sizes = [1, 1], strides = [1, 1]} : vector<3x4xf32> to vector<1x1xf32>
    %1492 = vector.extract %1491[0, 0] : f32 from vector<1x1xf32>
    %1493 = vector.broadcast %1492 : f32 to vector<2x8x16xf32>
    %1494 = arith.addf %1490, %1493 : vector<2x8x16xf32>
    %1495 = vector.extract_strided_slice %1146 {offsets = [1, 1], sizes = [1, 1], strides = [1, 1]} : vector<3x4xf32> to vector<1x1xf32>
    %1496 = vector.extract %1495[0, 0] : f32 from vector<1x1xf32>
    %1497 = vector.extract_strided_slice %1146 {offsets = [2, 1], sizes = [1, 1], strides = [1, 1]} : vector<3x4xf32> to vector<1x1xf32>
    %1498 = vector.extract %1497[0, 0] : f32 from vector<1x1xf32>
    %1499 = vector.shape_cast %1494 : vector<2x8x16xf32> to vector<1x2x8x16xf32>
    %cst_556 = arith.constant dense<0.000000e+00> : vector<1xf32>
    %1500 = vector.multi_reduction <add>, %1499, %cst_556 [1, 2, 3] : vector<1x2x8x16xf32> to vector<1xf32>
    %1501 = vector.shape_cast %1500 : vector<1xf32> to vector<1x1x1x1xf32>
    %1502 = vector.extract %1501[0, 0, 0, 0] : f32 from vector<1x1x1x1xf32>
    %cst_557 = arith.constant 2.560000e+02 : f32
    %1503 = arith.divf %1502, %cst_557 : f32
    %1504 = vector.broadcast %1503 : f32 to vector<2x8x16xf32>
    %1505 = arith.subf %1494, %1504 : vector<2x8x16xf32>
    %1506 = arith.mulf %1505, %1505 : vector<2x8x16xf32>
    %1507 = vector.shape_cast %1506 : vector<2x8x16xf32> to vector<1x2x8x16xf32>
    %cst_558 = arith.constant dense<0.000000e+00> : vector<1xf32>
    %1508 = vector.multi_reduction <add>, %1507, %cst_558 [1, 2, 3] : vector<1x2x8x16xf32> to vector<1xf32>
    %1509 = vector.shape_cast %1508 : vector<1xf32> to vector<1x1x1x1xf32>
    %1510 = vector.extract %1509[0, 0, 0, 0] : f32 from vector<1x1x1x1xf32>
    %cst_559 = arith.constant 2.560000e+02 : f32
    %1511 = arith.divf %1510, %cst_559 : f32
    %1512 = vector.broadcast %1503 : f32 to vector<2x8x16xf32>
    %1513 = arith.subf %1494, %1512 : vector<2x8x16xf32>
    %cst_560 = arith.constant 9.99999974E-6 : f32
    %1514 = arith.addf %1511, %cst_560 : f32
    %1515 = math.rsqrt %1514 : f32
    %1516 = vector.broadcast %1515 : f32 to vector<2x8x16xf32>
    %1517 = arith.mulf %1513, %1516 : vector<2x8x16xf32>
    %1518 = vector.broadcast %1496 : f32 to vector<2x8x16xf32>
    %1519 = arith.mulf %1517, %1518 : vector<2x8x16xf32>
    %1520 = vector.broadcast %1498 : f32 to vector<2x8x16xf32>
    %1521 = arith.addf %1519, %1520 : vector<2x8x16xf32>
    %c1_561 = arith.constant 1 : index
    %c0_562 = arith.constant 0 : index
    %c1_563 = arith.constant 1 : index
    %c1_564 = arith.constant 1 : index
    %1522 = vector.load %arg23[%c1_561, %c0_562, %c1_563, %c1_564] : memref<4x2x10x18xf32, #tpu.memory_space<vmem>>, vector<1x2x8x16xf32>
    %1523 = vector.shape_cast %1522 : vector<1x2x8x16xf32> to vector<2x8x16xf32>
    %1524 = vector.shape_cast %1521 : vector<2x8x16xf32> to vector<1x2x8x16xf32>
    tpu.vector_store %arg23[%c1_561, %c0_562, %c1_563, %c1_564], %1524 {strides = array<i32>} : memref<4x2x10x18xf32, #tpu.memory_space<vmem>>, vector<1x2x8x16xf32>,
    %1525 = vector.extract_strided_slice %1145 {offsets = [2, 0], sizes = [1, 1], strides = [1, 1]} : vector<4x4xf32> to vector<1x1xf32>
    %1526 = vector.extract %1525[0, 0] : f32 from vector<1x1xf32>
    %1527 = vector.broadcast %1526 : f32 to vector<2x8x16xf32>
    %1528 = arith.mulf %1214, %1527 : vector<2x8x16xf32>
    %1529 = vector.extract_strided_slice %1145 {offsets = [2, 1], sizes = [1, 1], strides = [1, 1]} : vector<4x4xf32> to vector<1x1xf32>
    %1530 = vector.extract %1529[0, 0] : f32 from vector<1x1xf32>
    %1531 = vector.broadcast %1530 : f32 to vector<2x8x16xf32>
    %1532 = arith.mulf %1282, %1531 : vector<2x8x16xf32>
    %1533 = arith.addf %1528, %1532 : vector<2x8x16xf32>
    %1534 = vector.extract_strided_slice %1145 {offsets = [2, 2], sizes = [1, 1], strides = [1, 1]} : vector<4x4xf32> to vector<1x1xf32>
    %1535 = vector.extract %1534[0, 0] : f32 from vector<1x1xf32>
    %1536 = vector.broadcast %1535 : f32 to vector<2x8x16xf32>
    %1537 = arith.mulf %1350, %1536 : vector<2x8x16xf32>
    %1538 = arith.addf %1533, %1537 : vector<2x8x16xf32>
    %1539 = vector.extract_strided_slice %1145 {offsets = [2, 3], sizes = [1, 1], strides = [1, 1]} : vector<4x4xf32> to vector<1x1xf32>
    %1540 = vector.extract %1539[0, 0] : f32 from vector<1x1xf32>
    %1541 = vector.broadcast %1540 : f32 to vector<2x8x16xf32>
    %1542 = arith.mulf %1418, %1541 : vector<2x8x16xf32>
    %1543 = arith.addf %1538, %1542 : vector<2x8x16xf32>
    %1544 = vector.extract_strided_slice %1146 {offsets = [0, 2], sizes = [1, 1], strides = [1, 1]} : vector<3x4xf32> to vector<1x1xf32>
    %1545 = vector.extract %1544[0, 0] : f32 from vector<1x1xf32>
    %1546 = vector.broadcast %1545 : f32 to vector<2x8x16xf32>
    %1547 = arith.addf %1543, %1546 : vector<2x8x16xf32>
    %1548 = vector.extract_strided_slice %1146 {offsets = [1, 2], sizes = [1, 1], strides = [1, 1]} : vector<3x4xf32> to vector<1x1xf32>
    %1549 = vector.extract %1548[0, 0] : f32 from vector<1x1xf32>
    %1550 = vector.extract_strided_slice %1146 {offsets = [2, 2], sizes = [1, 1], strides = [1, 1]} : vector<3x4xf32> to vector<1x1xf32>
    %1551 = vector.extract %1550[0, 0] : f32 from vector<1x1xf32>
    %1552 = vector.shape_cast %1547 : vector<2x8x16xf32> to vector<1x2x8x16xf32>
    %cst_565 = arith.constant dense<0.000000e+00> : vector<1xf32>
    %1553 = vector.multi_reduction <add>, %1552, %cst_565 [1, 2, 3] : vector<1x2x8x16xf32> to vector<1xf32>
    %1554 = vector.shape_cast %1553 : vector<1xf32> to vector<1x1x1x1xf32>
    %1555 = vector.extract %1554[0, 0, 0, 0] : f32 from vector<1x1x1x1xf32>
    %cst_566 = arith.constant 2.560000e+02 : f32
    %1556 = arith.divf %1555, %cst_566 : f32
    %1557 = vector.broadcast %1556 : f32 to vector<2x8x16xf32>
    %1558 = arith.subf %1547, %1557 : vector<2x8x16xf32>
    %1559 = arith.mulf %1558, %1558 : vector<2x8x16xf32>
    %1560 = vector.shape_cast %1559 : vector<2x8x16xf32> to vector<1x2x8x16xf32>
    %cst_567 = arith.constant dense<0.000000e+00> : vector<1xf32>
    %1561 = vector.multi_reduction <add>, %1560, %cst_567 [1, 2, 3] : vector<1x2x8x16xf32> to vector<1xf32>
    %1562 = vector.shape_cast %1561 : vector<1xf32> to vector<1x1x1x1xf32>
    %1563 = vector.extract %1562[0, 0, 0, 0] : f32 from vector<1x1x1x1xf32>
    %cst_568 = arith.constant 2.560000e+02 : f32
    %1564 = arith.divf %1563, %cst_568 : f32
    %1565 = vector.broadcast %1556 : f32 to vector<2x8x16xf32>
    %1566 = arith.subf %1547, %1565 : vector<2x8x16xf32>
    %cst_569 = arith.constant 9.99999974E-6 : f32
    %1567 = arith.addf %1564, %cst_569 : f32
    %1568 = math.rsqrt %1567 : f32
    %1569 = vector.broadcast %1568 : f32 to vector<2x8x16xf32>
    %1570 = arith.mulf %1566, %1569 : vector<2x8x16xf32>
    %1571 = vector.broadcast %1549 : f32 to vector<2x8x16xf32>
    %1572 = arith.mulf %1570, %1571 : vector<2x8x16xf32>
    %1573 = vector.broadcast %1551 : f32 to vector<2x8x16xf32>
    %1574 = arith.addf %1572, %1573 : vector<2x8x16xf32>
    %c2_570 = arith.constant 2 : index
    %c0_571 = arith.constant 0 : index
    %c1_572 = arith.constant 1 : index
    %c1_573 = arith.constant 1 : index
    %1575 = vector.load %arg23[%c2_570, %c0_571, %c1_572, %c1_573] : memref<4x2x10x18xf32, #tpu.memory_space<vmem>>, vector<1x2x8x16xf32>
    %1576 = vector.shape_cast %1575 : vector<1x2x8x16xf32> to vector<2x8x16xf32>
    %1577 = vector.shape_cast %1574 : vector<2x8x16xf32> to vector<1x2x8x16xf32>
    tpu.vector_store %arg23[%c2_570, %c0_571, %c1_572, %c1_573], %1577 {strides = array<i32>} : memref<4x2x10x18xf32, #tpu.memory_space<vmem>>, vector<1x2x8x16xf32>,
    %1578 = vector.extract_strided_slice %1145 {offsets = [3, 0], sizes = [1, 1], strides = [1, 1]} : vector<4x4xf32> to vector<1x1xf32>
    %1579 = vector.extract %1578[0, 0] : f32 from vector<1x1xf32>
    %1580 = vector.broadcast %1579 : f32 to vector<2x8x16xf32>
    %1581 = arith.mulf %1214, %1580 : vector<2x8x16xf32>
    %1582 = vector.extract_strided_slice %1145 {offsets = [3, 1], sizes = [1, 1], strides = [1, 1]} : vector<4x4xf32> to vector<1x1xf32>
    %1583 = vector.extract %1582[0, 0] : f32 from vector<1x1xf32>
    %1584 = vector.broadcast %1583 : f32 to vector<2x8x16xf32>
    %1585 = arith.mulf %1282, %1584 : vector<2x8x16xf32>
    %1586 = arith.addf %1581, %1585 : vector<2x8x16xf32>
    %1587 = vector.extract_strided_slice %1145 {offsets = [3, 2], sizes = [1, 1], strides = [1, 1]} : vector<4x4xf32> to vector<1x1xf32>
    %1588 = vector.extract %1587[0, 0] : f32 from vector<1x1xf32>
    %1589 = vector.broadcast %1588 : f32 to vector<2x8x16xf32>
    %1590 = arith.mulf %1350, %1589 : vector<2x8x16xf32>
    %1591 = arith.addf %1586, %1590 : vector<2x8x16xf32>
    %1592 = vector.extract_strided_slice %1145 {offsets = [3, 3], sizes = [1, 1], strides = [1, 1]} : vector<4x4xf32> to vector<1x1xf32>
    %1593 = vector.extract %1592[0, 0] : f32 from vector<1x1xf32>
    %1594 = vector.broadcast %1593 : f32 to vector<2x8x16xf32>
    %1595 = arith.mulf %1418, %1594 : vector<2x8x16xf32>
    %1596 = arith.addf %1591, %1595 : vector<2x8x16xf32>
    %1597 = vector.extract_strided_slice %1146 {offsets = [0, 3], sizes = [1, 1], strides = [1, 1]} : vector<3x4xf32> to vector<1x1xf32>
    %1598 = vector.extract %1597[0, 0] : f32 from vector<1x1xf32>
    %1599 = vector.broadcast %1598 : f32 to vector<2x8x16xf32>
    %1600 = arith.addf %1596, %1599 : vector<2x8x16xf32>
    %1601 = vector.extract_strided_slice %1146 {offsets = [1, 3], sizes = [1, 1], strides = [1, 1]} : vector<3x4xf32> to vector<1x1xf32>
    %1602 = vector.extract %1601[0, 0] : f32 from vector<1x1xf32>
    %1603 = vector.extract_strided_slice %1146 {offsets = [2, 3], sizes = [1, 1], strides = [1, 1]} : vector<3x4xf32> to vector<1x1xf32>
    %1604 = vector.extract %1603[0, 0] : f32 from vector<1x1xf32>
    %1605 = vector.shape_cast %1600 : vector<2x8x16xf32> to vector<1x2x8x16xf32>
    %cst_574 = arith.constant dense<0.000000e+00> : vector<1xf32>
    %1606 = vector.multi_reduction <add>, %1605, %cst_574 [1, 2, 3] : vector<1x2x8x16xf32> to vector<1xf32>
    %1607 = vector.shape_cast %1606 : vector<1xf32> to vector<1x1x1x1xf32>
    %1608 = vector.extract %1607[0, 0, 0, 0] : f32 from vector<1x1x1x1xf32>
    %cst_575 = arith.constant 2.560000e+02 : f32
    %1609 = arith.divf %1608, %cst_575 : f32
    %1610 = vector.broadcast %1609 : f32 to vector<2x8x16xf32>
    %1611 = arith.subf %1600, %1610 : vector<2x8x16xf32>
    %1612 = arith.mulf %1611, %1611 : vector<2x8x16xf32>
    %1613 = vector.shape_cast %1612 : vector<2x8x16xf32> to vector<1x2x8x16xf32>
    %cst_576 = arith.constant dense<0.000000e+00> : vector<1xf32>
    %1614 = vector.multi_reduction <add>, %1613, %cst_576 [1, 2, 3] : vector<1x2x8x16xf32> to vector<1xf32>
    %1615 = vector.shape_cast %1614 : vector<1xf32> to vector<1x1x1x1xf32>
    %1616 = vector.extract %1615[0, 0, 0, 0] : f32 from vector<1x1x1x1xf32>
    %cst_577 = arith.constant 2.560000e+02 : f32
    %1617 = arith.divf %1616, %cst_577 : f32
    %1618 = vector.broadcast %1609 : f32 to vector<2x8x16xf32>
    %1619 = arith.subf %1600, %1618 : vector<2x8x16xf32>
    %cst_578 = arith.constant 9.99999974E-6 : f32
    %1620 = arith.addf %1617, %cst_578 : f32
    %1621 = math.rsqrt %1620 : f32
    %1622 = vector.broadcast %1621 : f32 to vector<2x8x16xf32>
    %1623 = arith.mulf %1619, %1622 : vector<2x8x16xf32>
    %1624 = vector.broadcast %1602 : f32 to vector<2x8x16xf32>
    %1625 = arith.mulf %1623, %1624 : vector<2x8x16xf32>
    %1626 = vector.broadcast %1604 : f32 to vector<2x8x16xf32>
    %1627 = arith.addf %1625, %1626 : vector<2x8x16xf32>
    %c3_579 = arith.constant 3 : index
    %c0_580 = arith.constant 0 : index
    %c1_581 = arith.constant 1 : index
    %c1_582 = arith.constant 1 : index
    %1628 = vector.load %arg23[%c3_579, %c0_580, %c1_581, %c1_582] : memref<4x2x10x18xf32, #tpu.memory_space<vmem>>, vector<1x2x8x16xf32>
    %1629 = vector.shape_cast %1628 : vector<1x2x8x16xf32> to vector<2x8x16xf32>
    %1630 = vector.shape_cast %1627 : vector<2x8x16xf32> to vector<1x2x8x16xf32>
    tpu.vector_store %arg23[%c3_579, %c0_580, %c1_581, %c1_582], %1630 {strides = array<i32>} : memref<4x2x10x18xf32, #tpu.memory_space<vmem>>, vector<1x2x8x16xf32>,
    %c0_583 = arith.constant 0 : index
    %c0_584 = arith.constant 0 : index
    %c0_585 = arith.constant 0 : index
    %c0_586 = arith.constant 0 : index
    %1631 = vector.load %arg23[%c0_583, %c0_584, %c0_585, %c0_586] : memref<4x2x10x18xf32, #tpu.memory_space<vmem>>, vector<1x2x10x18xf32>
    %1632 = vector.shape_cast %1631 : vector<1x2x10x18xf32> to vector<2x10x18xf32>
    %1633 = vector.extract_strided_slice %1632 {offsets = [0, 1, 1], sizes = [2, 8, 16], strides = [1, 1, 1]} : vector<2x10x18xf32> to vector<2x8x16xf32>
    %1634 = vector.extract_strided_slice %1632 {offsets = [0, 0, 0], sizes = [2, 8, 16], strides = [1, 1, 1]} : vector<2x10x18xf32> to vector<2x8x16xf32>
    %1635 = arith.maximumf %1633, %1634 : vector<2x8x16xf32>
    %1636 = vector.extract_strided_slice %1632 {offsets = [0, 0, 1], sizes = [2, 8, 16], strides = [1, 1, 1]} : vector<2x10x18xf32> to vector<2x8x16xf32>
    %1637 = arith.maximumf %1635, %1636 : vector<2x8x16xf32>
    %1638 = vector.extract_strided_slice %1632 {offsets = [0, 0, 2], sizes = [2, 8, 16], strides = [1, 1, 1]} : vector<2x10x18xf32> to vector<2x8x16xf32>
    %1639 = arith.maximumf %1637, %1638 : vector<2x8x16xf32>
    %1640 = vector.extract_strided_slice %1632 {offsets = [0, 1, 0], sizes = [2, 8, 16], strides = [1, 1, 1]} : vector<2x10x18xf32> to vector<2x8x16xf32>
    %1641 = arith.maximumf %1639, %1640 : vector<2x8x16xf32>
    %1642 = vector.extract_strided_slice %1632 {offsets = [0, 1, 2], sizes = [2, 8, 16], strides = [1, 1, 1]} : vector<2x10x18xf32> to vector<2x8x16xf32>
    %1643 = arith.maximumf %1641, %1642 : vector<2x8x16xf32>
    %1644 = vector.extract_strided_slice %1632 {offsets = [0, 2, 0], sizes = [2, 8, 16], strides = [1, 1, 1]} : vector<2x10x18xf32> to vector<2x8x16xf32>
    %1645 = arith.maximumf %1643, %1644 : vector<2x8x16xf32>
    %1646 = vector.extract_strided_slice %1632 {offsets = [0, 2, 1], sizes = [2, 8, 16], strides = [1, 1, 1]} : vector<2x10x18xf32> to vector<2x8x16xf32>
    %1647 = arith.maximumf %1645, %1646 : vector<2x8x16xf32>
    %1648 = vector.extract_strided_slice %1632 {offsets = [0, 2, 2], sizes = [2, 8, 16], strides = [1, 1, 1]} : vector<2x10x18xf32> to vector<2x8x16xf32>
    %1649 = arith.maximumf %1647, %1648 : vector<2x8x16xf32>
    %1650 = arith.addf %790, %1649 : vector<2x8x16xf32>
    %1651 = vector.extract_strided_slice %1650 {offsets = [0, 0, 0], sizes = [1, 8, 16], strides = [1, 1, 1]} : vector<2x8x16xf32> to vector<1x8x16xf32>
    %1652 = vector.shape_cast %1651 : vector<1x8x16xf32> to vector<8x16xf32>
    %c0_587 = arith.constant 0 : index
    %c0_588 = arith.constant 0 : index
    %1653 = vector.load %arg24[%c0_587, %c0_588] : memref<16x64xf32, #tpu.memory_space<vmem>>, vector<8x16xf32>
    tpu.vector_store %arg24[%c0_587, %c0_588], %1652 {strides = array<i32>} : memref<16x64xf32, #tpu.memory_space<vmem>>, vector<8x16xf32>,
    %1654 = vector.extract_strided_slice %1650 {offsets = [1, 0, 0], sizes = [1, 8, 16], strides = [1, 1, 1]} : vector<2x8x16xf32> to vector<1x8x16xf32>
    %1655 = vector.shape_cast %1654 : vector<1x8x16xf32> to vector<8x16xf32>
    %c8 = arith.constant 8 : index
    %c0_589 = arith.constant 0 : index
    %1656 = vector.load %arg24[%c8, %c0_589] : memref<16x64xf32, #tpu.memory_space<vmem>>, vector<8x16xf32>
    tpu.vector_store %arg24[%c8, %c0_589], %1655 {strides = array<i32>} : memref<16x64xf32, #tpu.memory_space<vmem>>, vector<8x16xf32>,
    %c1_590 = arith.constant 1 : index
    %c0_591 = arith.constant 0 : index
    %c0_592 = arith.constant 0 : index
    %c0_593 = arith.constant 0 : index
    %1657 = vector.load %arg23[%c1_590, %c0_591, %c0_592, %c0_593] : memref<4x2x10x18xf32, #tpu.memory_space<vmem>>, vector<1x2x10x18xf32>
    %1658 = vector.shape_cast %1657 : vector<1x2x10x18xf32> to vector<2x10x18xf32>
    %1659 = vector.extract_strided_slice %1658 {offsets = [0, 1, 1], sizes = [2, 8, 16], strides = [1, 1, 1]} : vector<2x10x18xf32> to vector<2x8x16xf32>
    %1660 = vector.extract_strided_slice %1658 {offsets = [0, 0, 0], sizes = [2, 8, 16], strides = [1, 1, 1]} : vector<2x10x18xf32> to vector<2x8x16xf32>
    %1661 = arith.maximumf %1659, %1660 : vector<2x8x16xf32>
    %1662 = vector.extract_strided_slice %1658 {offsets = [0, 0, 1], sizes = [2, 8, 16], strides = [1, 1, 1]} : vector<2x10x18xf32> to vector<2x8x16xf32>
    %1663 = arith.maximumf %1661, %1662 : vector<2x8x16xf32>
    %1664 = vector.extract_strided_slice %1658 {offsets = [0, 0, 2], sizes = [2, 8, 16], strides = [1, 1, 1]} : vector<2x10x18xf32> to vector<2x8x16xf32>
    %1665 = arith.maximumf %1663, %1664 : vector<2x8x16xf32>
    %1666 = vector.extract_strided_slice %1658 {offsets = [0, 1, 0], sizes = [2, 8, 16], strides = [1, 1, 1]} : vector<2x10x18xf32> to vector<2x8x16xf32>
    %1667 = arith.maximumf %1665, %1666 : vector<2x8x16xf32>
    %1668 = vector.extract_strided_slice %1658 {offsets = [0, 1, 2], sizes = [2, 8, 16], strides = [1, 1, 1]} : vector<2x10x18xf32> to vector<2x8x16xf32>
    %1669 = arith.maximumf %1667, %1668 : vector<2x8x16xf32>
    %1670 = vector.extract_strided_slice %1658 {offsets = [0, 2, 0], sizes = [2, 8, 16], strides = [1, 1, 1]} : vector<2x10x18xf32> to vector<2x8x16xf32>
    %1671 = arith.maximumf %1669, %1670 : vector<2x8x16xf32>
    %1672 = vector.extract_strided_slice %1658 {offsets = [0, 2, 1], sizes = [2, 8, 16], strides = [1, 1, 1]} : vector<2x10x18xf32> to vector<2x8x16xf32>
    %1673 = arith.maximumf %1671, %1672 : vector<2x8x16xf32>
    %1674 = vector.extract_strided_slice %1658 {offsets = [0, 2, 2], sizes = [2, 8, 16], strides = [1, 1, 1]} : vector<2x10x18xf32> to vector<2x8x16xf32>
    %1675 = arith.maximumf %1673, %1674 : vector<2x8x16xf32>
    %1676 = arith.addf %834, %1675 : vector<2x8x16xf32>
    %1677 = vector.extract_strided_slice %1676 {offsets = [0, 0, 0], sizes = [1, 8, 16], strides = [1, 1, 1]} : vector<2x8x16xf32> to vector<1x8x16xf32>
    %1678 = vector.shape_cast %1677 : vector<1x8x16xf32> to vector<8x16xf32>
    %c0_594 = arith.constant 0 : index
    %c16 = arith.constant 16 : index
    %1679 = vector.load %arg24[%c0_594, %c16] : memref<16x64xf32, #tpu.memory_space<vmem>>, vector<8x16xf32>
    tpu.vector_store %arg24[%c0_594, %c16], %1678 {strides = array<i32>} : memref<16x64xf32, #tpu.memory_space<vmem>>, vector<8x16xf32>,
    %1680 = vector.extract_strided_slice %1676 {offsets = [1, 0, 0], sizes = [1, 8, 16], strides = [1, 1, 1]} : vector<2x8x16xf32> to vector<1x8x16xf32>
    %1681 = vector.shape_cast %1680 : vector<1x8x16xf32> to vector<8x16xf32>
    %c8_595 = arith.constant 8 : index
    %c16_596 = arith.constant 16 : index
    %1682 = vector.load %arg24[%c8_595, %c16_596] : memref<16x64xf32, #tpu.memory_space<vmem>>, vector<8x16xf32>
    tpu.vector_store %arg24[%c8_595, %c16_596], %1681 {strides = array<i32>} : memref<16x64xf32, #tpu.memory_space<vmem>>, vector<8x16xf32>,
    %c2_597 = arith.constant 2 : index
    %c0_598 = arith.constant 0 : index
    %c0_599 = arith.constant 0 : index
    %c0_600 = arith.constant 0 : index
    %1683 = vector.load %arg23[%c2_597, %c0_598, %c0_599, %c0_600] : memref<4x2x10x18xf32, #tpu.memory_space<vmem>>, vector<1x2x10x18xf32>
    %1684 = vector.shape_cast %1683 : vector<1x2x10x18xf32> to vector<2x10x18xf32>
    %1685 = vector.extract_strided_slice %1684 {offsets = [0, 1, 1], sizes = [2, 8, 16], strides = [1, 1, 1]} : vector<2x10x18xf32> to vector<2x8x16xf32>
    %1686 = vector.extract_strided_slice %1684 {offsets = [0, 0, 0], sizes = [2, 8, 16], strides = [1, 1, 1]} : vector<2x10x18xf32> to vector<2x8x16xf32>
    %1687 = arith.maximumf %1685, %1686 : vector<2x8x16xf32>
    %1688 = vector.extract_strided_slice %1684 {offsets = [0, 0, 1], sizes = [2, 8, 16], strides = [1, 1, 1]} : vector<2x10x18xf32> to vector<2x8x16xf32>
    %1689 = arith.maximumf %1687, %1688 : vector<2x8x16xf32>
    %1690 = vector.extract_strided_slice %1684 {offsets = [0, 0, 2], sizes = [2, 8, 16], strides = [1, 1, 1]} : vector<2x10x18xf32> to vector<2x8x16xf32>
    %1691 = arith.maximumf %1689, %1690 : vector<2x8x16xf32>
    %1692 = vector.extract_strided_slice %1684 {offsets = [0, 1, 0], sizes = [2, 8, 16], strides = [1, 1, 1]} : vector<2x10x18xf32> to vector<2x8x16xf32>
    %1693 = arith.maximumf %1691, %1692 : vector<2x8x16xf32>
    %1694 = vector.extract_strided_slice %1684 {offsets = [0, 1, 2], sizes = [2, 8, 16], strides = [1, 1, 1]} : vector<2x10x18xf32> to vector<2x8x16xf32>
    %1695 = arith.maximumf %1693, %1694 : vector<2x8x16xf32>
    %1696 = vector.extract_strided_slice %1684 {offsets = [0, 2, 0], sizes = [2, 8, 16], strides = [1, 1, 1]} : vector<2x10x18xf32> to vector<2x8x16xf32>
    %1697 = arith.maximumf %1695, %1696 : vector<2x8x16xf32>
    %1698 = vector.extract_strided_slice %1684 {offsets = [0, 2, 1], sizes = [2, 8, 16], strides = [1, 1, 1]} : vector<2x10x18xf32> to vector<2x8x16xf32>
    %1699 = arith.maximumf %1697, %1698 : vector<2x8x16xf32>
    %1700 = vector.extract_strided_slice %1684 {offsets = [0, 2, 2], sizes = [2, 8, 16], strides = [1, 1, 1]} : vector<2x10x18xf32> to vector<2x8x16xf32>
    %1701 = arith.maximumf %1699, %1700 : vector<2x8x16xf32>
    %1702 = arith.addf %878, %1701 : vector<2x8x16xf32>
    %1703 = vector.extract_strided_slice %1702 {offsets = [0, 0, 0], sizes = [1, 8, 16], strides = [1, 1, 1]} : vector<2x8x16xf32> to vector<1x8x16xf32>
    %1704 = vector.shape_cast %1703 : vector<1x8x16xf32> to vector<8x16xf32>
    %c0_601 = arith.constant 0 : index
    %c32_602 = arith.constant 32 : index
    %1705 = vector.load %arg24[%c0_601, %c32_602] : memref<16x64xf32, #tpu.memory_space<vmem>>, vector<8x16xf32>
    tpu.vector_store %arg24[%c0_601, %c32_602], %1704 {strides = array<i32>} : memref<16x64xf32, #tpu.memory_space<vmem>>, vector<8x16xf32>,
    %1706 = vector.extract_strided_slice %1702 {offsets = [1, 0, 0], sizes = [1, 8, 16], strides = [1, 1, 1]} : vector<2x8x16xf32> to vector<1x8x16xf32>
    %1707 = vector.shape_cast %1706 : vector<1x8x16xf32> to vector<8x16xf32>
    %c8_603 = arith.constant 8 : index
    %c32_604 = arith.constant 32 : index
    %1708 = vector.load %arg24[%c8_603, %c32_604] : memref<16x64xf32, #tpu.memory_space<vmem>>, vector<8x16xf32>
    tpu.vector_store %arg24[%c8_603, %c32_604], %1707 {strides = array<i32>} : memref<16x64xf32, #tpu.memory_space<vmem>>, vector<8x16xf32>,
    %c3_605 = arith.constant 3 : index
    %c0_606 = arith.constant 0 : index
    %c0_607 = arith.constant 0 : index
    %c0_608 = arith.constant 0 : index
    %1709 = vector.load %arg23[%c3_605, %c0_606, %c0_607, %c0_608] : memref<4x2x10x18xf32, #tpu.memory_space<vmem>>, vector<1x2x10x18xf32>
    %1710 = vector.shape_cast %1709 : vector<1x2x10x18xf32> to vector<2x10x18xf32>
    %1711 = vector.extract_strided_slice %1710 {offsets = [0, 1, 1], sizes = [2, 8, 16], strides = [1, 1, 1]} : vector<2x10x18xf32> to vector<2x8x16xf32>
    %1712 = vector.extract_strided_slice %1710 {offsets = [0, 0, 0], sizes = [2, 8, 16], strides = [1, 1, 1]} : vector<2x10x18xf32> to vector<2x8x16xf32>
    %1713 = arith.maximumf %1711, %1712 : vector<2x8x16xf32>
    %1714 = vector.extract_strided_slice %1710 {offsets = [0, 0, 1], sizes = [2, 8, 16], strides = [1, 1, 1]} : vector<2x10x18xf32> to vector<2x8x16xf32>
    %1715 = arith.maximumf %1713, %1714 : vector<2x8x16xf32>
    %1716 = vector.extract_strided_slice %1710 {offsets = [0, 0, 2], sizes = [2, 8, 16], strides = [1, 1, 1]} : vector<2x10x18xf32> to vector<2x8x16xf32>
    %1717 = arith.maximumf %1715, %1716 : vector<2x8x16xf32>
    %1718 = vector.extract_strided_slice %1710 {offsets = [0, 1, 0], sizes = [2, 8, 16], strides = [1, 1, 1]} : vector<2x10x18xf32> to vector<2x8x16xf32>
    %1719 = arith.maximumf %1717, %1718 : vector<2x8x16xf32>
    %1720 = vector.extract_strided_slice %1710 {offsets = [0, 1, 2], sizes = [2, 8, 16], strides = [1, 1, 1]} : vector<2x10x18xf32> to vector<2x8x16xf32>
    %1721 = arith.maximumf %1719, %1720 : vector<2x8x16xf32>
    %1722 = vector.extract_strided_slice %1710 {offsets = [0, 2, 0], sizes = [2, 8, 16], strides = [1, 1, 1]} : vector<2x10x18xf32> to vector<2x8x16xf32>
    %1723 = arith.maximumf %1721, %1722 : vector<2x8x16xf32>
    %1724 = vector.extract_strided_slice %1710 {offsets = [0, 2, 1], sizes = [2, 8, 16], strides = [1, 1, 1]} : vector<2x10x18xf32> to vector<2x8x16xf32>
    %1725 = arith.maximumf %1723, %1724 : vector<2x8x16xf32>
    %1726 = vector.extract_strided_slice %1710 {offsets = [0, 2, 2], sizes = [2, 8, 16], strides = [1, 1, 1]} : vector<2x10x18xf32> to vector<2x8x16xf32>
    %1727 = arith.maximumf %1725, %1726 : vector<2x8x16xf32>
    %1728 = arith.addf %922, %1727 : vector<2x8x16xf32>
    %1729 = vector.extract_strided_slice %1728 {offsets = [0, 0, 0], sizes = [1, 8, 16], strides = [1, 1, 1]} : vector<2x8x16xf32> to vector<1x8x16xf32>
    %1730 = vector.shape_cast %1729 : vector<1x8x16xf32> to vector<8x16xf32>
    %c0_609 = arith.constant 0 : index
    %c48 = arith.constant 48 : index
    %1731 = vector.load %arg24[%c0_609, %c48] : memref<16x64xf32, #tpu.memory_space<vmem>>, vector<8x16xf32>
    tpu.vector_store %arg24[%c0_609, %c48], %1730 {strides = array<i32>} : memref<16x64xf32, #tpu.memory_space<vmem>>, vector<8x16xf32>,
    %1732 = vector.extract_strided_slice %1728 {offsets = [1, 0, 0], sizes = [1, 8, 16], strides = [1, 1, 1]} : vector<2x8x16xf32> to vector<1x8x16xf32>
    %1733 = vector.shape_cast %1732 : vector<1x8x16xf32> to vector<8x16xf32>
    %c8_610 = arith.constant 8 : index
    %c48_611 = arith.constant 48 : index
    %1734 = vector.load %arg24[%c8_610, %c48_611] : memref<16x64xf32, #tpu.memory_space<vmem>>, vector<8x16xf32>
    tpu.vector_store %arg24[%c8_610, %c48_611], %1733 {strides = array<i32>} : memref<16x64xf32, #tpu.memory_space<vmem>>, vector<8x16xf32>,
    %c0_612 = arith.constant 0 : index
    %c0_613 = arith.constant 0 : index
    %1735 = vector.load %arg24[%c0_612, %c0_613] : memref<16x64xf32, #tpu.memory_space<vmem>>, vector<16x64xf32>
    %c0_614 = arith.constant 0 : index
    %c0_615 = arith.constant 0 : index
    %1736 = vector.load %arg11[%c0_614, %c0_615] : memref<64x36xf32, #tpu.memory_space<vmem>>, vector<64x36xf32>
    %cst_616 = arith.constant dense<0.000000e+00> : vector<16x36xf32>
    %1737 = tpu.matmul %1735, %1736, %cst_616 {dimension_numbers = #tpu.dot_dimension_numbers<[1], [0], [0], [1], [0, 0, 1, 1], [], []>} : vector<16x64xf32>, vector<64x36xf32>, vector<16x36xf32> -> vector<16x36xf32>
    %c0_617 = arith.constant 0 : index
    %c0_618 = arith.constant 0 : index
    %1738 = vector.load %arg12[%c0_617, %c0_618] : memref<1x36xf32, #tpu.memory_space<vmem>>, vector<1x36xf32>
    %1739 = vector.broadcast %1738 : vector<1x36xf32> to vector<16x36xf32>
    %1740 = arith.addf %1737, %1739 : vector<16x36xf32>
    %cst_619 = arith.constant 0.000000e+00 : f32
    %1741 = vector.broadcast %cst_619 : f32 to vector<16x36xf32>
    %1742 = arith.maximumf %1740, %1741 : vector<16x36xf32>
    %c0_620 = arith.constant 0 : index
    %c0_621 = arith.constant 0 : index
    %1743 = vector.load %arg13[%c0_620, %c0_621] : memref<36x12xf32, #tpu.memory_space<vmem>>, vector<36x12xf32>
    %cst_622 = arith.constant dense<0.000000e+00> : vector<16x12xf32>
    %1744 = tpu.matmul %1742, %1743, %cst_622 {dimension_numbers = #tpu.dot_dimension_numbers<[1], [0], [0], [1], [0, 0, 1, 1], [], []>} : vector<16x36xf32>, vector<36x12xf32>, vector<16x12xf32> -> vector<16x12xf32>
    %c0_623 = arith.constant 0 : index
    %c0_624 = arith.constant 0 : index
    %1745 = vector.load %arg14[%c0_623, %c0_624] : memref<1x12xf32, #tpu.memory_space<vmem>>, vector<1x12xf32>
    %1746 = vector.broadcast %1745 : vector<1x12xf32> to vector<16x12xf32>
    %1747 = arith.addf %1744, %1746 : vector<16x12xf32>
    %cst_625 = arith.constant 0.000000e+00 : f32
    %1748 = vector.broadcast %cst_625 : f32 to vector<16x12xf32>
    %1749 = arith.maximumf %1747, %1748 : vector<16x12xf32>
    %c0_626 = arith.constant 0 : index
    %c0_627 = arith.constant 0 : index
    %1750 = vector.load %arg15[%c0_626, %c0_627] : memref<12x4xf32, #tpu.memory_space<vmem>>, vector<12x4xf32>
    %cst_628 = arith.constant dense<0.000000e+00> : vector<16x4xf32>
    %1751 = tpu.matmul %1749, %1750, %cst_628 {dimension_numbers = #tpu.dot_dimension_numbers<[1], [0], [0], [1], [0, 0, 1, 1], [], []>} : vector<16x12xf32>, vector<12x4xf32>, vector<16x4xf32> -> vector<16x4xf32>
    %c0_629 = arith.constant 0 : index
    %c0_630 = arith.constant 0 : index
    %1752 = vector.load %arg16[%c0_629, %c0_630] : memref<1x4xf32, #tpu.memory_space<vmem>>, vector<1x4xf32>
    %1753 = vector.broadcast %1752 : vector<1x4xf32> to vector<16x4xf32>
    %1754 = arith.addf %1751, %1753 : vector<16x4xf32>
    %cst_631 = arith.constant 0.000000e+00 : f32
    %1755 = vector.broadcast %cst_631 : f32 to vector<16x4xf32>
    %1756 = arith.maximumf %1754, %1755 : vector<16x4xf32>
    %1757 = vector.extract_strided_slice %1756 {offsets = [0, 0], sizes = [8, 4], strides = [1, 1]} : vector<16x4xf32> to vector<8x4xf32>
    %c0_632 = arith.constant 0 : index
    %c0_633 = arith.constant 0 : index
    %c0_634 = arith.constant 0 : index
    %1758 = vector.load %arg17[%c0_632, %c0_633, %c0_634] : memref<2x8x4xf32, #tpu.memory_space<vmem>>, vector<1x8x4xf32>
    %1759 = vector.shape_cast %1758 : vector<1x8x4xf32> to vector<8x4xf32>
    %1760 = vector.shape_cast %1757 : vector<8x4xf32> to vector<1x8x4xf32>
    tpu.vector_store %arg17[%c0_632, %c0_633, %c0_634], %1760 {strides = array<i32>} : memref<2x8x4xf32, #tpu.memory_space<vmem>>, vector<1x8x4xf32>,
    %1761 = vector.extract_strided_slice %1756 {offsets = [8, 0], sizes = [8, 4], strides = [1, 1]} : vector<16x4xf32> to vector<8x4xf32>
    %c1_635 = arith.constant 1 : index
    %c0_636 = arith.constant 0 : index
    %c0_637 = arith.constant 0 : index
    %1762 = vector.load %arg17[%c1_635, %c0_636, %c0_637] : memref<2x8x4xf32, #tpu.memory_space<vmem>>, vector<1x8x4xf32>
    %1763 = vector.shape_cast %1762 : vector<1x8x4xf32> to vector<8x4xf32>
    %1764 = vector.shape_cast %1761 : vector<8x4xf32> to vector<1x8x4xf32>
    tpu.vector_store %arg17[%c1_635, %c0_636, %c0_637], %1764 {strides = array<i32>} : memref<2x8x4xf32, #tpu.memory_space<vmem>>, vector<1x8x4xf32>,
    return
  }
}

</mosaic_0001>

<bundles_post_ra>
// kernel: body_net_forward.1
= control target key start
LH: loop header
LB: loop body
LE: loop exit
PB: predicated region body
PF: predicated region fallthrough
CT: control target
= control target key end

     0   :  { %vm107_vm0 = vcmask 130048   ;;  %v4370_v3 = vmov 0.0   ;;  %vm4371_vm1 = vmmov 0   ;;  %vm189_vm2 = vcmask 254976   ;;  %s4373_s24 = smov 8   ;;  %s4374_s25 = smov 16   ;;  %s6327_s1 = inlined_call_operand.vmem [shape: f32[16,64], index: 1, kind: input, shape index: {}]   ;;  %s6328_s0 = inlined_call_operand.vmem [shape: f32[16,16], index: 0, kind: input, shape index: {}]   ;;  %s6329_s2 = inlined_call_operand.vmem [shape: f32[16,64], index: 2, kind: input, shape index: {}]   ;;  %s6330_s3 = inlined_call_operand.vmem [shape: f32[1,64], index: 3, kind: input, shape index: {}]   ;;  %s6331_s4 = inlined_call_operand.vmem [shape: f32[1,2], index: 4, kind: input, shape index: {}]   ;;  %s6332_s5 = inlined_call_operand.vmem [shape: f32[4,4], index: 5, kind: input, shape index: {}]   ;;  %s6333_s6 = inlined_call_operand.vmem [shape: f32[1,10], index: 6, kind: input, shape index: {}]   ;;  %s6334_s7 = inlined_call_operand.vmem [shape: f32[4,4], index: 7, kind: input, shape index: {}]   ;;  %s6335_s8 = inlined_call_operand.vmem [shape: f32[4,10], index: 8, kind: input, shape index: {}]   ;;  %s6336_s9 = inlined_call_operand.vmem [shape: f32[4,4], index: 9, kind: input, shape index: {}]   ;;  %s6337_s10 = inlined_call_operand.vmem [shape: f32[3,4], index: 10, kind: input, shape index: {}]   ;;  %s6338_s11 = inlined_call_operand.vmem [shape: f32[64,36], index: 11, kind: input, shape index: {}]   ;;  %s6339_s13 = inlined_call_operand.vmem [shape: f32[36,12], index: 13, kind: input, shape index: {}]   ;;  %s6340_s12 = inlined_call_operand.vmem [shape: f32[1,36], index: 12, kind: input, shape index: {}]   ;;  %s6341_s15 = inlined_call_operand.vmem [shape: f32[12,4], index: 15, kind: input, shape index: {}]   ;;  %s6342_s14 = inlined_call_operand.vmem [shape: f32[1,12], index: 14, kind: input, shape index: {}]   ;;  %s6343_s16 = inlined_call_operand.vmem [shape: f32[1,4], index: 16, kind: input, shape index: {}]   ;;  %s6344_s17 = inlined_call_operand.vmem [shape: f32[2,8,4], index: 17, kind: output, shape index: {}]  }
   0x1   :  { %6375 = sst [smem:[#allocation16_spill]] %s6327_s1  ;;  %3883 = vmatprep.subr.mxu1 %v4370_v3  ;;  %3887 = vmatprep.mubr.msk.f32.mxu1 %vm4371_vm1, %v4370_v3  ;;  %v4501_v6 = vld [vmem:[%s6329_s2 + $0x8] sm:$0xff]  ;;  %v4507_v8 = vld [vmem:[%s6329_s2] sm:$0xff]  ;;  %vm194_vm3 = vcmask 257026   ;;  %vm199_vm4 = vcmask 259076   ;;  %vm204_vm5 = vcmask 261126  }
   0x2   :  { %6376 = sst [smem:[#allocation17_spill]] %s6328_s0  ;;  %3884 = vmatpush3.msra.mxu1 %v4501_v6  ;;  %v3805_v9 = vld [vmem:[%s6330_s3] ss:$0 sm:$0xff]  ;;  %vm191_vm6 = vcmask 523526   ;;  %vm196_vm7 = vcmask 521476   ;;  %vm201_vm8 = vcmask 519426  }
   0x3   :  { %6377 = sst [smem:[#allocation18_spill]] %s6338_s11  ;;  %3885 = vmatprep.subr.mxu1 %v4370_v3  ;;  %vm206_vm9 = vcmask 517376   ;;  %s4372_s3 = smov 112   ;;  %vm323_vm10 = vcmask 58368   ;;  %vm333_vm11 = vcmask 64512   ;;  %vm1147_vm12 = vcmask 1041409  }
   0x4   :  { %6378 = sst [smem:[#allocation19_spill]] %s6339_s13  ;;  %3886 = vmatpush3.msra.mxu1 %v4507_v8  ;;  %s4376_s27 = smov 104   ;;  %vm1150_vm13 = vcmask 1042434   ;;  %vm1153_vm14 = vcmask 1043459   ;;  %vm1156_vm15 = vcmask 1044484  }
   0x5   :  { %6379 = sst [smem:[#allocation20_spill]] %s6340_s12  ;;  %3888 = vmatmul.mubr.f32.vlgmr.msra.gmra.mxu1 %v4370_v3  ;;  %3897 = vmatprep.subr.mxu1 %v4370_v3  ;;  %s4377_s28 = smov 72  }
   0x6   :  { %6380 = sst [smem:[#allocation21_spill]] %s6341_s15  ;;  %3898 = vmatpush3.msra.mxu1 %v4501_v6  ;;  %3901 = vmatprep.mubr.msk.f32.mxu1 %vm4371_vm1, %v4370_v3 }
   0x7   :  { %6381 = sst [smem:[#allocation22_spill]] %s6342_s14  ;;  %3899 = vmatprep.subr.mxu1 %v4370_v3 }
   0x8   :  { %6382 = sst [smem:[#allocation23_spill]] %s6343_s16  ;;  %3900 = vmatpush3.msra.mxu1 %v4507_v8 }
   0x9   :  { %6383 = sst [smem:[#allocation24_spill]] %s6344_s17  ;;  %3911 = vmatprep.subr.mxu1 %v4370_v3  ;;  %s6354_s17 = smov 120  }
   0xa   :  { %s6384_s26 = sld [smem:[#allocation16_spill]] }
   0xb   :  { %s6385_s30 = sld [smem:[#allocation17_spill]] }
  0x10   :  { %v99_v0 = vld [vmem:[%s6384_s26 + $0x8] sm:$0xff]  ;;  %v98_v1 = vld [vmem:[%s6384_s26] sm:$0xff]  ;;  %s4375_s26 = smov 80  }
  0x11   :  { %v94_v2 = vld [vmem:[%s6385_s30] sm:$0xff]  ;;  %3876 = vmatprep.subr.mxu0 %v99_v0  ;;  %v95_v4 = vld [vmem:[%s6385_s30 + $0x8] sm:$0xff]  ;;  %s6347_s30 = smov 1  }
  0x12   :  { %v96_v5 = vmax.f32 %v94_v2, 0.0  ;;  %3877 = vmatpush3.msra.mxu0 %v99_v0  ;;  %v97_v7 = vmax.f32 %v95_v4, 0.0 }
  0x13   :  { %3878 = vmatprep.subr.mxu0 %v98_v1 }
  0x14   :  { %3880 = vmatprep.mubr.msk.f32.mxu0 %vm107_vm0, %v96_v5  ;;  %3879 = vmatpush3.msra.mxu0 %v98_v1 }
  0x15   :  { %3881 = vmatmul.mubr.msk.f32.vlgmr.msra.gmra.mxu0 %vm107_vm0, %v97_v7  ;;  %3890 = vmatprep.subr.mxu0 %v4370_v3 }
  0x16   :  { %3891 = vmatpush3.msra.mxu0 %v4501_v6  ;;  %3894 = vmatprep.mubr.msk.f32.mxu0 %vm4371_vm1, %v4370_v3 }
  0x17   :  { %3892 = vmatprep.subr.mxu0 %v4370_v3 }
  0x18   :  { %3893 = vmatpush3.msra.mxu0 %v4507_v8 }
  0x19   :  { %3904 = vmatprep.subr.mxu0 %v4370_v3 }
  0xc5   :  { %v292_v12 = vpop.f32.mrf.mxu1 }
  0xc7   :  { %v3889_v15 = vpop.f32.mrf.mxu1 }
  0xd5   :  { %v3882_v10 = vpop.f32.mrf.mxu0 }
  0xd6   :  { %v186_v11 = vadd.f32 %v3882_v10, %v3805_v9 }
  0xd7   :  { %v180_v13 = vpop.f32.mrf.mxu0 }
  0xd8   :  { %209 = vst.msk [vmem:[#allocation2 + $0x8] sm:$0x3] %vm189_vm2, %v186_v11  ;;  %v181_v14 = vadd.f32 %v3805_v9, %v180_v13 }
  0xd9   :  { %212 = vst.msk [vmem:[#allocation2 + $0x8] sm:$0xc] %vm194_vm3, %v186_v11 }
  0xda   :  { %215 = vst.msk [vmem:[#allocation2 + $0x8] sm:$0x30] %vm199_vm4, %v186_v11  ;;  %200 = vst.msk [vmem:[#allocation2] sm:$0x30] %vm199_vm4, %v181_v14  ;;  %vm1165_vm4 = vcmask 1047559  }
  0xdb   :  { %218 = vst.msk [vmem:[#allocation2 + $0x8] sm:$0xc0] %vm204_vm5, %v186_v11  ;;  %205 = vst.msk [vmem:[#allocation2] sm:$0xc0] %vm204_vm5, %v181_v14  ;;  %vm58_vm5 = vcmask 140288  }
  0xdc   :  { %190 = vst.msk [vmem:[#allocation2] sm:$0x3] %vm189_vm2, %v181_v14  ;;  %vm1162_vm2 = vcmask 1046534  }
  0xdd   :  { %195 = vst.msk [vmem:[#allocation2] sm:$0xc] %vm194_vm3, %v181_v14  ;;  %vm56_vm3 = vcmask 146432  }
  0xde   :  { %210 = vst.msk [vmem:[#allocation2 + $0x2] sm:$0xc0] %vm191_vm6, %v181_v14  ;;  %192 = vst.msk [vmem:[#allocation2 - $0x6] sm:$0xc0] %vm191_vm6, %v186_v11  ;;  %vm1220_vm6 = vcmask 72713  }
  0xdf   :  { %213 = vst.msk [vmem:[#allocation2 + $0x6] sm:$0x30] %vm196_vm7, %v181_v14  ;;  %197 = vst.msk [vmem:[#allocation2 - $0x2] sm:$0x30] %vm196_vm7, %v186_v11  ;;  %vm1222_vm7 = vcmask 65544  }
  0xe0   :  { %216 = vst.msk [vmem:[#allocation2 + $0xa] sm:$0xc] %vm201_vm8, %v181_v14  ;;  %202 = vst.msk [vmem:[#allocation2 + $0x2] sm:$0xc] %vm201_vm8, %v186_v11  ;;  %vm1170_vm8 = vcmask 72712  }
  0xe1   :  { %219 = vst.msk [vmem:[#allocation2 + $0xe] sm:$0x3] %vm206_vm9, %v181_v14  ;;  %207 = vst.msk [vmem:[#allocation2 + $0x6] sm:$0x3] %vm206_vm9, %v186_v11  ;;  %vm1205_vm9 = vcmask 138312  }
  0xe2   :  { %60 = vst.msk [vmem:[#allocation5 + $0x10] sm:$0xff] %vm56_vm3, %v4370_v3  ;;  %57 = vst.msk [vmem:[#allocation5] sm:$0xff] %vm56_vm3, %v4370_v3 }
  0xe3   :  { %62 = vst.msk [vmem:[#allocation6] sm:$0xff] %vm56_vm3, %v4370_v3  ;;  %64 = vst.msk [vmem:[#allocation6 + $0x10] sm:$0xff] %vm56_vm3, %v4370_v3 }
  0xe4   :  { %66 = vst.msk [vmem:[#allocation6 + $0x20] sm:$0xff] %vm56_vm3, %v4370_v3  ;;  %68 = vst.msk [vmem:[#allocation6 + $0x30] sm:$0xff] %vm56_vm3, %v4370_v3 }
  0xe5   :  { %v222_v16 = vld [vmem:[#allocation2] sm:$0x3]  ;;  %70 = vst.msk [vmem:[#allocation6 + $0x40] sm:$0xff] %vm56_vm3, %v4370_v3  ;;  %72 = vst.msk [vmem:[#allocation6 + $0x50] sm:$0xff] %vm56_vm3, %v4370_v3 }
  0xe6   :  { %v296_v17 = vadd.f32 %v292_v12, %v222_v16  ;;  %v335_v34 = vld [vmem:[#allocation2 + $0x2] sm:$0x3]  ;;  %74 = vst.msk [vmem:[#allocation6 + $0x60] sm:$0xff] %vm56_vm3, %v4370_v3  ;;  %76 = vst.msk [vmem:[#allocation6 + $0x70] sm:$0xff] %vm56_vm3, %v4370_v3 }
  0xe7   :  { %v447_v60 = vld [vmem:[#allocation2 + $0x4] sm:$0x3]  ;;  %61 = vst.msk [vmem:[#allocation5 + $0x18] sm:$0x3] %vm58_vm5, %v4370_v3  ;;  %59 = vst.msk [vmem:[#allocation5 + $0x8] sm:$0x3] %vm58_vm5, %v4370_v3 }
  0xe8   :  { %4297 = vtanh.f32 %v296_v17  ;;  %v297_v19 = vmul.f32 0.5, %v296_v17  ;;  %63 = vst.msk [vmem:[#allocation6 + $0x8] sm:$0x3] %vm58_vm5, %v4370_v3  ;;  %65 = vst.msk [vmem:[#allocation6 + $0x18] sm:$0x3] %vm58_vm5, %v4370_v3 }
  0xe9   :  { %67 = vst.msk [vmem:[#allocation6 + $0x28] sm:$0x3] %vm58_vm5, %v4370_v3  ;;  %69 = vst.msk [vmem:[#allocation6 + $0x38] sm:$0x3] %vm58_vm5, %v4370_v3 }
  0xea   :  { %4299 = vtanh.f32 %v297_v19  ;;  %71 = vst.msk [vmem:[#allocation6 + $0x48] sm:$0x3] %vm58_vm5, %v4370_v3  ;;  %73 = vst.msk [vmem:[#allocation6 + $0x58] sm:$0x3] %vm58_vm5, %v4370_v3 }
  0xeb   :  { %75 = vst.msk [vmem:[#allocation6 + $0x68] sm:$0x3] %vm58_vm5, %v4370_v3  ;;  %77 = vst.msk [vmem:[#allocation6 + $0x78] sm:$0x3] %vm58_vm5, %v4370_v3 }
  0xf5   :  { %v4298_v18 = vpop.eup %4297 }
  0xf6   :  { %304 = vrot.lane.b32.xlu0 %v4298_v18, %s4372_s3 }
  0xf7   :  { %v4300_v20 = vpop.eup %4299 }
  0xf8   :  { %v299_v21 = vadd.f32 1.0, %v4300_v20 }
  0xfa   :  { %v300_v22 = vmul.f32 0.5, %v299_v21 }
  0xfc   :  { %v302_v25 = vmul.f32 0.0, %v300_v22 }
 0x168   :  { %v305_v23 = vpop.permute.xlu0 %304 }
 0x169   :  { %v307_v24 = vmul.f32 %v305_v23, %v300_v22  ;;  %v559_v23 = vld [vmem:[#allocation2 + $0x6] sm:$0x3] }
 0x16b   :  { %309 = vrot.lane.b32.xlu0 %v307_v24, %s4373_s24 }
 0x1dd   :  { %v310_v26 = vpop.permute.xlu0 %309 }
 0x1de   :  { %v312_v27 = vadd.f32 %v310_v26, %v302_v25 }
 0x1e0   :  { %4301 = vtanh.f32 %v312_v27 }
 0x1ed   :  { %v4302_v28 = vpop.eup %4301 }
 0x1ee   :  { %315 = vrot.lane.b32.xlu1 %v4302_v28, %s4374_s25 }
 0x260   :  { %v316_v29 = vpop.permute.xlu1 %315 }
 0x261   :  { %v4550_v30 = vmul.f32 %v316_v29, %v300_v22 }
 0x263   :  { %330 = vrot.lane.b32.xlu0 %v4550_v30, %s4375_s26  ;;  %320 = vrot.lane.b32.xlu1 %v4550_v30, %s4376_s27 }
 0x2d5   :  { %v331_v31 = vpop.permute.xlu0 %330  ;;  %v321_v32 = vpop.permute.xlu1 %320 }
 0x2d6   :  { %324 = vst.msk [vmem:[#allocation3] sm:$0x3] %vm323_vm10, %v321_v32  ;;  %v334_v33 = vsel %vm333_vm11, %v321_v32, %v331_v31 }
 0x2d7   :  { %3895 = vmatmul.mubr.msk.f32.vlgmr.msra.gmra.mxu0 %vm107_vm0, %v334_v33 }
 0x2d8   :  { %3905 = vmatpush3.msra.mxu0 %v4501_v6  ;;  %3908 = vmatprep.mubr.msk.f32.mxu0 %vm4371_vm1, %v4370_v3 }
 0x2d9   :  { %3906 = vmatprep.subr.mxu0 %v4370_v3 }
 0x2da   :  { %3907 = vmatpush3.msra.mxu0 %v4507_v8 }
 0x2db   :  { %3918 = vmatprep.subr.mxu0 %v4370_v3 }
 0x2dd   :  { %v4583_v54 = vld [vmem:[#allocation3] sm:$0x3] }
 0x2de   :  { %v1130_v57 = vmax.f32 %v4583_v54, 0.0 }
 0x397   :  { %v405_v35 = vpop.f32.mrf.mxu0 }
 0x398   :  { %v409_v36 = vadd.f32 %v405_v35, %v335_v34 }
 0x399   :  { %v3896_v37 = vpop.f32.mrf.mxu0 }
 0x39a   :  { %4303 = vtanh.f32 %v409_v36  ;;  %v410_v39 = vmul.f32 0.5, %v409_v36 }
 0x39c   :  { %4305 = vtanh.f32 %v410_v39 }
 0x3a7   :  { %v4304_v38 = vpop.eup %4303 }
 0x3a8   :  { %417 = vrot.lane.b32.xlu1 %v4304_v38, %s4372_s3 }
 0x3a9   :  { %v4306_v40 = vpop.eup %4305 }
 0x3aa   :  { %v412_v41 = vadd.f32 1.0, %v4306_v40 }
 0x3ac   :  { %v413_v42 = vmul.f32 0.5, %v412_v41 }
 0x3ae   :  { %v415_v45 = vmul.f32 %v413_v42, %v312_v27 }
 0x41a   :  { %v418_v43 = vpop.permute.xlu1 %417 }
 0x41b   :  { %v420_v44 = vmul.f32 %v418_v43, %v413_v42 }
 0x41d   :  { %422 = vrot.lane.b32.xlu0 %v420_v44, %s4373_s24 }
 0x48f   :  { %v423_v46 = vpop.permute.xlu0 %422 }
 0x490   :  { %v425_v47 = vadd.f32 %v423_v46, %v415_v45 }
 0x492   :  { %4307 = vtanh.f32 %v425_v47 }
 0x49f   :  { %v4308_v48 = vpop.eup %4307 }
 0x4a0   :  { %428 = vrot.lane.b32.xlu1 %v4308_v48, %s4374_s25  ;;  %v671_v48 = vld [vmem:[#allocation2 + $0x8] sm:$0x3] }
 0x512   :  { %v429_v49 = vpop.permute.xlu1 %428 }
 0x513   :  { %v4568_v50 = vmul.f32 %v429_v49, %v413_v42 }
 0x515   :  { %443 = vrot.lane.b32.xlu1 %v4568_v50, %s4375_s26  ;;  %433 = vrot.lane.b32.xlu0 %v4568_v50, %s4376_s27 }
 0x587   :  { %v444_v51 = vpop.permute.xlu1 %443  ;;  %v434_v52 = vpop.permute.xlu0 %433 }
 0x588   :  { %437 = vst.msk [vmem:[#allocation3 + $0x2] sm:$0x3] %vm323_vm10, %v434_v52  ;;  %v446_v53 = vsel %vm333_vm11, %v434_v52, %v444_v51 }
 0x589   :  { %3902 = vmatmul.mubr.msk.f32.vlgmr.msra.gmra.mxu1 %vm107_vm0, %v446_v53 }
 0x58a   :  { %3912 = vmatpush3.msra.mxu1 %v4501_v6  ;;  %3915 = vmatprep.mubr.msk.f32.mxu1 %vm4371_vm1, %v4370_v3 }
 0x58b   :  { %3913 = vmatprep.subr.mxu1 %v4370_v3 }
 0x58c   :  { %3914 = vmatpush3.msra.mxu1 %v4507_v8 }
 0x58d   :  { %3925 = vmatprep.subr.mxu1 %v4370_v3 }
 0x58f   :  { %v1115_v55 = vld [vmem:[#allocation3 + $0x2] sm:$0x3] }
 0x590   :  { %v1131_v56 = vmax.f32 %v1115_v55, 0.0 }
 0x592   :  { %v4586_v58 = vrot.slane %v1131_v56, 7 }
 0x594   :  { %v1148_v59 = vsel %vm1147_vm12, %v4586_v58, %v1130_v57 }
 0x649   :  { %v517_v61 = vpop.f32.mrf.mxu1 }
 0x64a   :  { %v521_v62 = vadd.f32 %v517_v61, %v447_v60 }
 0x64b   :  { %v3903_v63 = vpop.f32.mrf.mxu1 }
 0x64c   :  { %4309 = vtanh.f32 %v521_v62  ;;  %v522_v1 = vmul.f32 0.5, %v521_v62 }
 0x64e   :  { %4311 = vtanh.f32 %v522_v1 }
 0x659   :  { %v4310_v0 = vpop.eup %4309 }
 0x65a   :  { %529 = vrot.lane.b32.xlu0 %v4310_v0, %s4372_s3 }
 0x65b   :  { %v4312_v2 = vpop.eup %4311 }
 0x65c   :  { %v524_v4 = vadd.f32 1.0, %v4312_v2 }
 0x65e   :  { %v525_v5 = vmul.f32 0.5, %v524_v4 }
 0x660   :  { %v527_v10 = vmul.f32 %v525_v5, %v425_v47 }
 0x6cc   :  { %v530_v7 = vpop.permute.xlu0 %529 }
 0x6cd   :  { %v532_v9 = vmul.f32 %v530_v7, %v525_v5 }
 0x6cf   :  { %534 = vrot.lane.b32.xlu1 %v532_v9, %s4373_s24 }
 0x741   :  { %v535_v11 = vpop.permute.xlu1 %534 }
 0x742   :  { %v537_v12 = vadd.f32 %v535_v11, %v527_v10 }
 0x744   :  { %4313 = vtanh.f32 %v537_v12 }
 0x751   :  { %v4314_v13 = vpop.eup %4313 }
 0x752   :  { %540 = vrot.lane.b32.xlu0 %v4314_v13, %s4374_s25 }
 0x7c4   :  { %v541_v14 = vpop.permute.xlu0 %540 }
 0x7c5   :  { %v4595_v15 = vmul.f32 %v541_v14, %v525_v5 }
 0x7c7   :  { %555 = vrot.lane.b32.xlu0 %v4595_v15, %s4375_s26  ;;  %545 = vrot.lane.b32.xlu1 %v4595_v15, %s4376_s27 }
 0x839   :  { %v556_v16 = vpop.permute.xlu0 %555  ;;  %v546_v17 = vpop.permute.xlu1 %545 }
 0x83a   :  { %549 = vst.msk [vmem:[#allocation3 + $0x4] sm:$0x3] %vm323_vm10, %v546_v17  ;;  %v558_v18 = vsel %vm333_vm11, %v546_v17, %v556_v16  ;;  %v783_v16 = vld [vmem:[#allocation2 + $0xa] sm:$0x3] }
 0x83b   :  { %3909 = vmatmul.mubr.msk.f32.vlgmr.msra.gmra.mxu0 %vm107_vm0, %v558_v18 }
 0x83c   :  { %3919 = vmatpush3.msra.mxu0 %v4501_v6  ;;  %3922 = vmatprep.mubr.msk.f32.mxu0 %vm4371_vm1, %v4370_v3 }
 0x83d   :  { %3920 = vmatprep.subr.mxu0 %v4370_v3 }
 0x83e   :  { %3921 = vmatpush3.msra.mxu0 %v4507_v8 }
 0x83f   :  { %3932 = vmatprep.subr.mxu0 %v4370_v3 }
 0x841   :  { %v1116_v19 = vld [vmem:[#allocation3 + $0x4] sm:$0x3] }
 0x842   :  { %v1132_v20 = vmax.f32 %v1116_v19, 0.0 }
 0x844   :  { %v4610_v21 = vrot.slane %v1132_v20, 6 }
 0x846   :  { %v1151_v22 = vsel %vm1150_vm13, %v4610_v21, %v1148_v59 }
 0x8fb   :  { %v629_v24 = vpop.f32.mrf.mxu0 }
 0x8fc   :  { %v633_v25 = vadd.f32 %v629_v24, %v559_v23 }
 0x8fd   :  { %v3910_v26 = vpop.f32.mrf.mxu0 }
 0x8fe   :  { %4315 = vtanh.f32 %v633_v25  ;;  %v634_v28 = vmul.f32 0.5, %v633_v25 }
 0x900   :  { %4317 = vtanh.f32 %v634_v28 }
 0x90b   :  { %v4316_v27 = vpop.eup %4315 }
 0x90c   :  { %641 = vrot.lane.b32.xlu1 %v4316_v27, %s4372_s3 }
 0x90d   :  { %v4318_v29 = vpop.eup %4317 }
 0x90e   :  { %v636_v31 = vadd.f32 1.0, %v4318_v29 }
 0x910   :  { %v637_v32 = vmul.f32 0.5, %v636_v31 }
 0x912   :  { %v639_v35 = vmul.f32 %v637_v32, %v537_v12 }
 0x97e   :  { %v642_v33 = vpop.permute.xlu1 %641 }
 0x97f   :  { %v644_v34 = vmul.f32 %v642_v33, %v637_v32 }
 0x981   :  { %646 = vrot.lane.b32.xlu0 %v644_v34, %s4373_s24 }
 0x9f3   :  { %v647_v36 = vpop.permute.xlu0 %646 }
 0x9f4   :  { %v649_v37 = vadd.f32 %v647_v36, %v639_v35 }
 0x9f6   :  { %4319 = vtanh.f32 %v649_v37 }
 0xa03   :  { %v4320_v38 = vpop.eup %4319 }
 0xa04   :  { %652 = vrot.lane.b32.xlu1 %v4320_v38, %s4374_s25 }
 0xa76   :  { %v653_v39 = vpop.permute.xlu1 %652 }
 0xa77   :  { %v4617_v40 = vmul.f32 %v653_v39, %v637_v32 }
 0xa79   :  { %667 = vrot.lane.b32.xlu1 %v4617_v40, %s4375_s26  ;;  %657 = vrot.lane.b32.xlu0 %v4617_v40, %s4376_s27 }
 0xaeb   :  { %v668_v41 = vpop.permute.xlu1 %667  ;;  %v658_v42 = vpop.permute.xlu0 %657 }
 0xaec   :  { %661 = vst.msk [vmem:[#allocation3 + $0x6] sm:$0x3] %vm323_vm10, %v658_v42  ;;  %v670_v43 = vsel %vm333_vm11, %v658_v42, %v668_v41  ;;  %v895_v41 = vld [vmem:[#allocation2 + $0xc] sm:$0x3] }
 0xaed   :  { %3916 = vmatmul.mubr.msk.f32.vlgmr.msra.gmra.mxu1 %vm107_vm0, %v670_v43 }
 0xaee   :  { %3926 = vmatpush3.msra.mxu1 %v4501_v6  ;;  %3929 = vmatprep.mubr.msk.f32.mxu1 %vm4371_vm1, %v4370_v3 }
 0xaef   :  { %3927 = vmatprep.subr.mxu1 %v4370_v3 }
 0xaf0   :  { %3928 = vmatpush3.msra.mxu1 %v4507_v8 }
 0xaf3   :  { %v1117_v44 = vld [vmem:[#allocation3 + $0x6] sm:$0x3] }
 0xaf4   :  { %v1133_v45 = vmax.f32 %v1117_v44, 0.0 }
 0xaf6   :  { %v4631_v46 = vrot.slane %v1133_v45, 5 }
 0xaf8   :  { %v1154_v47 = vsel %vm1153_vm14, %v4631_v46, %v1151_v22 }
 0xbad   :  { %v741_v49 = vpop.f32.mrf.mxu1 }
 0xbae   :  { %v745_v51 = vadd.f32 %v741_v49, %v671_v48 }
 0xbaf   :  { %v3917_v52 = vpop.f32.mrf.mxu1 }
 0xbb0   :  { %4321 = vtanh.f32 %v745_v51  ;;  %v746_v55 = vmul.f32 0.5, %v745_v51 }
 0xbb2   :  { %4323 = vtanh.f32 %v746_v55 }
 0xbbd   :  { %v4322_v53 = vpop.eup %4321 }
 0xbbe   :  { %753 = vrot.lane.b32.xlu0 %v4322_v53, %s4372_s3 }
 0xbbf   :  { %v4324_v56 = vpop.eup %4323 }
 0xbc0   :  { %v748_v59 = vadd.f32 1.0, %v4324_v56 }
 0xbc2   :  { %v749_v60 = vmul.f32 0.5, %v748_v59 }
 0xbc4   :  { %v751_v63 = vmul.f32 %v749_v60, %v649_v37 }
 0xc30   :  { %v754_v61 = vpop.permute.xlu0 %753 }
 0xc31   :  { %v756_v62 = vmul.f32 %v754_v61, %v749_v60 }
 0xc33   :  { %758 = vrot.lane.b32.xlu1 %v756_v62, %s4373_s24 }
 0xca5   :  { %v759_v0 = vpop.permute.xlu1 %758 }
 0xca6   :  { %v761_v1 = vadd.f32 %v759_v0, %v751_v63 }
 0xca8   :  { %4325 = vtanh.f32 %v761_v1 }
 0xcb5   :  { %v4326_v2 = vpop.eup %4325 }
 0xcb6   :  { %764 = vrot.lane.b32.xlu0 %v4326_v2, %s4374_s25 }
 0xd28   :  { %v765_v4 = vpop.permute.xlu0 %764 }
 0xd29   :  { %v4638_v5 = vmul.f32 %v765_v4, %v749_v60 }
 0xd2b   :  { %779 = vrot.lane.b32.xlu0 %v4638_v5, %s4375_s26  ;;  %769 = vrot.lane.b32.xlu1 %v4638_v5, %s4376_s27 }
 0xd9d   :  { %v780_v7 = vpop.permute.xlu0 %779  ;;  %v770_v9 = vpop.permute.xlu1 %769 }
 0xd9e   :  { %773 = vst.msk [vmem:[#allocation3 + $0x8] sm:$0x3] %vm323_vm10, %v770_v9  ;;  %v782_v10 = vsel %vm333_vm11, %v770_v9, %v780_v7 }
 0xd9f   :  { %3923 = vmatmul.mubr.msk.f32.vlgmr.msra.gmra.mxu0 %vm107_vm0, %v782_v10  ;;  %v1007_v10 = vld [vmem:[#allocation2 + $0xe] sm:$0x3] }
 0xda0   :  { %3933 = vmatpush3.msra.mxu0 %v4501_v6  ;;  %3936 = vmatprep.mubr.msk.f32.mxu0 %vm4371_vm1, %v4370_v3  ;;  %vm1159_vm1 = vcmask 1045509  }
 0xda1   :  { %3934 = vmatprep.subr.mxu0 %v4370_v3 }
 0xda2   :  { %3935 = vmatpush3.msra.mxu0 %v4507_v8 }
 0xda5   :  { %v1118_v11 = vld [vmem:[#allocation3 + $0x8] sm:$0x3] }
 0xda6   :  { %v1134_v12 = vmax.f32 %v1118_v11, 0.0 }
 0xda8   :  { %v4652_v13 = vrot.slane %v1134_v12, 4 }
 0xdaa   :  { %v1157_v14 = vsel %vm1156_vm15, %v4652_v13, %v1154_v47 }
 0xe5f   :  { %v853_v17 = vpop.f32.mrf.mxu0 }
 0xe60   :  { %v857_v18 = vadd.f32 %v853_v17, %v783_v16 }
 0xe61   :  { %v3924_v19 = vpop.f32.mrf.mxu0 }
 0xe62   :  { %4327 = vtanh.f32 %v857_v18  ;;  %v858_v20 = vmul.f32 0.5, %v857_v18 }
 0xe64   :  { %4329 = vtanh.f32 %v858_v20 }
 0xe6f   :  { %v4328_v6 = vpop.eup %4327 }
 0xe70   :  { %865 = vrot.lane.b32.xlu1 %v4328_v6, %s4372_s3 }
 0xe71   :  { %v4330_v22 = vpop.eup %4329 }
 0xe72   :  { %v860_v8 = vadd.f32 1.0, %v4330_v22 }
 0xe74   :  { %v861_v23 = vmul.f32 0.5, %v860_v8 }
 0xe76   :  { %v863_v26 = vmul.f32 %v861_v23, %v761_v1 }
 0xee2   :  { %v866_v24 = vpop.permute.xlu1 %865 }
 0xee3   :  { %v868_v25 = vmul.f32 %v866_v24, %v861_v23 }
 0xee5   :  { %870 = vrot.lane.b32.xlu0 %v868_v25, %s4373_s24 }
 0xf57   :  { %v871_v27 = vpop.permute.xlu0 %870 }
 0xf58   :  { %v873_v28 = vadd.f32 %v871_v27, %v863_v26 }
 0xf5a   :  { %4331 = vtanh.f32 %v873_v28 }
 0xf67   :  { %v4332_v29 = vpop.eup %4331 }
 0xf68   :  { %876 = vrot.lane.b32.xlu1 %v4332_v29, %s4374_s25 }
 0xfda   :  { %v877_v31 = vpop.permute.xlu1 %876 }
 0xfdb   :  { %v4659_v32 = vmul.f32 %v877_v31, %v861_v23 }
 0xfdd   :  { %891 = vrot.lane.b32.xlu1 %v4659_v32, %s4375_s26  ;;  %881 = vrot.lane.b32.xlu0 %v4659_v32, %s4376_s27 }
0x104f   :  { %v892_v33 = vpop.permute.xlu1 %891  ;;  %v882_v34 = vpop.permute.xlu0 %881 }
0x1050   :  { %885 = vst.msk [vmem:[#allocation3 + $0xa] sm:$0x3] %vm323_vm10, %v882_v34  ;;  %v894_v35 = vsel %vm333_vm11, %v882_v34, %v892_v33 }
0x1051   :  { %3930 = vmatmul.mubr.msk.f32.vlgmr.msra.gmra.mxu1 %vm107_vm0, %v894_v35 }
0x1057   :  { %v1119_v36 = vld [vmem:[#allocation3 + $0xa] sm:$0x3] }
0x1058   :  { %v1135_v37 = vmax.f32 %v1119_v36, 0.0 }
0x105a   :  { %v4668_v38 = vrot.slane %v1135_v37, 3 }
0x105c   :  { %v1160_v39 = vsel %vm1159_vm1, %v4668_v38, %v1157_v14 }
0x1111   :  { %v965_v42 = vpop.f32.mrf.mxu1 }
0x1112   :  { %v969_v43 = vadd.f32 %v965_v42, %v895_v41 }
0x1113   :  { %v3931_v44 = vpop.f32.mrf.mxu1 }
0x1114   :  { %4333 = vtanh.f32 %v969_v43  ;;  %v970_v47 = vmul.f32 0.5, %v969_v43 }
0x1116   :  { %4335 = vtanh.f32 %v970_v47 }
0x1121   :  { %v4334_v45 = vpop.eup %4333 }
0x1122   :  { %977 = vrot.lane.b32.xlu0 %v4334_v45, %s4372_s3 }
0x1123   :  { %v4336_v48 = vpop.eup %4335 }
0x1124   :  { %v972_v49 = vadd.f32 1.0, %v4336_v48 }
0x1126   :  { %v973_v51 = vmul.f32 0.5, %v972_v49 }
0x1128   :  { %v975_v55 = vmul.f32 %v973_v51, %v873_v28 }
0x1194   :  { %v978_v52 = vpop.permute.xlu0 %977 }
0x1195   :  { %v980_v53 = vmul.f32 %v978_v52, %v973_v51 }
0x1197   :  { %982 = vrot.lane.b32.xlu1 %v980_v53, %s4373_s24 }
0x1209   :  { %v983_v56 = vpop.permute.xlu1 %982 }
0x120a   :  { %v985_v59 = vadd.f32 %v983_v56, %v975_v55 }
0x120c   :  { %4337 = vtanh.f32 %v985_v59 }
0x1219   :  { %v4338_v60 = vpop.eup %4337 }
0x121a   :  { %988 = vrot.lane.b32.xlu0 %v4338_v60, %s4374_s25 }
0x128c   :  { %v989_v61 = vpop.permute.xlu0 %988 }
0x128d   :  { %v991_v62 = vmul.f32 %v989_v61, %v973_v51 }
0x128f   :  { %1003 = vrot.lane.b32.xlu0 %v991_v62, %s4375_s26  ;;  %993 = vrot.lane.b32.xlu1 %v991_v62, %s4376_s27 }
0x1301   :  { %v1004_v63 = vpop.permute.xlu0 %1003  ;;  %v994_v0 = vpop.permute.xlu1 %993 }
0x1302   :  { %997 = vst.msk [vmem:[#allocation3 + $0xc] sm:$0x3] %vm323_vm10, %v994_v0  ;;  %v1006_v1 = vsel %vm333_vm11, %v994_v0, %v1004_v63  ;;  %vm1236_vm11 = vcmask 138313  }
0x1303   :  { %3937 = vmatmul.mubr.msk.f32.vlgmr.msra.gmra.mxu0 %vm107_vm0, %v1006_v1 }
0x1309   :  { %v1120_v2 = vld [vmem:[#allocation3 + $0xc] sm:$0x3] }
0x130a   :  { %v1136_v4 = vmax.f32 %v1120_v2, 0.0 }
0x130c   :  { %v4680_v7 = vrot.slane %v1136_v4, 2 }
0x130e   :  { %v4684_v9 = vsel %vm1162_vm2, %v4680_v7, %v1160_v39 }
0x13c3   :  { %v1077_v11 = vpop.f32.mrf.mxu0 }
0x13c4   :  { %v1081_v12 = vadd.f32 %v1077_v11, %v1007_v10 }
0x13c5   :  { %v3938_v14 = vpop.f32.mrf.mxu0 }
0x13c6   :  { %4339 = vtanh.f32 %v1081_v12  ;;  %v1082_v17 = vmul.f32 0.5, %v1081_v12 }
0x13c8   :  { %4341 = vtanh.f32 %v1082_v17 }
0x13d3   :  { %v4340_v16 = vpop.eup %4339 }
0x13d4   :  { %1089 = vrot.lane.b32.xlu1 %v4340_v16, %s4372_s3 }
0x13d5   :  { %v4342_v18 = vpop.eup %4341 }
0x13d6   :  { %v1084_v19 = vadd.f32 1.0, %v4342_v18 }
0x13d8   :  { %v1085_v6 = vmul.f32 0.5, %v1084_v19 }
0x13da   :  { %v1087_v8 = vmul.f32 %v1085_v6, %v985_v59 }
0x1446   :  { %v1090_v20 = vpop.permute.xlu1 %1089 }
0x1447   :  { %v1092_v22 = vmul.f32 %v1090_v20, %v1085_v6 }
0x1449   :  { %1094 = vrot.lane.b32.xlu0 %v1092_v22, %s4373_s24 }
0x144d   :  { %998 = vrot.lane.b32.xlu0 %v991_v62, %s4377_s28 }
0x1451   :  { %774 = vrot.lane.b32.xlu0 %v4638_v5, %s4377_s28 }
0x1455   :  { %662 = vrot.lane.b32.xlu0 %v4617_v40, %s4377_s28 }
0x1459   :  { %438 = vrot.lane.b32.xlu0 %v4568_v50, %s4377_s28  ;;  %v1242_v50 = vld [vmem:[%s6331_s4] sm:$0x1]  ;;  %s6362_s4 = smov 127  }
0x145a   :  { %3978 = vpush %v1242_v50 }
0x145d   :  { %325 = vrot.lane.b32.xlu0 %v4550_v30, %s4377_s28 }
0x148b   :  { %s4799_s0 = spop %3978 }
0x14bb   :  { %v1095_v23 = vpop.permute.xlu0 %1094 }
0x14bc   :  { %v1097_v24 = vadd.f32 %v1095_v23, %v1087_v8 }
0x14be   :  { %4343 = vtanh.f32 %v1097_v24 }
0x14bf   :  { %v999_v25 = vpop.permute.xlu0 %998 }
0x14c0   :  { %1002 = vst.msk [vmem:[#allocation4 + $0x2] sm:$0x3] %vm323_vm10, %v999_v25 }
0x14c3   :  { %v775_v26 = vpop.permute.xlu0 %774 }
0x14c4   :  { %778 = vst.msk [vmem:[#allocation4 + $0x6] sm:$0x3] %vm323_vm10, %v775_v26 }
0x14c7   :  { %v663_v5 = vpop.permute.xlu0 %662 }
0x14c8   :  { %666 = vst.msk [vmem:[#allocation4 + $0x8] sm:$0x3] %vm323_vm10, %v663_v5 }
0x14cb   :  { %v4344_v40 = vpop.eup %4343  ;;  %v439_v30 = vpop.permute.xlu0 %438  ;;  %v1125_v37 = vld [vmem:[#allocation4 + $0x6] sm:$0x3] }
0x14cc   :  { %442 = vst.msk [vmem:[#allocation4 + $0xc] sm:$0x3] %vm323_vm10, %v439_v30  ;;  %1100 = vrot.lane.b32.xlu1 %v4344_v40, %s4374_s25  ;;  %v1175_v3 = vmax.f32 %v1125_v37, 0.0 }
0x14ce   :  { %v1192_v61 = vrot.slane %v1175_v3, 5 }
0x14cf   :  { %v326_v27 = vpop.permute.xlu0 %325 }
0x14d0   :  { %329 = vst.msk [vmem:[#allocation4 + $0xe] sm:$0x3] %vm323_vm10, %v326_v27  ;;  %886 = vrot.lane.b32.xlu1 %v4659_v32, %s4377_s28  ;;  %v1207_v32 = vsel %vm1150_vm13, %v4586_v58, %v1130_v57  ;;  %v4753_v57 = vld [vmem:[%s6332_s5] sm:$0xf]  ;;  %s4380_s5 = smov 9  }
0x14d1   :  { %v1208_v33 = vsel %vm1153_vm14, %v4610_v21, %v1207_v32  ;;  %3980 = vpush %v4753_v57  ;;  %v1123_v21 = vld [vmem:[#allocation4 + $0x2] sm:$0x3]  ;;  %v4779_v43 = vrot.slane %v4753_v57, 1 }
0x14d2   :  { %v1209_v34 = vsel %vm1156_vm15, %v4631_v46, %v1208_v33  ;;  %v1173_v39 = vmax.f32 %v1123_v21, 0.0  ;;  %v4819_v21 = vrot.slane %v4753_v57, 3 }
0x14d3   :  { %v1210_v35 = vsel %vm1159_vm1, %v4652_v13, %v1209_v34  ;;  %v1128_v44 = vld [vmem:[#allocation4 + $0xc] sm:$0x3] }
0x14d4   :  { %550 = vrot.lane.b32.xlu1 %v4595_v15, %s4377_s28  ;;  %v1211_v36 = vsel %vm1162_vm2, %v4668_v38, %v1210_v35  ;;  %v1126_v38 = vld [vmem:[#allocation4 + $0x8] sm:$0x3]  ;;  %v1188_v53 = vrot.slane %v1173_v39, 7  ;;  %v1178_v55 = vmax.f32 %v1128_v44, 0.0 }
0x14d5   :  { %v1212_v54 = vsel %vm1165_vm4, %v4680_v7, %v1211_v36  ;;  %v1176_v49 = vmax.f32 %v1126_v38, 0.0 }
0x14d6   :  { %v1198_v14 = vrot.slane %v1178_v55, 2 }
0x14d7   :  { %v1129_v48 = vld [vmem:[#allocation4 + $0xe] sm:$0x3]  ;;  %v1194_v2 = vrot.slane %v1176_v49, 4 }
0x14d8   :  { %v1179_v59 = vmax.f32 %v1129_v48, 0.0 }
0x14da   :  { %v1200_v18 = vrot.slane %v1179_v59, 1 }
0x1502   :  { %s3981_s20 = spop %3980 }
0x1503   :  { %s1246_s23 = smul.f32 %s3981_s20, %s4799_s0 }
0x1505   :  { %v1254_v40 = vstv %s1246_s23 }
0x153e   :  { %v1101_v15 = vpop.permute.xlu1 %1100 }
0x153f   :  { %v1103_v28 = vmul.f32 %v1101_v15, %v1085_v6 }
0x1541   :  { %1110 = vrot.lane.b32.xlu1 %v1103_v28, %s4377_s28 }
0x1542   :  { %v887_v29 = vpop.permute.xlu1 %886 }
0x1543   :  { %890 = vst.msk [vmem:[#allocation4 + $0x4] sm:$0x3] %vm323_vm10, %v887_v29 }
0x1545   :  { %1105 = vrot.lane.b32.xlu1 %v1103_v28, %s4376_s27 }
0x1546   :  { %v551_v31 = vpop.permute.xlu1 %550 }
0x1547   :  { %554 = vst.msk [vmem:[#allocation4 + $0xa] sm:$0x3] %vm323_vm10, %v551_v31 }
0x1549   :  { %1247 = vrot.lane.b32.xlu1 %v1242_v50, %s6362_s4 }
0x154a   :  { %v1124_v46 = vld [vmem:[#allocation4 + $0x4] sm:$0x3] }
0x154b   :  { %v1174_v42 = vmax.f32 %v1124_v46, 0.0 }
0x154d   :  { %1213 = vrot.lane.b32.xlu1 %v1212_v54, %s6347_s30  ;;  %v1190_v56 = vrot.slane %v1174_v42, 6 }
0x154e   :  { %v1127_v41 = vld [vmem:[#allocation4 + $0xa] sm:$0x3] }
0x154f   :  { %v1177_v52 = vmax.f32 %v1127_v41, 0.0 }
0x1551   :  { %v1196_v11 = vrot.slane %v1177_v52, 3 }
0x15b3   :  { %v1111_v58 = vpop.permute.xlu1 %1110 }
0x15b4   :  { %1113 = vst.msk [vmem:[#allocation4] sm:$0x3] %vm323_vm10, %v1111_v58  ;;  %v4816_v58 = vrot.slane %v4753_v57, 2 }
0x15b7   :  { %v1106_v13 = vpop.permute.xlu1 %1105 }
0x15b8   :  { %1109 = vst.msk [vmem:[#allocation3 + $0xe] sm:$0x3] %vm323_vm10, %v1106_v13  ;;  %vm1238_vm10 = vcmask 131144  }
0x15bb   :  { %v1248_v45 = vpop.permute.xlu1 %1247  ;;  %v1122_v47 = vld [vmem:[#allocation4] sm:$0x3] }
0x15bc   :  { %v1172_v51 = vmax.f32 %v1122_v47, 0.0  ;;  %3982 = vpush %v1248_v45 }
0x15bd   :  { %3984 = vpush %v4779_v43 }
0x15be   :  { %v1189_v60 = vsel %vm1147_vm12, %v1188_v53, %v1172_v51  ;;  %v1224_v62 = vsel %vm1150_vm13, %v1188_v53, %v1172_v51  ;;  %3986 = vpush %v4816_v58  ;;  %vm1784_vm12 = vcmask 138248  }
0x15bf   :  { %v1214_v63 = vpop.permute.xlu1 %1213  ;;  %v1121_v0 = vld [vmem:[#allocation3 + $0xe] sm:$0x3]  ;;  %v1191_v1 = vsel %vm1150_vm13, %v1190_v56, %v1189_v60  ;;  %v1225_v4 = vsel %vm1153_vm14, %v1190_v56, %v1224_v62  ;;  %3988 = vpush %v4819_v21  ;;  %vm3012_vm13 = vcmask 1046528  }
0x15c0   :  { %1221 = vst.msk [vmem:[#allocation5 + $0x10] sm:$0xfe] %vm1220_vm6, %v1214_v63  ;;  %v1137_v7 = vmax.f32 %v1121_v0, 0.0  ;;  %v1193_v10 = vsel %vm1153_vm14, %v1192_v61, %v1191_v1  ;;  %v1226_v19 = vsel %vm1156_vm15, %v1192_v61, %v1225_v4  ;;  %vm3215_vm14 = vcmask 261248  }
0x15c1   :  { %v1195_v12 = vsel %vm1156_vm15, %v1194_v2, %v1193_v10  ;;  %v1227_v22 = vsel %vm1159_vm1, %v1194_v2, %v1226_v19  ;;  %vm3620_vm15 = vcmask 1043456  }
0x15c2   :  { %v1164_v16 = vrot.slane %v1137_v7, 1  ;;  %v1197_v17 = vsel %vm1159_vm1, %v1196_v11, %v1195_v12  ;;  %v1228_v23 = vsel %vm1162_vm2, %v1196_v11, %v1227_v22  ;;  %vm3354_vm1 = vcmask 392448  }
0x15c3   :  { %v1199_v6 = vsel %vm1162_vm2, %v1198_v14, %v1197_v17  ;;  %v1229_v24 = vsel %vm1165_vm4, %v1198_v14, %v1228_v23  ;;  %vm3493_vm2 = vcmask 523648  }
0x15c4   :  { %1215 = vrot.lane.b32.xlu0 %v1164_v16, %s6347_s30  ;;  %v1201_v20 = vsel %vm1165_vm4, %v1200_v18, %v1199_v6  ;;  %v1166_v8 = vsel %vm1165_vm4, %v1164_v16, %v4684_v9  ;;  %vm3710_vm4 = vcmask 97280  }
0x15c5   :  { %1202 = vrot.lane.b32.xlu1 %v1201_v20, %s4380_s5 }
0x15c8   :  { %1167 = vrot.lane.b32.xlu0 %v1166_v8, %s6347_s30 }
0x15c9   :  { %1232 = vrot.lane.b32.xlu1 %v1200_v18, %s4380_s5 }
0x15cc   :  { %1230 = vrot.lane.b32.xlu0 %v1229_v24, %s4380_s5 }
0x15ed   :  { %s4801_s21 = spop %3982 }
0x15ee   :  { %s1250_s22 = smul.f32 %s4801_s21, %s3981_s20  ;;  %s3985_s2 = spop %3984 }
0x15ef   :  { %s4825_s24 = spop %3986 }
0x15f0   :  { %s1253_s3 = sadd.f32 %s3985_s2, %s1250_s22  ;;  %s4827_s25 = spop %3988 }
0x15f2   :  { %v1257_v27 = vstv %s1253_s3 }
0x1636   :  { %v1216_v25 = vpop.permute.xlu0 %1215 }
0x1637   :  { %1223 = vst.msk [vmem:[#allocation5 + $0x18] sm:$0x1] %vm1222_vm7, %v1216_v25  ;;  %v1203_v26 = vpop.permute.xlu1 %1202 }
0x163a   :  { %v1168_v9 = vpop.permute.xlu0 %1167 }
0x163b   :  { %1171 = vst.msk [vmem:[#allocation5 + $0x1] sm:$0xff] %vm1170_vm8, %v1168_v9  ;;  %v1233_v5 = vpop.permute.xlu1 %1232 }
0x163c   :  { %1206 = vst.msk [vmem:[#allocation5 + $0x1] sm:$0xff] %vm1205_vm9, %v1203_v26 }
0x163d   :  { %1239 = vst.msk [vmem:[#allocation5 + $0x18] sm:$0x1] %vm1238_vm10, %v1233_v5 }
0x163e   :  { %v1231_v50 = vpop.permute.xlu0 %1230 }
0x163f   :  { %1237 = vst.msk [vmem:[#allocation5 + $0x10] sm:$0xfe] %vm1236_vm11, %v1231_v50 }
0x1643   :  { %v4805_v30 = vld [vmem:[#allocation5 + $0x1] sm:$0xff] }
0x1644   :  { %v1255_v15 = vmul.f32 %v1254_v40, %v4805_v30 }
0x1646   :  { %v4808_v28 = vld [vmem:[#allocation5 + $0x11] sm:$0xff]  ;;  %v1258_v29 = vadd.f32 %v1257_v27, %v1255_v15 }
0x1647   :  { %v1256_v31 = vmul.f32 %v1254_v40, %v4808_v28 }
0x1648   :  { %1266 = vrot.lane.b32.xlu0 %v1258_v29, %s6362_s4 }
0x1649   :  { %v1259_v32 = vadd.f32 %v1257_v27, %v1256_v31 }
0x164b   :  { %1268 = vrot.lane.b32.xlu1 %v1259_v32, %s6362_s4 }
0x16ba   :  { %v1267_v33 = vpop.permute.xlu0 %1266 }
0x16bb   :  { %v1272_v35 = vsel %vm107_vm0, %v1267_v33, 0.0 }
0x16bd   :  { %v1269_v34 = vpop.permute.xlu1 %1268 }
0x16be   :  { %v1273_v36 = vsel %vm107_vm0, %v1269_v34, 0.0 }
0x16bf   :  { %v1274_v54 = vadd.f32 %v1273_v36, %v1272_v35 }
0x16c1   :  { %1275 = vadd.xlane.f32.xlu0 %v1274_v54 }
0x16d7   :  { %1328 = vrot.lane.b32.xlu0 %v4753_v57, %s6362_s4 }
0x174a   :  { %v1276_v46 = vpop.xlane.xlu0 %1275 }
0x174b   :  { %v1277_v13 = vrot.slane %v1276_v46, 4 }
0x174d   :  { %v1278_v37 = vadd.f32 %v1277_v13, %v1276_v46 }
0x174e   :  { %v1329_v2 = vpop.permute.xlu0 %1328 }
0x174f   :  { %v1279_v38 = vrot.slane %v1278_v37, 2 }
0x1751   :  { %v1280_v39 = vadd.f32 %v1279_v38, %v1278_v37 }
0x1753   :  { %v1281_v41 = vrot.slane %v1280_v39, 1 }
0x1755   :  { %v1282_v42 = vadd.f32 %v1281_v41, %v1280_v39 }
0x1757   :  { %3990 = vpush %v1282_v42 }
0x1788   :  { %s3991_s26 = spop %3990 }
0x1789   :  { %s1286_s27 = smul.f32 0.00390625, %s3991_s26 }
0x178b   :  { %v1287_v44 = vstv %s1286_s27 }
0x178c   :  { %v4829_v3 = vsub.f32 %v1258_v29, %v1287_v44  ;;  %v4831_v45 = vsub.f32 %v1259_v32, %v1287_v44 }
0x178e   :  { %v1290_v47 = vmul.f32 %v4829_v3, %v4829_v3  ;;  %v1291_v48 = vmul.f32 %v4831_v45, %v4831_v45 }
0x1790   :  { %1294 = vrot.lane.b32.xlu1 %v1290_v47, %s6362_s4 }
0x1794   :  { %1296 = vrot.lane.b32.xlu1 %v1291_v48, %s6362_s4 }
0x1802   :  { %v1295_v49 = vpop.permute.xlu1 %1294 }
0x1803   :  { %v1300_v52 = vsel %vm107_vm0, %v1295_v49, 0.0 }
0x1806   :  { %v1297_v51 = vpop.permute.xlu1 %1296 }
0x1807   :  { %v1301_v53 = vsel %vm107_vm0, %v1297_v51, 0.0 }
0x1808   :  { %v1302_v55 = vadd.f32 %v1301_v53, %v1300_v52 }
0x180a   :  { %1303 = vadd.xlane.f32.xlu1 %v1302_v55 }
0x181b   :  { %1333 = vrot.lane.b32.xlu1 %v4779_v43, %s6362_s4 }
0x181f   :  { %1343 = vrot.lane.b32.xlu1 %v4816_v58, %s6362_s4 }
0x1823   :  { %1346 = vrot.lane.b32.xlu1 %v4819_v21, %s6362_s4 }
0x1893   :  { %v1304_v56 = vpop.xlane.xlu1 %1303 }
0x1894   :  { %v1305_v59 = vrot.slane %v1304_v56, 4 }
0x1896   :  { %v1306_v60 = vadd.f32 %v1305_v59, %v1304_v56 }
0x1897   :  { %v1334_v7 = vpop.permute.xlu1 %1333 }
0x1898   :  { %v1307_v61 = vrot.slane %v1306_v60, 2 }
0x189a   :  { %v1308_v62 = vadd.f32 %v1307_v61, %v1306_v60 }
0x189b   :  { %v1344_v8 = vpop.permute.xlu1 %1343 }
0x189c   :  { %v1309_v63 = vrot.slane %v1308_v62, 1 }
0x189e   :  { %v1310_v0 = vadd.f32 %v1309_v63, %v1308_v62 }
0x189f   :  { %v1347_v23 = vpop.permute.xlu1 %1346 }
0x18a0   :  { %3992 = vpush %v1310_v0 }
0x18d1   :  { %s3993_s28 = spop %3992 }
0x18d2   :  { %s1314_s29 = smul.f32 0.00390625, %s3993_s28  ;;  %s6349_s28 = smov 126  }
0x18d4   :  { %s1315_s1 = sadd.f32 1e-05, %s1314_s29 }
0x18d6   :  { %v1316_v1 = vstv %s1315_s1 }
0x18d7   :  { %4345 = vrsqrt.f32 %v1316_v1 }
0x18e4   :  { %v4346_v4 = vpop.eup %4345 }
0x18e5   :  { %3994 = vpush %v4346_v4 }
0x18e6   :  { %3996 = vpush %v1329_v2 }
0x18e7   :  { %3998 = vpush %v1334_v7 }
0x18e8   :  { %4000 = vpush %v1344_v8 }
0x18e9   :  { %4002 = vpush %v1347_v23 }
0x1916   :  { %s4847_s18 = spop %3994 }
0x1917   :  { %s3997_s19 = spop %3996 }
0x1918   :  { %s1331_s5 = smul.f32 %s3997_s19, %s4799_s0  ;;  %s3999_s20 = spop %3998 }
0x1919   :  { %s1332_s22 = smul.f32 %s3997_s19, %s4801_s21  ;;  %s4857_s23 = spop %4000 }
0x191a   :  { %v1337_v10 = vstv %s1331_s5  ;;  %s4859_s3 = spop %4002 }
0x191b   :  { %v1338_v11 = vmul.f32 %v1337_v10, %v4805_v30  ;;  %s1336_s2 = sadd.f32 %s3999_s20, %s1332_s22  ;;  %v1339_v14 = vmul.f32 %v1337_v10, %v4808_v28 }
0x191d   :  { %v1340_v12 = vstv %s1336_s2 }
0x191e   :  { %v1341_v16 = vadd.f32 %v1340_v12, %v1338_v11  ;;  %v1342_v17 = vadd.f32 %v1340_v12, %v1339_v14 }
0x1920   :  { %1351 = vrot.lane.b32.xlu0 %v1341_v16, %s6362_s4 }
0x1924   :  { %1353 = vrot.lane.b32.xlu0 %v1342_v17, %s6362_s4 }
0x1992   :  { %v1352_v18 = vpop.permute.xlu0 %1351 }
0x1993   :  { %v1357_v6 = vsel %vm107_vm0, %v1352_v18, 0.0 }
0x1996   :  { %v1354_v19 = vpop.permute.xlu0 %1353 }
0x1997   :  { %v1358_v20 = vsel %vm107_vm0, %v1354_v19, 0.0 }
0x1998   :  { %v1359_v22 = vadd.f32 %v1358_v20, %v1357_v6 }
0x199a   :  { %1360 = vadd.xlane.f32.xlu0 %v1359_v22 }
0x19b0   :  { %1413 = vrot.lane.b32.xlu0 %v4753_v57, %s6349_s28 }
0x1a23   :  { %v1361_v24 = vpop.xlane.xlu0 %1360 }
0x1a24   :  { %v1362_v25 = vrot.slane %v1361_v24, 4 }
0x1a26   :  { %v1363_v26 = vadd.f32 %v1362_v25, %v1361_v24 }
0x1a27   :  { %v1414_v47 = vpop.permute.xlu0 %1413 }
0x1a28   :  { %v1364_v9 = vrot.slane %v1363_v26, 2 }
0x1a2a   :  { %v1365_v5 = vadd.f32 %v1364_v9, %v1363_v26 }
0x1a2c   :  { %v1366_v50 = vrot.slane %v1365_v5, 1 }
0x1a2e   :  { %v1367_v40 = vadd.f32 %v1366_v50, %v1365_v5 }
0x1a30   :  { %4004 = vpush %v1367_v40 }
0x1a61   :  { %s4005_s26 = spop %4004 }
0x1a62   :  { %s1371_s27 = smul.f32 0.00390625, %s4005_s26 }
0x1a64   :  { %v1372_v27 = vstv %s1371_s27 }
0x1a65   :  { %v4863_v15 = vsub.f32 %v1341_v16, %v1372_v27  ;;  %v4865_v29 = vsub.f32 %v1342_v17, %v1372_v27 }
0x1a67   :  { %6386 = vst [vmem:[#allocation9_spill] sm:$0xff] %v4863_v15  ;;  %v1375_v31 = vmul.f32 %v4863_v15, %v4863_v15  ;;  %v1376_v32 = vmul.f32 %v4865_v29, %v4865_v29 }
0x1a69   :  { %1379 = vrot.lane.b32.xlu1 %v1375_v31, %s6362_s4 }
0x1a6d   :  { %1381 = vrot.lane.b32.xlu1 %v1376_v32, %s6362_s4 }
0x1adb   :  { %v1380_v33 = vpop.permute.xlu1 %1379 }
0x1adc   :  { %v1385_v35 = vsel %vm107_vm0, %v1380_v33, 0.0 }
0x1adf   :  { %v1382_v34 = vpop.permute.xlu1 %1381 }
0x1ae0   :  { %v1386_v36 = vsel %vm107_vm0, %v1382_v34, 0.0 }
0x1ae1   :  { %v1387_v54 = vadd.f32 %v1386_v36, %v1385_v35 }
0x1ae3   :  { %1388 = vadd.xlane.f32.xlu1 %v1387_v54 }
0x1af4   :  { %1418 = vrot.lane.b32.xlu1 %v4779_v43, %s6349_s28 }
0x1af8   :  { %1428 = vrot.lane.b32.xlu1 %v4816_v58, %s6349_s28 }
0x1afc   :  { %1431 = vrot.lane.b32.xlu1 %v4819_v21, %s6349_s28 }
0x1b6c   :  { %v1389_v46 = vpop.xlane.xlu1 %1388 }
0x1b6d   :  { %v1390_v13 = vrot.slane %v1389_v46, 4 }
0x1b6f   :  { %v1391_v37 = vadd.f32 %v1390_v13, %v1389_v46 }
0x1b70   :  { %v1419_v49 = vpop.permute.xlu1 %1418 }
0x1b71   :  { %v1392_v38 = vrot.slane %v1391_v37, 2 }
0x1b73   :  { %v1393_v39 = vadd.f32 %v1392_v38, %v1391_v37 }
0x1b74   :  { %v1429_v1 = vpop.permute.xlu1 %1428 }
0x1b75   :  { %v1394_v41 = vrot.slane %v1393_v39, 1 }
0x1b77   :  { %v1395_v42 = vadd.f32 %v1394_v41, %v1393_v39 }
0x1b78   :  { %v1432_v2 = vpop.permute.xlu1 %1431 }
0x1b79   :  { %4006 = vpush %v1395_v42 }
0x1baa   :  { %s4007_s29 = spop %4006 }
0x1bab   :  { %s1399_s1 = smul.f32 0.00390625, %s4007_s29 }
0x1bad   :  { %s1400_s19 = sadd.f32 1e-05, %s1399_s1 }
0x1baf   :  { %v1401_v44 = vstv %s1400_s19 }
0x1bb0   :  { %4347 = vrsqrt.f32 %v1401_v44 }
0x1bbd   :  { %v4348_v48 = vpop.eup %4347 }
0x1bbe   :  { %4008 = vpush %v4348_v48 }
0x1bbf   :  { %4010 = vpush %v1414_v47 }
0x1bc0   :  { %4012 = vpush %v1419_v49 }
0x1bc1   :  { %4014 = vpush %v1429_v1 }
0x1bc2   :  { %4016 = vpush %v1432_v2 }
0x1bef   :  { %s4881_s5 = spop %4008 }
0x1bf0   :  { %s4011_s20 = spop %4010 }
0x1bf1   :  { %s1416_s22 = smul.f32 %s4011_s20, %s4799_s0  ;;  %s4013_s2 = spop %4012 }
0x1bf2   :  { %s1417_s26 = smul.f32 %s4011_s20, %s4801_s21  ;;  %s4891_s29 = spop %4014 }
0x1bf3   :  { %v1422_v51 = vstv %s1416_s22  ;;  %s4893_s1 = spop %4016  ;;  %s6351_s22 = smov 125  }
0x1bf4   :  { %v1423_v52 = vmul.f32 %v1422_v51, %v4805_v30  ;;  %s1421_s27 = sadd.f32 %s4013_s2, %s1417_s26  ;;  %v1424_v55 = vmul.f32 %v1422_v51, %v4808_v28 }
0x1bf6   :  { %v1425_v53 = vstv %s1421_s27 }
0x1bf7   :  { %v1426_v56 = vadd.f32 %v1425_v53, %v1423_v52  ;;  %v1427_v59 = vadd.f32 %v1425_v53, %v1424_v55 }
0x1bf9   :  { %1436 = vrot.lane.b32.xlu0 %v1426_v56, %s6362_s4 }
0x1bfd   :  { %1438 = vrot.lane.b32.xlu0 %v1427_v59, %s6362_s4 }
0x1c6b   :  { %v1437_v60 = vpop.permute.xlu0 %1436 }
0x1c6c   :  { %v1442_v62 = vsel %vm107_vm0, %v1437_v60, 0.0 }
0x1c6f   :  { %v1439_v61 = vpop.permute.xlu0 %1438 }
0x1c70   :  { %v1443_v63 = vsel %vm107_vm0, %v1439_v61, 0.0 }
0x1c71   :  { %v1444_v0 = vadd.f32 %v1443_v63, %v1442_v62  ;;  %v1583_v62 = vld [vmem:[%s6333_s6] sm:$0x1]  ;;  %s6366_s6 = smov 122  }
0x1c73   :  { %1445 = vadd.xlane.f32.xlu0 %v1444_v0 }
0x1c89   :  { %1498 = vrot.lane.b32.xlu0 %v4753_v57, %s6351_s22 }
0x1c8d   :  { %1503 = vrot.lane.b32.xlu0 %v4779_v43, %s6351_s22 }
0x1cfc   :  { %v1446_v4 = vpop.xlane.xlu0 %1445 }
0x1cfd   :  { %v1447_v7 = vrot.slane %v1446_v4, 4 }
0x1cff   :  { %v1448_v10 = vadd.f32 %v1447_v7, %v1446_v4 }
0x1d00   :  { %v1499_v31 = vpop.permute.xlu0 %1498 }
0x1d01   :  { %v1449_v11 = vrot.slane %v1448_v10, 2 }
0x1d03   :  { %v1450_v12 = vadd.f32 %v1449_v11, %v1448_v10 }
0x1d04   :  { %v1504_v33 = vpop.permute.xlu0 %1503 }
0x1d05   :  { %v1451_v14 = vrot.slane %v1450_v12, 1 }
0x1d07   :  { %v1452_v16 = vadd.f32 %v1451_v14, %v1450_v12 }
0x1d09   :  { %4018 = vpush %v1452_v16 }
0x1d3a   :  { %s4019_s19 = spop %4018 }
0x1d3b   :  { %s1456_s20 = smul.f32 0.00390625, %s4019_s19 }
0x1d3d   :  { %v1457_v17 = vstv %s1456_s20 }
0x1d3e   :  { %v4897_v18 = vsub.f32 %v1426_v56, %v1457_v17  ;;  %v4899_v19 = vsub.f32 %v1427_v59, %v1457_v17 }
0x1d40   :  { %6387 = vst [vmem:[#allocation10_spill] sm:$0xff] %v4899_v19  ;;  %v1460_v6 = vmul.f32 %v4897_v18, %v4897_v18  ;;  %v1461_v20 = vmul.f32 %v4899_v19, %v4899_v19 }
0x1d42   :  { %1464 = vrot.lane.b32.xlu1 %v1460_v6, %s6362_s4 }
0x1d46   :  { %1466 = vrot.lane.b32.xlu1 %v1461_v20, %s6362_s4 }
0x1db4   :  { %v1465_v22 = vpop.permute.xlu1 %1464 }
0x1db5   :  { %v1470_v57 = vsel %vm107_vm0, %v1465_v22, 0.0 }
0x1db8   :  { %v1467_v8 = vpop.permute.xlu1 %1466 }
0x1db9   :  { %v1471_v23 = vsel %vm107_vm0, %v1467_v8, 0.0 }
0x1dba   :  { %v1472_v24 = vadd.f32 %v1471_v23, %v1470_v57 }
0x1dbc   :  { %1473 = vadd.xlane.f32.xlu1 %v1472_v24 }
0x1e45   :  { %v1474_v25 = vpop.xlane.xlu1 %1473 }
0x1e46   :  { %v1475_v26 = vrot.slane %v1474_v25, 4 }
0x1e48   :  { %v1476_v9 = vadd.f32 %v1475_v26, %v1474_v25 }
0x1e4a   :  { %v1477_v5 = vrot.slane %v1476_v9, 2 }
0x1e4c   :  { %v1478_v43 = vadd.f32 %v1477_v5, %v1476_v9  ;;  %v4956_v9 = vld [vmem:[%s6334_s7] sm:$0xf] }
0x1e4e   :  { %v1479_v50 = vrot.slane %v1478_v43, 1 }
0x1e50   :  { %v1480_v40 = vadd.f32 %v1479_v50, %v1478_v43  ;;  %v4959_v50 = vrot.slane %v4956_v9, 1 }
0x1e52   :  { %4020 = vpush %v1480_v40 }
0x1e83   :  { %s4021_s2 = spop %4020 }
0x1e84   :  { %s1484_s26 = smul.f32 0.00390625, %s4021_s2 }
0x1e86   :  { %s1485_s27 = sadd.f32 1e-05, %s1484_s26  ;;  %s6388_s26 = smov 125  }
0x1e88   :  { %v1486_v27 = vstv %s1485_s27 }
0x1e89   :  { %4349 = vrsqrt.f32 %v1486_v27 }
0x1e96   :  { %v4350_v32 = vpop.eup %4349 }
0x1e97   :  { %4022 = vpush %v4350_v32  ;;  %v1585_v32 = vld [vmem:[#allocation5] sm:$0xff] }
0x1e98   :  { %4024 = vpush %v1499_v31 }
0x1e99   :  { %4026 = vpush %v1504_v33  ;;  %v1586_v33 = vld [vmem:[#allocation5 + $0x10] sm:$0xff] }
0x1ec8   :  { %s4911_s19 = spop %4022 }
0x1ec9   :  { %s4025_s20 = spop %4024 }
0x1eca   :  { %s1501_s30 = smul.f32 %s4025_s20, %s4799_s0  ;;  %s4027_s28 = spop %4026 }
0x1ecb   :  { %s1502_s22 = smul.f32 %s4025_s20, %s4801_s21  ;;  %s6364_s20 = smov 124  }
0x1ecc   :  { %v1507_v34 = vstv %s1501_s30 }
0x1ecd   :  { %v1508_v35 = vmul.f32 %v1507_v34, %v4805_v30  ;;  %v1509_v36 = vmul.f32 %v1507_v34, %v4808_v28  ;;  %s1506_s2 = sadd.f32 %s4027_s28, %s1502_s22  ;;  %s6358_s22 = smov 119  }
0x1ecf   :  { %v1510_v54 = vstv %s1506_s2  ;;  %s6360_s2 = smov 121  }
0x1ed0   :  { %v1511_v46 = vadd.f32 %v1510_v54, %v1508_v35  ;;  %v1512_v13 = vadd.f32 %v1510_v54, %v1509_v36 }
0x1ed2   :  { %1523 = vrot.lane.b32.xlu1 %v1512_v13, %s6362_s4  ;;  %1521 = vrot.lane.b32.xlu0 %v1511_v46, %s6362_s4 }
0x1ed6   :  { %1513 = vrot.lane.b32.xlu1 %v4816_v58, %s6388_s26 }
0x1eda   :  { %1516 = vrot.lane.b32.xlu1 %v4819_v21, %s6388_s26 }
0x1f44   :  { %v1524_v37 = vpop.permute.xlu1 %1523  ;;  %v1522_v38 = vpop.permute.xlu0 %1521 }
0x1f45   :  { %v1528_v39 = vsel %vm107_vm0, %v1524_v37, 0.0  ;;  %v1527_v41 = vsel %vm107_vm0, %v1522_v38, 0.0 }
0x1f46   :  { %v1529_v42 = vadd.f32 %v1528_v39, %v1527_v41 }
0x1f48   :  { %1530 = vadd.xlane.f32.xlu0 %v1529_v42  ;;  %v1514_v44 = vpop.permute.xlu1 %1513 }
0x1f49   :  { %4028 = vpush %v1514_v44 }
0x1f4c   :  { %v1517_v47 = vpop.permute.xlu1 %1516 }
0x1f4d   :  { %4030 = vpush %v1517_v47 }
0x1f7a   :  { %s4925_s30 = spop %4028 }
0x1f7b   :  { %v1577_v35 = vstv %s4925_s30 }
0x1f7e   :  { %s4927_s0 = spop %4030 }
0x1f7f   :  { %6389 = sst [smem:[#allocation11_spill]] %s4927_s0 }
0x1fd1   :  { %v1531_v48 = vpop.xlane.xlu0 %1530 }
0x1fd2   :  { %v1532_v49 = vrot.slane %v1531_v48, 4 }
0x1fd4   :  { %v1533_v51 = vadd.f32 %v1532_v49, %v1531_v48  ;;  %v1665_v48 = vld [vmem:[#allocation5 + $0x2] sm:$0xff]  ;;  %v1666_v49 = vld [vmem:[#allocation5 + $0x12] sm:$0xff] }
0x1fd6   :  { %v1534_v52 = vrot.slane %v1533_v51, 2 }
0x1fd8   :  { %v1535_v58 = vadd.f32 %v1534_v52, %v1533_v51 }
0x1fda   :  { %v1536_v53 = vrot.slane %v1535_v58, 1 }
0x1fdc   :  { %v1537_v55 = vadd.f32 %v1536_v53, %v1535_v58 }
0x1fde   :  { %4032 = vpush %v1537_v55 }
0x200f   :  { %s4033_s21 = spop %4032 }
0x2010   :  { %s1541_s28 = smul.f32 0.00390625, %s4033_s21  ;;  %s6390_s21 = smov 126  }
0x2012   :  { %v1542_v21 = vstv %s1541_s28  ;;  %s6356_s28 = smov 123  }
0x2013   :  { %v4929_v56 = vsub.f32 %v1511_v46, %v1542_v21  ;;  %v4931_v59 = vsub.f32 %v1512_v13, %v1542_v21 }
0x2015   :  { %v1545_v60 = vmul.f32 %v4929_v56, %v4929_v56  ;;  %v1546_v61 = vmul.f32 %v4931_v59, %v4931_v59 }
0x2017   :  { %1549 = vrot.lane.b32.xlu1 %v1545_v60, %s6362_s4 }
0x201b   :  { %1551 = vrot.lane.b32.xlu1 %v1546_v61, %s6362_s4 }
0x201f   :  { %1593 = vrot.lane.b32.xlu1 %v1583_v62, %s6388_s26 }
0x2023   :  { %1625 = vrot.lane.b32.xlu1 %v1583_v62, %s6362_s4 }
0x2027   :  { %1633 = vrot.lane.b32.xlu1 %v1583_v62, %s6364_s20 }
0x202b   :  { %1649 = vrot.lane.b32.xlu1 %v1583_v62, %s6360_s2 }
0x202f   :  { %1667 = vrot.lane.b32.xlu1 %v1583_v62, %s6390_s21 }
0x2033   :  { %1675 = vrot.lane.b32.xlu1 %v1583_v62, %s6356_s28 }
0x2037   :  { %1691 = vrot.lane.b32.xlu1 %v1583_v62, %s6354_s17 }
0x2089   :  { %v1550_v63 = vpop.permute.xlu1 %1549 }
0x208a   :  { %v1555_v1 = vsel %vm107_vm0, %v1550_v63, 0.0 }
0x208d   :  { %v1552_v0 = vpop.permute.xlu1 %1551 }
0x208e   :  { %v1556_v2 = vsel %vm107_vm0, %v1552_v0, 0.0 }
0x208f   :  { %v1557_v4 = vadd.f32 %v1556_v2, %v1555_v1 }
0x2091   :  { %1558 = vadd.xlane.f32.xlu0 %v1557_v4  ;;  %v1594_v6 = vpop.permute.xlu1 %1593 }
0x2095   :  { %v1626_v20 = vpop.permute.xlu1 %1625 }
0x2099   :  { %v1634_v22 = vpop.permute.xlu1 %1633 }
0x209d   :  { %v1650_v57 = vpop.permute.xlu1 %1649 }
0x20a1   :  { %v1668_v23 = vpop.permute.xlu1 %1667 }
0x20a5   :  { %v1676_v25 = vpop.permute.xlu1 %1675 }
0x20a7   :  { %1609 = vrot.lane.b32.xlu0 %v1583_v62, %s6366_s6 }
0x20a9   :  { %v1692_v5 = vpop.permute.xlu1 %1691 }
0x20ab   :  { %1707 = vrot.lane.b32.xlu0 %v1583_v62, %s6358_s22 }
0x211a   :  { %v1559_v7 = vpop.xlane.xlu0 %1558 }
0x211b   :  { %v1560_v10 = vrot.slane %v1559_v7, 4 }
0x211d   :  { %v1561_v11 = vadd.f32 %v1560_v10, %v1559_v7 }
0x211e   :  { %v1610_v26 = vpop.permute.xlu0 %1609 }
0x211f   :  { %v1562_v12 = vrot.slane %v1561_v11, 2 }
0x2121   :  { %v1563_v14 = vadd.f32 %v1562_v12, %v1561_v11 }
0x2122   :  { %v1708_v43 = vpop.permute.xlu0 %1707 }
0x2123   :  { %v1564_v16 = vrot.slane %v1563_v14, 1 }
0x2125   :  { %v1565_v17 = vadd.f32 %v1564_v16, %v1563_v14 }
0x2127   :  { %4034 = vpush %v1565_v17 }
0x2158   :  { %s4035_s27 = spop %4034 }
0x2159   :  { %s1569_s17 = smul.f32 0.00390625, %s4035_s27 }
0x215b   :  { %s1570_s28 = sadd.f32 1e-05, %s1569_s17 }
0x215d   :  { %v1571_v8 = vstv %s1570_s28 }
0x215e   :  { %4351 = vrsqrt.f32 %v1571_v8 }
0x216b   :  { %v4352_v24 = vpop.eup %4351 }
0x216c   :  { %4036 = vpush %v4352_v24 }
0x216d   :  { %4038 = vpush %v1583_v62 }
0x216e   :  { %4040 = vpush %v1594_v6 }
0x216f   :  { %4042 = vpush %v1610_v26 }
0x2170   :  { %4044 = vpush %v1626_v20 }
0x2171   :  { %4046 = vpush %v1634_v22 }
0x2172   :  { %4048 = vpush %v1650_v57 }
0x2173   :  { %4050 = vpush %v1668_v23 }
0x2174   :  { %4052 = vpush %v1676_v25 }
0x2175   :  { %4054 = vpush %v1692_v5 }
0x2176   :  { %4056 = vpush %v1708_v43 }
0x2177   :  { %4058 = vpush %v4956_v9 }
0x2178   :  { %4060 = vpush %v4959_v50 }
0x219d   :  { %s4037_s17 = spop %4036 }
0x219e   :  { %v1574_v40 = vstv %s4037_s17  ;;  %s4039_s2 = spop %4038 }
0x219f   :  { %v1575_v27 = vmul.f32 %v1574_v40, %v4929_v56  ;;  %v1576_v31 = vmul.f32 %v1574_v40, %v4931_v59  ;;  %v1588_v34 = vstv %s4039_s2  ;;  %s4041_s7 = spop %4040 }
0x21a0   :  { %v1589_v36 = vmul.f32 %v1588_v34, %v1585_v32  ;;  %v1590_v54 = vmul.f32 %v1588_v34, %v1586_v33  ;;  %v1596_v46 = vstv %s4041_s7  ;;  %s4043_s28 = spop %4042 }
0x21a1   :  { %v4966_v13 = vmul.f32 %v1577_v35, %v1575_v27  ;;  %v4968_v37 = vmul.f32 %v1577_v35, %v1576_v31  ;;  %v1597_v38 = vmul.f32 %v1596_v46, %v1585_v32  ;;  %v1598_v39 = vmul.f32 %v1596_v46, %v1586_v33  ;;  %s4970_s22 = spop %4044 }
0x21a2   :  { %v1612_v41 = vstv %s4043_s28  ;;  %s4047_s27 = spop %4046  ;;  %v1628_v7 = vstv %s4970_s22 }
0x21a3   :  { %6391 = vst [vmem:[#allocation12_spill] sm:$0xff] %v4966_v13  ;;  %6392 = vst [vmem:[#allocation13_spill] sm:$0xff] %v4968_v37  ;;  %s4049_s17 = spop %4048  ;;  %1603 = vrot.lane.b32.xlu0 %v1598_v39, %s6362_s4  ;;  %1601 = vrot.lane.b32.xlu1 %v1597_v38, %s6362_s4  ;;  %v1614_v42 = vmul.f32 %v1612_v41, %v1586_v33  ;;  %v1613_v44 = vmul.f32 %v1612_v41, %v1585_v32  ;;  %v1636_v47 = vstv %s4047_s27 }
0x21a4   :  { %s4051_s2 = spop %4050  ;;  %v1638_v53 = vmul.f32 %v1636_v47, %v4808_v28  ;;  %v1637_v55 = vmul.f32 %v1636_v47, %v4805_v30  ;;  %v1652_v21 = vstv %s4049_s17  ;;  %v1630_v14 = vmul.f32 %v1628_v7, %v4808_v28 }
0x21a5   :  { %v1670_v51 = vstv %s4051_s2  ;;  %s4053_s30 = spop %4052  ;;  %v1654_v56 = vmul.f32 %v1652_v21, %v4808_v28  ;;  %v1653_v59 = vmul.f32 %v1652_v21, %v4805_v30  ;;  %v1629_v6 = vmul.f32 %v1628_v7, %v4805_v30 }
0x21a6   :  { %v1671_v52 = vmul.f32 %v1670_v51, %v1665_v48  ;;  %v1672_v58 = vmul.f32 %v1670_v51, %v1666_v49  ;;  %v1678_v60 = vstv %s4053_s30  ;;  %s4055_s7 = spop %4054 }
0x21a7   :  { %1619 = vrot.lane.b32.xlu0 %v1614_v42, %s6390_s21  ;;  %1617 = vrot.lane.b32.xlu1 %v1613_v44, %s6390_s21  ;;  %v1680_v61 = vmul.f32 %v1678_v60, %v1666_v49  ;;  %v1679_v62 = vmul.f32 %v1678_v60, %v1665_v48  ;;  %v1694_v63 = vstv %s4055_s7  ;;  %s4057_s28 = spop %4056 }
0x21a8   :  { %v1696_v0 = vmul.f32 %v1694_v63, %v1666_v49  ;;  %v1695_v1 = vmul.f32 %v1694_v63, %v1665_v48  ;;  %s4059_s22 = spop %4058  ;;  %v1710_v35 = vstv %s4057_s28 }
0x21a9   :  { %s4061_s27 = spop %4060  ;;  %v1714_v38 = vstv %s4059_s22 }
0x21aa   :  { %v1719_v42 = vstv %s4061_s27 }
0x21ab   :  { %1643 = vrot.lane.b32.xlu0 %v1638_v53, %s6362_s4  ;;  %1641 = vrot.lane.b32.xlu1 %v1637_v55, %s6362_s4  ;;  %v5000_v53 = vrot.slane %v4956_v9, 2  ;;  %v5003_v55 = vrot.slane %v4956_v9, 3 }
0x21ad   :  { %4062 = vpush %v5000_v53 }
0x21ae   :  { %4064 = vpush %v5003_v55 }
0x21af   :  { %1659 = vrot.lane.b32.xlu0 %v1654_v56, %s6390_s21  ;;  %1657 = vrot.lane.b32.xlu1 %v1653_v59, %s6390_s21 }
0x21b3   :  { %1685 = vrot.lane.b32.xlu0 %v1680_v61, %s6362_s4  ;;  %1683 = vrot.lane.b32.xlu1 %v1679_v62, %s6362_s4 }
0x21b7   :  { %1701 = vrot.lane.b32.xlu0 %v1696_v0, %s6390_s21  ;;  %1699 = vrot.lane.b32.xlu1 %v1695_v1, %s6390_s21 }
0x21de   :  { %s5009_s17 = spop %4062 }
0x21df   :  { %s5011_s2 = spop %4064 }
0x2215   :  { %v1604_v2 = vpop.permute.xlu0 %1603  ;;  %v1602_v4 = vpop.permute.xlu1 %1601 }
0x2216   :  { %v1608_v10 = vadd.f32 %v1604_v2, %v1590_v54  ;;  %v1607_v11 = vadd.f32 %v1602_v4, %v1589_v36 }
0x2219   :  { %v1620_v12 = vpop.permute.xlu0 %1619  ;;  %v1618_v17 = vpop.permute.xlu1 %1617 }
0x221a   :  { %v1624_v16 = vadd.f32 %v1620_v12, %v1608_v10  ;;  %v1623_v20 = vadd.f32 %v1618_v17, %v1607_v11 }
0x221c   :  { %v1632_v22 = vadd.f32 %v1630_v14, %v1624_v16  ;;  %v1631_v57 = vadd.f32 %v1629_v6, %v1623_v20 }
0x221d   :  { %v1644_v8 = vpop.permute.xlu0 %1643  ;;  %v1642_v23 = vpop.permute.xlu1 %1641 }
0x221e   :  { %v1648_v24 = vadd.f32 %v1644_v8, %v1632_v22  ;;  %v1647_v25 = vadd.f32 %v1642_v23, %v1631_v57 }
0x2221   :  { %v1660_v26 = vpop.permute.xlu0 %1659  ;;  %v1658_v43 = vpop.permute.xlu1 %1657 }
0x2222   :  { %v1664_v5 = vadd.f32 %v1660_v26, %v1648_v24  ;;  %v1663_v40 = vadd.f32 %v1658_v43, %v1647_v25 }
0x2224   :  { %v1674_v27 = vadd.f32 %v1672_v58, %v1664_v5  ;;  %v1673_v32 = vadd.f32 %v1671_v52, %v1663_v40 }
0x2225   :  { %v1686_v31 = vpop.permute.xlu0 %1685  ;;  %v1684_v33 = vpop.permute.xlu1 %1683 }
0x2226   :  { %v1690_v28 = vadd.f32 %v1686_v31, %v1674_v27  ;;  %v1689_v34 = vadd.f32 %v1684_v33, %v1673_v32  ;;  %v1768_v27 = vstv %s5009_s17 }
0x2229   :  { %v1702_v30 = vpop.permute.xlu0 %1701  ;;  %v1700_v54 = vpop.permute.xlu1 %1699 }
0x222a   :  { %v1706_v36 = vadd.f32 %v1702_v30, %v1690_v28  ;;  %v1705_v46 = vadd.f32 %v1700_v54, %v1689_v34  ;;  %v1771_v30 = vstv %s5011_s2 }
0x222c   :  { %v4991_v39 = vadd.f32 %v1710_v35, %v1706_v36  ;;  %v4993_v41 = vadd.f32 %v1710_v35, %v1705_v46 }
0x222e   :  { %v1716_v44 = vmul.f32 %v1714_v38, %v4991_v39  ;;  %v1715_v47 = vmul.f32 %v1714_v38, %v4993_v41 }
0x2230   :  { %v1721_v48 = vadd.f32 %v1719_v42, %v1716_v44  ;;  %v1720_v49 = vadd.f32 %v1719_v42, %v1715_v47 }
0x2232   :  { %v1727_v51 = vsel %vm107_vm0, %v1721_v48, 0.0  ;;  %v1726_v52 = vsel %vm107_vm0, %v1720_v49, 0.0 }
0x2233   :  { %v1728_v58 = vadd.f32 %v1727_v51, %v1726_v52 }
0x2235   :  { %1729 = vadd.xlane.f32.xlu1 %v1728_v58 }
0x2246   :  { %1793 = vrot.lane.b32.xlu1 %v4959_v50, %s6362_s4 }
0x22be   :  { %v1730_v21 = vpop.xlane.xlu1 %1729 }
0x22bf   :  { %v1731_v56 = vrot.slane %v1730_v21, 4 }
0x22c1   :  { %v1732_v59 = vadd.f32 %v1731_v56, %v1730_v21 }
0x22c2   :  { %v1794_v25 = vpop.permute.xlu1 %1793 }
0x22c3   :  { %v1733_v60 = vrot.slane %v1732_v59, 2 }
0x22c5   :  { %v1734_v61 = vadd.f32 %v1733_v60, %v1732_v59 }
0x22c7   :  { %v1735_v62 = vrot.slane %v1734_v61, 1 }
0x22c9   :  { %v1736_v63 = vadd.f32 %v1735_v62, %v1734_v61 }
0x22cb   :  { %4066 = vpush %v1736_v63 }
0x22fc   :  { %s4067_s30 = spop %4066 }
0x22fd   :  { %s1740_s7 = smul.f32 0.00390625, %s4067_s30 }
0x22ff   :  { %v1741_v0 = vstv %s1740_s7 }
0x2300   :  { %v1742_v1 = vsub.f32 %v1720_v49, %v1741_v0  ;;  %v1743_v2 = vsub.f32 %v1721_v48, %v1741_v0 }
0x2302   :  { %v1744_v4 = vmul.f32 %v1742_v1, %v1742_v1  ;;  %v1745_v7 = vmul.f32 %v1743_v2, %v1743_v2 }
0x2304   :  { %v1746_v10 = vsel %vm107_vm0, %v1744_v4, 0.0  ;;  %v1747_v11 = vsel %vm107_vm0, %v1745_v7, 0.0 }
0x2305   :  { %v1748_v12 = vadd.f32 %v1747_v11, %v1746_v10 }
0x2307   :  { %1749 = vadd.xlane.f32.xlu0 %v1748_v12 }
0x231d   :  { %1787 = vrot.lane.b32.xlu0 %v4956_v9, %s6362_s4 }
0x2321   :  { %1799 = vrot.lane.b32.xlu0 %v5000_v53, %s6362_s4 }
0x2325   :  { %1802 = vrot.lane.b32.xlu0 %v5003_v55, %s6362_s4 }
0x2390   :  { %v1750_v14 = vpop.xlane.xlu0 %1749 }
0x2391   :  { %v1751_v16 = vrot.slane %v1750_v14, 4 }
0x2393   :  { %v1752_v17 = vadd.f32 %v1751_v16, %v1750_v14 }
0x2394   :  { %v1788_v23 = vpop.permute.xlu0 %1787 }
0x2395   :  { %v1753_v6 = vrot.slane %v1752_v17, 2 }
0x2397   :  { %v1754_v20 = vadd.f32 %v1753_v6, %v1752_v17 }
0x2398   :  { %v1800_v44 = vpop.permute.xlu0 %1799 }
0x2399   :  { %v1755_v22 = vrot.slane %v1754_v20, 1 }
0x239b   :  { %v1756_v8 = vadd.f32 %v1755_v22, %v1754_v20 }
0x239c   :  { %v1803_v47 = vpop.permute.xlu0 %1802 }
0x239d   :  { %4068 = vpush %v1756_v8 }
0x23ce   :  { %s4069_s28 = spop %4068 }
0x23cf   :  { %s1760_s22 = smul.f32 0.00390625, %s4069_s28 }
0x23d1   :  { %s1761_s27 = sadd.f32 1e-05, %s1760_s22 }
0x23d3   :  { %v1762_v57 = vstv %s1761_s27 }
0x23d4   :  { %4353 = vrsqrt.f32 %v1762_v57 }
0x23e1   :  { %v4354_v24 = vpop.eup %4353 }
0x23e2   :  { %4070 = vpush %v4354_v24 }
0x23e3   :  { %4072 = vpush %v1788_v23 }
0x23e4   :  { %4074 = vpush %v1794_v25 }
0x23e5   :  { %4076 = vpush %v1800_v44 }
0x23e6   :  { %4078 = vpush %v1803_v47 }
0x2413   :  { %s4071_s30 = spop %4070 }
0x2414   :  { %v1765_v26 = vstv %s4071_s30  ;;  %s4073_s7 = spop %4072 }
0x2415   :  { %v1766_v5 = vmul.f32 %v1765_v26, %v1742_v1  ;;  %v1767_v43 = vmul.f32 %v1765_v26, %v1743_v2  ;;  %v1790_v40 = vstv %s4073_s7  ;;  %s4075_s4 = spop %4074 }
0x2416   :  { %v1791_v31 = vmul.f32 %v1790_v40, %v4993_v41  ;;  %v1792_v32 = vmul.f32 %v1790_v40, %v4991_v39  ;;  %v1796_v33 = vstv %s4075_s4  ;;  %s5035_s4 = spop %4076 }
0x2417   :  { %v1769_v28 = vmul.f32 %v1768_v27, %v1766_v5  ;;  %v5024_v34 = vmul.f32 %v1768_v27, %v1767_v43  ;;  %s5037_s17 = spop %4078  ;;  %v1847_v25 = vstv %s5035_s4 }
0x2418   :  { %v1797_v35 = vadd.f32 %v1796_v33, %v1791_v31  ;;  %v1798_v36 = vadd.f32 %v1796_v33, %v1792_v32  ;;  %v1850_v31 = vstv %s5037_s17 }
0x2419   :  { %v5029_v54 = vadd.f32 %v1771_v30, %v1769_v28 }
0x241a   :  { %v1805_v46 = vsel %vm107_vm0, %v1797_v35, 0.0  ;;  %v1806_v38 = vsel %vm107_vm0, %v1798_v36, 0.0 }
0x241b   :  { %v1807_v42 = vadd.f32 %v1806_v38, %v1805_v46 }
0x241d   :  { %1808 = vadd.xlane.f32.xlu1 %v1807_v42 }
0x242e   :  { %1866 = vrot.lane.b32.xlu1 %v4956_v9, %s6390_s21 }
0x24a6   :  { %v1809_v48 = vpop.xlane.xlu1 %1808 }
0x24a7   :  { %v1810_v49 = vrot.slane %v1809_v48, 4 }
0x24a9   :  { %v1811_v51 = vadd.f32 %v1810_v49, %v1809_v48 }
0x24aa   :  { %v1867_v6 = vpop.permute.xlu1 %1866 }
0x24ab   :  { %v1812_v52 = vrot.slane %v1811_v51, 2 }
0x24ad   :  { %v1813_v58 = vadd.f32 %v1812_v52, %v1811_v51 }
0x24af   :  { %v1814_v21 = vrot.slane %v1813_v58, 1 }
0x24b1   :  { %v1815_v56 = vadd.f32 %v1814_v21, %v1813_v58 }
0x24b3   :  { %4080 = vpush %v1815_v56 }
0x24e4   :  { %s4081_s28 = spop %4080 }
0x24e5   :  { %s1819_s22 = smul.f32 0.00390625, %s4081_s28 }
0x24e7   :  { %v1820_v59 = vstv %s1819_s22 }
0x24e8   :  { %v1821_v60 = vsub.f32 %v1797_v35, %v1820_v59  ;;  %v1822_v61 = vsub.f32 %v1798_v36, %v1820_v59 }
0x24ea   :  { %v1823_v62 = vmul.f32 %v1821_v60, %v1821_v60  ;;  %v1824_v63 = vmul.f32 %v1822_v61, %v1822_v61 }
0x24ec   :  { %v1825_v0 = vsel %vm107_vm0, %v1823_v62, 0.0  ;;  %v1826_v1 = vsel %vm107_vm0, %v1824_v63, 0.0 }
0x24ed   :  { %v1827_v2 = vadd.f32 %v1826_v1, %v1825_v0 }
0x24ef   :  { %1828 = vadd.xlane.f32.xlu0 %v1827_v2 }
0x2505   :  { %1872 = vrot.lane.b32.xlu0 %v4959_v50, %s6390_s21 }
0x2509   :  { %1878 = vrot.lane.b32.xlu0 %v5000_v53, %s6390_s21 }
0x250d   :  { %1881 = vrot.lane.b32.xlu0 %v5003_v55, %s6390_s21 }
0x2578   :  { %v1829_v4 = vpop.xlane.xlu0 %1828 }
0x2579   :  { %v1830_v7 = vrot.slane %v1829_v4, 4 }
0x257b   :  { %v1831_v10 = vadd.f32 %v1830_v7, %v1829_v4 }
0x257c   :  { %v1873_v22 = vpop.permute.xlu0 %1872 }
0x257d   :  { %v1832_v11 = vrot.slane %v1831_v10, 2 }
0x257f   :  { %v1833_v12 = vadd.f32 %v1832_v11, %v1831_v10 }
0x2580   :  { %v1879_v38 = vpop.permute.xlu0 %1878 }
0x2581   :  { %v1834_v14 = vrot.slane %v1833_v12, 1 }
0x2583   :  { %v1835_v16 = vadd.f32 %v1834_v14, %v1833_v12 }
0x2584   :  { %v1882_v42 = vpop.permute.xlu0 %1881 }
0x2585   :  { %4082 = vpush %v1835_v16 }
0x25b6   :  { %s4083_s27 = spop %4082 }
0x25b7   :  { %s1839_s30 = smul.f32 0.00390625, %s4083_s27 }
0x25b9   :  { %s1840_s7 = sadd.f32 1e-05, %s1839_s30 }
0x25bb   :  { %v1841_v17 = vstv %s1840_s7 }
0x25bc   :  { %4355 = vrsqrt.f32 %v1841_v17 }
0x25c9   :  { %v4356_v20 = vpop.eup %4355 }
0x25ca   :  { %4084 = vpush %v4356_v20 }
0x25cb   :  { %4086 = vpush %v1867_v6 }
0x25cc   :  { %4088 = vpush %v1873_v22 }
0x25cd   :  { %4090 = vpush %v1879_v38 }
0x25ce   :  { %4092 = vpush %v1882_v42  ;;  %v1773_v42 = vadd.f32 %v1771_v30, %v5024_v34 }
0x25fb   :  { %s4085_s28 = spop %4084 }
0x25fc   :  { %v1844_v8 = vstv %s4085_s28  ;;  %s4087_s22 = spop %4086 }
0x25fd   :  { %v1845_v57 = vmul.f32 %v1844_v8, %v1821_v60  ;;  %v1846_v23 = vmul.f32 %v1844_v8, %v1822_v61  ;;  %v1869_v24 = vstv %s4087_s22  ;;  %s4089_s20 = spop %4088 }
0x25fe   :  { %v1870_v26 = vmul.f32 %v1869_v24, %v4993_v41  ;;  %v1871_v5 = vmul.f32 %v1869_v24, %v4991_v39  ;;  %v1875_v43 = vstv %s4089_s20  ;;  %s5061_s20 = spop %4090 }
0x25ff   :  { %v1848_v40 = vmul.f32 %v1847_v25, %v1845_v57  ;;  %v5050_v27 = vmul.f32 %v1847_v25, %v1846_v23  ;;  %s5063_s4 = spop %4092  ;;  %v1926_v20 = vstv %s5061_s20  ;;  %s6400_s20 = smov 1  }
0x2600   :  { %v1876_v32 = vadd.f32 %v1875_v43, %v1870_v26  ;;  %v1877_v33 = vadd.f32 %v1875_v43, %v1871_v5  ;;  %v1929_v25 = vstv %s5063_s4  ;;  %s6393_s4 = smov 122  }
0x2601   :  { %v5055_v28 = vadd.f32 %v1850_v31, %v1848_v40 }
0x2602   :  { %v1884_v35 = vsel %vm107_vm0, %v1876_v32, 0.0  ;;  %v1885_v36 = vsel %vm107_vm0, %v1877_v33, 0.0 }
0x2603   :  { %v1886_v46 = vadd.f32 %v1885_v36, %v1884_v35 }
0x2605   :  { %1887 = vadd.xlane.f32.xlu1 %v1886_v46 }
0x2616   :  { %1945 = vrot.lane.b32.xlu1 %v4956_v9, %s6388_s26 }
0x268e   :  { %v1888_v44 = vpop.xlane.xlu1 %1887 }
0x268f   :  { %v1889_v47 = vrot.slane %v1888_v44, 4 }
0x2691   :  { %v1890_v48 = vadd.f32 %v1889_v47, %v1888_v44  ;;  %v1775_v44 = vmax.f32 %v1773_v42, 0.0  ;;  %v1852_v47 = vadd.f32 %v1850_v31, %v5050_v27 }
0x2693   :  { %v1891_v49 = vrot.slane %v1890_v48, 2 }
0x2695   :  { %v1892_v51 = vadd.f32 %v1891_v49, %v1890_v48  ;;  %v1854_v48 = vmax.f32 %v1852_v47, 0.0 }
0x2697   :  { %v1893_v52 = vrot.slane %v1892_v51, 1 }
0x2699   :  { %v1894_v58 = vadd.f32 %v1893_v52, %v1892_v51 }
0x269b   :  { %4094 = vpush %v1894_v58 }
0x26cc   :  { %s4095_s27 = spop %4094 }
0x26cd   :  { %s1898_s30 = smul.f32 0.00390625, %s4095_s27 }
0x26cf   :  { %v1899_v21 = vstv %s1898_s30 }
0x26d0   :  { %v1900_v56 = vsub.f32 %v1876_v32, %v1899_v21  ;;  %v1901_v59 = vsub.f32 %v1877_v33, %v1899_v21 }
0x26d2   :  { %v1902_v60 = vmul.f32 %v1900_v56, %v1900_v56  ;;  %v1903_v61 = vmul.f32 %v1901_v59, %v1901_v59 }
0x26d4   :  { %v1904_v9 = vsel %vm107_vm0, %v1902_v60, 0.0  ;;  %v1905_v62 = vsel %vm107_vm0, %v1903_v61, 0.0 }
0x26d5   :  { %v1906_v63 = vadd.f32 %v1905_v62, %v1904_v9 }
0x26d7   :  { %1907 = vadd.xlane.f32.xlu0 %v1906_v63 }
0x26ed   :  { %1951 = vrot.lane.b32.xlu0 %v4959_v50, %s6388_s26  ;;  %v1946_v50 = vpop.permute.xlu1 %1945 }
0x26f1   :  { %1957 = vrot.lane.b32.xlu0 %v5000_v53, %s6388_s26 }
0x26f5   :  { %1960 = vrot.lane.b32.xlu0 %v5003_v55, %s6388_s26 }
0x2760   :  { %v1908_v0 = vpop.xlane.xlu0 %1907 }
0x2761   :  { %v1909_v1 = vrot.slane %v1908_v0, 4 }
0x2763   :  { %v1910_v2 = vadd.f32 %v1909_v1, %v1908_v0 }
0x2764   :  { %v1952_v53 = vpop.permute.xlu0 %1951 }
0x2765   :  { %v1911_v4 = vrot.slane %v1910_v2, 2 }
0x2767   :  { %v1912_v7 = vadd.f32 %v1911_v4, %v1910_v2 }
0x2769   :  { %v1913_v10 = vrot.slane %v1912_v7, 1 }
0x276b   :  { %v1914_v11 = vadd.f32 %v1913_v10, %v1912_v7 }
0x276d   :  { %4096 = vpush %v1914_v11 }
0x279e   :  { %s4097_s7 = spop %4096 }
0x279f   :  { %s1918_s28 = smul.f32 0.00390625, %s4097_s7  ;;  %s6394_s7 = smov 124  }
0x27a1   :  { %s1919_s22 = sadd.f32 1e-05, %s1918_s28  ;;  %s6395_s28 = smov 121  }
0x27a3   :  { %v1920_v12 = vstv %s1919_s22  ;;  %s6397_s22 = smov 120  }
0x27a4   :  { %4357 = vrsqrt.f32 %v1920_v12 }
0x27b1   :  { %v4358_v14 = vpop.eup %4357 }
0x27b2   :  { %4098 = vpush %v4358_v14 }
0x27b3   :  { %4100 = vpush %v1946_v50 }
0x27b4   :  { %4102 = vpush %v1952_v53 }
0x27e3   :  { %s4099_s27 = spop %4098 }
0x27e4   :  { %v1923_v55 = vstv %s4099_s27  ;;  %s4101_s30 = spop %4100  ;;  %s6398_s27 = smov 119  }
0x27e5   :  { %v1924_v16 = vmul.f32 %v1923_v55, %v1900_v56  ;;  %v1925_v17 = vmul.f32 %v1923_v55, %v1901_v59  ;;  %v1948_v6 = vstv %s4101_s30  ;;  %s4103_s6 = spop %4102  ;;  %s6399_s30 = smov 127  }
0x27e6   :  { %v1949_v22 = vmul.f32 %v1948_v6, %v4993_v41  ;;  %v1950_v8 = vmul.f32 %v1948_v6, %v4991_v39  ;;  %v1954_v57 = vstv %s4103_s6  ;;  %v1958_v41 = vpop.permute.xlu0 %1957  ;;  %v5090_v39 = vld [vmem:[%s6335_s8] sm:$0xf]  ;;  %s6396_s8 = smov 123  }
0x27e7   :  { %v1927_v23 = vmul.f32 %v1926_v20, %v1924_v16  ;;  %v1928_v24 = vmul.f32 %v1926_v20, %v1925_v17  ;;  %4104 = vpush %v1958_v41  ;;  %v5109_v36 = vrot.slane %v5090_v39, 1  ;;  %v5120_v46 = vrot.slane %v5090_v39, 2 }
0x27e8   :  { %v5077_v26 = vadd.f32 %v1954_v57, %v1949_v22  ;;  %v5079_v5 = vadd.f32 %v1954_v57, %v1950_v8  ;;  %v5133_v38 = vrot.slane %v5090_v39, 3 }
0x27e9   :  { %v5081_v43 = vadd.f32 %v1929_v25, %v1927_v23  ;;  %v1931_v49 = vadd.f32 %v1929_v25, %v1928_v24 }
0x27ea   :  { %v1963_v40 = vsel %vm107_vm0, %v5077_v26, 0.0  ;;  %v1964_v32 = vsel %vm107_vm0, %v5079_v5, 0.0  ;;  %v1961_v35 = vpop.permute.xlu0 %1960 }
0x27eb   :  { %v1965_v33 = vadd.f32 %v1964_v32, %v1963_v40  ;;  %4106 = vpush %v1961_v35  ;;  %v1933_v51 = vmax.f32 %v1931_v49, 0.0  ;;  %v1774_v32 = vmax.f32 %v5029_v54, 0.0  ;;  %v1932_v41 = vmax.f32 %v5081_v43, 0.0  ;;  %v5252_v35 = vld [vmem:[%s6336_s9] sm:$0xf] }
0x27ed   :  { %1966 = vadd.xlane.f32.xlu1 %v1965_v33  ;;  %v1853_v33 = vmax.f32 %v5055_v28, 0.0 }
0x27fe   :  { %2035 = vrot.lane.b32.xlu1 %v5090_v39, %s6388_s26 }
0x2802   :  { %2051 = vrot.lane.b32.xlu1 %v5090_v39, %s6393_s4 }
0x2806   :  { %2077 = vrot.lane.b32.xlu1 %v5090_v39, %s6394_s7 }
0x280a   :  { %2093 = vrot.lane.b32.xlu1 %v5090_v39, %s6395_s28 }
0x280e   :  { %2111 = vrot.lane.b32.xlu1 %v5090_v39, %s6390_s21 }
0x2812   :  { %2119 = vrot.lane.b32.xlu1 %v5090_v39, %s6396_s8 }
0x2816   :  { %2135 = vrot.lane.b32.xlu1 %v5090_v39, %s6397_s22 }
0x2818   :  { %s5180_s2 = spop %4104 }
0x281a   :  { %2151 = vrot.lane.b32.xlu1 %v5090_v39, %s6398_s27 }
0x281c   :  { %s5184_s17 = spop %4106 }
0x281e   :  { %2182 = vrot.lane.b32.xlu1 %v5109_v36, %s6393_s4 }
0x2822   :  { %2208 = vrot.lane.b32.xlu1 %v5109_v36, %s6394_s7 }
0x2826   :  { %2242 = vrot.lane.b32.xlu1 %v5109_v36, %s6390_s21 }
0x282a   :  { %2266 = vrot.lane.b32.xlu1 %v5109_v36, %s6397_s22 }
0x282e   :  { %2297 = vrot.lane.b32.xlu1 %v5120_v46, %s6388_s26 }
0x2832   :  { %2331 = vrot.lane.b32.xlu1 %v5120_v46, %s6399_s30 }
0x2836   :  { %2355 = vrot.lane.b32.xlu1 %v5120_v46, %s6395_s28 }
0x283a   :  { %2381 = vrot.lane.b32.xlu1 %v5120_v46, %s6396_s8 }
0x283e   :  { %2413 = vrot.lane.b32.xlu1 %v5120_v46, %s6398_s27 }
0x2842   :  { %2444 = vrot.lane.b32.xlu1 %v5133_v38, %s6393_s4 }
0x2846   :  { %2470 = vrot.lane.b32.xlu1 %v5133_v38, %s6394_s7 }
0x284a   :  { %2504 = vrot.lane.b32.xlu1 %v5133_v38, %s6390_s21 }
0x284e   :  { %2528 = vrot.lane.b32.xlu1 %v5133_v38, %s6397_s22 }
0x2852   :  { %1780 = vrot.lane.b32.xlu1 %v1775_v44, %s6400_s20 }
0x2856   :  { %1859 = vrot.lane.b32.xlu1 %v1854_v48, %s6400_s20 }
0x285a   :  { %1938 = vrot.lane.b32.xlu1 %v1933_v51, %s6400_s20 }
0x285e   :  { %2554 = vrot.lane.b32.xlu1 %v5252_v35, %s6399_s30 }
0x2862   :  { %2570 = vrot.lane.b32.xlu1 %v5252_v35, %s6388_s26 }
0x2876   :  { %v1967_v52 = vpop.xlane.xlu1 %1966 }
0x2877   :  { %v1968_v58 = vrot.slane %v1967_v52, 4 }
0x2879   :  { %v1969_v21 = vadd.f32 %v1968_v58, %v1967_v52 }
0x287a   :  { %v5152_v34 = vpop.permute.xlu1 %2035 }
0x287b   :  { %v1970_v30 = vrot.slane %v1969_v21, 2 }
0x287d   :  { %v1971_v56 = vadd.f32 %v1970_v30, %v1969_v21 }
0x287e   :  { %v5154_v59 = vpop.permute.xlu1 %2051 }
0x287f   :  { %v1972_v60 = vrot.slane %v1971_v56, 1 }
0x2881   :  { %v1973_v27 = vadd.f32 %v1972_v60, %v1971_v56 }
0x2882   :  { %v5156_v31 = vpop.permute.xlu1 %2077 }
0x2883   :  { %4108 = vpush %v1973_v27 }
0x2886   :  { %v5158_v61 = vpop.permute.xlu1 %2093 }
0x288a   :  { %v5160_v9 = vpop.permute.xlu1 %2111 }
0x288e   :  { %v5162_v62 = vpop.permute.xlu1 %2119 }
0x2892   :  { %v5164_v63 = vpop.permute.xlu1 %2135 }
0x2896   :  { %v5166_v0 = vpop.permute.xlu1 %2151 }
0x289a   :  { %v5168_v1 = vpop.permute.xlu1 %2182 }
0x289e   :  { %v5170_v2 = vpop.permute.xlu1 %2208 }
0x28a2   :  { %v5172_v4 = vpop.permute.xlu1 %2242 }
0x28a6   :  { %v5174_v7 = vpop.permute.xlu1 %2266 }
0x28aa   :  { %v5176_v10 = vpop.permute.xlu1 %2297 }
0x28ae   :  { %v5178_v11 = vpop.permute.xlu1 %2331 }
0x28b2   :  { %v5182_v12 = vpop.permute.xlu1 %2355 }
0x28b4   :  { %s4109_s6 = spop %4108 }
0x28b5   :  { %s1977_s16 = smul.f32 0.00390625, %s4109_s6 }
0x28b6   :  { %v5186_v50 = vpop.permute.xlu1 %2381 }
0x28b7   :  { %v1978_v14 = vstv %s1977_s16 }
0x28b8   :  { %v5189_v53 = vsub.f32 %v5077_v26, %v1978_v14  ;;  %v5192_v55 = vsub.f32 %v5079_v5, %v1978_v14 }
0x28ba   :  { %v1981_v16 = vmul.f32 %v5189_v53, %v5189_v53  ;;  %v1982_v17 = vmul.f32 %v5192_v55, %v5192_v55  ;;  %v5198_v6 = vpop.permute.xlu1 %2413 }
0x28bc   :  { %v1983_v20 = vsel %vm107_vm0, %v1981_v16, 0.0  ;;  %v1984_v22 = vsel %vm107_vm0, %v1982_v17, 0.0 }
0x28bd   :  { %v1985_v8 = vadd.f32 %v1984_v22, %v1983_v20 }
0x28be   :  { %v5202_v57 = vpop.permute.xlu1 %2444 }
0x28bf   :  { %1986 = vadd.xlane.f32.xlu0 %v1985_v8 }
0x28c2   :  { %v5204_v23 = vpop.permute.xlu1 %2470 }
0x28c6   :  { %v5206_v24 = vpop.permute.xlu1 %2504 }
0x28ca   :  { %v5208_v25 = vpop.permute.xlu1 %2528 }
0x28ce   :  { %v1781_v26 = vpop.permute.xlu1 %1780 }
0x28cf   :  { %1786 = vst.msk [vmem:[#allocation6 + $0x11] sm:$0xff] %vm1784_vm12, %v1781_v26 }
0x28d2   :  { %v1860_v5 = vpop.permute.xlu1 %1859 }
0x28d3   :  { %1865 = vst.msk [vmem:[#allocation6 + $0x31] sm:$0xff] %vm1784_vm12, %v1860_v5 }
0x28d5   :  { %2069 = vrot.lane.b32.xlu0 %v5090_v39, %s6399_s30 }
0x28d6   :  { %v1939_v40 = vpop.permute.xlu1 %1938 }
0x28d7   :  { %1944 = vst.msk [vmem:[#allocation6 + $0x51] sm:$0xff] %vm1784_vm12, %v1939_v40 }
0x28d9   :  { %2166 = vrot.lane.b32.xlu0 %v5109_v36, %s6388_s26 }
0x28dd   :  { %2200 = vrot.lane.b32.xlu0 %v5109_v36, %s6399_s30 }
0x28e1   :  { %2224 = vrot.lane.b32.xlu0 %v5109_v36, %s6395_s28 }
0x28e5   :  { %2250 = vrot.lane.b32.xlu0 %v5109_v36, %s6396_s8 }
0x28e9   :  { %2282 = vrot.lane.b32.xlu0 %v5109_v36, %s6398_s27 }
0x28ed   :  { %2313 = vrot.lane.b32.xlu0 %v5120_v46, %s6393_s4 }
0x28f1   :  { %2339 = vrot.lane.b32.xlu0 %v5120_v46, %s6394_s7 }
0x28f5   :  { %2373 = vrot.lane.b32.xlu0 %v5120_v46, %s6390_s21 }
0x28f9   :  { %2397 = vrot.lane.b32.xlu0 %v5120_v46, %s6397_s22 }
0x28fd   :  { %2428 = vrot.lane.b32.xlu0 %v5133_v38, %s6388_s26 }
0x2901   :  { %2462 = vrot.lane.b32.xlu0 %v5133_v38, %s6399_s30 }
0x2905   :  { %2486 = vrot.lane.b32.xlu0 %v5133_v38, %s6395_s28 }
0x2909   :  { %2512 = vrot.lane.b32.xlu0 %v5133_v38, %s6396_s8 }
0x290d   :  { %1778 = vrot.lane.b32.xlu0 %v1774_v32, %s6400_s20 }
0x2911   :  { %1857 = vrot.lane.b32.xlu0 %v1853_v33, %s6400_s20 }
0x2915   :  { %1936 = vrot.lane.b32.xlu0 %v1932_v41, %s6400_s20  ;;  %v2158_v41 = vld [vmem:[#allocation6 + $0x30] sm:$0xff] }
0x2919   :  { %2544 = vrot.lane.b32.xlu0 %v5133_v38, %s6398_s27 }
0x291d   :  { %2562 = vrot.lane.b32.xlu0 %v5252_v35, %s6390_s21 }
0x2948   :  { %v1987_v54 = vpop.xlane.xlu0 %1986 }
0x2949   :  { %v1988_v28 = vrot.slane %v1987_v54, 4 }
0x294b   :  { %v1989_v43 = vadd.f32 %v1988_v28, %v1987_v54 }
0x294c   :  { %v2070_v42 = vpop.permute.xlu0 %2069 }
0x294d   :  { %v1990_v44 = vrot.slane %v1989_v43, 2 }
0x294f   :  { %v1991_v47 = vadd.f32 %v1990_v44, %v1989_v43 }
0x2950   :  { %v2167_v48 = vpop.permute.xlu0 %2166 }
0x2951   :  { %v1992_v49 = vrot.slane %v1991_v47, 1 }
0x2953   :  { %v1993_v51 = vadd.f32 %v1992_v49, %v1991_v47 }
0x2954   :  { %v2201_v52 = vpop.permute.xlu0 %2200 }
0x2955   :  { %4110 = vpush %v1993_v51 }
0x2958   :  { %v2225_v58 = vpop.permute.xlu0 %2224 }
0x295c   :  { %v2251_v21 = vpop.permute.xlu0 %2250 }
0x2960   :  { %v2283_v30 = vpop.permute.xlu0 %2282 }
0x2964   :  { %v2314_v56 = vpop.permute.xlu0 %2313 }
0x2968   :  { %v2340_v60 = vpop.permute.xlu0 %2339 }
0x296c   :  { %v2374_v27 = vpop.permute.xlu0 %2373 }
0x2970   :  { %v2398_v14 = vpop.permute.xlu0 %2397 }
0x2974   :  { %v2429_v16 = vpop.permute.xlu0 %2428 }
0x2978   :  { %v2463_v17 = vpop.permute.xlu0 %2462 }
0x297c   :  { %v2487_v20 = vpop.permute.xlu0 %2486 }
0x2980   :  { %v2513_v22 = vpop.permute.xlu0 %2512 }
0x2984   :  { %v1779_v8 = vpop.permute.xlu0 %1778 }
0x2985   :  { %1785 = vst.msk [vmem:[#allocation6 + $0x1] sm:$0xff] %vm1784_vm12, %v1779_v8 }
0x2986   :  { %s4111_s7 = spop %4110 }
0x2987   :  { %s1997_s28 = smul.f32 0.00390625, %s4111_s7 }
0x2988   :  { %v1858_v26 = vpop.permute.xlu0 %1857 }
0x2989   :  { %s1998_s8 = sadd.f32 1e-05, %s1997_s28  ;;  %1864 = vst.msk [vmem:[#allocation6 + $0x21] sm:$0xff] %vm1784_vm12, %v1858_v26 }
0x298b   :  { %v1999_v5 = vstv %s1998_s8 }
0x298c   :  { %4359 = vrsqrt.f32 %v1999_v5  ;;  %v1937_v40 = vpop.permute.xlu0 %1936 }
0x298d   :  { %1943 = vst.msk [vmem:[#allocation6 + $0x41] sm:$0xff] %vm1784_vm12, %v1937_v40 }
0x2990   :  { %v2157_v33 = vld [vmem:[#allocation6 + $0x20] sm:$0xff] }
0x2991   :  { %v5337_v51 = vld [vmem:[#allocation6 + $0x21] sm:$0xff] }
0x2999   :  { %v4360_v32 = vpop.eup %4359 }
0x299a   :  { %4112 = vpush %v4360_v32  ;;  %v2288_v32 = vld [vmem:[#allocation6 + $0x40] sm:$0xff] }
0x299b   :  { %4114 = vpush %v5090_v39  ;;  %v2545_v39 = vpop.permute.xlu0 %2544 }
0x299c   :  { %4116 = vpush %v5152_v34 }
0x299d   :  { %4118 = vpush %v5154_v59  ;;  %v2028_v59 = vld [vmem:[#allocation6 + $0x10] sm:$0xff] }
0x299e   :  { %4120 = vpush %v2070_v42 }
0x299f   :  { %4122 = vpush %v5156_v31 }
0x29a0   :  { %4124 = vpush %v5158_v61 }
0x29a1   :  { %4126 = vpush %v5160_v9 }
0x29a2   :  { %4128 = vpush %v5162_v62 }
0x29a3   :  { %4130 = vpush %v5164_v63 }
0x29a4   :  { %4132 = vpush %v5166_v0 }
0x29a5   :  { %4134 = vpush %v5109_v36  ;;  %v2555_v36 = vpop.permute.xlu1 %2554 }
0x29a6   :  { %4136 = vpush %v2167_v48 }
0x29a7   :  { %4138 = vpush %v5168_v1 }
0x29a8   :  { %4140 = vpush %v2201_v52  ;;  %v5339_v52 = vld [vmem:[#allocation6 + $0x31] sm:$0xff] }
0x29a9   :  { %4142 = vpush %v5170_v2  ;;  %v2571_v34 = vpop.permute.xlu1 %2570 }
0x29aa   :  { %4144 = vpush %v2225_v58 }
0x29ab   :  { %4146 = vpush %v5172_v4  ;;  %v5297_v4 = vld [vmem:[#allocation6 + $0x1] sm:$0xff] }
0x29ac   :  { %4148 = vpush %v2251_v21  ;;  %v2008_v21 = vstv %s5184_s17 }
0x29ad   :  { %4150 = vpush %v5174_v7  ;;  %v5299_v7 = vld [vmem:[#allocation6 + $0x11] sm:$0xff] }
0x29ae   :  { %4152 = vpush %v2283_v30 }
0x29af   :  { %4154 = vpush %v5120_v46  ;;  %v2563_v46 = vpop.permute.xlu0 %2562 }
0x29b0   :  { %4156 = vpush %v5176_v10 }
0x29b1   :  { %4158 = vpush %v2314_v56 }
0x29b2   :  { %4160 = vpush %v5178_v11 }
0x29b3   :  { %4162 = vpush %v2340_v60 }
0x29b4   :  { %4164 = vpush %v5182_v12 }
0x29b5   :  { %4166 = vpush %v2374_v27 }
0x29b6   :  { %4168 = vpush %v5186_v50  ;;  %v5314_v50 = vld [vmem:[#allocation6 + $0x2] sm:$0xff] }
0x29b7   :  { %4170 = vpush %v2398_v14 }
0x29b8   :  { %4172 = vpush %v5198_v6  ;;  %v5316_v6 = vld [vmem:[#allocation6 + $0x12] sm:$0xff] }
0x29b9   :  { %4174 = vpush %v5133_v38  ;;  %v2027_v38 = vld [vmem:[#allocation6] sm:$0xff] }
0x29ba   :  { %4176 = vpush %v2429_v16 }
0x29bb   :  { %4178 = vpush %v5202_v57 }
0x29bc   :  { %4180 = vpush %v2463_v17  ;;  %v5354_v17 = vld [vmem:[#allocation6 + $0x22] sm:$0xff] }
0x29bd   :  { %4182 = vpush %v5204_v23 }
0x29be   :  { %4184 = vpush %v2487_v20  ;;  %v5356_v20 = vld [vmem:[#allocation6 + $0x32] sm:$0xff] }
0x29bf   :  { %4186 = vpush %v5206_v24 }
0x29c0   :  { %4188 = vpush %v2513_v22 }
0x29c1   :  { %4190 = vpush %v5208_v25 }
0x29c2   :  { %4192 = vpush %v2545_v39  ;;  %v2289_v39 = vld [vmem:[#allocation6 + $0x50] sm:$0xff] }
0x29c3   :  { %4194 = vpush %v5252_v35 }
0x29c4   :  { %4196 = vpush %v2555_v36 }
0x29c5   :  { %4198 = vpush %v2563_v46 }
0x29c6   :  { %4200 = vpush %v2571_v34 }
0x29cb   :  { %s4113_s22 = spop %4112 }
0x29cc   :  { %s4115_s27 = spop %4114  ;;  %v2002_v2 = vstv %s4113_s22 }
0x29cd   :  { %v2030_v31 = vstv %s4115_s27  ;;  %s4117_s6 = spop %4116  ;;  %v2003_v12 = vmul.f32 %v2002_v2, %v5189_v53  ;;  %v2004_v23 = vmul.f32 %v2002_v2, %v5192_v55  ;;  %v2005_v53 = vstv %s5180_s2 }
0x29ce   :  { %v5289_v61 = vmul.f32 %v2030_v31, %v2027_v38  ;;  %v5291_v9 = vmul.f32 %v2030_v31, %v2028_v59  ;;  %v2038_v62 = vstv %s4117_s6  ;;  %s5293_s16 = spop %4118  ;;  %v2330_v31 = vld [vmem:[#allocation6 + $0x51] sm:$0xff] }
0x29cf   :  { %v2039_v63 = vmul.f32 %v2038_v62, %v2027_v38  ;;  %v2040_v0 = vmul.f32 %v2038_v62, %v2028_v59  ;;  %s4121_s4 = spop %4120  ;;  %v2006_v28 = vmul.f32 %v2005_v53, %v2003_v12  ;;  %v2007_v44 = vmul.f32 %v2005_v53, %v2004_v23  ;;  %v5389_v23 = vld [vmem:[#allocation6 + $0x52] sm:$0xff] }
0x29d0   :  { %v2072_v1 = vstv %s4121_s4  ;;  %s5295_s7 = spop %4122  ;;  %v2054_v49 = vstv %s5293_s16 }
0x29d1   :  { %s5301_s28 = spop %4124  ;;  %2043 = vrot.lane.b32.xlu0 %v2039_v63, %s6399_s30  ;;  %v5305_v10 = vmul.f32 %v2072_v1, %v5297_v4  ;;  %v5308_v11 = vmul.f32 %v2072_v1, %v5299_v7  ;;  %2045 = vrot.lane.b32.xlu1 %v2040_v0, %s6399_s30  ;;  %v2009_v60 = vadd.f32 %v2008_v21, %v2006_v28 }
0x29d2   :  { %s4127_s8 = spop %4126  ;;  %v2010_v27 = vadd.f32 %v2008_v21, %v2007_v44  ;;  %v2055_v14 = vmul.f32 %v2054_v49, %v2027_v38  ;;  %v2056_v16 = vmul.f32 %v2054_v49, %v2028_v59  ;;  %v2329_v59 = vld [vmem:[#allocation6 + $0x41] sm:$0xff] }
0x29d3   :  { %s5311_s27 = spop %4128  ;;  %v2114_v57 = vstv %s4127_s8  ;;  %v2011_v5 = vmax.f32 %v2009_v60, 0.0 }
0x29d4   :  { %s5318_s22 = spop %4130  ;;  %v5322_v24 = vmul.f32 %v2114_v57, %v5314_v50  ;;  %v5325_v25 = vmul.f32 %v2114_v57, %v5316_v6  ;;  %v2012_v40 = vmax.f32 %v2010_v27, 0.0  ;;  %v5387_v57 = vld [vmem:[#allocation6 + $0x42] sm:$0xff] }
0x29d5   :  { %s5327_s6 = spop %4132 }
0x29d6   :  { %s4135_s4 = spop %4134 }
0x29d7   :  { %v2161_v54 = vstv %s4135_s4  ;;  %s4137_s8 = spop %4136 }
0x29d8   :  { %v5330_v43 = vmul.f32 %v2161_v54, %v2157_v33  ;;  %v5332_v55 = vmul.f32 %v2161_v54, %v2158_v41  ;;  %v2169_v42 = vstv %s4137_s8  ;;  %s5334_s14 = spop %4138 }
0x29d9   :  { %v2170_v47 = vmul.f32 %v2169_v42, %v2157_v33  ;;  %v2171_v48 = vmul.f32 %v2169_v42, %v2158_v41  ;;  %s4141_s15 = spop %4140  ;;  %v2185_v46 = vstv %s5334_s14 }
0x29da   :  { %v2203_v58 = vstv %s4141_s15  ;;  %s5341_s2 = spop %4142  ;;  %v2186_v63 = vmul.f32 %v2185_v46, %v2157_v33  ;;  %v2187_v0 = vmul.f32 %v2185_v46, %v2158_v41 }
0x29db   :  { %v5345_v30 = vmul.f32 %v2203_v58, %v5337_v51  ;;  %v5348_v56 = vmul.f32 %v2203_v58, %v5339_v52  ;;  %s5350_s4 = spop %4144  ;;  %2174 = vrot.lane.b32.xlu0 %v2170_v47, %s6399_s30  ;;  %2176 = vrot.lane.b32.xlu1 %v2171_v48, %s6399_s30  ;;  %v2080_v48 = vstv %s5295_s7  ;;  %v2211_v21 = vstv %s5341_s2 }
0x29dc   :  { %s4147_s16 = spop %4146  ;;  %v2081_v49 = vmul.f32 %v2080_v48, %v5297_v4  ;;  %v2082_v58 = vmul.f32 %v2080_v48, %v5299_v7  ;;  %v2212_v60 = vmul.f32 %v2211_v21, %v5337_v51  ;;  %v2213_v27 = vmul.f32 %v2211_v21, %v5339_v52 }
0x29dd   :  { %v2245_v22 = vstv %s4147_s16  ;;  %s5358_s15 = spop %4148 }
0x29de   :  { %v5361_v8 = vmul.f32 %v2245_v22, %v5354_v17  ;;  %v5364_v26 = vmul.f32 %v2245_v22, %v5356_v20  ;;  %s5366_s17 = spop %4150 }
0x29df   :  { %s5368_s8 = spop %4152  ;;  %2059 = vrot.lane.b32.xlu0 %v2055_v14, %s6390_s21  ;;  %2061 = vrot.lane.b32.xlu1 %v2056_v16, %s6390_s21  ;;  %v2096_v14 = vstv %s5301_s28 }
0x29e0   :  { %s4155_s12 = spop %4154  ;;  %v2097_v16 = vmul.f32 %v2096_v14, %v5297_v4  ;;  %v2098_v22 = vmul.f32 %v2096_v14, %v5299_v7 }
0x29e1   :  { %v2292_v36 = vstv %s4155_s12  ;;  %s4157_s16 = spop %4156 }
0x29e2   :  { %v5373_v34 = vmul.f32 %v2292_v36, %v2288_v32  ;;  %v5375_v38 = vmul.f32 %v2292_v36, %v2289_v39  ;;  %s4159_s13 = spop %4158  ;;  %v2300_v12 = vstv %s4157_s16 }
0x29e3   :  { %s4161_s0 = spop %4160  ;;  %2015 = vrot.lane.b32.xlu0 %v2011_v5, %s6400_s20  ;;  %2017 = vrot.lane.b32.xlu1 %v2012_v40, %s6400_s20  ;;  %v2301_v54 = vmul.f32 %v2300_v12, %v2288_v32  ;;  %v2302_v28 = vmul.f32 %v2300_v12, %v2289_v39  ;;  %v2316_v42 = vstv %s4159_s13  ;;  %v2227_v5 = vstv %s5350_s4 }
0x29e4   :  { %v2334_v62 = vstv %s4161_s0  ;;  %s5379_s11 = spop %4162  ;;  %v2317_v44 = vmul.f32 %v2316_v42, %v2288_v32  ;;  %v2318_v47 = vmul.f32 %v2316_v42, %v2289_v39  ;;  %v2228_v40 = vmul.f32 %v2227_v5, %v5337_v51 }
0x29e5   :  { %v5381_v1 = vmul.f32 %v2334_v62, %v2329_v59  ;;  %v5383_v2 = vmul.f32 %v2334_v62, %v2330_v31  ;;  %s5385_s12 = spop %4164  ;;  %v2229_v32 = vmul.f32 %v2227_v5, %v5339_v52  ;;  %v2342_v39 = vstv %s5379_s11 }
0x29e6   :  { %s4167_s14 = spop %4166  ;;  %v2343_v36 = vmul.f32 %v2342_v39, %v2329_v59  ;;  %v2344_v4 = vmul.f32 %v2342_v39, %v2330_v31  ;;  %v2358_v7 = vstv %s5385_s12  ;;  %v2122_v51 = vstv %s5311_s27 }
0x29e7   :  { %v2376_v53 = vstv %s4167_s14  ;;  %2190 = vrot.lane.b32.xlu0 %v2186_v63, %s6390_s21  ;;  %2192 = vrot.lane.b32.xlu1 %v2187_v0, %s6390_s21  ;;  %v2359_v46 = vmul.f32 %v2358_v7, %v2329_v59  ;;  %v2360_v62 = vmul.f32 %v2358_v7, %v2330_v31  ;;  %v2123_v52 = vmul.f32 %v2122_v51, %v5314_v50  ;;  %s4169_s11 = spop %4168 }
0x29e8   :  { %v5394_v33 = vmul.f32 %v2376_v53, %v5387_v57  ;;  %v5397_v41 = vmul.f32 %v2376_v53, %v5389_v23  ;;  %v2124_v63 = vmul.f32 %v2122_v51, %v5316_v6  ;;  %v2253_v0 = vstv %s5358_s15  ;;  %s4171_s7 = spop %4170 }
0x29e9   :  { %v2254_v12 = vmul.f32 %v2253_v0, %v5354_v17  ;;  %v2255_v59 = vmul.f32 %v2253_v0, %v5356_v20  ;;  %v2138_v31 = vstv %s5318_s22  ;;  %v2384_v48 = vstv %s4169_s11 }
0x29ea   :  { %v2139_v53 = vmul.f32 %v2138_v31, %v5314_v50  ;;  %v2385_v50 = vmul.f32 %v2384_v48, %v5387_v57 }
0x29eb   :  { %2305 = vrot.lane.b32.xlu0 %v2301_v54, %s6399_s30  ;;  %2307 = vrot.lane.b32.xlu1 %v2302_v28, %s6399_s30  ;;  %v2140_v54 = vmul.f32 %v2138_v31, %v5316_v6  ;;  %v2269_v28 = vstv %s5366_s17  ;;  %v2386_v6 = vmul.f32 %v2384_v48, %v5389_v23 }
0x29ec   :  { %v2270_v42 = vmul.f32 %v2269_v28, %v5354_v17  ;;  %v2400_v17 = vstv %s4171_s7 }
0x29ef   :  { %2321 = vrot.lane.b32.xlu0 %v2317_v44, %s6390_s21  ;;  %2323 = vrot.lane.b32.xlu1 %v2318_v47, %s6390_s21  ;;  %v2271_v44 = vmul.f32 %v2269_v28, %v5356_v20  ;;  %v5450_v47 = vld [vmem:[%s6337_s10] sm:$0x7]  ;;  %v2401_v20 = vmul.f32 %v2400_v17, %v5387_v57  ;;  %s5465_s10 = spop %4172 }
0x29f0   :  { %4202 = vpush %v5450_v47  ;;  %s5467_s28 = spop %4174 }
0x29f1   :  { %s4177_s27 = spop %4176  ;;  %v2423_v0 = vstv %s5467_s28 }
0x29f2   :  { %s5477_s22 = spop %4178 }
0x29f3   :  { %2085 = vrot.lane.b32.xlu0 %v2081_v49, %s6399_s30  ;;  %2087 = vrot.lane.b32.xlu1 %v2082_v58, %s6399_s30  ;;  %v2402_v49 = vmul.f32 %v2400_v17, %v5389_v23  ;;  %s5481_s2 = spop %4180 }
0x29f4   :  { %s5483_s4 = spop %4182 }
0x29f5   :  { %s5485_s15 = spop %4184 }
0x29f6   :  { %s4187_s17 = spop %4186 }
0x29f7   :  { %2216 = vrot.lane.b32.xlu0 %v2212_v60, %s6399_s30  ;;  %2218 = vrot.lane.b32.xlu1 %v2213_v27, %s6399_s30  ;;  %v2507_v48 = vstv %s4187_s17  ;;  %s4189_s16 = spop %4188 }
0x29f8   :  { %s4191_s12 = spop %4190 }
0x29fb   :  { %2101 = vrot.lane.b32.xlu0 %v2097_v16, %s6390_s21  ;;  %2103 = vrot.lane.b32.xlu1 %v2098_v22, %s6390_s21 }
0x29ff   :  { %2232 = vrot.lane.b32.xlu0 %v2228_v40, %s6390_s21  ;;  %2234 = vrot.lane.b32.xlu1 %v2229_v32, %s6390_s21 }
0x2a03   :  { %2347 = vrot.lane.b32.xlu0 %v2343_v36, %s6399_s30  ;;  %2349 = vrot.lane.b32.xlu1 %v2344_v4, %s6399_s30 }
0x2a07   :  { %2363 = vrot.lane.b32.xlu0 %v2359_v46, %s6390_s21  ;;  %2365 = vrot.lane.b32.xlu1 %v2360_v62, %s6390_s21  ;;  %v2431_v62 = vstv %s4177_s27 }
0x2a0b   :  { %2127 = vrot.lane.b32.xlu0 %v2123_v52, %s6399_s30  ;;  %2129 = vrot.lane.b32.xlu1 %v2124_v63, %s6399_s30 }
0x2a0f   :  { %2258 = vrot.lane.b32.xlu0 %v2254_v12, %s6399_s30  ;;  %2260 = vrot.lane.b32.xlu1 %v2255_v59, %s6399_s30 }
0x2a13   :  { %2143 = vrot.lane.b32.xlu0 %v2139_v53, %s6390_s21  ;;  %2145 = vrot.lane.b32.xlu1 %v2140_v54, %s6390_s21  ;;  %v2447_v53 = vstv %s5477_s22  ;;  %v2465_v54 = vstv %s5481_s2 }
0x2a17   :  { %2274 = vrot.lane.b32.xlu0 %v2270_v42, %s6390_s21  ;;  %2276 = vrot.lane.b32.xlu1 %v2271_v44, %s6390_s21 }
0x2a1b   :  { %2389 = vrot.lane.b32.xlu0 %v2385_v50, %s6399_s30  ;;  %2391 = vrot.lane.b32.xlu1 %v2386_v6, %s6399_s30 }
0x2a1f   :  { %2405 = vrot.lane.b32.xlu0 %v2401_v20, %s6390_s21  ;;  %2407 = vrot.lane.b32.xlu1 %v2402_v49, %s6390_s21 }
0x2a43   :  { %v2044_v58 = vpop.permute.xlu0 %2043  ;;  %v2046_v21 = vpop.permute.xlu1 %2045 }
0x2a44   :  { %v2049_v14 = vadd.f32 %v2044_v58, %v5289_v61  ;;  %v2050_v16 = vadd.f32 %v2046_v21, %v5291_v9 }
0x2a4d   :  { %v2175_v60 = vpop.permute.xlu0 %2174  ;;  %v2177_v27 = vpop.permute.xlu1 %2176 }
0x2a4e   :  { %v2180_v61 = vadd.f32 %v2175_v60, %v5330_v43  ;;  %v2181_v9 = vadd.f32 %v2177_v27, %v5332_v55 }
0x2a51   :  { %v2060_v22 = vpop.permute.xlu0 %2059  ;;  %v2062_v5 = vpop.permute.xlu1 %2061 }
0x2a52   :  { %v2065_v40 = vadd.f32 %v2060_v22, %v2049_v14  ;;  %v2066_v32 = vadd.f32 %v2062_v5, %v2050_v16  ;;  %v2473_v5 = vstv %s5483_s4 }
0x2a54   :  { %v5470_v57 = vadd.f32 %v5305_v10, %v2065_v40  ;;  %v5473_v23 = vadd.f32 %v5308_v11, %v2066_v32 }
0x2a55   :  { %v2016_v39 = vpop.permute.xlu0 %2015  ;;  %v2018_v36 = vpop.permute.xlu1 %2017 }
0x2a56   :  { %2022 = vst.msk [vmem:[#allocation6 + $0x61] sm:$0xff] %vm1784_vm12, %v2016_v39  ;;  %2023 = vst.msk [vmem:[#allocation6 + $0x71] sm:$0xff] %vm1784_vm12, %v2018_v36 }
0x2a59   :  { %v2191_v10 = vpop.permute.xlu0 %2190  ;;  %v2193_v4 = vpop.permute.xlu1 %2192 }
0x2a5a   :  { %v2196_v11 = vadd.f32 %v2191_v10, %v2180_v61  ;;  %v2197_v7 = vadd.f32 %v2193_v4, %v2181_v9  ;;  %v2489_v61 = vstv %s5485_s15 }
0x2a5c   :  { %v5488_v46 = vadd.f32 %v5345_v30, %v2196_v11  ;;  %v5491_v43 = vadd.f32 %v5348_v56, %v2197_v7 }
0x2a5d   :  { %v2306_v55 = vpop.permute.xlu0 %2305  ;;  %v2308_v51 = vpop.permute.xlu1 %2307  ;;  %v2419_v52 = vld [vmem:[#allocation6 + $0x60] sm:$0xff]  ;;  %v2420_v63 = vld [vmem:[#allocation6 + $0x70] sm:$0xff] }
0x2a5e   :  { %v2432_v12 = vmul.f32 %v2431_v62, %v2419_v52  ;;  %v2433_v59 = vmul.f32 %v2431_v62, %v2420_v63  ;;  %v2460_v31 = vld [vmem:[#allocation6 + $0x61] sm:$0xff]  ;;  %v2311_v28 = vadd.f32 %v2306_v55, %v5373_v34  ;;  %v2312_v30 = vadd.f32 %v2308_v51, %v5375_v38  ;;  %v2461_v56 = vld [vmem:[#allocation6 + $0x71] sm:$0xff] }
0x2a5f   :  { %v2502_v42 = vld [vmem:[#allocation6 + $0x62] sm:$0xff]  ;;  %v2503_v44 = vld [vmem:[#allocation6 + $0x72] sm:$0xff]  ;;  %v2448_v17 = vmul.f32 %v2447_v53, %v2419_v52  ;;  %v2449_v20 = vmul.f32 %v2447_v53, %v2420_v63  ;;  %v5500_v49 = vmul.f32 %v2423_v0, %v2419_v52  ;;  %v5502_v34 = vmul.f32 %v2423_v0, %v2420_v63 }
0x2a60   :  { %2436 = vrot.lane.b32.xlu0 %v2432_v12, %s6399_s30  ;;  %2438 = vrot.lane.b32.xlu1 %v2433_v59, %s6399_s30  ;;  %v5504_v38 = vmul.f32 %v2465_v54, %v2460_v31  ;;  %v5506_v60 = vmul.f32 %v2465_v54, %v2461_v56  ;;  %v5508_v27 = vmul.f32 %v2507_v48, %v2502_v42 }
0x2a61   :  { %v2322_v50 = vpop.permute.xlu0 %2321  ;;  %v2324_v6 = vpop.permute.xlu1 %2323  ;;  %v5510_v14 = vmul.f32 %v2507_v48, %v2503_v44  ;;  %v2474_v39 = vmul.f32 %v2473_v5, %v2460_v31  ;;  %v2475_v36 = vmul.f32 %v2473_v5, %v2461_v56  ;;  %v2490_v4 = vmul.f32 %v2489_v61, %v2460_v31 }
0x2a62   :  { %v2327_v58 = vadd.f32 %v2322_v50, %v2311_v28  ;;  %v2328_v21 = vadd.f32 %v2324_v6, %v2312_v30  ;;  %v2491_v11 = vmul.f32 %v2489_v61, %v2461_v56  ;;  %v2531_v31 = vstv %s4191_s12 }
0x2a63   :  { %v2532_v56 = vmul.f32 %v2531_v31, %v2502_v42  ;;  %v2533_v48 = vmul.f32 %v2531_v31, %v2503_v44 }
0x2a64   :  { %2452 = vrot.lane.b32.xlu0 %v2448_v17, %s6390_s21  ;;  %2454 = vrot.lane.b32.xlu1 %v2449_v20, %s6390_s21  ;;  %v2337_v16 = vadd.f32 %v5381_v1, %v2327_v58  ;;  %v2338_v22 = vadd.f32 %v5383_v2, %v2328_v21  ;;  %v2515_v2 = vstv %s4189_s16 }
0x2a65   :  { %v2086_v40 = vpop.permute.xlu0 %2085  ;;  %v2088_v32 = vpop.permute.xlu1 %2087  ;;  %v2516_v63 = vmul.f32 %v2515_v2, %v2502_v42  ;;  %v2517_v0 = vmul.f32 %v2515_v2, %v2503_v44 }
0x2a66   :  { %v2091_v7 = vadd.f32 %v2086_v40, %v5470_v57  ;;  %v2092_v1 = vadd.f32 %v2088_v32, %v5473_v23 }
0x2a68   :  { %2478 = vrot.lane.b32.xlu0 %v2474_v39, %s6399_s30  ;;  %2480 = vrot.lane.b32.xlu1 %v2475_v36, %s6399_s30 }
0x2a69   :  { %v2217_v9 = vpop.permute.xlu0 %2216  ;;  %v2219_v10 = vpop.permute.xlu1 %2218 }
0x2a6a   :  { %v2222_v12 = vadd.f32 %v2217_v9, %v5488_v46  ;;  %v2223_v59 = vadd.f32 %v2219_v10, %v5491_v43  ;;  %v2154_v9 = vstv %s5327_s6  ;;  %s5555_s6 = spop %4192 }
0x2a6c   :  { %2494 = vrot.lane.b32.xlu0 %v2490_v4, %s6390_s21  ;;  %2496 = vrot.lane.b32.xlu1 %v2491_v11, %s6390_s21 }
0x2a6d   :  { %v2102_v62 = vpop.permute.xlu0 %2101  ;;  %v2104_v55 = vpop.permute.xlu1 %2103 }
0x2a6e   :  { %v2107_v51 = vadd.f32 %v2102_v62, %v2091_v7  ;;  %v2108_v52 = vadd.f32 %v2104_v55, %v2092_v1  ;;  %v2285_v62 = vstv %s5368_s8  ;;  %s4195_s8 = spop %4194 }
0x2a6f   :  { %s4197_s14 = spop %4196 }
0x2a70   :  { %2520 = vrot.lane.b32.xlu0 %v2516_v63, %s6399_s30  ;;  %2522 = vrot.lane.b32.xlu1 %v2517_v0, %s6399_s30  ;;  %v2117_v57 = vadd.f32 %v5322_v24, %v2107_v51  ;;  %v2118_v23 = vadd.f32 %v5325_v25, %v2108_v52  ;;  %s4199_s11 = spop %4198 }
0x2a71   :  { %v2233_v53 = vpop.permute.xlu0 %2232  ;;  %v2235_v54 = vpop.permute.xlu1 %2234  ;;  %s4201_s13 = spop %4200 }
0x2a72   :  { %v2238_v28 = vadd.f32 %v2233_v53, %v2222_v12  ;;  %v2239_v30 = vadd.f32 %v2235_v54, %v2223_v59  ;;  %v2416_v53 = vstv %s5465_s10  ;;  %s4203_s0 = spop %4202 }
0x2a74   :  { %2536 = vrot.lane.b32.xlu0 %v2532_v56, %s6390_s21  ;;  %2538 = vrot.lane.b32.xlu1 %v2533_v48, %s6390_s21  ;;  %v2248_v46 = vadd.f32 %v5361_v8, %v2238_v28  ;;  %v2249_v43 = vadd.f32 %v5364_v26, %v2239_v30 }
0x2a75   :  { %v2348_v50 = vpop.permute.xlu0 %2347  ;;  %v2350_v6 = vpop.permute.xlu1 %2349 }
0x2a76   :  { %v2353_v24 = vadd.f32 %v2348_v50, %v2337_v16  ;;  %v2354_v17 = vadd.f32 %v2350_v6, %v2338_v22 }
0x2a79   :  { %v2364_v25 = vpop.permute.xlu0 %2363  ;;  %v2366_v20 = vpop.permute.xlu1 %2365 }
0x2a7a   :  { %v2369_v58 = vadd.f32 %v2364_v25, %v2353_v24  ;;  %v2370_v21 = vadd.f32 %v2366_v20, %v2354_v17 }
0x2a7c   :  { %v2379_v42 = vadd.f32 %v5394_v33, %v2369_v58  ;;  %v2380_v44 = vadd.f32 %v5397_v41, %v2370_v21 }
0x2a7d   :  { %v2128_v5 = vpop.permute.xlu0 %2127  ;;  %v2130_v40 = vpop.permute.xlu1 %2129 }
0x2a7e   :  { %v2133_v8 = vadd.f32 %v2128_v5, %v2117_v57  ;;  %v2134_v26 = vadd.f32 %v2130_v40, %v2118_v23 }
0x2a81   :  { %v2259_v32 = vpop.permute.xlu0 %2258  ;;  %v2261_v39 = vpop.permute.xlu1 %2260 }
0x2a82   :  { %v2264_v10 = vadd.f32 %v2259_v32, %v2248_v46  ;;  %v2265_v4 = vadd.f32 %v2261_v39, %v2249_v43 }
0x2a85   :  { %v2144_v36 = vpop.permute.xlu0 %2143  ;;  %v2146_v61 = vpop.permute.xlu1 %2145 }
0x2a86   :  { %v2149_v16 = vadd.f32 %v2144_v36, %v2133_v8  ;;  %v2150_v22 = vadd.f32 %v2146_v61, %v2134_v26  ;;  %v2551_v8 = vstv %s4195_s8 }
0x2a88   :  { %v5537_v11 = vadd.f32 %v2154_v9, %v2149_v16  ;;  %v5539_v7 = vadd.f32 %v2154_v9, %v2150_v22  ;;  %v2565_v22 = vstv %s4199_s11 }
0x2a89   :  { %v2275_v33 = vpop.permute.xlu0 %2274  ;;  %v2277_v41 = vpop.permute.xlu1 %2276 }
0x2a8a   :  { %v2280_v1 = vadd.f32 %v2275_v33, %v2264_v10  ;;  %v2281_v2 = vadd.f32 %v2277_v41, %v2265_v4  ;;  %v2552_v4 = vmul.f32 %v2551_v8, %v5537_v11 }
0x2a8c   :  { %v5542_v55 = vadd.f32 %v2285_v62, %v2280_v1  ;;  %v5544_v51 = vadd.f32 %v2285_v62, %v2281_v2  ;;  %v2547_v2 = vstv %s5555_s6 }
0x2a8d   :  { %v2390_v52 = vpop.permute.xlu0 %2389  ;;  %v2392_v63 = vpop.permute.xlu1 %2391 }
0x2a8e   :  { %v2395_v0 = vadd.f32 %v2390_v52, %v2379_v42  ;;  %v2396_v12 = vadd.f32 %v2392_v63, %v2380_v44 }
0x2a91   :  { %v2406_v59 = vpop.permute.xlu0 %2405  ;;  %v2408_v57 = vpop.permute.xlu1 %2407 }
0x2a92   :  { %v2411_v23 = vadd.f32 %v2406_v59, %v2395_v0  ;;  %v2412_v31 = vadd.f32 %v2408_v57, %v2396_v12  ;;  %v2573_v12 = vstv %s4201_s13 }
0x2a94   :  { %v5547_v54 = vadd.f32 %v2416_v53, %v2411_v23  ;;  %v5549_v28 = vadd.f32 %v2416_v53, %v2412_v31  ;;  %v2579_v53 = vstv %s4203_s0 }
0x2a96   :  { %v2566_v41 = vmul.f32 %v2565_v22, %v5547_v54  ;;  %v2567_v1 = vmul.f32 %v2565_v22, %v5549_v28 }
0x2ad2   :  { %v2437_v30 = vpop.permute.xlu0 %2436  ;;  %v2439_v56 = vpop.permute.xlu1 %2438 }
0x2ad3   :  { %v2442_v48 = vadd.f32 %v2437_v30, %v5500_v49  ;;  %v2443_v46 = vadd.f32 %v2439_v56, %v5502_v34 }
0x2ad6   :  { %v2453_v43 = vpop.permute.xlu0 %2452  ;;  %v2455_v50 = vpop.permute.xlu1 %2454 }
0x2ad7   :  { %v2458_v6 = vadd.f32 %v2453_v43, %v2442_v48  ;;  %v2459_v24 = vadd.f32 %v2455_v50, %v2443_v46 }
0x2ad9   :  { %v2468_v17 = vadd.f32 %v5504_v38, %v2458_v6  ;;  %v2469_v25 = vadd.f32 %v5506_v60, %v2459_v24  ;;  %v2557_v60 = vstv %s4197_s14  ;;  %v5575_v24 = vrot.slane %v5450_v47, 1 }
0x2ada   :  { %v2479_v20 = vpop.permute.xlu0 %2478  ;;  %v2481_v58 = vpop.permute.xlu1 %2480  ;;  %v2558_v61 = vmul.f32 %v2557_v60, %v5542_v55  ;;  %v2559_v16 = vmul.f32 %v2557_v60, %v5544_v51 }
0x2adb   :  { %v2484_v21 = vadd.f32 %v2479_v20, %v2468_v17  ;;  %v2485_v42 = vadd.f32 %v2481_v58, %v2469_v25  ;;  %v5578_v17 = vrot.slane %v5450_v47, 2  ;;  %4204 = vpush %v5575_v24  ;;  %v2644_v25 = vrot.slane %v5252_v35, 1 }
0x2adc   :  { %v2560_v63 = vadd.f32 %v2558_v61, %v2552_v4 }
0x2add   :  { %4206 = vpush %v5578_v17 }
0x2ade   :  { %v2495_v44 = vpop.permute.xlu0 %2494  ;;  %v2497_v5 = vpop.permute.xlu1 %2496  ;;  %v2568_v59 = vadd.f32 %v2566_v41, %v2560_v63 }
0x2adf   :  { %v2500_v49 = vadd.f32 %v2495_v44, %v2484_v21  ;;  %v2501_v40 = vadd.f32 %v2497_v5, %v2485_v42 }
0x2ae1   :  { %v2510_v34 = vadd.f32 %v5508_v27, %v2500_v49  ;;  %v2511_v32 = vadd.f32 %v5510_v14, %v2501_v40  ;;  %v2553_v27 = vmul.f32 %v2551_v8, %v5539_v7 }
0x2ae2   :  { %v2521_v39 = vpop.permute.xlu0 %2520  ;;  %v2523_v38 = vpop.permute.xlu1 %2522 }
0x2ae3   :  { %v2526_v26 = vadd.f32 %v2521_v39, %v2510_v34  ;;  %v2527_v36 = vadd.f32 %v2523_v38, %v2511_v32  ;;  %v2561_v0 = vadd.f32 %v2559_v16, %v2553_v27 }
0x2ae5   :  { %v2569_v57 = vadd.f32 %v2567_v1, %v2561_v0 }
0x2ae6   :  { %v2537_v9 = vpop.permute.xlu0 %2536  ;;  %v2539_v10 = vpop.permute.xlu1 %2538 }
0x2ae7   :  { %v2542_v14 = vadd.f32 %v2537_v9, %v2526_v26  ;;  %v2543_v33 = vadd.f32 %v2539_v10, %v2527_v36 }
0x2ae9   :  { %v5566_v62 = vadd.f32 %v2547_v2, %v2542_v14  ;;  %v5568_v52 = vadd.f32 %v2547_v2, %v2543_v33 }
0x2aeb   :  { %v2574_v23 = vmul.f32 %v2573_v12, %v5566_v62  ;;  %v2575_v31 = vmul.f32 %v2573_v12, %v5568_v52 }
0x2aed   :  { %v2576_v30 = vadd.f32 %v2574_v23, %v2568_v59  ;;  %v2577_v56 = vadd.f32 %v2575_v31, %v2569_v57 }
0x2aef   :  { %v2580_v48 = vadd.f32 %v2579_v53, %v2576_v30  ;;  %v2581_v46 = vadd.f32 %v2579_v53, %v2577_v56 }
0x2af1   :  { %v2586_v43 = vsel %vm107_vm0, %v2580_v48, 0.0  ;;  %v2587_v50 = vsel %vm107_vm0, %v2581_v46, 0.0 }
0x2af2   :  { %v2588_v6 = vadd.f32 %v2587_v50, %v2586_v43 }
0x2af4   :  { %2589 = vadd.xlane.f32.xlu0 %v2588_v6 }
0x2b0a   :  { %2649 = vrot.lane.b32.xlu0 %v2644_v25, %s6399_s30 }
0x2b0c   :  { %s5585_s7 = spop %4204 }
0x2b0d   :  { %v2628_v59 = vstv %s5585_s7 }
0x2b0e   :  { %2665 = vrot.lane.b32.xlu0 %v2644_v25, %s6388_s26  ;;  %s5587_s10 = spop %4206 }
0x2b7d   :  { %v2590_v20 = vpop.xlane.xlu0 %2589 }
0x2b7e   :  { %v2591_v58 = vrot.slane %v2590_v20, 4 }
0x2b80   :  { %v2592_v21 = vadd.f32 %v2591_v58, %v2590_v20 }
0x2b81   :  { %v2650_v27 = vpop.permute.xlu0 %2649 }
0x2b82   :  { %v2593_v42 = vrot.slane %v2592_v21, 2 }
0x2b84   :  { %v2594_v44 = vadd.f32 %v2593_v42, %v2592_v21 }
0x2b85   :  { %v2666_v41 = vpop.permute.xlu0 %2665 }
0x2b86   :  { %v2595_v5 = vrot.slane %v2594_v44, 1 }
0x2b88   :  { %v2596_v49 = vadd.f32 %v2595_v5, %v2594_v44 }
0x2b8a   :  { %4208 = vpush %v2596_v49 }
0x2bbb   :  { %s4209_s28 = spop %4208 }
0x2bbc   :  { %s2600_s27 = smul.f32 0.00390625, %s4209_s28 }
0x2bbe   :  { %v2601_v40 = vstv %s2600_s27 }
0x2bbf   :  { %v2602_v35 = vsub.f32 %v2580_v48, %v2601_v40  ;;  %v2603_v34 = vsub.f32 %v2581_v46, %v2601_v40  ;;  %v2631_v46 = vstv %s5587_s10 }
0x2bc1   :  { %v2604_v32 = vmul.f32 %v2602_v35, %v2602_v35  ;;  %v2605_v39 = vmul.f32 %v2603_v34, %v2603_v34 }
0x2bc3   :  { %v2606_v38 = vsel %vm107_vm0, %v2604_v32, 0.0  ;;  %v2607_v8 = vsel %vm107_vm0, %v2605_v39, 0.0 }
0x2bc4   :  { %v2608_v60 = vadd.f32 %v2607_v8, %v2606_v38 }
0x2bc6   :  { %2609 = vadd.xlane.f32.xlu1 %v2608_v60 }
0x2bd7   :  { %2657 = vrot.lane.b32.xlu1 %v2644_v25, %s6390_s21 }
0x2bdb   :  { %2673 = vrot.lane.b32.xlu1 %v5450_v47, %s6399_s30 }
0x2bdf   :  { %2679 = vrot.lane.b32.xlu1 %v5575_v24, %s6399_s30 }
0x2be3   :  { %2682 = vrot.lane.b32.xlu1 %v5578_v17, %s6399_s30 }
0x2c4f   :  { %v2610_v26 = vpop.xlane.xlu1 %2609 }
0x2c50   :  { %v2611_v36 = vrot.slane %v2610_v26, 4 }
0x2c52   :  { %v2612_v61 = vadd.f32 %v2611_v36, %v2610_v26 }
0x2c53   :  { %v2658_v14 = vpop.permute.xlu1 %2657 }
0x2c54   :  { %v2613_v16 = vrot.slane %v2612_v61, 2 }
0x2c56   :  { %v2614_v22 = vadd.f32 %v2613_v16, %v2612_v61  ;;  %v5619_v61 = vld [vmem:[%s6336_s9] sm:$0xf] }
0x2c57   :  { %v2674_v1 = vpop.permute.xlu1 %2673  ;;  %v2744_v16 = vrot.slane %v5619_v61, 2 }
0x2c58   :  { %v2615_v9 = vrot.slane %v2614_v22, 1 }
0x2c5a   :  { %v2616_v10 = vadd.f32 %v2615_v9, %v2614_v22 }
0x2c5b   :  { %v2680_v26 = vpop.permute.xlu1 %2679 }
0x2c5c   :  { %4210 = vpush %v2616_v10 }
0x2c5f   :  { %v2683_v36 = vpop.permute.xlu1 %2682 }
0x2c8d   :  { %s4211_s22 = spop %4210 }
0x2c8e   :  { %s2620_s2 = smul.f32 0.00390625, %s4211_s22 }
0x2c90   :  { %s2621_s4 = sadd.f32 1e-05, %s2620_s2 }
0x2c92   :  { %v2622_v4 = vstv %s2621_s4 }
0x2c93   :  { %4361 = vrsqrt.f32 %v2622_v4 }
0x2ca0   :  { %v4362_v33 = vpop.eup %4361 }
0x2ca1   :  { %4212 = vpush %v4362_v33 }
0x2ca2   :  { %4214 = vpush %v2644_v25 }
0x2ca3   :  { %4216 = vpush %v2650_v27 }
0x2ca4   :  { %4218 = vpush %v2658_v14 }
0x2ca5   :  { %4220 = vpush %v2666_v41 }
0x2ca6   :  { %4222 = vpush %v2674_v1 }
0x2ca7   :  { %4224 = vpush %v2680_v26 }
0x2ca8   :  { %4226 = vpush %v2683_v36 }
0x2cd2   :  { %s4213_s15 = spop %4212 }
0x2cd3   :  { %v2625_v2 = vstv %s4213_s15  ;;  %s4215_s17 = spop %4214 }
0x2cd4   :  { %v2626_v63 = vmul.f32 %v2625_v2, %v2602_v35  ;;  %v2627_v0 = vmul.f32 %v2625_v2, %v2603_v34  ;;  %v2646_v12 = vstv %s4215_s17  ;;  %s4217_s16 = spop %4216 }
0x2cd5   :  { %v2647_v57 = vmul.f32 %v2646_v12, %v5537_v11  ;;  %v2648_v23 = vmul.f32 %v2646_v12, %v5539_v7  ;;  %v2652_v31 = vstv %s4217_s16  ;;  %s4219_s12 = spop %4218 }
0x2cd6   :  { %v5601_v53 = vmul.f32 %v2628_v59, %v2626_v63  ;;  %v2630_v30 = vmul.f32 %v2628_v59, %v2627_v0  ;;  %v2653_v56 = vmul.f32 %v2652_v31, %v5542_v55  ;;  %v2654_v48 = vmul.f32 %v2652_v31, %v5544_v51  ;;  %s4221_s6 = spop %4220 }
0x2cd7   :  { %v2660_v43 = vstv %s4219_s12  ;;  %v2668_v20 = vstv %s4221_s6  ;;  %s4223_s8 = spop %4222 }
0x2cd8   :  { %v5608_v50 = vadd.f32 %v2631_v46, %v2630_v30  ;;  %v2655_v6 = vadd.f32 %v2653_v56, %v2647_v57  ;;  %v2656_v25 = vadd.f32 %v2654_v48, %v2648_v23  ;;  %v2661_v58 = vmul.f32 %v2660_v43, %v5547_v54  ;;  %s5626_s13 = spop %4224 }
0x2cd9   :  { %v2662_v21 = vmul.f32 %v2660_v43, %v5549_v28  ;;  %v2669_v5 = vmul.f32 %v2668_v20, %v5566_v62  ;;  %v2670_v49 = vmul.f32 %v2668_v20, %v5568_v52  ;;  %v2676_v40 = vstv %s4223_s8  ;;  %s5628_s9 = spop %4226 }
0x2cda   :  { %v2663_v42 = vadd.f32 %v2661_v58, %v2655_v6 }
0x2cdb   :  { %v2664_v44 = vadd.f32 %v2662_v21, %v2656_v25 }
0x2cdc   :  { %v2671_v35 = vadd.f32 %v2669_v5, %v2663_v42 }
0x2cdd   :  { %v2672_v34 = vadd.f32 %v2670_v49, %v2664_v44 }
0x2cde   :  { %v2677_v32 = vadd.f32 %v2676_v40, %v2671_v35 }
0x2cdf   :  { %v2678_v39 = vadd.f32 %v2676_v40, %v2672_v34  ;;  %v2727_v34 = vstv %s5626_s13 }
0x2ce0   :  { %v2685_v38 = vsel %vm107_vm0, %v2677_v32, 0.0 }
0x2ce1   :  { %v2686_v8 = vsel %vm107_vm0, %v2678_v39, 0.0 }
0x2ce2   :  { %v2687_v60 = vadd.f32 %v2686_v8, %v2685_v38 }
0x2ce4   :  { %2688 = vadd.xlane.f32.xlu0 %v2687_v60 }
0x2cfa   :  { %2749 = vrot.lane.b32.xlu0 %v2744_v16, %s6399_s30 }
0x2cfe   :  { %2765 = vrot.lane.b32.xlu0 %v2744_v16, %s6388_s26 }
0x2d02   :  { %2773 = vrot.lane.b32.xlu0 %v5450_v47, %s6390_s21 }
0x2d6d   :  { %v2689_v22 = vpop.xlane.xlu0 %2688 }
0x2d6e   :  { %v2690_v9 = vrot.slane %v2689_v22, 4 }
0x2d70   :  { %v2691_v10 = vadd.f32 %v2690_v9, %v2689_v22 }
0x2d71   :  { %v2750_v20 = vpop.permute.xlu0 %2749 }
0x2d72   :  { %v2692_v4 = vrot.slane %v2691_v10, 2 }
0x2d74   :  { %v2693_v27 = vadd.f32 %v2692_v4, %v2691_v10 }
0x2d75   :  { %v2766_v58 = vpop.permute.xlu0 %2765 }
0x2d76   :  { %v2694_v14 = vrot.slane %v2693_v27, 1 }
0x2d78   :  { %v2695_v33 = vadd.f32 %v2694_v14, %v2693_v27 }
0x2d79   :  { %v2774_v44 = vpop.permute.xlu0 %2773 }
0x2d7a   :  { %4228 = vpush %v2695_v33 }
0x2dab   :  { %s4229_s0 = spop %4228 }
0x2dac   :  { %s2699_s7 = smul.f32 0.00390625, %s4229_s0 }
0x2dae   :  { %v2700_v41 = vstv %s2699_s7 }
0x2daf   :  { %v2701_v1 = vsub.f32 %v2677_v32, %v2700_v41  ;;  %v2702_v2 = vsub.f32 %v2678_v39, %v2700_v41 }
0x2db1   :  { %v2703_v63 = vmul.f32 %v2701_v1, %v2701_v1  ;;  %v2704_v0 = vmul.f32 %v2702_v2, %v2702_v2 }
0x2db3   :  { %v2705_v12 = vsel %vm107_vm0, %v2703_v63, 0.0  ;;  %v2706_v59 = vsel %vm107_vm0, %v2704_v0, 0.0 }
0x2db4   :  { %v2707_v57 = vadd.f32 %v2706_v59, %v2705_v12 }
0x2db6   :  { %2708 = vadd.xlane.f32.xlu1 %v2707_v57 }
0x2dc7   :  { %2757 = vrot.lane.b32.xlu1 %v2744_v16, %s6390_s21 }
0x2dcb   :  { %2779 = vrot.lane.b32.xlu1 %v5575_v24, %s6390_s21 }
0x2dcf   :  { %2782 = vrot.lane.b32.xlu1 %v5578_v17, %s6390_s21 }
0x2e3f   :  { %v2709_v23 = vpop.xlane.xlu1 %2708 }
0x2e40   :  { %v2710_v31 = vrot.slane %v2709_v23, 4 }
0x2e42   :  { %v2711_v30 = vadd.f32 %v2710_v31, %v2709_v23 }
0x2e43   :  { %v2758_v42 = vpop.permute.xlu1 %2757 }
0x2e44   :  { %v2712_v56 = vrot.slane %v2711_v30, 2 }
0x2e46   :  { %v2713_v48 = vadd.f32 %v2712_v56, %v2711_v30 }
0x2e47   :  { %v2780_v30 = vpop.permute.xlu1 %2779 }
0x2e48   :  { %v2714_v43 = vrot.slane %v2713_v48, 1 }
0x2e4a   :  { %v2715_v6 = vadd.f32 %v2714_v43, %v2713_v48  ;;  %v2844_v48 = vrot.slane %v5619_v61, 3 }
0x2e4b   :  { %v2783_v56 = vpop.permute.xlu1 %2782 }
0x2e4c   :  { %4230 = vpush %v2715_v6 }
0x2e7d   :  { %s4231_s28 = spop %4230 }
0x2e7e   :  { %s2719_s27 = smul.f32 0.00390625, %s4231_s28 }
0x2e80   :  { %s2720_s22 = sadd.f32 1e-05, %s2719_s27 }
0x2e82   :  { %v2721_v25 = vstv %s2720_s22 }
0x2e83   :  { %4363 = vrsqrt.f32 %v2721_v25 }
0x2e90   :  { %v4364_v21 = vpop.eup %4363 }
0x2e91   :  { %4232 = vpush %v4364_v21 }
0x2e92   :  { %4234 = vpush %v2744_v16 }
0x2e93   :  { %4236 = vpush %v2750_v20 }
0x2e94   :  { %4238 = vpush %v2758_v42 }
0x2e95   :  { %4240 = vpush %v2766_v58 }
0x2e96   :  { %4242 = vpush %v2774_v44 }
0x2e97   :  { %4244 = vpush %v2780_v30 }
0x2e98   :  { %4246 = vpush %v2783_v56 }
0x2ec2   :  { %s4233_s2 = spop %4232 }
0x2ec3   :  { %v2724_v5 = vstv %s4233_s2  ;;  %s4235_s4 = spop %4234 }
0x2ec4   :  { %v2725_v49 = vmul.f32 %v2724_v5, %v2701_v1  ;;  %v2726_v40 = vmul.f32 %v2724_v5, %v2702_v2  ;;  %v2746_v35 = vstv %s4235_s4  ;;  %s4237_s15 = spop %4236 }
0x2ec5   :  { %v2747_v32 = vmul.f32 %v2746_v35, %v5537_v11  ;;  %v2748_v39 = vmul.f32 %v2746_v35, %v5539_v7  ;;  %v2752_v38 = vstv %s4237_s15  ;;  %s4239_s17 = spop %4238 }
0x2ec6   :  { %v5640_v8 = vmul.f32 %v2727_v34, %v2725_v49  ;;  %v5642_v60 = vmul.f32 %v2727_v34, %v2726_v40  ;;  %v2753_v26 = vmul.f32 %v2752_v38, %v5542_v55  ;;  %v2754_v36 = vmul.f32 %v2752_v38, %v5544_v51  ;;  %s4241_s16 = spop %4240 }
0x2ec7   :  { %v2760_v16 = vstv %s4239_s17  ;;  %v2768_v10 = vstv %s4241_s16  ;;  %s4243_s12 = spop %4242 }
0x2ec8   :  { %v2755_v22 = vadd.f32 %v2753_v26, %v2747_v32  ;;  %v2756_v9 = vadd.f32 %v2754_v36, %v2748_v39  ;;  %v2761_v4 = vmul.f32 %v2760_v16, %v5547_v54  ;;  %v2762_v27 = vmul.f32 %v2760_v16, %v5549_v28  ;;  %s5657_s6 = spop %4244 }
0x2ec9   :  { %v2769_v41 = vmul.f32 %v2768_v10, %v5566_v62  ;;  %v2770_v1 = vmul.f32 %v2768_v10, %v5568_v52  ;;  %v2776_v2 = vstv %s4243_s12  ;;  %s5659_s8 = spop %4246 }
0x2eca   :  { %v2763_v14 = vadd.f32 %v2761_v4, %v2755_v22  ;;  %v2764_v33 = vadd.f32 %v2762_v27, %v2756_v9 }
0x2ecc   :  { %v2771_v63 = vadd.f32 %v2769_v41, %v2763_v14  ;;  %v2772_v0 = vadd.f32 %v2770_v1, %v2764_v33  ;;  %v2827_v1 = vstv %s5657_s6 }
0x2ece   :  { %v2777_v12 = vadd.f32 %v2776_v2, %v2771_v63  ;;  %v2778_v59 = vadd.f32 %v2776_v2, %v2772_v0 }
0x2ed0   :  { %v2785_v57 = vsel %vm107_vm0, %v2777_v12, 0.0  ;;  %v2786_v23 = vsel %vm107_vm0, %v2778_v59, 0.0 }
0x2ed1   :  { %v2787_v31 = vadd.f32 %v2786_v23, %v2785_v57  ;;  %v2830_v23 = vstv %s5659_s8  ;;  %s6412_s8 = sld [smem:[#allocation11_spill]] }
0x2ed3   :  { %2788 = vadd.xlane.f32.xlu0 %v2787_v31 }
0x2ee9   :  { %2849 = vrot.lane.b32.xlu0 %v2844_v48, %s6399_s30 }
0x2eed   :  { %2865 = vrot.lane.b32.xlu0 %v2844_v48, %s6388_s26 }
0x2ef1   :  { %2873 = vrot.lane.b32.xlu0 %v5450_v47, %s6388_s26 }
0x2f5c   :  { %v2789_v43 = vpop.xlane.xlu0 %2788 }
0x2f5d   :  { %v2790_v6 = vrot.slane %v2789_v43, 4 }
0x2f5f   :  { %v2791_v25 = vadd.f32 %v2790_v6, %v2789_v43 }
0x2f60   :  { %v2850_v10 = vpop.permute.xlu0 %2849 }
0x2f61   :  { %v2792_v20 = vrot.slane %v2791_v25, 2 }
0x2f63   :  { %v2793_v58 = vadd.f32 %v2792_v20, %v2791_v25 }
0x2f64   :  { %v2866_v4 = vpop.permute.xlu0 %2865 }
0x2f65   :  { %v2794_v21 = vrot.slane %v2793_v58, 1 }
0x2f67   :  { %v2795_v42 = vadd.f32 %v2794_v21, %v2793_v58 }
0x2f69   :  { %4248 = vpush %v2795_v42 }
0x2f9a   :  { %s4249_s14 = spop %4248 }
0x2f9b   :  { %s2799_s11 = smul.f32 0.00390625, %s4249_s14 }
0x2f9d   :  { %v2800_v61 = vstv %s2799_s11 }
0x2f9e   :  { %v5661_v44 = vsub.f32 %v2777_v12, %v2800_v61  ;;  %v2802_v5 = vsub.f32 %v2778_v59, %v2800_v61 }
0x2fa0   :  { %v2803_v47 = vmul.f32 %v5661_v44, %v5661_v44  ;;  %v2804_v49 = vmul.f32 %v2802_v5, %v2802_v5 }
0x2fa2   :  { %v2805_v40 = vsel %vm107_vm0, %v2803_v47, 0.0  ;;  %v2806_v35 = vsel %vm107_vm0, %v2804_v49, 0.0  ;;  %v4389_v49 = vmov -1e+30  }
0x2fa3   :  { %v2807_v34 = vadd.f32 %v2806_v35, %v2805_v40  ;;  %78 = vst.msk [vmem:[#allocation7] sm:$0xff] %vm56_vm3, %v4389_v49  ;;  %80 = vst.msk [vmem:[#allocation7 + $0x10] sm:$0xff] %vm56_vm3, %v4389_v49  ;;  %v2730_v40 = vstv %s5628_s9 }
0x2fa4   :  { %79 = vst.msk [vmem:[#allocation7 + $0x8] sm:$0x3] %vm58_vm5, %v4389_v49  ;;  %81 = vst.msk [vmem:[#allocation7 + $0x18] sm:$0x3] %vm58_vm5, %v4389_v49  ;;  %v2731_v35 = vadd.f32 %v2730_v40, %v5640_v8 }
0x2fa5   :  { %2808 = vadd.xlane.f32.xlu1 %v2807_v34  ;;  %82 = vst.msk [vmem:[#allocation7 + $0x20] sm:$0xff] %vm56_vm3, %v4389_v49  ;;  %84 = vst.msk [vmem:[#allocation7 + $0x30] sm:$0xff] %vm56_vm3, %v4389_v49 }
0x2fa6   :  { %83 = vst.msk [vmem:[#allocation7 + $0x28] sm:$0x3] %vm58_vm5, %v4389_v49  ;;  %85 = vst.msk [vmem:[#allocation7 + $0x38] sm:$0x3] %vm58_vm5, %v4389_v49 }
0x2fa7   :  { %86 = vst.msk [vmem:[#allocation7 + $0x40] sm:$0xff] %vm56_vm3, %v4389_v49  ;;  %88 = vst.msk [vmem:[#allocation7 + $0x50] sm:$0xff] %vm56_vm3, %v4389_v49 }
0x2fa8   :  { %87 = vst.msk [vmem:[#allocation7 + $0x48] sm:$0x3] %vm58_vm5, %v4389_v49  ;;  %89 = vst.msk [vmem:[#allocation7 + $0x58] sm:$0x3] %vm58_vm5, %v4389_v49 }
0x2fa9   :  { %90 = vst.msk [vmem:[#allocation7 + $0x60] sm:$0xff] %vm56_vm3, %v4389_v49  ;;  %92 = vst.msk [vmem:[#allocation7 + $0x70] sm:$0xff] %vm56_vm3, %v4389_v49  ;;  %vm3613_vm3 = vcmask 293888  }
0x2faa   :  { %91 = vst.msk [vmem:[#allocation7 + $0x68] sm:$0x3] %vm58_vm5, %v4389_v49  ;;  %93 = vst.msk [vmem:[#allocation7 + $0x78] sm:$0x3] %vm58_vm5, %v4389_v49  ;;  %vm3797_vm5 = vcmask 31744  }
0x2fb6   :  { %2857 = vrot.lane.b32.xlu1 %v2844_v48, %s6390_s21 }
0x2fba   :  { %2879 = vrot.lane.b32.xlu1 %v5575_v24, %s6388_s26 }
0x2fbe   :  { %2882 = vrot.lane.b32.xlu1 %v5578_v17, %s6388_s26  ;;  %v2874_v17 = vpop.permute.xlu0 %2873 }
0x302e   :  { %v2809_v32 = vpop.xlane.xlu1 %2808 }
0x302f   :  { %v2810_v39 = vrot.slane %v2809_v32, 4 }
0x3031   :  { %v2811_v38 = vadd.f32 %v2810_v39, %v2809_v32  ;;  %v2732_v32 = vadd.f32 %v2730_v40, %v5642_v60 }
0x3032   :  { %v2858_v27 = vpop.permute.xlu1 %2857 }
0x3033   :  { %v2812_v26 = vrot.slane %v2811_v38, 2 }
0x3035   :  { %v2813_v36 = vadd.f32 %v2812_v26, %v2811_v38 }
0x3036   :  { %v2880_v47 = vpop.permute.xlu1 %2879 }
0x3037   :  { %v2814_v16 = vrot.slane %v2813_v36, 1 }
0x3039   :  { %v2815_v22 = vadd.f32 %v2814_v16, %v2813_v36 }
0x303b   :  { %4250 = vpush %v2815_v22 }
0x306c   :  { %s4251_s13 = spop %4250 }
0x306d   :  { %s2819_s0 = smul.f32 0.00390625, %s4251_s13  ;;  %s6419_s13 = sld [smem:[#allocation23_spill]] }
0x306f   :  { %s2820_s7 = sadd.f32 1e-05, %s2819_s0 }
0x3071   :  { %v2821_v9 = vstv %s2820_s7 }
0x3072   :  { %4365 = vrsqrt.f32 %v2821_v9 }
0x307f   :  { %v4366_v24 = vpop.eup %4365 }
0x3080   :  { %4252 = vpush %v4366_v24 }
0x3081   :  { %4254 = vpush %v2844_v48 }
0x3082   :  { %4256 = vpush %v2850_v10 }
0x3083   :  { %4258 = vpush %v2858_v27 }
0x3084   :  { %4260 = vpush %v2866_v4 }
0x3085   :  { %4262 = vpush %v2874_v17 }
0x3086   :  { %4264 = vpush %v2880_v47 }
0x30b1   :  { %s5672_s26 = spop %4252 }
0x30b2   :  { %v2824_v14 = vstv %s5672_s26  ;;  %s4255_s21 = spop %4254  ;;  %s6420_s26 = sld [smem:[#allocation24_spill]] }
0x30b3   :  { %v2826_v33 = vmul.f32 %v2824_v14, %v2802_v5  ;;  %v2846_v41 = vstv %s4255_s21  ;;  %s4257_s28 = spop %4256  ;;  %v2825_v34 = vmul.f32 %v2824_v14, %v5661_v44 }
0x30b4   :  { %v2847_v2 = vmul.f32 %v2846_v41, %v5537_v11  ;;  %v2848_v63 = vmul.f32 %v2846_v41, %v5539_v7  ;;  %v2852_v0 = vstv %s4257_s28  ;;  %s4259_s27 = spop %4258 }
0x30b5   :  { %v2829_v12 = vmul.f32 %v2827_v1, %v2826_v33  ;;  %v2853_v59 = vmul.f32 %v2852_v0, %v5542_v55  ;;  %v2854_v57 = vmul.f32 %v2852_v0, %v5544_v51  ;;  %s4261_s22 = spop %4260  ;;  %v2860_v31 = vstv %s4259_s27  ;;  %s4392_s27 = smov 47  }
0x30b6   :  { %v2868_v43 = vstv %s4261_s22  ;;  %v2861_v6 = vmul.f32 %v2860_v31, %v5547_v54  ;;  %v2862_v11 = vmul.f32 %v2860_v31, %v5549_v28  ;;  %s4263_s2 = spop %4262  ;;  %v2828_v39 = vmul.f32 %v2827_v1, %v2825_v34 }
0x30b7   :  { %v5681_v30 = vadd.f32 %v2830_v23, %v2829_v12  ;;  %v2855_v56 = vadd.f32 %v2853_v59, %v2847_v2  ;;  %v2856_v48 = vadd.f32 %v2854_v57, %v2848_v63  ;;  %v2869_v20 = vmul.f32 %v2868_v43, %v5566_v62  ;;  %s5751_s10 = spop %4264 }
0x30b8   :  { %v2870_v55 = vmul.f32 %v2868_v43, %v5568_v52  ;;  %v2876_v51 = vstv %s4263_s2  ;;  %v2632_v62 = vadd.f32 %v2631_v46, %v5601_v53  ;;  %v2883_v52 = vpop.permute.xlu1 %2882  ;;  %v2831_v38 = vadd.f32 %v2830_v23, %v2828_v39 }
0x30b9   :  { %v2863_v7 = vadd.f32 %v2861_v6, %v2855_v56  ;;  %v2864_v25 = vadd.f32 %v2862_v11, %v2856_v48  ;;  %4266 = vpush %v2883_v52 }
0x30bb   :  { %v2871_v58 = vadd.f32 %v2869_v20, %v2863_v7  ;;  %v2872_v21 = vadd.f32 %v2870_v55, %v2864_v25 }
0x30bd   :  { %v5687_v42 = vadd.f32 %v2876_v51, %v2871_v58  ;;  %v5689_v61 = vadd.f32 %v2876_v51, %v2872_v21 }
0x30bf   :  { %v2885_v5 = vsel %vm107_vm0, %v5687_v42, 0.0  ;;  %v2886_v54 = vsel %vm107_vm0, %v5689_v61, 0.0 }
0x30c0   :  { %v2887_v28 = vadd.f32 %v2886_v54, %v2885_v5 }
0x30c2   :  { %2888 = vadd.xlane.f32.xlu0 %v2887_v28 }
0x30d8   :  { %2636 = vrot.lane.b32.xlu0 %v2632_v62, %s6400_s20 }
0x30dc   :  { %2735 = vrot.lane.b32.xlu0 %v2731_v35, %s6400_s20 }
0x30e0   :  { %2737 = vrot.lane.b32.xlu0 %v2732_v32, %s6400_s20 }
0x30e4   :  { %2835 = vrot.lane.b32.xlu0 %v2831_v38, %s6400_s20 }
0x30ea   :  { %s5753_s9 = spop %4266 }
0x314b   :  { %v2889_v53 = vpop.xlane.xlu0 %2888 }
0x314c   :  { %v2890_v46 = vrot.slane %v2889_v53, 4 }
0x314e   :  { %v2891_v26 = vadd.f32 %v2890_v46, %v2889_v53 }
0x314f   :  { %v2637_v36 = vpop.permute.xlu0 %2636 }
0x3150   :  { %v2892_v16 = vrot.slane %v2891_v26, 2  ;;  %2642 = vst.msk [vmem:[#allocation7 + $0x1] sm:$0xff] %vm1784_vm12, %v2637_v36 }
0x3152   :  { %v2893_v8 = vadd.f32 %v2892_v16, %v2891_v26 }
0x3153   :  { %v2736_v22 = vpop.permute.xlu0 %2735 }
0x3154   :  { %2742 = vst.msk [vmem:[#allocation7 + $0x21] sm:$0xff] %vm1784_vm12, %v2736_v22  ;;  %v2894_v44 = vrot.slane %v2893_v8, 1 }
0x3156   :  { %v2895_v9 = vadd.f32 %v2894_v44, %v2893_v8 }
0x3157   :  { %v2738_v60 = vpop.permute.xlu0 %2737  ;;  %v5724_v10 = vld [vmem:[#allocation7] sm:$0xff]  ;;  %v5745_v41 = vld [vmem:[#allocation7 + $0x8] sm:$0x3] }
0x3158   :  { %2743 = vst.msk [vmem:[#allocation7 + $0x31] sm:$0xff] %vm1784_vm12, %v2738_v60  ;;  %v5728_v4 = vrot.slane %v5724_v10, 7  ;;  %v5841_v38 = vrot.slane %v5745_v41, 1  ;;  %v3013_v53 = vrot.slane %v5724_v10, 1 }
0x3159   :  { %4268 = vpush %v2895_v9 }
0x315a   :  { %2952 = vrot.lane.b32.xlu0 %v5728_v4, %s6400_s20  ;;  %v5850_v46 = vsel %vm3012_vm13, %v3013_v53, %v5841_v38 }
0x315b   :  { %v2836_v24 = vpop.permute.xlu0 %2835  ;;  %v5732_v27 = vld [vmem:[#allocation7 + $0x20] sm:$0xff]  ;;  %v5773_v48 = vld [vmem:[#allocation7 + $0x28] sm:$0x3] }
0x315c   :  { %2842 = vst.msk [vmem:[#allocation7 + $0x41] sm:$0xff] %vm1784_vm12, %v2836_v24  ;;  %v3089_v17 = vrot.slane %v5732_v27, 7 }
0x315e   :  { %3091 = vrot.lane.b32.xlu0 %v3089_v17, %s6400_s20 }
0x315f   :  { %v5800_v52 = vld [vmem:[#allocation7 + $0x30] sm:$0xff]  ;;  %v5820_v32 = vld [vmem:[#allocation7 + $0x38] sm:$0x3] }
0x3160   :  { %v5807_v40 = vrot.slane %v5800_v52, 7 }
0x3163   :  { %v5737_v14 = vld [vmem:[#allocation7 + $0x40] sm:$0xff]  ;;  %v5826_v39 = vld [vmem:[#allocation7 + $0x48] sm:$0x3] }
0x3164   :  { %v5740_v33 = vrot.slane %v5737_v14, 7 }
0x3166   :  { %3230 = vrot.lane.b32.xlu0 %v5740_v33, %s6400_s20 }
0x316a   :  { %3107 = vrot.lane.b32.xlu0 %v3089_v17, %s6399_s30 }
0x316e   :  { %2982 = vrot.lane.b32.xlu0 %v5745_v41, %s6400_s20 }
0x3172   :  { %3246 = vrot.lane.b32.xlu0 %v5740_v33, %s6399_s30 }
0x318a   :  { %s4269_s4 = spop %4268 }
0x318b   :  { %s2899_s15 = smul.f32 0.00390625, %s4269_s4 }
0x318d   :  { %v2900_v1 = vstv %s2899_s15 }
0x318e   :  { %v5756_v2 = vsub.f32 %v5687_v42, %v2900_v1  ;;  %v5759_v63 = vsub.f32 %v5689_v61, %v2900_v1 }
0x3190   :  { %v2903_v0 = vmul.f32 %v5756_v2, %v5756_v2  ;;  %v2904_v12 = vmul.f32 %v5759_v63, %v5759_v63 }
0x3192   :  { %v2905_v59 = vsel %vm107_vm0, %v2903_v0, 0.0  ;;  %v2906_v57 = vsel %vm107_vm0, %v2904_v12, 0.0 }
0x3193   :  { %v2907_v23 = vadd.f32 %v2906_v57, %v2905_v59 }
0x3195   :  { %2908 = vadd.xlane.f32.xlu1 %v2907_v23 }
0x31a6   :  { %2638 = vrot.lane.b32.xlu1 %v5608_v50, %s6400_s20 }
0x31aa   :  { %2837 = vrot.lane.b32.xlu1 %v5681_v30, %s6400_s20 }
0x31cc   :  { %v5771_v31 = vpop.permute.xlu0 %2952 }
0x31d0   :  { %v3092_v56 = vpop.permute.xlu0 %3091 }
0x31d1   :  { %v3097_v43 = vmax.f32 %v5732_v27, %v3092_v56  ;;  %v3098_v6 = vmax.f32 %v5773_v48, %v3092_v56  ;;  %v2927_v56 = vstv %s5751_s10  ;;  %s6415_s10 = sld [smem:[#allocation19_spill]] }
0x31d3   :  { %v5779_v7 = vmax.f32 %v3097_v43, %v3089_v17  ;;  %v5781_v25 = vmax.f32 %v3098_v6, %v3089_v17  ;;  %v2958_v43 = vmax.f32 %v5724_v10, %v5771_v31 }
0x31d8   :  { %v5777_v11 = vpop.permute.xlu0 %3230 }
0x31dc   :  { %v5783_v20 = vpop.permute.xlu0 %3107 }
0x31dd   :  { %v3113_v50 = vmax.f32 %v5779_v7, %v5783_v20  ;;  %v3114_v30 = vmax.f32 %v5781_v25, %v5783_v20  ;;  %v3237_v25 = vmax.f32 %v5826_v39, %v5777_v11  ;;  %v1319_v20 = vstv %s4847_s18 }
0x31e0   :  { %v2983_v9 = vpop.permute.xlu0 %2982 }
0x31e4   :  { %v5892_v60 = vpop.permute.xlu0 %3246 }
0x321e   :  { %v2909_v55 = vpop.xlane.xlu1 %2908 }
0x321f   :  { %v2910_v51 = vrot.slane %v2909_v55, 4 }
0x3221   :  { %v2911_v58 = vadd.f32 %v2910_v51, %v2909_v55 }
0x3222   :  { %v2639_v21 = vpop.permute.xlu1 %2638 }
0x3223   :  { %v2912_v42 = vrot.slane %v2911_v58, 2  ;;  %2643 = vst.msk [vmem:[#allocation7 + $0x11] sm:$0xff] %vm1784_vm12, %v2639_v21  ;;  %v2959_v21 = vmax.f32 %v5745_v41, %v5771_v31 }
0x3225   :  { %v2913_v61 = vadd.f32 %v2912_v42, %v2911_v58  ;;  %v2930_v58 = vstv %s5753_s9 }
0x3226   :  { %v2838_v5 = vpop.permute.xlu1 %2837 }
0x3227   :  { %v2914_v54 = vrot.slane %v2913_v61, 1  ;;  %2843 = vst.msk [vmem:[#allocation7 + $0x51] sm:$0xff] %vm1784_vm12, %v2838_v5  ;;  %v2964_v5 = vmax.f32 %v2958_v43, %v5728_v4 }
0x3229   :  { %v2915_v28 = vadd.f32 %v2914_v54, %v2913_v61 }
0x322a   :  { %v5791_v47 = vld [vmem:[#allocation7 + $0x18] sm:$0x3]  ;;  %v5793_v49 = vld [vmem:[#allocation7 + $0x10] sm:$0xff] }
0x322b   :  { %4270 = vpush %v2915_v28  ;;  %2986 = vrot.lane.b32.xlu0 %v5791_v47, %s6400_s20  ;;  %v5798_v62 = vrot.slane %v5793_v49, 7  ;;  %v5861_v26 = vrot.slane %v5791_v47, 1  ;;  %v3016_v36 = vrot.slane %v5793_v49, 1  ;;  %v2965_v28 = vmax.f32 %v2959_v21, %v5728_v4 }
0x322c   :  { %v3290_v21 = vrot.slane %v5737_v14, 1 }
0x322d   :  { %2954 = vrot.lane.b32.xlu1 %v5798_v62, %s6400_s20  ;;  %v5870_v16 = vsel %vm3012_vm13, %v3016_v36, %v5861_v26 }
0x322e   :  { %v5809_v35 = vld [vmem:[#allocation7 + $0x50] sm:$0xff]  ;;  %v5882_v22 = vld [vmem:[#allocation7 + $0x58] sm:$0x3] }
0x322f   :  { %3121 = vrot.lane.b32.xlu0 %v5773_v48, %s6400_s20  ;;  %v5816_v34 = vrot.slane %v5809_v35, 7 }
0x3231   :  { %3093 = vrot.lane.b32.xlu1 %v5807_v40, %s6400_s20 }
0x3233   :  { %2998 = vrot.lane.b32.xlu0 %v5745_v41, %s6399_s30  ;;  %v3243_v41 = vmax.f32 %v3237_v25, %v5740_v33 }
0x3235   :  { %3232 = vrot.lane.b32.xlu1 %v5816_v34, %s6400_s20 }
0x3237   :  { %3125 = vrot.lane.b32.xlu0 %v5820_v32, %s6400_s20 }
0x3239   :  { %2968 = vrot.lane.b32.xlu1 %v5728_v4, %s6399_s30 }
0x323b   :  { %3260 = vrot.lane.b32.xlu0 %v5826_v39, %s6400_s20 }
0x323d   :  { %2970 = vrot.lane.b32.xlu1 %v5798_v62, %s6399_s30 }
0x323f   :  { %3000 = vrot.lane.b32.xlu0 %v5793_v49, %s6399_s30 }
0x3241   :  { %2980 = vrot.lane.b32.xlu1 %v5724_v10, %s6400_s20 }
0x3243   :  { %3135 = vrot.lane.b32.xlu0 %v5732_v27, %s6399_s30 }
0x3245   :  { %3109 = vrot.lane.b32.xlu1 %v5807_v40, %s6399_s30 }
0x3247   :  { %3262 = vrot.lane.b32.xlu0 %v5809_v35, %s6400_s20 }
0x3249   :  { %2984 = vrot.lane.b32.xlu1 %v5793_v49, %s6400_s20 }
0x324b   :  { %3019 = vrot.lane.b32.xlu0 %v5850_v46, %s6400_s20 }
0x324d   :  { %3119 = vrot.lane.b32.xlu1 %v5732_v27, %s6400_s20 }
0x324f   :  { %3139 = vrot.lane.b32.xlu0 %v5800_v52, %s6399_s30 }
0x3251   :  { %3248 = vrot.lane.b32.xlu1 %v5816_v34, %s6399_s30 }
0x3253   :  { %3274 = vrot.lane.b32.xlu0 %v5737_v14, %s6399_s30 }
0x3255   :  { %2996 = vrot.lane.b32.xlu1 %v5724_v10, %s6399_s30  ;;  %v3151_v10 = vrot.slane %v5732_v27, 1 }
0x3257   :  { %3023 = vrot.lane.b32.xlu0 %v5870_v16, %s6400_s20 }
0x3259   :  { %3123 = vrot.lane.b32.xlu1 %v5800_v52, %s6400_s20 }
0x325c   :  { %s4271_s17 = spop %4270 }
0x325d   :  { %s2919_s16 = smul.f32 0.00390625, %s4271_s17  ;;  %3258 = vrot.lane.b32.xlu1 %v5737_v14, %s6400_s20 }
0x325f   :  { %s2920_s12 = sadd.f32 1e-05, %s2919_s16 }
0x3261   :  { %v2921_v8 = vstv %s2920_s12  ;;  %3002 = vrot.lane.b32.xlu1 %v5791_v47, %s6399_s30 }
0x3262   :  { %4367 = vrsqrt.f32 %v2921_v8 }
0x3265   :  { %3137 = vrot.lane.b32.xlu1 %v5773_v48, %s6399_s30 }
0x3269   :  { %3264 = vrot.lane.b32.xlu1 %v5882_v22, %s6400_s20 }
0x326d   :  { %3021 = vrot.lane.b32.xlu1 %v5841_v38, %s6400_s20 }
0x326f   :  { %v4368_v44 = vpop.eup %4367 }
0x3270   :  { %4272 = vpush %v4368_v44 }
0x3271   :  { %3141 = vrot.lane.b32.xlu1 %v5820_v32, %s6399_s30 }
0x3275   :  { %3276 = vrot.lane.b32.xlu1 %v5826_v39, %s6399_s30 }
0x329d   :  { %v2987_v24 = vpop.permute.xlu0 %2986 }
0x329f   :  { %v2955_v17 = vpop.permute.xlu1 %2954 }
0x32a0   :  { %v2960_v31 = vmax.f32 %v5793_v49, %v2955_v17  ;;  %v2961_v54 = vmax.f32 %v5791_v47, %v2955_v17 }
0x32a1   :  { %s4273_s6 = spop %4272  ;;  %v3122_v1 = vpop.permute.xlu0 %3121 }
0x32a2   :  { %v2924_v0 = vstv %s4273_s6  ;;  %v5897_v12 = vmax.f32 %v3114_v30, %v3122_v1  ;;  %v2966_v4 = vmax.f32 %v2960_v31, %v5798_v62  ;;  %v2967_v17 = vmax.f32 %v2961_v54, %v5798_v62 }
0x32a3   :  { %v2925_v59 = vmul.f32 %v2924_v0, %v5756_v2  ;;  %v2926_v57 = vmul.f32 %v2924_v0, %v5759_v63  ;;  %v3094_v23 = vpop.permute.xlu1 %3093  ;;  %v5914_v63 = vrot.slane %v5773_v48, 1  ;;  %v3253_v48 = vmax.f32 %v3243_v41, %v5892_v60 }
0x32a4   :  { %v5940_v1 = vrot.slane %v5820_v32, 1  ;;  %v3100_v62 = vmax.f32 %v5820_v32, %v3094_v23 }
0x32a5   :  { %v2928_v6 = vmul.f32 %v2927_v56, %v2925_v59  ;;  %v2929_v55 = vmul.f32 %v2927_v56, %v2926_v57  ;;  %v5904_v51 = vpop.permute.xlu0 %2998  ;;  %v5927_v8 = vsel %vm3012_vm13, %v3151_v10, %v5914_v63  ;;  %v3154_v56 = vrot.slane %v5800_v52, 1 }
0x32a6   :  { %v3106_v32 = vmax.f32 %v3100_v62, %v5807_v40 }
0x32a7   :  { %v2931_v30 = vadd.f32 %v2930_v58, %v2928_v6  ;;  %v2932_v2 = vadd.f32 %v2930_v58, %v2929_v55  ;;  %v5911_v42 = vpop.permute.xlu1 %3232  ;;  %v5954_v55 = vrot.slane %v5826_v39, 1 }
0x32a9   :  { %2937 = vrot.lane.b32.xlu1 %v2932_v2, %s6400_s20  ;;  %2935 = vrot.lane.b32.xlu0 %v2931_v30, %s6400_s20  ;;  %v3126_v61 = vpop.permute.xlu0 %3125  ;;  %v5961_v30 = vsel %vm3012_vm13, %v3154_v56, %v5940_v1 }
0x32ab   :  { %v2969_v53 = vpop.permute.xlu1 %2968 }
0x32ac   :  { %v2974_v36 = vmax.f32 %v2964_v5, %v2969_v53  ;;  %v2975_v27 = vmax.f32 %v2965_v28, %v2969_v53  ;;  %v3293_v5 = vrot.slane %v5809_v35, 1  ;;  %v3238_v53 = vmax.f32 %v5809_v35, %v5911_v42 }
0x32ad   :  { %3025 = vrot.lane.b32.xlu1 %v5861_v26, %s6400_s20  ;;  %3157 = vrot.lane.b32.xlu0 %v5927_v8, %s6400_s20  ;;  %v3261_v49 = vpop.permute.xlu0 %3260 }
0x32ae   :  { %v5933_v44 = vmax.f32 %v2975_v27, %v2983_v9  ;;  %v5935_v47 = vmax.f32 %v3253_v48, %v3261_v49  ;;  %v3099_v9 = vmax.f32 %v5800_v52, %v3094_v23  ;;  %v5974_v23 = vrot.slane %v5882_v22, 1 }
0x32af   :  { %v2971_v0 = vpop.permute.xlu1 %2970  ;;  %v6011_v49 = vmax.f32 %v3238_v53, %v5816_v34 }
0x32b0   :  { %v2976_v59 = vmax.f32 %v2966_v4, %v2971_v0  ;;  %v2977_v57 = vmax.f32 %v2967_v17, %v2971_v0  ;;  %v3105_v52 = vmax.f32 %v3099_v9, %v5807_v40  ;;  %6401 = vst [vmem:[#allocation14_spill] sm:$0xff] %v5974_v23  ;;  %v5989_v28 = vsel %vm3012_vm13, %v3293_v5, %v5974_v23 }
0x32b1   :  { %3159 = vrot.lane.b32.xlu1 %v5914_v63, %s6400_s20  ;;  %3278 = vrot.lane.b32.xlu0 %v5809_v35, %s6399_s30  ;;  %v5983_v40 = vpop.permute.xlu0 %3000  ;;  %6402 = vst [vmem:[#allocation15_spill] sm:$0xff] %v5989_v28  ;;  %v6403_v37 = vmax.f32 %v5933_v44, %v5904_v51 }
0x32b2   :  { %v5951_v6 = vmax.f32 %v2977_v57, %v2987_v24  ;;  %v5971_v24 = vsel %vm3012_vm13, %v3290_v21, %v5954_v55 }
0x32b3   :  { %v2981_v58 = vpop.permute.xlu1 %2980 }
0x32b4   :  { %v5957_v25 = vmax.f32 %v2974_v36, %v2981_v58 }
0x32b5   :  { %3280 = vrot.lane.b32.xlu1 %v5882_v22, %s6399_s30  ;;  %3161 = vrot.lane.b32.xlu0 %v5961_v30, %s6400_s20  ;;  %v6004_v27 = vpop.permute.xlu0 %3135 }
0x32b7   :  { %v3110_v39 = vpop.permute.xlu1 %3109 }
0x32b8   :  { %v3115_v2 = vmax.f32 %v3105_v52, %v3110_v39  ;;  %v3116_v10 = vmax.f32 %v3106_v32, %v3110_v39 }
0x32b9   :  { %3163 = vrot.lane.b32.xlu1 %v5940_v1, %s6400_s20  ;;  %3296 = vrot.lane.b32.xlu0 %v5971_v24, %s6400_s20 }
0x32ba   :  { %v5981_v41 = vmax.f32 %v3116_v10, %v3126_v61  ;;  %v3239_v61 = vmax.f32 %v5882_v22, %v5911_v42 }
0x32bb   :  { %v2985_v31 = vpop.permute.xlu1 %2984 }
0x32bc   :  { %v5985_v54 = vmax.f32 %v2976_v59, %v2985_v31  ;;  %v6014_v35 = vmax.f32 %v3239_v61, %v5816_v34  ;;  %v3236_v34 = vmax.f32 %v5737_v14, %v5777_v11 }
0x32bd   :  { %3298 = vrot.lane.b32.xlu1 %v5954_v55, %s6400_s20  ;;  %3300 = vrot.lane.b32.xlu0 %v5989_v28, %s6400_s20 }
0x32be   :  { %v3242_v0 = vmax.f32 %v3236_v34, %v5740_v33  ;;  %v3010_v43 = vmax.f32 %v5985_v54, %v5983_v40  ;;  %v1320_v40 = vmul.f32 %v1319_v20, %v4829_v3 }
0x32bf   :  { %v3120_v48 = vpop.permute.xlu1 %3119 }
0x32c0   :  { %v6002_v36 = vmax.f32 %v3113_v50, %v3120_v48  ;;  %v3252_v14 = vmax.f32 %v3242_v0, %v5892_v60  ;;  %v6055_v60 = vpop.permute.xlu0 %3262 }
0x32c1   :  { %3302 = vrot.lane.b32.xlu1 %v5974_v23, %s6400_s20  ;;  %3043 = vrot.lane.b32.xlu0 %v5850_v46, %s6399_s30 }
0x32c3   :  { %v6018_v7 = vpop.permute.xlu1 %3248 }
0x32c4   :  { %v3020_v9 = vpop.permute.xlu0 %3019 }
0x32c5   :  { %3045 = vrot.lane.b32.xlu1 %v5841_v38, %s6399_s30  ;;  %3047 = vrot.lane.b32.xlu0 %v5870_v16, %s6399_s30 }
0x32c7   :  { %v2997_v42 = vpop.permute.xlu1 %2996 }
0x32c8   :  { %v3008_v4 = vmax.f32 %v5957_v25, %v2997_v42  ;;  %v6061_v58 = vpop.permute.xlu0 %3139 }
0x32c9   :  { %3049 = vrot.lane.b32.xlu1 %v5861_v26, %s6399_s30  ;;  %3181 = vrot.lane.b32.xlu0 %v5927_v8, %s6399_s30 }
0x32ca   :  { %v3031_v22 = vmax.f32 %v3008_v4, %v3020_v9  ;;  %v1321_v4 = vmul.f32 %v1319_v20, %v4831_v45  ;;  %v1322_v45 = vstv %s4825_s24  ;;  %s4390_s24 = smov 15  }
0x32cb   :  { %v3124_v17 = vpop.permute.xlu1 %3123 }
0x32cc   :  { %v6036_v59 = vmax.f32 %v3115_v2, %v3124_v17  ;;  %v6063_v25 = vpop.permute.xlu0 %3274  ;;  %v3039_v51 = vmax.f32 %v3031_v22, %v5850_v46  ;;  %v6404_v46 = vmax.f32 %v6002_v36, %v6004_v27 }
0x32cd   :  { %3183 = vrot.lane.b32.xlu1 %v5914_v63, %s6399_s30  ;;  %3185 = vrot.lane.b32.xlu0 %v5961_v30, %s6399_s30 }
0x32ce   :  { %v3149_v36 = vmax.f32 %v6036_v59, %v6061_v58  ;;  %v1407_v58 = vstv %s4857_s23  ;;  %s4391_s23 = smov 31  }
0x32cf   :  { %v3259_v11 = vpop.permute.xlu1 %3258 }
0x32d0   :  { %v6043_v57 = vmax.f32 %v3252_v14, %v3259_v11  ;;  %v3024_v32 = vpop.permute.xlu0 %3023 }
0x32d1   :  { %3187 = vrot.lane.b32.xlu1 %v5940_v1, %s6399_s30  ;;  %3320 = vrot.lane.b32.xlu0 %v5971_v24, %s6399_s30  ;;  %v3033_v54 = vmax.f32 %v3010_v43, %v3024_v32  ;;  %v1325_v32 = vstv %s4827_s25 }
0x32d3   :  { %v3003_v33 = vpop.permute.xlu1 %3002 }
0x32d4   :  { %v3011_v9 = vmax.f32 %v5951_v6, %v3003_v33 }
0x32d5   :  { %3322 = vrot.lane.b32.xlu1 %v5954_v55, %s6399_s30  ;;  %3324 = vrot.lane.b32.xlu0 %v5989_v28, %s6399_s30 }
0x32d7   :  { %v6057_v56 = vpop.permute.xlu1 %3137 }
0x32d8   :  { %v3148_v3 = vmax.f32 %v5897_v12, %v6057_v56 }
0x32d9   :  { %3326 = vrot.lane.b32.xlu1 %v5974_v23, %s6399_s30 }
0x32db   :  { %v6059_v62 = vpop.permute.xlu1 %3264 }
0x32df   :  { %v3022_v21 = vpop.permute.xlu1 %3021 }
0x32e0   :  { %v3032_v13 = vmax.f32 %v6403_v37, %v3022_v21  ;;  %v1324_v21 = vmul.f32 %v1322_v45, %v1321_v4 }
0x32e2   :  { %v3040_v6 = vmax.f32 %v3032_v13, %v5841_v38  ;;  %v3041_v13 = vmax.f32 %v3033_v54, %v5870_v16  ;;  %v1404_v38 = vstv %s4881_s5  ;;  %s6411_s5 = sld [smem:[#allocation18_spill]] }
0x32e3   :  { %v6065_v52 = vpop.permute.xlu1 %3141 }
0x32e7   :  { %v6067_v39 = vpop.permute.xlu1 %3276 }
0x331b   :  { %v2938_v2 = vpop.permute.xlu1 %2937  ;;  %v2936_v10 = vpop.permute.xlu0 %2935 }
0x331c   :  { %2943 = vst.msk [vmem:[#allocation7 + $0x71] sm:$0xff] %vm1784_vm12, %v2938_v2  ;;  %2942 = vst.msk [vmem:[#allocation7 + $0x61] sm:$0xff] %vm1784_vm12, %v2936_v10 }
0x331f   :  { %v3026_v5 = vpop.permute.xlu1 %3025  ;;  %v3158_v31 = vpop.permute.xlu0 %3157 }
0x3320   :  { %v3034_v37 = vmax.f32 %v3011_v9, %v3026_v5  ;;  %v3169_v43 = vmax.f32 %v6404_v46, %v3158_v31  ;;  %v6140_v5 = vmul.f32 %v1322_v45, %v1320_v40  ;;  %v1327_v9 = vadd.f32 %v1325_v32, %v1324_v21 }
0x3321   :  { %v3150_v40 = vmax.f32 %v5981_v41, %v6065_v52  ;;  %v1406_v41 = vmul.f32 %v1404_v38, %v4865_v29 }
0x3322   :  { %v3042_v27 = vmax.f32 %v3034_v37, %v5861_v26 }
0x3323   :  { %v3160_v53 = vpop.permute.xlu1 %3159  ;;  %v6071_v61 = vpop.permute.xlu0 %3278  ;;  %v6073_v48 = vld [vmem:[#allocation7 + $0x68] sm:$0x3]  ;;  %v6075_v42 = vld [vmem:[#allocation7 + $0x60] sm:$0xff]  ;;  %v6083_v0 = vld [vmem:[#allocation7 + $0x78] sm:$0x3] }
0x3324   :  { %3399 = vrot.lane.b32.xlu1 %v6073_v48, %s6400_s20  ;;  %3397 = vrot.lane.b32.xlu0 %v6075_v42, %s6400_s20  ;;  %v6085_v14 = vld [vmem:[#allocation7 + $0x70] sm:$0xff]  ;;  %v6117_v28 = vrot.slane %v6075_v42, 7  ;;  %v6132_v33 = vrot.slane %v6073_v48, 1  ;;  %v3170_v12 = vmax.f32 %v3148_v3, %v3160_v53  ;;  %v6152_v16 = vrot.slane %v6083_v0, 1 }
0x3325   :  { %v6114_v23 = vrot.slane %v6085_v14, 7  ;;  %v3177_v53 = vmax.f32 %v3169_v43, %v5927_v8  ;;  %v3429_v59 = vrot.slane %v6075_v42, 1  ;;  %v6405_v8 = vmax.f32 %v6011_v49, %v6018_v7 }
0x3326   :  { %v3287_v43 = vmax.f32 %v5935_v47, %v6067_v39  ;;  %v1409_v47 = vmul.f32 %v1407_v58, %v1406_v41  ;;  %v6406_v39 = vmax.f32 %v6014_v35, %v6018_v7  ;;  %v6408_v41 = vld [vmem:[#allocation10_spill] sm:$0xff] }
0x3327   :  { %v6081_v34 = vpop.permute.xlu1 %3280  ;;  %v3162_v17 = vpop.permute.xlu0 %3161  ;;  %v3272_v52 = vmax.f32 %v6405_v8, %v6055_v60  ;;  %v6184_v49 = vsel %vm3012_vm13, %v3429_v59, %v6132_v33  ;;  %v6407_v59 = vld [vmem:[#allocation9_spill] sm:$0xff] }
0x3328   :  { %3403 = vrot.lane.b32.xlu1 %v6083_v0, %s6400_s20  ;;  %3401 = vrot.lane.b32.xlu0 %v6085_v14, %s6400_s20  ;;  %v3171_v26 = vmax.f32 %v3149_v36, %v3162_v17  ;;  %v3286_v17 = vmax.f32 %v6043_v57, %v6063_v25  ;;  %v3432_v57 = vrot.slane %v6085_v14, 1 }
0x332a   :  { %v6208_v7 = vsel %vm3012_vm13, %v3432_v57, %v6152_v16 }
0x332b   :  { %v6091_v11 = vpop.permute.xlu1 %3163  ;;  %v6093_v2 = vpop.permute.xlu0 %3296 }
0x332c   :  { %3415 = vrot.lane.b32.xlu1 %v6073_v48, %s6399_s30  ;;  %3413 = vrot.lane.b32.xlu0 %v6075_v42, %s6399_s30  ;;  %v3308_v29 = vmax.f32 %v3286_v17, %v6093_v2  ;;  %v3273_v2 = vmax.f32 %v6406_v39, %v6059_v62  ;;  %v3509_v39 = vld [vmem:[%s6411_s5 + $0x38] sm:$0xff] }
0x332d   :  { %3939 = vmatprep.subr.mxu1 %v3509_v39 }
0x332e   :  { %3940 = vmatpush3.msra.mxu1 %v3509_v39  ;;  %v3504_v39 = vld [vmem:[%s6411_s5 + $0x10] sm:$0xff] }
0x332f   :  { %v6099_v10 = vpop.permute.xlu1 %3298  ;;  %v6101_v50 = vpop.permute.xlu0 %3300 }
0x3330   :  { %3419 = vrot.lane.b32.xlu1 %v6083_v0, %s6399_s30  ;;  %3417 = vrot.lane.b32.xlu0 %v6085_v14, %s6399_s30 }
0x3333   :  { %v6121_v19 = vpop.permute.xlu1 %3302  ;;  %v3044_v15 = vpop.permute.xlu0 %3043 }
0x3334   :  { %3387 = vrot.lane.b32.xlu1 %v6114_v23, %s6399_s30  ;;  %3369 = vrot.lane.b32.xlu0 %v6117_v28, %s6400_s20  ;;  %v3055_v44 = vmax.f32 %v3039_v51, %v3044_v15 }
0x3336   :  { %v3063_v56 = vrot.slane %v3055_v44, 1  ;;  %v3178_v44 = vmax.f32 %v3170_v12, %v5914_v63  ;;  %v1489_v63 = vstv %s4911_s19 }
0x3337   :  { %v3046_v22 = vpop.permute.xlu1 %3045  ;;  %v3048_v20 = vpop.permute.xlu0 %3047  ;;  %v1491_v8 = vmul.f32 %v1489_v63, %v6408_v41 }
0x3338   :  { %v3056_v15 = vmax.f32 %v3040_v6, %v3046_v22  ;;  %3437 = vrot.lane.b32.xlu1 %v6132_v33, %s6400_s20  ;;  %3371 = vrot.lane.b32.xlu0 %v6114_v23, %s6400_s20  ;;  %v3057_v4 = vmax.f32 %v3041_v13, %v3048_v20  ;;  %v3172_v6 = vmax.f32 %v3150_v40, %v6091_v11 }
0x3339   :  { %v3179_v11 = vmax.f32 %v3171_v26, %v5961_v30  ;;  %v3309_v13 = vmax.f32 %v3287_v43, %v6099_v10  ;;  %v3316_v40 = vmax.f32 %v3308_v29, %v5971_v24  ;;  %v1405_v26 = vmul.f32 %v1404_v38, %v6407_v59  ;;  %v6410_v29 = vld [vmem:[#allocation14_spill] sm:$0xff] }
0x333a   :  { %v3064_v31 = vrot.slane %v3056_v15, 1  ;;  %v3066_v21 = vrot.slane %v3057_v4, 1  ;;  %v3288_v15 = vmax.f32 %v3272_v52, %v6071_v61 }
0x333b   :  { %v3050_v54 = vpop.permute.xlu1 %3049  ;;  %v3182_v51 = vpop.permute.xlu0 %3181 }
0x333c   :  { %v6162_v37 = vsel %vm3012_vm13, %v3063_v56, %v3064_v31  ;;  %v3058_v45 = vmax.f32 %v3042_v27, %v3050_v54  ;;  %3441 = vrot.lane.b32.xlu1 %v6152_v16, %s6400_s20  ;;  %3385 = vrot.lane.b32.xlu0 %v6117_v28, %s6399_s30  ;;  %v3193_v46 = vmax.f32 %v3177_v53, %v3182_v51 }
0x333d   :  { %v3180_v27 = vmax.f32 %v3172_v6, %v5940_v1  ;;  %v1490_v56 = vmul.f32 %v1489_v63, %v4897_v18  ;;  %v3289_v31 = vmax.f32 %v3273_v2, %v6081_v34  ;;  %v3310_v62 = vmax.f32 %v3288_v15, %v6101_v50 }
0x333e   :  { %v3067_v3 = vrot.slane %v3058_v45, 1  ;;  %v3201_v12 = vrot.slane %v3193_v46, 1  ;;  %v1410_v18 = vstv %s4859_s3  ;;  %v1492_v1 = vstv %s4891_s29 }
0x333f   :  { %v3184_v22 = vpop.permute.xlu1 %3183  ;;  %v3186_v20 = vpop.permute.xlu0 %3185  ;;  %v3311_v24 = vmax.f32 %v3289_v31, %v6121_v19  ;;  %v3317_v34 = vmax.f32 %v3309_v13, %v5954_v55  ;;  %v1412_v45 = vadd.f32 %v1410_v18, %v1409_v47  ;;  %v1493_v52 = vmul.f32 %v1492_v1, %v1490_v56  ;;  %v6409_v55 = vld [vmem:[#allocation15_spill] sm:$0xff] }
0x3340   :  { %v3068_v60 = vsel %vm3012_vm13, %v3066_v21, %v3067_v3  ;;  %v3194_v25 = vmax.f32 %v3178_v44, %v3184_v22  ;;  %3461 = vrot.lane.b32.xlu1 %v6132_v33, %s6399_s30  ;;  %3435 = vrot.lane.b32.xlu0 %v6184_v49, %s6400_s20  ;;  %v3195_v36 = vmax.f32 %v3179_v11, %v3186_v20 }
0x3341   :  { %v3072_v54 = vadd.f32 %v3068_v60, %v1327_v9  ;;  %v3318_v21 = vmax.f32 %v3310_v62, %v6409_v55  ;;  %v1495_v9 = vstv %s4893_s1  ;;  %v3319_v22 = vmax.f32 %v3311_v24, %v6410_v29 }
0x3342   :  { %v3202_v30 = vrot.slane %v3194_v25, 1  ;;  %v3204_v53 = vrot.slane %v3195_v36, 1  ;;  %v1326_v20 = vadd.f32 %v1325_v32, %v6140_v5  ;;  %v1494_v57 = vmul.f32 %v1492_v1, %v1491_v8  ;;  %v3508_v32 = vld [vmem:[%s6411_s5 + $0x30] sm:$0xff] }
0x3343   :  { %v3188_v4 = vpop.permute.xlu1 %3187  ;;  %v3321_v35 = vpop.permute.xlu0 %3320  ;;  %v1496_v63 = vadd.f32 %v1495_v9, %v1493_v52  ;;  %v1408_v25 = vmul.f32 %v1407_v58, %v1405_v26  ;;  %3941 = vmatprep.subr.mxu1 %v3508_v32 }
0x3344   :  { %v3203_v61 = vsel %vm3012_vm13, %v3201_v12, %v3202_v30  ;;  %v3196_v10 = vmax.f32 %v3180_v27, %v3188_v4  ;;  %3465 = vrot.lane.b32.xlu1 %v6152_v16, %s6399_s30  ;;  %3439 = vrot.lane.b32.xlu0 %v6208_v7, %s6400_s20  ;;  %v3332_v50 = vmax.f32 %v3316_v40, %v3321_v35 }
0x3345   :  { %v3071_v58 = vadd.f32 %v6162_v37, %v1326_v20  ;;  %v1497_v13 = vadd.f32 %v1495_v9, %v1494_v57  ;;  %v1411_v12 = vadd.f32 %v1410_v18, %v1408_v25  ;;  %3942 = vmatpush3.msra.mxu1 %v3508_v32 }
0x3346   :  { %v3205_v51 = vrot.slane %v3196_v10, 1  ;;  %v3340_v3 = vrot.slane %v3332_v50, 1 }
0x3347   :  { %v3323_v17 = vpop.permute.xlu1 %3322  ;;  %v3325_v44 = vpop.permute.xlu0 %3324  ;;  %v3209_v27 = vadd.f32 %v3203_v61, %v1411_v12  ;;  %v3502_v12 = vld [vmem:[%s6411_s5] sm:$0xff] }
0x3348   :  { %v3206_v19 = vsel %vm3012_vm13, %v3204_v53, %v3205_v51  ;;  %v3333_v6 = vmax.f32 %v3317_v34, %v3323_v17  ;;  %3459 = vrot.lane.b32.xlu0 %v6184_v49, %s6399_s30  ;;  %3079 = vrot.lane.b32.xlu1 %v3072_v54, %s6399_s30  ;;  %v3334_v43 = vmax.f32 %v3318_v21, %v3325_v44 }
0x3349   :  { %v3210_v38 = vadd.f32 %v3206_v19, %v1412_v45 }
0x334a   :  { %v3341_v46 = vrot.slane %v3333_v6, 1  ;;  %v3343_v2 = vrot.slane %v3334_v43, 1  ;;  %v3506_v43 = vld [vmem:[%s6411_s5 + $0x20] sm:$0xff] }
0x334b   :  { %v3327_v60 = vpop.permute.xlu1 %3326 }
0x334c   :  { %v3342_v11 = vsel %vm3012_vm13, %v3340_v3, %v3341_v46  ;;  %v3335_v47 = vmax.f32 %v3319_v22, %v3327_v60  ;;  %3463 = vrot.lane.b32.xlu0 %v6208_v7, %s6399_s30  ;;  %3218 = vrot.lane.b32.xlu1 %v3210_v38, %s4390_s24 }
0x334d   :  { %v3348_v5 = vadd.f32 %v3342_v11, %v1496_v63 }
0x334e   :  { %v3344_v15 = vrot.slane %v3335_v47, 1  ;;  %v3505_v47 = vld [vmem:[%s6411_s5 + $0x18] sm:$0xff] }
0x3350   :  { %v3345_v30 = vsel %vm3012_vm13, %v3343_v2, %v3344_v15  ;;  %3074 = vrot.lane.b32.xlu0 %v3071_v58, %s6399_s30 }
0x3351   :  { %v3349_v36 = vadd.f32 %v3345_v30, %v1497_v13  ;;  %v6413_v30 = vld [vmem:[#allocation12_spill] sm:$0xff] }
0x3353   :  { %3357 = vrot.lane.b32.xlu1 %v3349_v36, %s4391_s23 }
0x3354   :  { %3212 = vrot.lane.b32.xlu0 %v3209_v27, %s4390_s24 }
0x3358   :  { %3351 = vrot.lane.b32.xlu0 %v3348_v5, %s4391_s23  ;;  %s6417_s23 = sld [smem:[#allocation21_spill]] }
0x3396   :  { %v3400_v56 = vpop.permute.xlu1 %3399  ;;  %v3398_v31 = vpop.permute.xlu0 %3397 }
0x339a   :  { %v3404_v37 = vpop.permute.xlu1 %3403  ;;  %v3402_v4 = vpop.permute.xlu0 %3401 }
0x339e   :  { %v3416_v40 = vpop.permute.xlu1 %3415  ;;  %v3414_v35 = vpop.permute.xlu0 %3413 }
0x33a2   :  { %v3420_v62 = vpop.permute.xlu1 %3419  ;;  %v3418_v10 = vpop.permute.xlu0 %3417 }
0x33a6   :  { %v3388_v18 = vpop.permute.xlu1 %3387  ;;  %v3370_v1 = vpop.permute.xlu0 %3369 }
0x33a7   :  { %v3375_v24 = vmax.f32 %v6075_v42, %v3370_v1  ;;  %v3376_v34 = vmax.f32 %v6073_v48, %v3370_v1 }
0x33a9   :  { %v3381_v26 = vmax.f32 %v3375_v24, %v6117_v28  ;;  %v3382_v45 = vmax.f32 %v3376_v34, %v6117_v28  ;;  %v3507_v28 = vld [vmem:[%s6411_s5 + $0x28] sm:$0xff] }
0x33aa   :  { %v3438_v54 = vpop.permute.xlu1 %3437  ;;  %v3372_v61 = vpop.permute.xlu0 %3371  ;;  %3943 = vmatprep.subr.mxu1 %v3507_v28 }
0x33ab   :  { %v3377_v53 = vmax.f32 %v6085_v14, %v3372_v61  ;;  %v3378_v51 = vmax.f32 %v6083_v0, %v3372_v61  ;;  %3944 = vmatpush3.msra.mxu1 %v3507_v28  ;;  %v3822_v28 = vld [vmem:[%s6419_s13] ss:$0 sm:$0xff] }
0x33ac   :  { %3945 = vmatprep.subr.mxu1 %v3506_v43 }
0x33ad   :  { %v3383_v50 = vmax.f32 %v3377_v53, %v6114_v23  ;;  %v3384_v59 = vmax.f32 %v3378_v51, %v6114_v23  ;;  %3946 = vmatpush3.msra.mxu1 %v3506_v43 }
0x33ae   :  { %v3442_v41 = vpop.permute.xlu1 %3441  ;;  %v3386_v8 = vpop.permute.xlu0 %3385  ;;  %3947 = vmatprep.subr.mxu1 %v3505_v47 }
0x33af   :  { %v3393_v52 = vmax.f32 %v3383_v50, %v3388_v18  ;;  %v3394_v42 = vmax.f32 %v3384_v59, %v3388_v18  ;;  %v3391_v17 = vmax.f32 %v3381_v26, %v3386_v8  ;;  %v3392_v48 = vmax.f32 %v3382_v45, %v3386_v8  ;;  %3948 = vmatpush3.msra.mxu1 %v3505_v47  ;;  %v3605_v18 = vld [vmem:[%s6415_s10 + $0x20] sm:$0xf]  ;;  %v3604_v26 = vld [vmem:[%s6415_s10 + $0x18] sm:$0xff]  ;;  %v3603_v45 = vld [vmem:[%s6415_s10 + $0x10] sm:$0xff] }
0x33b0   :  { %3949 = vmatprep.subr.mxu1 %v3504_v39  ;;  %3958 = vmatprep.subr.msk.mxu0 %vm3620_vm15, %v3605_v18  ;;  %v3601_v8 = vld [vmem:[%s6415_s10] sm:$0xff] }
0x33b1   :  { %v3412_v44 = vmax.f32 %v3394_v42, %v3404_v37  ;;  %v3409_v19 = vmax.f32 %v3391_v17, %v3398_v31  ;;  %v3410_v6 = vmax.f32 %v3392_v48, %v3400_v56  ;;  %v3411_v38 = vmax.f32 %v3393_v52, %v3402_v4  ;;  %3950 = vmatpush3.msra.mxu1 %v3504_v39 }
0x33b2   :  { %v3462_v14 = vpop.permute.xlu1 %3461  ;;  %v3436_v55 = vpop.permute.xlu0 %3435  ;;  %3959 = vmatpush3.msk.msra.mxu0 %vm3620_vm15, %v3605_v18 }
0x33b3   :  { %v3428_v0 = vmax.f32 %v3412_v44, %v3420_v62  ;;  %v3426_v21 = vmax.f32 %v3410_v6, %v3416_v40  ;;  %v3425_v9 = vmax.f32 %v3409_v19, %v3414_v35  ;;  %v3427_v57 = vmax.f32 %v3411_v38, %v3418_v10  ;;  %v6414_v35 = vld [vmem:[#allocation13_spill] sm:$0xff]  ;;  %3960 = vmatprep.subr.mxu0 %v3604_v26 }
0x33b4   :  { %3961 = vmatpush3.msra.mxu0 %v3604_v26 }
0x33b5   :  { %v3450_v23 = vmax.f32 %v3428_v0, %v3442_v41  ;;  %v3448_v3 = vmax.f32 %v3426_v21, %v3438_v54  ;;  %v3447_v46 = vmax.f32 %v3425_v9, %v3436_v55  ;;  %v3602_v41 = vld [vmem:[%s6415_s10 + $0x8] sm:$0xff]  ;;  %3962 = vmatprep.subr.mxu0 %v3603_v45  ;;  %v3701_v55 = vld [vmem:[%s6417_s23] sm:$0xff] }
0x33b6   :  { %v3466_v29 = vpop.permute.xlu1 %3465  ;;  %v3440_v22 = vpop.permute.xlu0 %3439  ;;  %3963 = vmatpush3.msra.mxu0 %v3603_v45 }
0x33b7   :  { %v3456_v20 = vmax.f32 %v3448_v3, %v6132_v33  ;;  %v3458_v60 = vmax.f32 %v3450_v23, %v6152_v16  ;;  %v3449_v25 = vmax.f32 %v3427_v57, %v3440_v22  ;;  %v3455_v11 = vmax.f32 %v3447_v46, %v6184_v49  ;;  %v3503_v16 = vld [vmem:[%s6411_s5 + $0x8] sm:$0xff]  ;;  %3964 = vmatprep.subr.mxu0 %v3602_v41  ;;  %s6416_s5 = sld [smem:[#allocation20_spill]] }
0x33b8   :  { %v1580_v49 = vstv %s6412_s8  ;;  %3951 = vmatprep.subr.mxu1 %v3503_v16  ;;  %3965 = vmatpush3.msra.mxu0 %v3602_v41  ;;  %s6418_s8 = sld [smem:[#allocation22_spill]] }
0x33b9   :  { %v3472_v63 = vmax.f32 %v3456_v20, %v3462_v14  ;;  %v3474_v2 = vmax.f32 %v3458_v60, %v3466_v29  ;;  %v3457_v13 = vmax.f32 %v3449_v25, %v6208_v7  ;;  %v1581_v36 = vadd.f32 %v1580_v49, %v6413_v30  ;;  %3952 = vmatpush3.msra.mxu1 %v3503_v16  ;;  %v3702_v14 = vld [vmem:[%s6417_s23 + $0x8] sm:$0xf] }
0x33ba   :  { %v3080_v33 = vpop.permute.xlu1 %3079  ;;  %v3460_v32 = vpop.permute.xlu0 %3459  ;;  %3953 = vmatprep.subr.mxu1 %v3502_v12  ;;  %v1582_v62 = vadd.f32 %v1580_v49, %v6414_v35  ;;  %3966 = vmatprep.subr.mxu0 %v3601_v8 }
0x33bb   :  { %3082 = vst.msk [vmem:[#allocation8 + $0x8] sm:$0xff] %vm107_vm0, %v3080_v33  ;;  %v3471_v5 = vmax.f32 %v3455_v11, %v3460_v32  ;;  %v3480_v58 = vrot.slane %v3472_v63, 1  ;;  %v3483_v40 = vrot.slane %v3474_v2, 1  ;;  %3954 = vmatpush3.msra.mxu1 %v3502_v12  ;;  %3967 = vmatpush3.msra.mxu0 %v3601_v8 }
0x33bc   :  { %3971 = vmatprep.subr.msk.mxu0 %vm3620_vm15, %v3702_v14 }
0x33bd   :  { %v3479_v15 = vrot.slane %v3471_v5, 1  ;;  %v3815_v52 = vld [vmem:[%s6416_s5] ss:$0 sm:$0xff] }
0x33be   :  { %v3219_v27 = vpop.permute.xlu1 %3218  ;;  %v3464_v56 = vpop.permute.xlu0 %3463  ;;  %v3818_v0 = vld [vmem:[%s6418_s8] ss:$0 sm:$0xff] }
0x33bf   :  { %v3481_v31 = vsel %vm3012_vm13, %v3479_v15, %v3480_v58  ;;  %3221 = vst.msk [vmem:[#allocation8 + $0x8] sm:$0xff] %vm3215_vm14, %v3219_v27  ;;  %v3473_v37 = vmax.f32 %v3457_v13, %v3464_v56 }
0x33c0   :  { %v3487_v4 = vadd.f32 %v3481_v31, %v1581_v36 }
0x33c1   :  { %v3482_v7 = vrot.slane %v3473_v37, 1 }
0x33c2   :  { %3490 = vrot.lane.b32.xlu0 %v3487_v4, %s4392_s27  ;;  %v3075_v10 = vpop.permute.xlu0 %3074 }
0x33c3   :  { %v3484_v1 = vsel %vm3012_vm13, %v3482_v7, %v3483_v40  ;;  %3077 = vst.msk [vmem:[#allocation8] sm:$0xff] %vm107_vm0, %v3075_v10  ;;  %vm3517_vm0 = vcmask 523264  }
0x33c4   :  { %v3488_v24 = vadd.f32 %v3484_v1, %v1582_v62 }
0x33c5   :  { %v3358_v34 = vpop.permute.xlu1 %3357 }
0x33c6   :  { %3360 = vst.msk [vmem:[#allocation8 + $0x8] sm:$0xff] %vm3354_vm1, %v3358_v34  ;;  %3496 = vrot.lane.b32.xlu1 %v3488_v24, %s4392_s27  ;;  %v3213_v54 = vpop.permute.xlu0 %3212 }
0x33c7   :  { %3216 = vst.msk [vmem:[#allocation8] sm:$0xff] %vm3215_vm14, %v3213_v54 }
0x33ca   :  { %v3352_v61 = vpop.permute.xlu0 %3351 }
0x33cb   :  { %3355 = vst.msk [vmem:[#allocation8] sm:$0xff] %vm3354_vm1, %v3352_v61 }
0x3434   :  { %v3491_v53 = vpop.permute.xlu0 %3490 }
0x3435   :  { %3494 = vst.msk [vmem:[#allocation8] sm:$0xff] %vm3493_vm2, %v3491_v53 }
0x3438   :  { %v3497_v51 = vpop.permute.xlu1 %3496 }
0x3439   :  { %3499 = vst.msk [vmem:[#allocation8 + $0x8] sm:$0xff] %vm3493_vm2, %v3497_v51 }
0x343c   :  { %v3500_v50 = vld [vmem:[#allocation8] sm:$0xff] }
0x343d   :  { %3955 = vmatprep.mubr.msk.f32.mxu1 %vm3517_vm0, %v3500_v50 }
0x3440   :  { %v3501_v59 = vld [vmem:[#allocation8 + $0x8] sm:$0xff] }
0x3441   :  { %3956 = vmatmul.mubr.msk.f32.vlgmr.msra.gmra.mxu1 %vm3517_vm0, %v3501_v59 }
0x3501   :  { %v3957_v42 = vpop.f32.mrf.mxu1 }
0x3502   :  { %v3596_v17 = vadd.f32 %v3957_v42, %v3815_v52 }
0x3503   :  { %v3590_v48 = vpop.f32.mrf.mxu1 }
0x3504   :  { %v3591_v44 = vadd.f32 %v3815_v52, %v3590_v48  ;;  %v3600_v6 = vmax.f32 %v3596_v17, 0.0 }
0x3506   :  { %v3599_v19 = vmax.f32 %v3591_v44, 0.0 }
0x3508   :  { %3968 = vmatprep.mubr.msk.f32.mxu0 %vm3613_vm3, %v3599_v19 }
0x3509   :  { %3969 = vmatmul.mubr.msk.f32.vlgmr.msra.gmra.mxu0 %vm3613_vm3, %v3600_v6 }
0x350a   :  { %3972 = vmatpush3.msk.msra.mxu0 %vm3620_vm15, %v3702_v14 }
0x350b   :  { %3973 = vmatprep.subr.mxu0 %v3701_v55 }
0x350c   :  { %3974 = vmatpush3.msra.mxu0 %v3701_v55 }
0x35c9   :  { %v3970_v21 = vpop.f32.mrf.mxu0 }
0x35ca   :  { %v3696_v9 = vadd.f32 %v3970_v21, %v3818_v0 }
0x35cb   :  { %v3690_v38 = vpop.f32.mrf.mxu0 }
0x35cc   :  { %v3691_v23 = vadd.f32 %v3818_v0, %v3690_v38  ;;  %v3700_v46 = vmax.f32 %v3696_v9, 0.0 }
0x35ce   :  { %v3699_v3 = vmax.f32 %v3691_v23, 0.0 }
0x35d0   :  { %3975 = vmatprep.mubr.msk.f32.mxu0 %vm3710_vm4, %v3699_v3 }
0x35d1   :  { %3976 = vmatmul.mubr.msk.f32.vlgmr.msra.gmra.mxu0 %vm3710_vm4, %v3700_v46 }
0x3691   :  { %v3977_v43 = vpop.f32.mrf.mxu0 }
0x3692   :  { %v3792_v29 = vadd.f32 %v3977_v43, %v3822_v28 }
0x3693   :  { %v3786_v22 = vpop.f32.mrf.mxu0 }
0x3694   :  { %v3796_v20 = vmax.f32 %v3792_v29, 0.0  ;;  %v3787_v57 = vadd.f32 %v3822_v28, %v3786_v22 }
0x3696   :  { %3826 = vst.msk [vmem:[%s6420_s26 + $0x8] sm:$0xff] %vm3797_vm5, %v3796_v20  ;;  %v3795_v63 = vmax.f32 %v3787_v57, 0.0 }
0x3698   :  { %3798 = vst.msk [vmem:[%s6420_s26] sm:$0xff] %vm3797_vm5, %v3795_v63 }

</bundles_post_ra>
